<compile_context>
chip_gen: v6e
topology: v6e:2x2x1
jax: 0.10.0
libtpu: 0.0.40
codegen_flags: <defaults>
</compile_context>

<pallas_src>
import math
import functools

import jax
import jax.numpy as jnp
from jax.experimental import pallas as pl
from jax.experimental.pallas import tpu as pltpu

VMEM_LIMIT_BYTES = 48 * 1024 * 1024   # fits v7x (64 MiB) as well as v5e/v6e (128 MiB)
LN_EPS = 1e-5


# --------------------------------------------------------------------------
# in-kernel helpers
# --------------------------------------------------------------------------
def _layernorm(x, gamma, beta, eps=LN_EPS):
    mean = jnp.mean(x, axis=-1, keepdims=True)
    var = jnp.mean(jnp.square(x - mean), axis=-1, keepdims=True)
    return (x - mean) * jax.lax.rsqrt(var + eps) * gamma + beta


def _gelu_tanh(x):
    # nn.GELU(approximate='tanh')
    c = 0.7978845608028654  # sqrt(2/pi)
    return 0.5 * x * (1.0 + jnp.tanh(c * (x + 0.044715 * x * x * x)))


# --------------------------------------------------------------------------
# Kernel 1: LayerNorm1 + fused QKV projection (row-tiled, weights resident)
# --------------------------------------------------------------------------
def _ln_qkv_kernel(x_ref, g_ref, b_ref, w_ref, bias_ref, out_ref):
    xn = _layernorm(x_ref[...], g_ref[...], b_ref[...])
    qkv = jnp.dot(xn.astype(jnp.bfloat16), w_ref[...],
                  preferred_element_type=jnp.float32) + bias_ref[...]
    out_ref[...] = qkv.astype(out_ref.dtype)


# --------------------------------------------------------------------------
# Kernel 2: flash-style causal attention (online softmax, per-tile causal mask)
# grid = (B*H, num_q_tiles, num_kv_tiles); kv axis is the reduction ("arbitrary")
# --------------------------------------------------------------------------
def make_flash_kernel(tq, tk, num_kv, scale):
    def kernel(q_ref, k_ref, v_ref, o_ref, m_sc, l_sc, acc_sc):
        qi = pl.program_id(1)
        ki = pl.program_id(2)

        @pl.when(ki == 0)
        def _init():
            m_sc[...] = jnp.full_like(m_sc, -jnp.inf)
            l_sc[...] = jnp.zeros_like(l_sc)
            acc_sc[...] = jnp.zeros_like(acc_sc)

        # Skip kv tiles that lie entirely above the causal diagonal.
        @pl.when(ki * tk <= qi * tq + (tq - 1))
        def _compute():
            q = q_ref[...]                       # (tq, Dh) bf16
            k = k_ref[...]                       # (tk, Dh) bf16
            v = v_ref[...]                       # (tk, Dh) bf16
            s = jax.lax.dot_general(
                q, k, (((1,), (1,)), ((), ())),
                preferred_element_type=jnp.float32) * scale        # (tq, tk)
            row = qi * tq + jax.lax.broadcasted_iota(jnp.int32, (tq, tk), 0)
            col = ki * tk + jax.lax.broadcasted_iota(jnp.int32, (tq, tk), 1)
            s = jnp.where(col <= row, s, -1e30)

            m_prev = m_sc[...]
            m_new = jnp.maximum(m_prev, jnp.max(s, axis=-1, keepdims=True))
            alpha = jnp.exp(m_prev - m_new)
            p = jnp.exp(s - m_new)
            l_sc[...] = alpha * l_sc[...] + jnp.sum(p, axis=-1, keepdims=True)
            acc_sc[...] = alpha * acc_sc[...] + jnp.dot(
                p.astype(jnp.bfloat16), v, preferred_element_type=jnp.float32)
            m_sc[...] = m_new

        @pl.when(ki == num_kv - 1)
        def _finalize():
            o_ref[...] = (acc_sc[...] *
                          pl.reciprocal(l_sc[...], approx=True)).astype(o_ref.dtype)

    return kernel


# --------------------------------------------------------------------------
# Kernel 3: attn out-proj + residual + LayerNorm2 + MLP (GELU tanh) + residual
# (row-tiled, all weights resident)
# --------------------------------------------------------------------------
def _proj_mlp_kernel(resid_ref, y_ref, wpr_ref, bpr_ref, g2_ref, b2_ref,
                     wfc_ref, bfc_ref, wp2_ref, bp2_ref, out_ref):
    attn_out = jnp.dot(y_ref[...], wpr_ref[...],
                       preferred_element_type=jnp.float32) + bpr_ref[...]
    resid_mid = resid_ref[...] + attn_out
    xn = _layernorm(resid_mid, g2_ref[...], b2_ref[...])
    h = jnp.dot(xn.astype(jnp.bfloat16), wfc_ref[...],
                preferred_element_type=jnp.float32) + bfc_ref[...]
    h = _gelu_tanh(h)
    mlp_out = jnp.dot(h.astype(jnp.bfloat16), wp2_ref[...],
                      preferred_element_type=jnp.float32) + bp2_ref[...]
    out_ref[...] = (resid_mid + mlp_out).astype(out_ref.dtype)


# --------------------------------------------------------------------------
# Kernel 4: final LayerNorm + tied lm_head, tiled over (rows, vocab)
# --------------------------------------------------------------------------
def _lm_head_kernel(x_ref, g_ref, b_ref, wte_ref, out_ref):
    xn = _layernorm(x_ref[...], g_ref[...], b_ref[...]).astype(jnp.bfloat16)
    # logits_tile = LN(x_tile) @ wte_tile^T  (transpose folded into the
    # contraction -> no materialized (C, V) copy of the embedding table)
    out_ref[...] = jax.lax.dot_general(
        xn, wte_ref[...], (((1,), (1,)), ((), ())),
        preferred_element_type=jnp.float32).astype(out_ref.dtype)


# --------------------------------------------------------------------------
# parameter init (matches GPT._init_weights; weights in bf16, LN/bias in f32)
# --------------------------------------------------------------------------
def init_gpt_params(key, vocab_size, block_size, n_layer, n_embd):
    std = 0.02
    std_proj = 0.02 * (2 * n_layer) ** (-0.5)
    keys = jax.random.split(key, 2 + 4 * n_layer)
    ki = iter(keys)

    def w(k, shape, s):
        return (jax.random.normal(k, shape, jnp.float32) * s).astype(jnp.bfloat16)

    params = {
        'wte': w(next(ki), (vocab_size, n_embd), std),   # tied with lm_head
        'wpe': jax.random.normal(next(ki), (block_size, n_embd), jnp.float32) * std,
        'ln_f_g': jnp.ones((1, n_embd), jnp.float32),
        'ln_f_b': jnp.zeros((1, n_embd), jnp.float32),
        'blocks': [],
    }
    for _ in range(n_layer):
        params['blocks'].append({
            'ln1_g': jnp.ones((1, n_embd), jnp.float32),
            'ln1_b': jnp.zeros((1, n_embd), jnp.float32),
            'w_qkv': w(next(ki), (n_embd, 3 * n_embd), std),
            'b_qkv': jnp.zeros((1, 3 * n_embd), jnp.float32),
            'w_attn_proj': w(next(ki), (n_embd, n_embd), std_proj),
            'b_attn_proj': jnp.zeros((1, n_embd), jnp.float32),
            'ln2_g': jnp.ones((1, n_embd), jnp.float32),
            'ln2_b': jnp.zeros((1, n_embd), jnp.float32),
            'w_fc': w(next(ki), (n_embd, 4 * n_embd), std),
            'b_fc': jnp.zeros((1, 4 * n_embd), jnp.float32),
            'w_mlp_proj': w(next(ki), (4 * n_embd, n_embd), std_proj),
            'b_mlp_proj': jnp.zeros((1, n_embd), jnp.float32),
        })
    return params


def _pick_tile(n, candidates):
    for c in candidates:
        if n % c == 0:
            return c
    return n   # fall back to full extent (valid for BlockSpec, possibly masked)


# --------------------------------------------------------------------------
# forward pass (GPT.forward(idx, targets=None).logits)
# --------------------------------------------------------------------------
def gpt_forward(params, idx, n_head):
    """idx: int32 [B, T] token indices -> logits float32 [B, T, vocab]."""
    B, T = idx.shape
    V, C = params['wte'].shape
    H = n_head
    assert C % H == 0
    Dh = C // H
    BT = B * T

    # --- embedding (glue: gather + add in plain JAX) ---
    tok_emb = jnp.take(params['wte'], idx, axis=0).astype(jnp.float32)
    pos_emb = params['wpe'][:T].astype(jnp.float32)
    resid = (tok_emb + pos_emb[None, :, :]).reshape(BT, C)

    # --- tile sizes (re-derived per shape; budgeted for v7x's 64 MiB VMEM) ---
    tr = _pick_tile(BT, (256, 128, 64, 32, 16, 8))     # rows per step
    tq = _pick_tile(T, (128, 64, 32, 16, 8))           # query tile
    tk = tq                                            # kv tile
    tv = _pick_tile(V, (512, 256, 128))                # vocab tile (lane-dense)
    num_kv = T // tk
    # TODO(synk): non-multiple-of-128 C / V would need padding for lane-dense stores.

    flash_kernel = make_flash_kernel(tq, tk, num_kv, 1.0 / math.sqrt(Dh))

    row_cp = pltpu.CompilerParams(dimension_semantics=("parallel",),
                                  vmem_limit_bytes=VMEM_LIMIT_BYTES)

    for blk in params['blocks']:
        # (1) LN1 + QKV projection, row-tiled; weights resident across the grid.
        qkv = pl.pallas_call(
            _ln_qkv_kernel,
            grid=(BT // tr,),
            in_specs=[
                pl.BlockSpec((tr, C), lambda i: (i, 0)),
                pl.BlockSpec((1, C), lambda i: (0, 0)),
                pl.BlockSpec((1, C), lambda i: (0, 0)),
                pl.BlockSpec((C, 3 * C), lambda i: (0, 0)),
                pl.BlockSpec((1, 3 * C), lambda i: (0, 0)),
            ],
            out_specs=pl.BlockSpec((tr, 3 * C), lambda i: (i, 0)),
            out_shape=jax.ShapeDtypeStruct((BT, 3 * C), jnp.bfloat16),
            compiler_params=row_cp,
        )(resid, blk['ln1_g'], blk['ln1_b'], blk['w_qkv'], blk['b_qkv'])

        # head split (cheap XLA layout glue, keeps head dim contiguous for MXU)
        qkv5 = qkv.reshape(B, T, 3, H, Dh).transpose(2, 0, 3, 1, 4)  # (3,B,H,T,Dh)
        q = qkv5[0].reshape(B * H, T, Dh)
        k = qkv5[1].reshape(B * H, T, Dh)
        v = qkv5[2].reshape(B * H, T, Dh)

        # (2) flash attention: (batch*head, q-tile) parallel, kv-tile reduction.
        y = pl.pallas_call(
            flash_kernel,
            grid=(B * H, T // tq, num_kv),
            in_specs=[
                pl.BlockSpec((None, tq, Dh), lambda b, qi, ki: (b, qi, 0)),
                pl.BlockSpec((None, tk, Dh), lambda b, qi, ki: (b, ki, 0)),
                pl.BlockSpec((None, tk, Dh), lambda b, qi, ki: (b, ki, 0)),
            ],
            out_specs=pl.BlockSpec((None, tq, Dh), lambda b, qi, ki: (b, qi, 0)),
            out_shape=jax.ShapeDtypeStruct((B * H, T, Dh), jnp.bfloat16),
            scratch_shapes=[
                pltpu.VMEM((tq, 1), jnp.float32),    # running max
                pltpu.VMEM((tq, 1), jnp.float32),    # running denom
                pltpu.VMEM((tq, Dh), jnp.float32),   # output accumulator
            ],
            compiler_params=pltpu.CompilerParams(
                dimension_semantics=("parallel", "parallel", "arbitrary"),
                vmem_limit_bytes=VMEM_LIMIT_BYTES),
        )(q, k, v)
        y = y.reshape(B, H, T, Dh).transpose(0, 2, 1, 3).reshape(BT, C)

        # (3) out-proj + residual + LN2 + MLP + residual, row-tiled,
        #     residual stream updated in place (aliased input 0 -> output 0).
        resid = pl.pallas_call(
            _proj_mlp_kernel,
            grid=(BT // tr,),
            in_specs=[
                pl.BlockSpec((tr, C), lambda i: (i, 0)),      # resid_pre
                pl.BlockSpec((tr, C), lambda i: (i, 0)),      # attn head output
                pl.BlockSpec((C, C), lambda i: (0, 0)),       # w_attn_proj
                pl.BlockSpec((1, C), lambda i: (0, 0)),       # b_attn_proj
                pl.BlockSpec((1, C), lambda i: (0, 0)),       # ln2_g
                pl.BlockSpec((1, C), lambda i: (0, 0)),       # ln2_b
                pl.BlockSpec((C, 4 * C), lambda i: (0, 0)),   # w_fc
                pl.BlockSpec((1, 4 * C), lambda i: (0, 0)),   # b_fc
                pl.BlockSpec((4 * C, C), lambda i: (0, 0)),   # w_mlp_proj
                pl.BlockSpec((1, C), lambda i: (0, 0)),       # b_mlp_proj
            ],
            out_specs=pl.BlockSpec((tr, C), lambda i: (i, 0)),
            out_shape=jax.ShapeDtypeStruct((BT, C), jnp.float32),
            input_output_aliases={0: 0},
            compiler_params=row_cp,
        )(resid, y, blk['w_attn_proj'], blk['b_attn_proj'],
          blk['ln2_g'], blk['ln2_b'], blk['w_fc'], blk['b_fc'],
          blk['w_mlp_proj'], blk['b_mlp_proj'])

    # --- final LN + tied lm_head, tiled over (row tiles, vocab tiles) ---
    logits = pl.pallas_call(
        _lm_head_kernel,
        grid=(BT // tr, V // tv),
        in_specs=[
            pl.BlockSpec((tr, C), lambda i, j: (i, 0)),
            pl.BlockSpec((1, C), lambda i, j: (0, 0)),
            pl.BlockSpec((1, C), lambda i, j: (0, 0)),
            pl.BlockSpec((tv, C), lambda i, j: (j, 0)),
        ],
        out_specs=pl.BlockSpec((tr, tv), lambda i, j: (i, j)),
        out_shape=jax.ShapeDtypeStruct((BT, V), jnp.float32),
        compiler_params=pltpu.CompilerParams(
            dimension_semantics=("parallel", "parallel"),
            vmem_limit_bytes=VMEM_LIMIT_BYTES),
    )(resid, params['ln_f_g'], params['ln_f_b'], params['wte'])

    # TODO(synk): cross-entropy loss path (targets != None), start_at_layer /
    # stop_at_layer hooks and non-LayerNorm norm strategies are not implemented;
    # this corresponds to GPT.forward(idx, targets=None).logits.
    return logits.reshape(B, T, V)


# --------------------------------------------------------------------------
# pure-JAX reference (same bf16-input / f32-accum matmul precision)
# --------------------------------------------------------------------------
def gpt_forward_reference(params, idx, n_head):
    B, T = idx.shape
    V, C = params['wte'].shape
    H = n_head
    Dh = C // H

    def mm(a, w_bf16):
        return jnp.dot(a.astype(jnp.bfloat16), w_bf16,
                       preferred_element_type=jnp.float32)

    x = jnp.take(params['wte'], idx, axis=0).astype(jnp.float32) \
        + params['wpe'][:T][None].astype(jnp.float32)
    for blk in params['blocks']:
        xn = _layernorm(x, blk['ln1_g'], blk['ln1_b'])
        qkv = mm(xn, blk['w_qkv']) + blk['b_qkv']
        q, k, v = jnp.split(qkv, 3, axis=-1)
        q = q.reshape(B, T, H, Dh).transpose(0, 2, 1, 3)
        k = k.reshape(B, T, H, Dh).transpose(0, 2, 1, 3)
        v = v.reshape(B, T, H, Dh).transpose(0, 2, 1, 3)
        s = jnp.einsum('bhtd,bhsd->bhts', q.astype(jnp.bfloat16),
                       k.astype(jnp.bfloat16),
                       preferred_element_type=jnp.float32) / math.sqrt(Dh)
        mask = jnp.tril(jnp.ones((T, T), dtype=bool))
        s = jnp.where(mask[None, None], s, -1e30)
        p = jax.nn.softmax(s, axis=-1)
        y = jnp.einsum('bhts,bhsd->bhtd', p.astype(jnp.bfloat16),
                       v.astype(jnp.bfloat16),
                       preferred_element_type=jnp.float32)
        y = y.transpose(0, 2, 1, 3).reshape(B, T, C)
        x = x + mm(y, blk['w_attn_proj']) + blk['b_attn_proj']
        xn2 = _layernorm(x, blk['ln2_g'], blk['ln2_b'])
        h = _gelu_tanh(mm(xn2, blk['w_fc']) + blk['b_fc'])
        x = x + mm(h, blk['w_mlp_proj']) + blk['b_mlp_proj']
    xn = _layernorm(x, params['ln_f_g'], params['ln_f_b'])
    logits = jnp.einsum('btc,vc->btv', xn.astype(jnp.bfloat16), params['wte'],
                        preferred_element_type=jnp.float32)
    return logits


# --------------------------------------------------------------------------
if __name__ == "__main__":
    # small, lane-aligned config consistent with GPTConfig fields
    vocab_size = 256
    block_size = 256
    n_layer = 2
    n_head = 4
    n_embd = 128
    B, T = 2, 256

    key = jax.random.PRNGKey(0)
    k_param, k_idx = jax.random.split(key)

    params = init_gpt_params(k_param, vocab_size, block_size, n_layer, n_embd)
    idx = jax.random.randint(k_idx, (B, T), 0, vocab_size, dtype=jnp.int32)

    fwd = jax.jit(functools.partial(gpt_forward, n_head=n_head))
    logits = jax.block_until_ready(fwd(params, idx))

    assert logits.shape == (B, T, vocab_size)
    assert bool(jnp.all(jnp.isfinite(logits)))

    ref = gpt_forward_reference(params, idx, n_head)
    max_err = float(jnp.max(jnp.abs(logits - ref)))
    assert max_err < 3e-2, f"max abs error vs reference: {max_err}"

    print("KERNEL_OK")
</pallas_src>

<mosaic_0001>
module attributes {stable_mosaic.version = 11 : i64} {
  func.func @_ln_qkv_kernel(%arg0: i32, %arg1: memref<256x128xf32, #tpu.memory_space<vmem>>, %arg2: memref<1x128xf32, #tpu.memory_space<vmem>>, %arg3: memref<1x128xf32, #tpu.memory_space<vmem>>, %arg4: memref<128x384xbf16, #tpu.memory_space<vmem>>, %arg5: memref<1x384xf32, #tpu.memory_space<vmem>>, %arg6: memref<256x384xbf16, #tpu.memory_space<vmem>>) attributes {dimension_semantics = [#tpu.dimension_semantics<parallel>], iteration_bounds = array<i64: 2>, scalar_prefetch = 0 : i64, scratch_operands = 0 : i64, tpu.core_type = #tpu.core_type<tc>, window_params = [{transform_indices = @transform_0, window_bounds = array<i64: 256, 128>}, {pipeline_mode = #tpu.pipeline_mode<synchronous>, transform_indices = @transform_1, window_bounds = array<i64: 1, 128>}, {pipeline_mode = #tpu.pipeline_mode<synchronous>, transform_indices = @transform_2, window_bounds = array<i64: 1, 128>}, {pipeline_mode = #tpu.pipeline_mode<synchronous>, transform_indices = @transform_3, window_bounds = array<i64: 128, 384>}, {pipeline_mode = #tpu.pipeline_mode<synchronous>, transform_indices = @transform_4, window_bounds = array<i64: 1, 384>}, {transform_indices = @transform_5, window_bounds = array<i64: 256, 384>}]} {
    %c0 = arith.constant 0 : index
    %c0_0 = arith.constant 0 : index
    %0 = vector.load %arg1[%c0, %c0_0] : memref<256x128xf32, #tpu.memory_space<vmem>>, vector<256x128xf32>
    %c0_1 = arith.constant 0 : index
    %c0_2 = arith.constant 0 : index
    %1 = vector.load %arg2[%c0_1, %c0_2] : memref<1x128xf32, #tpu.memory_space<vmem>>, vector<1x128xf32>
    %c0_3 = arith.constant 0 : index
    %c0_4 = arith.constant 0 : index
    %2 = vector.load %arg3[%c0_3, %c0_4] : memref<1x128xf32, #tpu.memory_space<vmem>>, vector<1x128xf32>
    %cst = arith.constant dense<0.000000e+00> : vector<256xf32>
    %3 = vector.multi_reduction <add>, %0, %cst [1] : vector<256x128xf32> to vector<256xf32>
    %4 = vector.shape_cast %3 : vector<256xf32> to vector<256x1xf32>
    %cst_5 = arith.constant 1.280000e+02 : f32
    %5 = vector.broadcast %cst_5 : f32 to vector<256x1xf32>
    %6 = arith.divf %4, %5 : vector<256x1xf32>
    %7 = vector.broadcast %6 : vector<256x1xf32> to vector<256x128xf32>
    %8 = arith.subf %0, %7 : vector<256x128xf32>
    %9 = arith.mulf %8, %8 : vector<256x128xf32>
    %cst_6 = arith.constant dense<0.000000e+00> : vector<256xf32>
    %10 = vector.multi_reduction <add>, %9, %cst_6 [1] : vector<256x128xf32> to vector<256xf32>
    %11 = vector.shape_cast %10 : vector<256xf32> to vector<256x1xf32>
    %cst_7 = arith.constant 1.280000e+02 : f32
    %12 = vector.broadcast %cst_7 : f32 to vector<256x1xf32>
    %13 = arith.divf %11, %12 : vector<256x1xf32>
    %14 = vector.broadcast %6 : vector<256x1xf32> to vector<256x128xf32>
    %15 = arith.subf %0, %14 : vector<256x128xf32>
    %cst_8 = arith.constant 9.99999974E-6 : f32
    %16 = vector.broadcast %cst_8 : f32 to vector<256x1xf32>
    %17 = arith.addf %13, %16 : vector<256x1xf32>
    %18 = math.rsqrt %17 : vector<256x1xf32>
    %19 = vector.broadcast %18 : vector<256x1xf32> to vector<256x128xf32>
    %20 = arith.mulf %15, %19 : vector<256x128xf32>
    %21 = vector.broadcast %1 : vector<1x128xf32> to vector<256x128xf32>
    %22 = arith.mulf %20, %21 : vector<256x128xf32>
    %23 = vector.broadcast %2 : vector<1x128xf32> to vector<256x128xf32>
    %24 = arith.addf %22, %23 : vector<256x128xf32>
    %25 = arith.truncf %24 : vector<256x128xf32> to vector<256x128xbf16>
    %c0_9 = arith.constant 0 : index
    %c0_10 = arith.constant 0 : index
    %26 = vector.load %arg4[%c0_9, %c0_10] : memref<128x384xbf16, #tpu.memory_space<vmem>>, vector<128x384xbf16>
    %cst_11 = arith.constant dense<0.000000e+00> : vector<256x384xf32>
    %27 = tpu.matmul %25, %26, %cst_11 {dimension_numbers = #tpu.dot_dimension_numbers<[1], [0], [0], [1], [0, 0, 1, 1], [], []>} : vector<256x128xbf16>, vector<128x384xbf16>, vector<256x384xf32> -> vector<256x384xf32>
    %c0_12 = arith.constant 0 : index
    %c0_13 = arith.constant 0 : index
    %28 = vector.load %arg5[%c0_12, %c0_13] : memref<1x384xf32, #tpu.memory_space<vmem>>, vector<1x384xf32>
    %29 = vector.broadcast %28 : vector<1x384xf32> to vector<256x384xf32>
    %30 = arith.addf %27, %29 : vector<256x384xf32>
    %31 = arith.truncf %30 : vector<256x384xf32> to vector<256x384xbf16>
    %c0_14 = arith.constant 0 : index
    %c0_15 = arith.constant 0 : index
    %32 = vector.load %arg6[%c0_14, %c0_15] : memref<256x384xbf16, #tpu.memory_space<vmem>>, vector<256x384xbf16>
    tpu.vector_store %arg6[%c0_14, %c0_15], %31 {strides = array<i32>} : memref<256x384xbf16, #tpu.memory_space<vmem>>, vector<256x384xbf16>,
    return
  }
  func.func @transform_0(%arg0: i32) -> (i32, i32) {
    %c0_i32 = arith.constant 0 : i32
    %c0_i32_0 = arith.constant 0 : i32
    return %arg0, %c0_i32 : i32, i32
  }
  func.func @transform_1(%arg0: i32) -> (i32, i32) {
    %c0_i32 = arith.constant 0 : i32
    %c0_i32_0 = arith.constant 0 : i32
    %c0_i32_1 = arith.constant 0 : i32
    return %c0_i32, %c0_i32_0 : i32, i32
  }
  func.func @transform_2(%arg0: i32) -> (i32, i32) {
    %c0_i32 = arith.constant 0 : i32
    %c0_i32_0 = arith.constant 0 : i32
    %c0_i32_1 = arith.constant 0 : i32
    return %c0_i32, %c0_i32_0 : i32, i32
  }
  func.func @transform_3(%arg0: i32) -> (i32, i32) {
    %c0_i32 = arith.constant 0 : i32
    %c0_i32_0 = arith.constant 0 : i32
    %c0_i32_1 = arith.constant 0 : i32
    return %c0_i32, %c0_i32_0 : i32, i32
  }
  func.func @transform_4(%arg0: i32) -> (i32, i32) {
    %c0_i32 = arith.constant 0 : i32
    %c0_i32_0 = arith.constant 0 : i32
    %c0_i32_1 = arith.constant 0 : i32
    return %c0_i32, %c0_i32_0 : i32, i32
  }
  func.func @transform_5(%arg0: i32) -> (i32, i32) {
    %c0_i32 = arith.constant 0 : i32
    %c0_i32_0 = arith.constant 0 : i32
    return %arg0, %c0_i32 : i32, i32
  }
}

module attributes {stable_mosaic.version = 11 : i64} {
  func.func @kernel(%arg0: i32, %arg1: i32, %arg2: i32, %arg3: memref<1x128x32xbf16, #tpu.memory_space<vmem>>, %arg4: memref<1x128x32xbf16, #tpu.memory_space<vmem>>, %arg5: memref<1x128x32xbf16, #tpu.memory_space<vmem>>, %arg6: memref<1x128x32xbf16, #tpu.memory_space<vmem>>, %arg7: memref<128x1xf32, #tpu.memory_space<vmem>>, %arg8: memref<128x1xf32, #tpu.memory_space<vmem>>, %arg9: memref<128x32xf32, #tpu.memory_space<vmem>>) attributes {dimension_semantics = [#tpu.dimension_semantics<parallel>, #tpu.dimension_semantics<parallel>, #tpu.dimension_semantics<arbitrary>], iteration_bounds = array<i64: 8, 2, 2>, scalar_prefetch = 0 : i64, scratch_operands = 3 : i64, tpu.core_type = #tpu.core_type<tc>, window_params = [{transform_indices = @transform_0, window_bounds = array<i64: 1, 128, 32>}, {transform_indices = @transform_1, window_bounds = array<i64: 1, 128, 32>}, {transform_indices = @transform_2, window_bounds = array<i64: 1, 128, 32>}, {transform_indices = @transform_3, window_bounds = array<i64: 1, 128, 32>}]} {
    %c0_i32 = arith.constant 0 : i32
    %0 = arith.cmpi eq, %arg2, %c0_i32 : i32
    %1 = arith.extui %0 : i1 to i32
    %c0_i32_0 = arith.constant 0 : i32
    %2 = arith.cmpi ne, %1, %c0_i32_0 : i32
    scf.if %2 {
      %cst = arith.constant 0xFF800000 : f32
      %12 = vector.broadcast %cst : f32 to vector<128x1xf32>
      %c0 = arith.constant 0 : index
      %c0_4 = arith.constant 0 : index
      %13 = vector.load %arg7[%c0, %c0_4] : memref<128x1xf32, #tpu.memory_space<vmem>>, vector<128x1xf32>
      tpu.vector_store %arg7[%c0, %c0_4], %12 {strides = array<i32>} : memref<128x1xf32, #tpu.memory_space<vmem>>, vector<128x1xf32>,
      %cst_5 = arith.constant 0.000000e+00 : f32
      %14 = vector.broadcast %cst_5 : f32 to vector<128x1xf32>
      %c0_6 = arith.constant 0 : index
      %c0_7 = arith.constant 0 : index
      %15 = vector.load %arg8[%c0_6, %c0_7] : memref<128x1xf32, #tpu.memory_space<vmem>>, vector<128x1xf32>
      tpu.vector_store %arg8[%c0_6, %c0_7], %14 {strides = array<i32>} : memref<128x1xf32, #tpu.memory_space<vmem>>, vector<128x1xf32>,
      %cst_8 = arith.constant 0.000000e+00 : f32
      %16 = vector.broadcast %cst_8 : f32 to vector<128x32xf32>
      %c0_9 = arith.constant 0 : index
      %c0_10 = arith.constant 0 : index
      %17 = vector.load %arg9[%c0_9, %c0_10] : memref<128x32xf32, #tpu.memory_space<vmem>>, vector<128x32xf32>
      tpu.vector_store %arg9[%c0_9, %c0_10], %16 {strides = array<i32>} : memref<128x32xf32, #tpu.memory_space<vmem>>, vector<128x32xf32>,
    } else {
    }
    %c128_i32 = arith.constant 128 : i32
    %3 = arith.muli %arg2, %c128_i32 : i32
    %c128_i32_1 = arith.constant 128 : i32
    %4 = arith.muli %arg1, %c128_i32_1 : i32
    %c127_i32 = arith.constant 127 : i32
    %5 = arith.addi %4, %c127_i32 : i32
    %6 = arith.cmpi sle, %3, %5 : i32
    %7 = arith.extui %6 : i1 to i32
    %c0_i32_2 = arith.constant 0 : i32
    %8 = arith.cmpi ne, %7, %c0_i32_2 : i32
    scf.if %8 {
      %c0 = arith.constant 0 : index
      %c0_4 = arith.constant 0 : index
      %c0_5 = arith.constant 0 : index
      %12 = vector.load %arg3[%c0, %c0_4, %c0_5] : memref<1x128x32xbf16, #tpu.memory_space<vmem>>, vector<1x128x32xbf16>
      %13 = vector.shape_cast %12 : vector<1x128x32xbf16> to vector<128x32xbf16>
      %c0_6 = arith.constant 0 : index
      %c0_7 = arith.constant 0 : index
      %c0_8 = arith.constant 0 : index
      %14 = vector.load %arg4[%c0_6, %c0_7, %c0_8] : memref<1x128x32xbf16, #tpu.memory_space<vmem>>, vector<1x128x32xbf16>
      %15 = vector.shape_cast %14 : vector<1x128x32xbf16> to vector<128x32xbf16>
      %c0_9 = arith.constant 0 : index
      %c0_10 = arith.constant 0 : index
      %c0_11 = arith.constant 0 : index
      %16 = vector.load %arg5[%c0_9, %c0_10, %c0_11] : memref<1x128x32xbf16, #tpu.memory_space<vmem>>, vector<1x128x32xbf16>
      %17 = vector.shape_cast %16 : vector<1x128x32xbf16> to vector<128x32xbf16>
      %cst = arith.constant dense<0.000000e+00> : vector<128x128xf32>
      %18 = tpu.matmul %13, %15, %cst {dimension_numbers = #tpu.dot_dimension_numbers<[1], [1], [0], [0], [0, 0, 1, 0], [], []>} : vector<128x32xbf16>, vector<128x32xbf16>, vector<128x128xf32> -> vector<128x128xf32>
      %cst_12 = arith.constant 0.176776692 : f32
      %19 = vector.broadcast %cst_12 : f32 to vector<128x128xf32>
      %20 = arith.mulf %18, %19 : vector<128x128xf32>
      %c128_i32_13 = arith.constant 128 : i32
      %21 = arith.muli %arg1, %c128_i32_13 : i32
      %22 = tpu.iota {dimensions = array<i32: 0>} : vector<128x128xi32>
      %23 = vector.broadcast %21 : i32 to vector<128x128xi32>
      %24 = arith.addi %23, %22 : vector<128x128xi32>
      %c128_i32_14 = arith.constant 128 : i32
      %25 = arith.muli %arg2, %c128_i32_14 : i32
      %26 = tpu.iota {dimensions = array<i32: 1>} : vector<128x128xi32>
      %27 = vector.broadcast %25 : i32 to vector<128x128xi32>
      %28 = arith.addi %27, %26 : vector<128x128xi32>
      %29 = arith.cmpi sle, %28, %24 : vector<128x128xi32>
      %cst_15 = arith.constant -1.000000e+30 : f32
      %30 = vector.broadcast %cst_15 : f32 to vector<128x128xf32>
      %31 = arith.select %29, %20, %30 : vector<128x128xi1>, vector<128x128xf32>
      %c0_16 = arith.constant 0 : index
      %c0_17 = arith.constant 0 : index
      %32 = vector.load %arg7[%c0_16, %c0_17] : memref<128x1xf32, #tpu.memory_space<vmem>>, vector<128x1xf32>
      %cst_18 = arith.constant dense<0xFF800000> : vector<128xf32>
      %33 = vector.multi_reduction <maximumf>, %31, %cst_18 [1] : vector<128x128xf32> to vector<128xf32>
      %34 = vector.shape_cast %33 : vector<128xf32> to vector<128x1xf32>
      %35 = arith.maximumf %32, %34 : vector<128x1xf32>
      %36 = arith.subf %32, %35 : vector<128x1xf32>
      %37 = math.exp %36 : vector<128x1xf32>
      %38 = vector.broadcast %35 : vector<128x1xf32> to vector<128x128xf32>
      %39 = arith.subf %31, %38 : vector<128x128xf32>
      %40 = math.exp %39 : vector<128x128xf32>
      %c0_19 = arith.constant 0 : index
      %c0_20 = arith.constant 0 : index
      %41 = vector.load %arg8[%c0_19, %c0_20] : memref<128x1xf32, #tpu.memory_space<vmem>>, vector<128x1xf32>
      %42 = arith.mulf %37, %41 : vector<128x1xf32>
      %cst_21 = arith.constant dense<0.000000e+00> : vector<128xf32>
      %43 = vector.multi_reduction <add>, %40, %cst_21 [1] : vector<128x128xf32> to vector<128xf32>
      %44 = vector.shape_cast %43 : vector<128xf32> to vector<128x1xf32>
      %45 = arith.addf %42, %44 : vector<128x1xf32>
      %c0_22 = arith.constant 0 : index
      %c0_23 = arith.constant 0 : index
      %46 = vector.load %arg8[%c0_22, %c0_23] : memref<128x1xf32, #tpu.memory_space<vmem>>, vector<128x1xf32>
      tpu.vector_store %arg8[%c0_22, %c0_23], %45 {strides = array<i32>} : memref<128x1xf32, #tpu.memory_space<vmem>>, vector<128x1xf32>,
      %c0_24 = arith.constant 0 : index
      %c0_25 = arith.constant 0 : index
      %47 = vector.load %arg9[%c0_24, %c0_25] : memref<128x32xf32, #tpu.memory_space<vmem>>, vector<128x32xf32>
      %48 = vector.broadcast %37 : vector<128x1xf32> to vector<128x32xf32>
      %49 = arith.mulf %48, %47 : vector<128x32xf32>
      %50 = arith.truncf %40 : vector<128x128xf32> to vector<128x128xbf16>
      %cst_26 = arith.constant dense<0.000000e+00> : vector<128x32xf32>
      %51 = tpu.matmul %50, %17, %cst_26 {dimension_numbers = #tpu.dot_dimension_numbers<[1], [0], [0], [1], [0, 0, 1, 1], [], []>} : vector<128x128xbf16>, vector<128x32xbf16>, vector<128x32xf32> -> vector<128x32xf32>
      %52 = arith.addf %49, %51 : vector<128x32xf32>
      %c0_27 = arith.constant 0 : index
      %c0_28 = arith.constant 0 : index
      %53 = vector.load %arg9[%c0_27, %c0_28] : memref<128x32xf32, #tpu.memory_space<vmem>>, vector<128x32xf32>
      tpu.vector_store %arg9[%c0_27, %c0_28], %52 {strides = array<i32>} : memref<128x32xf32, #tpu.memory_space<vmem>>, vector<128x32xf32>,
      %c0_29 = arith.constant 0 : index
      %c0_30 = arith.constant 0 : index
      %54 = vector.load %arg7[%c0_29, %c0_30] : memref<128x1xf32, #tpu.memory_space<vmem>>, vector<128x1xf32>
      tpu.vector_store %arg7[%c0_29, %c0_30], %35 {strides = array<i32>} : memref<128x1xf32, #tpu.memory_space<vmem>>, vector<128x1xf32>,
    } else {
    }
    %c1_i32 = arith.constant 1 : i32
    %9 = arith.cmpi eq, %arg2, %c1_i32 : i32
    %10 = arith.extui %9 : i1 to i32
    %c0_i32_3 = arith.constant 0 : i32
    %11 = arith.cmpi ne, %10, %c0_i32_3 : i32
    scf.if %11 {
      %c0 = arith.constant 0 : index
      %c0_4 = arith.constant 0 : index
      %12 = vector.load %arg9[%c0, %c0_4] : memref<128x32xf32, #tpu.memory_space<vmem>>, vector<128x32xf32>
      %c0_5 = arith.constant 0 : index
      %c0_6 = arith.constant 0 : index
      %13 = vector.load %arg8[%c0_5, %c0_6] : memref<128x1xf32, #tpu.memory_space<vmem>>, vector<128x1xf32>
      %14 = tpu.reciprocal %13 {approx = true} : vector<128x1xf32> -> vector<128x1xf32>
      %15 = vector.broadcast %14 : vector<128x1xf32> to vector<128x32xf32>
      %16 = arith.mulf %12, %15 : vector<128x32xf32>
      %17 = arith.truncf %16 : vector<128x32xf32> to vector<128x32xbf16>
      %c0_7 = arith.constant 0 : index
      %c0_8 = arith.constant 0 : index
      %c0_9 = arith.constant 0 : index
      %18 = vector.load %arg6[%c0_7, %c0_8, %c0_9] : memref<1x128x32xbf16, #tpu.memory_space<vmem>>, vector<1x128x32xbf16>
      %19 = vector.shape_cast %18 : vector<1x128x32xbf16> to vector<128x32xbf16>
      %20 = vector.shape_cast %17 : vector<128x32xbf16> to vector<1x128x32xbf16>
      tpu.vector_store %arg6[%c0_7, %c0_8, %c0_9], %20 {strides = array<i32>} : memref<1x128x32xbf16, #tpu.memory_space<vmem>>, vector<1x128x32xbf16>,
    } else {
    }
    return
  }
  func.func @transform_0(%arg0: i32, %arg1: i32, %arg2: i32) -> (i32, i32, i32) {
    %c0_i32 = arith.constant 0 : i32
    %c0_i32_0 = arith.constant 0 : i32
    return %arg0, %arg1, %c0_i32 : i32, i32, i32
  }
  func.func @transform_1(%arg0: i32, %arg1: i32, %arg2: i32) -> (i32, i32, i32) {
    %c0_i32 = arith.constant 0 : i32
    %c0_i32_0 = arith.constant 0 : i32
    return %arg0, %arg2, %c0_i32 : i32, i32, i32
  }
  func.func @transform_2(%arg0: i32, %arg1: i32, %arg2: i32) -> (i32, i32, i32) {
    %c0_i32 = arith.constant 0 : i32
    %c0_i32_0 = arith.constant 0 : i32
    return %arg0, %arg2, %c0_i32 : i32, i32, i32
  }
  func.func @transform_3(%arg0: i32, %arg1: i32, %arg2: i32) -> (i32, i32, i32) {
    %c0_i32 = arith.constant 0 : i32
    %c0_i32_0 = arith.constant 0 : i32
    return %arg0, %arg1, %c0_i32 : i32, i32, i32
  }
}

module attributes {stable_mosaic.version = 11 : i64} {
  func.func @_proj_mlp_kernel(%arg0: i32, %arg1: memref<256x128xf32, #tpu.memory_space<vmem>>, %arg2: memref<256x128xbf16, #tpu.memory_space<vmem>>, %arg3: memref<128x128xbf16, #tpu.memory_space<vmem>>, %arg4: memref<1x128xf32, #tpu.memory_space<vmem>>, %arg5: memref<1x128xf32, #tpu.memory_space<vmem>>, %arg6: memref<1x128xf32, #tpu.memory_space<vmem>>, %arg7: memref<128x512xbf16, #tpu.memory_space<vmem>>, %arg8: memref<1x512xf32, #tpu.memory_space<vmem>>, %arg9: memref<512x128xbf16, #tpu.memory_space<vmem>>, %arg10: memref<1x128xf32, #tpu.memory_space<vmem>>, %arg11: memref<256x128xf32, #tpu.memory_space<vmem>>) attributes {dimension_semantics = [#tpu.dimension_semantics<parallel>], iteration_bounds = array<i64: 2>, scalar_prefetch = 0 : i64, scratch_operands = 0 : i64, tpu.core_type = #tpu.core_type<tc>, window_params = [{transform_indices = @transform_0, window_bounds = array<i64: 256, 128>}, {transform_indices = @transform_1, window_bounds = array<i64: 256, 128>}, {pipeline_mode = #tpu.pipeline_mode<synchronous>, transform_indices = @transform_2, window_bounds = array<i64: 128, 128>}, {pipeline_mode = #tpu.pipeline_mode<synchronous>, transform_indices = @transform_3, window_bounds = array<i64: 1, 128>}, {pipeline_mode = #tpu.pipeline_mode<synchronous>, transform_indices = @transform_4, window_bounds = array<i64: 1, 128>}, {pipeline_mode = #tpu.pipeline_mode<synchronous>, transform_indices = @transform_5, window_bounds = array<i64: 1, 128>}, {pipeline_mode = #tpu.pipeline_mode<synchronous>, transform_indices = @transform_6, window_bounds = array<i64: 128, 512>}, {pipeline_mode = #tpu.pipeline_mode<synchronous>, transform_indices = @transform_7, window_bounds = array<i64: 1, 512>}, {pipeline_mode = #tpu.pipeline_mode<synchronous>, transform_indices = @transform_8, window_bounds = array<i64: 512, 128>}, {pipeline_mode = #tpu.pipeline_mode<synchronous>, transform_indices = @transform_9, window_bounds = array<i64: 1, 128>}, {transform_indices = @transform_10, window_bounds = array<i64: 256, 128>}]} {
    %c0 = arith.constant 0 : index
    %c0_0 = arith.constant 0 : index
    %0 = vector.load %arg2[%c0, %c0_0] : memref<256x128xbf16, #tpu.memory_space<vmem>>, vector<256x128xbf16>
    %c0_1 = arith.constant 0 : index
    %c0_2 = arith.constant 0 : index
    %1 = vector.load %arg3[%c0_1, %c0_2] : memref<128x128xbf16, #tpu.memory_space<vmem>>, vector<128x128xbf16>
    %cst = arith.constant dense<0.000000e+00> : vector<256x128xf32>
    %2 = tpu.matmul %0, %1, %cst {dimension_numbers = #tpu.dot_dimension_numbers<[1], [0], [0], [1], [0, 0, 1, 1], [], []>} : vector<256x128xbf16>, vector<128x128xbf16>, vector<256x128xf32> -> vector<256x128xf32>
    %c0_3 = arith.constant 0 : index
    %c0_4 = arith.constant 0 : index
    %3 = vector.load %arg4[%c0_3, %c0_4] : memref<1x128xf32, #tpu.memory_space<vmem>>, vector<1x128xf32>
    %4 = vector.broadcast %3 : vector<1x128xf32> to vector<256x128xf32>
    %5 = arith.addf %2, %4 : vector<256x128xf32>
    %c0_5 = arith.constant 0 : index
    %c0_6 = arith.constant 0 : index
    %6 = vector.load %arg1[%c0_5, %c0_6] : memref<256x128xf32, #tpu.memory_space<vmem>>, vector<256x128xf32>
    %7 = arith.addf %6, %5 : vector<256x128xf32>
    %c0_7 = arith.constant 0 : index
    %c0_8 = arith.constant 0 : index
    %8 = vector.load %arg5[%c0_7, %c0_8] : memref<1x128xf32, #tpu.memory_space<vmem>>, vector<1x128xf32>
    %c0_9 = arith.constant 0 : index
    %c0_10 = arith.constant 0 : index
    %9 = vector.load %arg6[%c0_9, %c0_10] : memref<1x128xf32, #tpu.memory_space<vmem>>, vector<1x128xf32>
    %cst_11 = arith.constant dense<0.000000e+00> : vector<256xf32>
    %10 = vector.multi_reduction <add>, %7, %cst_11 [1] : vector<256x128xf32> to vector<256xf32>
    %11 = vector.shape_cast %10 : vector<256xf32> to vector<256x1xf32>
    %cst_12 = arith.constant 1.280000e+02 : f32
    %12 = vector.broadcast %cst_12 : f32 to vector<256x1xf32>
    %13 = arith.divf %11, %12 : vector<256x1xf32>
    %14 = vector.broadcast %13 : vector<256x1xf32> to vector<256x128xf32>
    %15 = arith.subf %7, %14 : vector<256x128xf32>
    %16 = arith.mulf %15, %15 : vector<256x128xf32>
    %cst_13 = arith.constant dense<0.000000e+00> : vector<256xf32>
    %17 = vector.multi_reduction <add>, %16, %cst_13 [1] : vector<256x128xf32> to vector<256xf32>
    %18 = vector.shape_cast %17 : vector<256xf32> to vector<256x1xf32>
    %cst_14 = arith.constant 1.280000e+02 : f32
    %19 = vector.broadcast %cst_14 : f32 to vector<256x1xf32>
    %20 = arith.divf %18, %19 : vector<256x1xf32>
    %21 = vector.broadcast %13 : vector<256x1xf32> to vector<256x128xf32>
    %22 = arith.subf %7, %21 : vector<256x128xf32>
    %cst_15 = arith.constant 9.99999974E-6 : f32
    %23 = vector.broadcast %cst_15 : f32 to vector<256x1xf32>
    %24 = arith.addf %20, %23 : vector<256x1xf32>
    %25 = math.rsqrt %24 : vector<256x1xf32>
    %26 = vector.broadcast %25 : vector<256x1xf32> to vector<256x128xf32>
    %27 = arith.mulf %22, %26 : vector<256x128xf32>
    %28 = vector.broadcast %8 : vector<1x128xf32> to vector<256x128xf32>
    %29 = arith.mulf %27, %28 : vector<256x128xf32>
    %30 = vector.broadcast %9 : vector<1x128xf32> to vector<256x128xf32>
    %31 = arith.addf %29, %30 : vector<256x128xf32>
    %32 = arith.truncf %31 : vector<256x128xf32> to vector<256x128xbf16>
    %c0_16 = arith.constant 0 : index
    %c0_17 = arith.constant 0 : index
    %33 = vector.load %arg7[%c0_16, %c0_17] : memref<128x512xbf16, #tpu.memory_space<vmem>>, vector<128x512xbf16>
    %cst_18 = arith.constant dense<0.000000e+00> : vector<256x512xf32>
    %34 = tpu.matmul %32, %33, %cst_18 {dimension_numbers = #tpu.dot_dimension_numbers<[1], [0], [0], [1], [0, 0, 1, 1], [], []>} : vector<256x128xbf16>, vector<128x512xbf16>, vector<256x512xf32> -> vector<256x512xf32>
    %c0_19 = arith.constant 0 : index
    %c0_20 = arith.constant 0 : index
    %35 = vector.load %arg8[%c0_19, %c0_20] : memref<1x512xf32, #tpu.memory_space<vmem>>, vector<1x512xf32>
    %36 = vector.broadcast %35 : vector<1x512xf32> to vector<256x512xf32>
    %37 = arith.addf %34, %36 : vector<256x512xf32>
    %cst_21 = arith.constant 5.000000e-01 : f32
    %38 = vector.broadcast %cst_21 : f32 to vector<256x512xf32>
    %39 = arith.mulf %38, %37 : vector<256x512xf32>
    %cst_22 = arith.constant 4.471500e-02 : f32
    %40 = vector.broadcast %cst_22 : f32 to vector<256x512xf32>
    %41 = arith.mulf %40, %37 : vector<256x512xf32>
    %42 = arith.mulf %41, %37 : vector<256x512xf32>
    %43 = arith.mulf %42, %37 : vector<256x512xf32>
    %44 = arith.addf %37, %43 : vector<256x512xf32>
    %cst_23 = arith.constant 0.797884583 : f32
    %45 = vector.broadcast %cst_23 : f32 to vector<256x512xf32>
    %46 = arith.mulf %45, %44 : vector<256x512xf32>
    %47 = math.tanh %46 : vector<256x512xf32>
    %cst_24 = arith.constant 1.000000e+00 : f32
    %48 = vector.broadcast %cst_24 : f32 to vector<256x512xf32>
    %49 = arith.addf %48, %47 : vector<256x512xf32>
    %50 = arith.mulf %39, %49 : vector<256x512xf32>
    %51 = arith.truncf %50 : vector<256x512xf32> to vector<256x512xbf16>
    %c0_25 = arith.constant 0 : index
    %c0_26 = arith.constant 0 : index
    %52 = vector.load %arg9[%c0_25, %c0_26] : memref<512x128xbf16, #tpu.memory_space<vmem>>, vector<512x128xbf16>
    %cst_27 = arith.constant dense<0.000000e+00> : vector<256x128xf32>
    %53 = tpu.matmul %51, %52, %cst_27 {dimension_numbers = #tpu.dot_dimension_numbers<[1], [0], [0], [1], [0, 0, 1, 1], [], []>} : vector<256x512xbf16>, vector<512x128xbf16>, vector<256x128xf32> -> vector<256x128xf32>
    %c0_28 = arith.constant 0 : index
    %c0_29 = arith.constant 0 : index
    %54 = vector.load %arg10[%c0_28, %c0_29] : memref<1x128xf32, #tpu.memory_space<vmem>>, vector<1x128xf32>
    %55 = vector.broadcast %54 : vector<1x128xf32> to vector<256x128xf32>
    %56 = arith.addf %53, %55 : vector<256x128xf32>
    %57 = arith.addf %7, %56 : vector<256x128xf32>
    %c0_30 = arith.constant 0 : index
    %c0_31 = arith.constant 0 : index
    %58 = vector.load %arg11[%c0_30, %c0_31] : memref<256x128xf32, #tpu.memory_space<vmem>>, vector<256x128xf32>
    tpu.vector_store %arg11[%c0_30, %c0_31], %57 {strides = array<i32>} : memref<256x128xf32, #tpu.memory_space<vmem>>, vector<256x128xf32>,
    return
  }
  func.func @transform_0(%arg0: i32) -> (i32, i32) {
    %c0_i32 = arith.constant 0 : i32
    %c0_i32_0 = arith.constant 0 : i32
    return %arg0, %c0_i32 : i32, i32
  }
  func.func @transform_1(%arg0: i32) -> (i32, i32) {
    %c0_i32 = arith.constant 0 : i32
    %c0_i32_0 = arith.constant 0 : i32
    return %arg0, %c0_i32 : i32, i32
  }
  func.func @transform_2(%arg0: i32) -> (i32, i32) {
    %c0_i32 = arith.constant 0 : i32
    %c0_i32_0 = arith.constant 0 : i32
    %c0_i32_1 = arith.constant 0 : i32
    return %c0_i32, %c0_i32_0 : i32, i32
  }
  func.func @transform_3(%arg0: i32) -> (i32, i32) {
    %c0_i32 = arith.constant 0 : i32
    %c0_i32_0 = arith.constant 0 : i32
    %c0_i32_1 = arith.constant 0 : i32
    return %c0_i32, %c0_i32_0 : i32, i32
  }
  func.func @transform_4(%arg0: i32) -> (i32, i32) {
    %c0_i32 = arith.constant 0 : i32
    %c0_i32_0 = arith.constant 0 : i32
    %c0_i32_1 = arith.constant 0 : i32
    return %c0_i32, %c0_i32_0 : i32, i32
  }
  func.func @transform_5(%arg0: i32) -> (i32, i32) {
    %c0_i32 = arith.constant 0 : i32
    %c0_i32_0 = arith.constant 0 : i32
    %c0_i32_1 = arith.constant 0 : i32
    return %c0_i32, %c0_i32_0 : i32, i32
  }
  func.func @transform_6(%arg0: i32) -> (i32, i32) {
    %c0_i32 = arith.constant 0 : i32
    %c0_i32_0 = arith.constant 0 : i32
    %c0_i32_1 = arith.constant 0 : i32
    return %c0_i32, %c0_i32_0 : i32, i32
  }
  func.func @transform_7(%arg0: i32) -> (i32, i32) {
    %c0_i32 = arith.constant 0 : i32
    %c0_i32_0 = arith.constant 0 : i32
    %c0_i32_1 = arith.constant 0 : i32
    return %c0_i32, %c0_i32_0 : i32, i32
  }
  func.func @transform_8(%arg0: i32) -> (i32, i32) {
    %c0_i32 = arith.constant 0 : i32
    %c0_i32_0 = arith.constant 0 : i32
    %c0_i32_1 = arith.constant 0 : i32
    return %c0_i32, %c0_i32_0 : i32, i32
  }
  func.func @transform_9(%arg0: i32) -> (i32, i32) {
    %c0_i32 = arith.constant 0 : i32
    %c0_i32_0 = arith.constant 0 : i32
    %c0_i32_1 = arith.constant 0 : i32
    return %c0_i32, %c0_i32_0 : i32, i32
  }
  func.func @transform_10(%arg0: i32) -> (i32, i32) {
    %c0_i32 = arith.constant 0 : i32
    %c0_i32_0 = arith.constant 0 : i32
    return %arg0, %c0_i32 : i32, i32
  }
}

module attributes {stable_mosaic.version = 11 : i64} {
  func.func @_lm_head_kernel(%arg0: i32, %arg1: i32, %arg2: memref<256x128xf32, #tpu.memory_space<vmem>>, %arg3: memref<1x128xf32, #tpu.memory_space<vmem>>, %arg4: memref<1x128xf32, #tpu.memory_space<vmem>>, %arg5: memref<256x128xbf16, #tpu.memory_space<vmem>>, %arg6: memref<256x256xf32, #tpu.memory_space<vmem>>) attributes {dimension_semantics = [#tpu.dimension_semantics<parallel>, #tpu.dimension_semantics<parallel>], iteration_bounds = array<i64: 2, 1>, scalar_prefetch = 0 : i64, scratch_operands = 0 : i64, tpu.core_type = #tpu.core_type<tc>, window_params = [{transform_indices = @transform_0, window_bounds = array<i64: 256, 128>}, {pipeline_mode = #tpu.pipeline_mode<synchronous>, transform_indices = @transform_1, window_bounds = array<i64: 1, 128>}, {pipeline_mode = #tpu.pipeline_mode<synchronous>, transform_indices = @transform_2, window_bounds = array<i64: 1, 128>}, {transform_indices = @transform_3, window_bounds = array<i64: 256, 128>}, {transform_indices = @transform_4, window_bounds = array<i64: 256, 256>}]} {
    %c0 = arith.constant 0 : index
    %c0_0 = arith.constant 0 : index
    %0 = vector.load %arg2[%c0, %c0_0] : memref<256x128xf32, #tpu.memory_space<vmem>>, vector<256x128xf32>
    %c0_1 = arith.constant 0 : index
    %c0_2 = arith.constant 0 : index
    %1 = vector.load %arg3[%c0_1, %c0_2] : memref<1x128xf32, #tpu.memory_space<vmem>>, vector<1x128xf32>
    %c0_3 = arith.constant 0 : index
    %c0_4 = arith.constant 0 : index
    %2 = vector.load %arg4[%c0_3, %c0_4] : memref<1x128xf32, #tpu.memory_space<vmem>>, vector<1x128xf32>
    %cst = arith.constant dense<0.000000e+00> : vector<256xf32>
    %3 = vector.multi_reduction <add>, %0, %cst [1] : vector<256x128xf32> to vector<256xf32>
    %4 = vector.shape_cast %3 : vector<256xf32> to vector<256x1xf32>
    %cst_5 = arith.constant 1.280000e+02 : f32
    %5 = vector.broadcast %cst_5 : f32 to vector<256x1xf32>
    %6 = arith.divf %4, %5 : vector<256x1xf32>
    %7 = vector.broadcast %6 : vector<256x1xf32> to vector<256x128xf32>
    %8 = arith.subf %0, %7 : vector<256x128xf32>
    %9 = arith.mulf %8, %8 : vector<256x128xf32>
    %cst_6 = arith.constant dense<0.000000e+00> : vector<256xf32>
    %10 = vector.multi_reduction <add>, %9, %cst_6 [1] : vector<256x128xf32> to vector<256xf32>
    %11 = vector.shape_cast %10 : vector<256xf32> to vector<256x1xf32>
    %cst_7 = arith.constant 1.280000e+02 : f32
    %12 = vector.broadcast %cst_7 : f32 to vector<256x1xf32>
    %13 = arith.divf %11, %12 : vector<256x1xf32>
    %14 = vector.broadcast %6 : vector<256x1xf32> to vector<256x128xf32>
    %15 = arith.subf %0, %14 : vector<256x128xf32>
    %cst_8 = arith.constant 9.99999974E-6 : f32
    %16 = vector.broadcast %cst_8 : f32 to vector<256x1xf32>
    %17 = arith.addf %13, %16 : vector<256x1xf32>
    %18 = math.rsqrt %17 : vector<256x1xf32>
    %19 = vector.broadcast %18 : vector<256x1xf32> to vector<256x128xf32>
    %20 = arith.mulf %15, %19 : vector<256x128xf32>
    %21 = vector.broadcast %1 : vector<1x128xf32> to vector<256x128xf32>
    %22 = arith.mulf %20, %21 : vector<256x128xf32>
    %23 = vector.broadcast %2 : vector<1x128xf32> to vector<256x128xf32>
    %24 = arith.addf %22, %23 : vector<256x128xf32>
    %25 = arith.truncf %24 : vector<256x128xf32> to vector<256x128xbf16>
    %c0_9 = arith.constant 0 : index
    %c0_10 = arith.constant 0 : index
    %26 = vector.load %arg5[%c0_9, %c0_10] : memref<256x128xbf16, #tpu.memory_space<vmem>>, vector<256x128xbf16>
    %cst_11 = arith.constant dense<0.000000e+00> : vector<256x256xf32>
    %27 = tpu.matmul %25, %26, %cst_11 {dimension_numbers = #tpu.dot_dimension_numbers<[1], [1], [0], [0], [0, 0, 1, 0], [], []>} : vector<256x128xbf16>, vector<256x128xbf16>, vector<256x256xf32> -> vector<256x256xf32>
    %c0_12 = arith.constant 0 : index
    %c0_13 = arith.constant 0 : index
    %28 = vector.load %arg6[%c0_12, %c0_13] : memref<256x256xf32, #tpu.memory_space<vmem>>, vector<256x256xf32>
    tpu.vector_store %arg6[%c0_12, %c0_13], %27 {strides = array<i32>} : memref<256x256xf32, #tpu.memory_space<vmem>>, vector<256x256xf32>,
    return
  }
  func.func @transform_0(%arg0: i32, %arg1: i32) -> (i32, i32) {
    %c0_i32 = arith.constant 0 : i32
    %c0_i32_0 = arith.constant 0 : i32
    return %arg0, %c0_i32 : i32, i32
  }
  func.func @transform_1(%arg0: i32, %arg1: i32) -> (i32, i32) {
    %c0_i32 = arith.constant 0 : i32
    %c0_i32_0 = arith.constant 0 : i32
    %c0_i32_1 = arith.constant 0 : i32
    return %c0_i32, %c0_i32_0 : i32, i32
  }
  func.func @transform_2(%arg0: i32, %arg1: i32) -> (i32, i32) {
    %c0_i32 = arith.constant 0 : i32
    %c0_i32_0 = arith.constant 0 : i32
    %c0_i32_1 = arith.constant 0 : i32
    return %c0_i32, %c0_i32_0 : i32, i32
  }
  func.func @transform_3(%arg0: i32, %arg1: i32) -> (i32, i32) {
    %c0_i32 = arith.constant 0 : i32
    %c0_i32_0 = arith.constant 0 : i32
    return %arg1, %c0_i32 : i32, i32
  }
  func.func @transform_4(%arg0: i32, %arg1: i32) -> (i32, i32) {
    %c0_i32 = arith.constant 0 : i32
    return %arg0, %arg1 : i32, i32
  }
}

</mosaic_0001>

<bundles_post_ra>
// kernel: gpt_forward.7
= control target key start
LH: loop header
LB: loop body
LE: loop exit
PB: predicated region body
PF: predicated region fallthrough
CT: control target
= control target key end

     0   :  { %s2081_s18 = smov 0   ;;  %s2803_s0 = inlined_call_operand.vmem [shape: f32[512,128], index: 0, kind: input, shape index: {}]   ;;  %s2804_s1 = inlined_call_operand.vmem [shape: f32[1,128], index: 1, kind: input, shape index: {}]   ;;  %s2805_s2 = inlined_call_operand.vmem [shape: f32[1,128], index: 2, kind: input, shape index: {}]   ;;  %s2806_s3 = inlined_call_operand.vmem [shape: bf16[128,384], index: 3, kind: input, shape index: {}]   ;;  %s2807_s4 = inlined_call_operand.vmem [shape: f32[1,384], index: 4, kind: input, shape index: {}]   ;;  %s2808_s5 = inlined_call_operand.vmem [shape: bf16[512,384], index: 5, kind: output, shape index: {}]  }
   0x1 LB: > { %s1683_s19 = sadd.s32 4294967295, %s2048_s18   ;;  %p1687_p0 = scmp.ge.s32.totalorder %s2048_s18, 1  ;;  %s2048_s18 = sphi %s2081_s18, %s15_s18  }
   0x2   : > { %p188_p1 = scmp.lt.s32.totalorder %s2048_s18, 3 }
   0x4   : > { %p189_p2 = pnand %p1687_p0, %p188_p1 }
   0x5   : > { %s1688_s20 = sshll.u32 (!%p189_p2), %s1683_s19, 5 }
   0x6   : > { %192 = sbr.rel (%p189_p2) target bundleno = 624 (0x270), region = 40  ;;  %p218_p3 = scmp.lt.s32.totalorder (!%p189_p2), %s1688_s20, 63 }
   0xb   : > { %s2810_s20 = smov (!%p218_p3, %s1688_s20), 63  ;;  %v1946_v32 = vld [vmem:[%s2806_s3 + $0xac] ss:$12 sps:$4 sm:$0xff]   ;;  %v1948_v33 = vld [vmem:[%s2806_s3 + $0xa8] ss:$12 sps:$4 sm:$0xff]  }
   0xc   : > { %s1689_s21 = sshll.u32 %s2810_s20, 3  ;;  %887 = vmatprep.subr.bf16.mxu0 %v1946_v32  ;;  %1920 = vmatprep.subr.bf16.mxu1 %v1946_v32  ;;  %s1936_s8 = smul.u32 12, %s2810_s20 }
   0xd   : > { %s2095_s24 = scalar_lea.vmem %s2803_s0, %s1689_s21  ;;  %888 = vmatpush1.bf16.msra.mxu0 %v1948_v33  ;;  %1928 = vmatpush1.bf16.msra.mxu1 %v1948_v33 }
   0xe   : > { %v2098_v0 = vld [vmem:[%s2095_s24] sm:$0xff]  ;;  %v2106_v2 = vld [vmem:[%s2095_s24 + $0x8] sm:$0xff]  ;;  %v2114_v4 = vld [vmem:[%s2095_s24 + $0x10] sm:$0xff]  ;;  %s2636_s11 = scalar_lea.vmem %s2808_s5, %s1936_s8 }
   0xf   : > { %v2101_v1 = vld [vmem:[%s2095_s24 + $0xc0] sm:$0xff]  ;;  %265 = vadd.xlane.f32.xlu0 %v2098_v0  ;;  %v2109_v3 = vld [vmem:[%s2095_s24 + $0xc8] sm:$0xff]  ;;  %v2117_v5 = vld [vmem:[%s2095_s24 + $0x18] sm:$0xff] }
  0x10   : > { %313 = vadd.xlane.f32.xlu1 %v2101_v1  ;;  %v2122_v6 = vld [vmem:[%s2095_s24 + $0xd0] sm:$0xff]  ;;  %v2125_v7 = vld [vmem:[%s2095_s24 + $0xd8] sm:$0xff]  ;;  %v2128_v8 = vld [vmem:[%s2095_s24 + $0x20] sm:$0xff] }
  0x11   : > { %v2133_v9 = vld [vmem:[%s2095_s24 + $0x28] sm:$0xff]  ;;  %v2138_v10 = vld [vmem:[%s2095_s24 + $0xe0] sm:$0xff]  ;;  %v2146_v12 = vld [vmem:[%s2095_s24 + $0x30] sm:$0xff] }
  0x12   : > { %v2141_v11 = vld [vmem:[%s2095_s24 + $0xe8] sm:$0xff]  ;;  %v2149_v13 = vld [vmem:[%s2095_s24 + $0x38] sm:$0xff]  ;;  %v2154_v14 = vld [vmem:[%s2095_s24 + $0xf0] sm:$0xff] }
  0x13   : > { %267 = vadd.xlane.f32.xlu0 %v2106_v2  ;;  %v2157_v15 = vld [vmem:[%s2095_s24 + $0xf8] sm:$0xff]  ;;  %v2162_v16 = vld [vmem:[%s2095_s24 + $0x40] sm:$0xff]  ;;  %v2165_v17 = vld [vmem:[%s2095_s24 + $0x48] sm:$0xff] }
  0x14   : > { %315 = vadd.xlane.f32.xlu1 %v2109_v3  ;;  %v2170_v18 = vld [vmem:[%s2095_s24 + $0x50] sm:$0xff]  ;;  %v2173_v19 = vld [vmem:[%s2095_s24 + $0x58] sm:$0xff]  ;;  %v2178_v20 = vld [vmem:[%s2095_s24 + $0x60] sm:$0xff] }
  0x15   : > { %v2181_v21 = vld [vmem:[%s2095_s24 + $0x68] sm:$0xff]  ;;  %v2186_v22 = vld [vmem:[%s2095_s24 + $0x70] sm:$0xff]  ;;  %v2189_v23 = vld [vmem:[%s2095_s24 + $0x78] sm:$0xff] }
  0x16   : > { %v2194_v24 = vld [vmem:[%s2095_s24 + $0x80] sm:$0xff]  ;;  %v2197_v25 = vld [vmem:[%s2095_s24 + $0x88] sm:$0xff]  ;;  %v2202_v26 = vld [vmem:[%s2095_s24 + $0x90] sm:$0xff] }
  0x17   : > { %269 = vadd.xlane.f32.xlu0 %v2114_v4  ;;  %v2205_v27 = vld [vmem:[%s2095_s24 + $0x98] sm:$0xff]  ;;  %v2210_v28 = vld [vmem:[%s2095_s24 + $0xa0] sm:$0xff]  ;;  %v2213_v29 = vld [vmem:[%s2095_s24 + $0xa8] sm:$0xff] }
  0x18   : > { %271 = vadd.xlane.f32.xlu1 %v2117_v5  ;;  %v2218_v30 = vld [vmem:[%s2095_s24 + $0xb0] sm:$0xff]  ;;  %v2221_v31 = vld [vmem:[%s2095_s24 + $0xb8] sm:$0xff] }
  0x1b   : > { %317 = vadd.xlane.f32.xlu0 %v2122_v6 }
  0x1c   : > { %319 = vadd.xlane.f32.xlu1 %v2125_v7 }
  0x1f   : > { %273 = vadd.xlane.f32.xlu0 %v2128_v8 }
  0x20   : > { %275 = vadd.xlane.f32.xlu1 %v2133_v9 }
  0x23   : > { %321 = vadd.xlane.f32.xlu0 %v2138_v10 }
  0x24   : > { %323 = vadd.xlane.f32.xlu1 %v2141_v11 }
  0x27   : > { %277 = vadd.xlane.f32.xlu0 %v2146_v12 }
  0x28   : > { %279 = vadd.xlane.f32.xlu1 %v2149_v13 }
  0x2b   : > { %325 = vadd.xlane.f32.xlu0 %v2154_v14 }
  0x2c   : > { %327 = vadd.xlane.f32.xlu1 %v2157_v15 }
  0x2f   : > { %281 = vadd.xlane.f32.xlu0 %v2162_v16 }
  0x30   : > { %283 = vadd.xlane.f32.xlu1 %v2165_v17 }
  0x33   : > { %285 = vadd.xlane.f32.xlu0 %v2170_v18 }
  0x34   : > { %287 = vadd.xlane.f32.xlu1 %v2173_v19 }
  0x37   : > { %289 = vadd.xlane.f32.xlu0 %v2178_v20 }
  0x38   : > { %291 = vadd.xlane.f32.xlu1 %v2181_v21 }
  0x3b   : > { %293 = vadd.xlane.f32.xlu0 %v2186_v22 }
  0x3c   : > { %295 = vadd.xlane.f32.xlu1 %v2189_v23 }
  0x3f   : > { %297 = vadd.xlane.f32.xlu0 %v2194_v24 }
  0x40   : > { %299 = vadd.xlane.f32.xlu1 %v2197_v25 }
  0x43   : > { %301 = vadd.xlane.f32.xlu0 %v2202_v26 }
  0x44   : > { %303 = vadd.xlane.f32.xlu1 %v2205_v27 }
  0x47   : > { %305 = vadd.xlane.f32.xlu0 %v2210_v28 }
  0x48   : > { %307 = vadd.xlane.f32.xlu1 %v2213_v29 }
  0x4b   : > { %309 = vadd.xlane.f32.xlu0 %v2218_v30 }
  0x4c   : > { %311 = vadd.xlane.f32.xlu1 %v2221_v31 }
  0x98   : > { %v266_v34 = vpop.xlane.xlu0 %265 }
  0x99   : > { %v314_v35 = vpop.xlane.xlu1 %313  ;;  %v330_v36 = vmul.f32 0.0078125, %v266_v34 }
  0x9a   : > { %v354_v37 = vmul.f32 0.0078125, %v314_v35 }
  0x9b   : > { %v2232_v38 = vsub.f32 %v2098_v0, %v330_v36 }
  0x9c   : > { %v2235_v39 = vsub.f32 %v2101_v1, %v354_v37  ;;  %v268_v40 = vpop.xlane.xlu0 %267 }
  0x9d   : > { %v316_v41 = vpop.xlane.xlu1 %315  ;;  %v331_v42 = vmul.f32 0.0078125, %v268_v40  ;;  %v394_v43 = vmul.f32 %v2232_v38, %v2232_v38 }
  0x9e   : > { %v355_v44 = vmul.f32 0.0078125, %v316_v41  ;;  %v418_v47 = vmul.f32 %v2235_v39, %v2235_v39 }
  0x9f   : > { %v2240_v45 = vsub.f32 %v2106_v2, %v331_v42  ;;  %426 = vadd.xlane.f32.xlu0 %v394_v43  ;;  %v1954_v43 = vld [vmem:[%s2806_s3 + $0x78] ss:$12 sps:$4 sm:$0xff]  }
  0xa0   : > { %v2243_v46 = vsub.f32 %v2109_v3, %v355_v44  ;;  %v270_v48 = vpop.xlane.xlu0 %269 }
  0xa1   : > { %v272_v49 = vpop.xlane.xlu1 %271  ;;  %v332_v50 = vmul.f32 0.0078125, %v270_v48  ;;  %v395_v51 = vmul.f32 %v2240_v45, %v2240_v45 }
  0xa2   : > { %v333_v52 = vmul.f32 0.0078125, %v272_v49  ;;  %v419_v55 = vmul.f32 %v2243_v46, %v2243_v46 }
  0xa3   : > { %v2250_v53 = vsub.f32 %v2114_v4, %v332_v50  ;;  %474 = vadd.xlane.f32.xlu0 %v418_v47  ;;  %428 = vadd.xlane.f32.xlu1 %v395_v51 }
  0xa4   : > { %v2253_v54 = vsub.f32 %v2117_v5, %v333_v52  ;;  %v318_v56 = vpop.xlane.xlu0 %317  ;;  %v1949_v5 = vld [vmem:[%s2806_s3 + $0x94] ss:$12 sps:$4 sm:$0xff]  }
  0xa5   : > { %v320_v57 = vpop.xlane.xlu1 %319  ;;  %v356_v58 = vmul.f32 0.0078125, %v318_v56  ;;  %v396_v59 = vmul.f32 %v2250_v53, %v2250_v53  ;;  %889 = vmatprep.subr.bf16.mxu0 %v1949_v5  ;;  %1921 = vmatprep.subr.bf16.mxu1 %v1949_v5 }
  0xa6   : > { %v357_v60 = vmul.f32 0.0078125, %v320_v57  ;;  %v397_v63 = vmul.f32 %v2253_v54, %v2253_v54 }
  0xa7   : > { %v2260_v61 = vsub.f32 %v2122_v6, %v356_v58  ;;  %476 = vadd.xlane.f32.xlu1 %v419_v55  ;;  %430 = vadd.xlane.f32.xlu0 %v396_v59  ;;  %v1951_v6 = vld [vmem:[%s2806_s3 + $0x90] ss:$12 sps:$4 sm:$0xff]   ;;  %v1957_v55 = vld [vmem:[%s2806_s3 + $0x60] ss:$12 sps:$4 sm:$0xff]  }
  0xa8   : > { %v2263_v62 = vsub.f32 %v2125_v7, %v357_v60  ;;  %v274_v0 = vpop.xlane.xlu0 %273  ;;  %890 = vmatpush1.bf16.msra.mxu0 %v1951_v6  ;;  %1929 = vmatpush1.bf16.msra.mxu1 %v1951_v6 }
  0xa9   : > { %v276_v1 = vpop.xlane.xlu1 %275  ;;  %v334_v2 = vmul.f32 0.0078125, %v274_v0  ;;  %v420_v3 = vmul.f32 %v2260_v61, %v2260_v61 }
  0xaa   : > { %v335_v4 = vmul.f32 0.0078125, %v276_v1  ;;  %v421_v33 = vmul.f32 %v2263_v62, %v2263_v62  ;;  %v1960_v1 = vld [vmem:[%s2806_s3 + $0x48] ss:$12 sps:$4 sm:$0xff]  }
  0xab   : > { %v2276_v7 = vsub.f32 %v2128_v8, %v334_v2  ;;  %432 = vadd.xlane.f32.xlu1 %v397_v63  ;;  %478 = vadd.xlane.f32.xlu0 %v420_v3  ;;  %v1952_v8 = vld [vmem:[%s2806_s3 + $0x7c] ss:$12 sps:$4 sm:$0xff]  }
  0xac   : > { %v2279_v32 = vsub.f32 %v2133_v9, %v335_v4  ;;  %v322_v34 = vpop.xlane.xlu0 %321  ;;  %891 = vmatprep.subr.bf16.mxu0 %v1952_v8  ;;  %1922 = vmatprep.subr.bf16.mxu1 %v1952_v8 }
  0xad   : > { %v324_v35 = vpop.xlane.xlu1 %323  ;;  %v358_v36 = vmul.f32 0.0078125, %v322_v34  ;;  %v398_v37 = vmul.f32 %v2276_v7, %v2276_v7  ;;  %892 = vmatpush1.bf16.msra.mxu0 %v1954_v43  ;;  %1930 = vmatpush1.bf16.msra.mxu1 %v1954_v43 }
  0xae   : > { %v359_v40 = vmul.f32 0.0078125, %v324_v35  ;;  %v399_v42 = vmul.f32 %v2279_v32, %v2279_v32  ;;  %v1963_v35 = vld [vmem:[%s2806_s3 + $0x30] ss:$12 sps:$4 sm:$0xff]  }
  0xaf   : > { %v2289_v9 = vsub.f32 %v2138_v10, %v358_v36  ;;  %480 = vadd.xlane.f32.xlu1 %v421_v33  ;;  %434 = vadd.xlane.f32.xlu0 %v398_v37 }
  0xb0   : > { %v2292_v41 = vsub.f32 %v2141_v11, %v359_v40  ;;  %v278_v44 = vpop.xlane.xlu0 %277  ;;  %v1955_v11 = vld [vmem:[%s2806_s3 + $0x64] ss:$12 sps:$4 sm:$0xff]  }
  0xb1   : > { %v280_v47 = vpop.xlane.xlu1 %279  ;;  %v336_v48 = vmul.f32 0.0078125, %v278_v44  ;;  %v422_v10 = vmul.f32 %v2289_v9, %v2289_v9  ;;  %893 = vmatprep.subr.bf16.mxu0 %v1955_v11  ;;  %1923 = vmatprep.subr.bf16.mxu1 %v1955_v11 }
  0xb2   : > { %v337_v49 = vmul.f32 0.0078125, %v280_v47  ;;  %v423_v52 = vmul.f32 %v2292_v41, %v2292_v41  ;;  %894 = vmatpush1.bf16.msra.mxu0 %v1957_v55  ;;  %1931 = vmatpush1.bf16.msra.mxu1 %v1957_v55  ;;  %v1966_v47 = vld [vmem:[%s2806_s3 + $0x18] ss:$12 sps:$4 sm:$0xff]  }
  0xb3   : > { %v2305_v50 = vsub.f32 %v2146_v12, %v336_v48  ;;  %436 = vadd.xlane.f32.xlu1 %v399_v42  ;;  %482 = vadd.xlane.f32.xlu0 %v422_v10 }
  0xb4   : > { %v2308_v51 = vsub.f32 %v2149_v13, %v337_v49  ;;  %v326_v56 = vpop.xlane.xlu0 %325  ;;  %v1958_v13 = vld [vmem:[%s2806_s3 + $0x4c] ss:$12 sps:$4 sm:$0xff]  }
  0xb5   : > { %v328_v57 = vpop.xlane.xlu1 %327  ;;  %v360_v58 = vmul.f32 0.0078125, %v326_v56  ;;  %v400_v12 = vmul.f32 %v2305_v50, %v2305_v50  ;;  %895 = vmatprep.subr.bf16.mxu0 %v1958_v13  ;;  %1924 = vmatprep.subr.bf16.mxu1 %v1958_v13 }
  0xb6   : > { %v361_v59 = vmul.f32 0.0078125, %v328_v57  ;;  %v401_v0 = vmul.f32 %v2308_v51, %v2308_v51  ;;  %896 = vmatpush1.bf16.msra.mxu0 %v1960_v1  ;;  %1932 = vmatpush1.bf16.msra.mxu1 %v1960_v1  ;;  %v1969_v57 = vld [vmem:[%s2806_s3] ss:$12 sps:$4 sm:$0xff]  }
  0xb7   : > { %v2321_v60 = vsub.f32 %v2154_v14, %v360_v58  ;;  %484 = vadd.xlane.f32.xlu1 %v423_v52  ;;  %438 = vadd.xlane.f32.xlu0 %v400_v12 }
  0xb8   : > { %v2324_v63 = vsub.f32 %v2157_v15, %v361_v59  ;;  %v282_v2 = vpop.xlane.xlu0 %281  ;;  %v1961_v15 = vld [vmem:[%s2806_s3 + $0x34] ss:$12 sps:$4 sm:$0xff]  }
  0xb9   : > { %v284_v3 = vpop.xlane.xlu1 %283  ;;  %v338_v4 = vmul.f32 0.0078125, %v282_v2  ;;  %v424_v14 = vmul.f32 %v2321_v60, %v2321_v60  ;;  %897 = vmatprep.subr.bf16.mxu0 %v1961_v15  ;;  %1925 = vmatprep.subr.bf16.mxu1 %v1961_v15 }
  0xba   : > { %v339_v5 = vmul.f32 0.0078125, %v284_v3  ;;  %v425_v34 = vmul.f32 %v2324_v63, %v2324_v63  ;;  %898 = vmatpush1.bf16.msra.mxu0 %v1963_v35  ;;  %1933 = vmatpush1.bf16.msra.mxu1 %v1963_v35 }
  0xbb   : > { %v2337_v6 = vsub.f32 %v2162_v16, %v338_v4  ;;  %440 = vadd.xlane.f32.xlu1 %v401_v0  ;;  %486 = vadd.xlane.f32.xlu0 %v424_v14  ;;  %v2050_v4 = vmov 0  }
  0xbc   : > { %v2340_v33 = vsub.f32 %v2165_v17, %v339_v5  ;;  %v286_v36 = vpop.xlane.xlu0 %285  ;;  %v1964_v17 = vld [vmem:[%s2806_s3 + $0x1c] ss:$12 sps:$4 sm:$0xff]   ;;  %919 = vmatprep.mubr.bf16.mxu0 %v2050_v4  ;;  %1039 = vmatprep.mubr.bf16.mxu1 %v2050_v4 }
  0xbd   : > { %v288_v37 = vpop.xlane.xlu1 %287  ;;  %v340_v40 = vmul.f32 0.0078125, %v286_v36  ;;  %v402_v16 = vmul.f32 %v2337_v6, %v2337_v6  ;;  %899 = vmatprep.subr.bf16.mxu0 %v1964_v17  ;;  %1926 = vmatprep.subr.bf16.mxu1 %v1964_v17 }
  0xbe   : > { %v341_v8 = vmul.f32 0.0078125, %v288_v37  ;;  %v403_v44 = vmul.f32 %v2340_v33, %v2340_v33  ;;  %900 = vmatpush1.bf16.msra.mxu0 %v1966_v47  ;;  %1934 = vmatpush1.bf16.msra.mxu1 %v1966_v47 }
  0xbf   : > { %v2353_v42 = vsub.f32 %v2170_v18, %v340_v40  ;;  %488 = vadd.xlane.f32.xlu1 %v425_v34  ;;  %442 = vadd.xlane.f32.xlu0 %v402_v16 }
  0xc0   : > { %v2356_v43 = vsub.f32 %v2173_v19, %v341_v8  ;;  %v290_v48 = vpop.xlane.xlu0 %289  ;;  %v1967_v19 = vld [vmem:[%s2806_s3 + $0x4] ss:$12 sps:$4 sm:$0xff]  }
  0xc1   : > { %v292_v10 = vpop.xlane.xlu1 %291  ;;  %v342_v49 = vmul.f32 0.0078125, %v290_v48  ;;  %v404_v18 = vmul.f32 %v2353_v42, %v2353_v42  ;;  %901 = vmatprep.subr.bf16.mxu0 %v1967_v19  ;;  %1927 = vmatprep.subr.bf16.mxu1 %v1967_v19 }
  0xc2   : > { %v343_v11 = vmul.f32 0.0078125, %v292_v10  ;;  %v405_v56 = vmul.f32 %v2356_v43, %v2356_v43  ;;  %902 = vmatpush1.bf16.msra.mxu0 %v1969_v57  ;;  %1935 = vmatpush1.bf16.msra.mxu1 %v1969_v57 }
  0xc3   : > { %v2369_v52 = vsub.f32 %v2178_v20, %v342_v49  ;;  %444 = vadd.xlane.f32.xlu1 %v403_v44  ;;  %446 = vadd.xlane.f32.xlu0 %v404_v18 }
  0xc4   : > { %v2372_v55 = vsub.f32 %v2181_v21, %v343_v11  ;;  %v294_v58 = vpop.xlane.xlu0 %293 }
  0xc5   : > { %v296_v12 = vpop.xlane.xlu1 %295  ;;  %v344_v59 = vmul.f32 0.0078125, %v294_v58  ;;  %v406_v20 = vmul.f32 %v2369_v52, %v2369_v52 }
  0xc6   : > { %v345_v13 = vmul.f32 0.0078125, %v296_v12  ;;  %v407_v1 = vmul.f32 %v2372_v55, %v2372_v55 }
  0xc7   : > { %v2382_v21 = vsub.f32 %v2186_v22, %v344_v59  ;;  %448 = vadd.xlane.f32.xlu1 %v405_v56  ;;  %450 = vadd.xlane.f32.xlu0 %v406_v20 }
  0xc8   : > { %v2385_v0 = vsub.f32 %v2189_v23, %v345_v13  ;;  %v298_v2 = vpop.xlane.xlu0 %297  ;;  %v2396_v23 = vld [vmem:[%s2806_s3 + $0xb0] ss:$12 sps:$4 sm:$0xff]  }
  0xc9   : > { %v300_v3 = vpop.xlane.xlu1 %299  ;;  %v346_v14 = vmul.f32 0.0078125, %v298_v2  ;;  %v408_v22 = vmul.f32 %v2382_v21, %v2382_v21  ;;  %1872 = vmatprep.subr.bf16.mxu1 %v2396_v23 }
  0xca   : > { %v347_v5 = vmul.f32 0.0078125, %v300_v3  ;;  %v409_v35 = vmul.f32 %v2385_v0, %v2385_v0 }
  0xcb   : > { %v2399_v15 = vsub.f32 %v2194_v24, %v346_v14  ;;  %452 = vadd.xlane.f32.xlu1 %v407_v1  ;;  %454 = vadd.xlane.f32.xlu0 %v408_v22 }
  0xcc   : > { %v2402_v34 = vsub.f32 %v2197_v25, %v347_v5  ;;  %v302_v36 = vpop.xlane.xlu0 %301 }
  0xcd   : > { %v304_v37 = vpop.xlane.xlu1 %303  ;;  %v348_v40 = vmul.f32 0.0078125, %v302_v36  ;;  %v410_v16 = vmul.f32 %v2399_v15, %v2399_v15 }
  0xce   : > { %v349_v8 = vmul.f32 0.0078125, %v304_v37  ;;  %v411_v17 = vmul.f32 %v2402_v34, %v2402_v34 }
  0xcf   : > { %v2410_v24 = vsub.f32 %v2202_v26, %v348_v40  ;;  %456 = vadd.xlane.f32.xlu1 %v409_v35  ;;  %458 = vadd.xlane.f32.xlu0 %v410_v16 }
  0xd0   : > { %v2413_v25 = vsub.f32 %v2205_v27, %v349_v8  ;;  %v306_v44 = vpop.xlane.xlu0 %305 }
  0xd1   : > { %v308_v47 = vpop.xlane.xlu1 %307  ;;  %v350_v48 = vmul.f32 0.0078125, %v306_v44  ;;  %v412_v10 = vmul.f32 %v2410_v24, %v2410_v24 }
  0xd2   : > { %v351_v49 = vmul.f32 0.0078125, %v308_v47  ;;  %v413_v27 = vmul.f32 %v2413_v25, %v2413_v25 }
  0xd3   : > { %v2420_v18 = vsub.f32 %v2210_v28, %v350_v48  ;;  %460 = vadd.xlane.f32.xlu1 %v411_v17  ;;  %462 = vadd.xlane.f32.xlu0 %v412_v10 }
  0xd4   : > { %v2423_v26 = vsub.f32 %v2213_v29, %v351_v49  ;;  %v310_v11 = vpop.xlane.xlu0 %309 }
  0xd5   : > { %v312_v19 = vpop.xlane.xlu1 %311  ;;  %v352_v56 = vmul.f32 0.0078125, %v310_v11  ;;  %v414_v57 = vmul.f32 %v2420_v18, %v2420_v18 }
  0xd6   : > { %v353_v58 = vmul.f32 0.0078125, %v312_v19  ;;  %v415_v29 = vmul.f32 %v2423_v26, %v2423_v26 }
  0xd7   : > { %v2430_v12 = vsub.f32 %v2218_v30, %v352_v56  ;;  %464 = vadd.xlane.f32.xlu1 %v413_v27  ;;  %466 = vadd.xlane.f32.xlu0 %v414_v57 }
  0xd8   : > { %v2433_v28 = vsub.f32 %v2221_v31, %v353_v58 }
  0xd9   : > { %v416_v59 = vmul.f32 %v2430_v12, %v2430_v12 }
  0xda   : > { %v417_v20 = vmul.f32 %v2433_v28, %v2433_v28 }
  0xdb   : > { %468 = vadd.xlane.f32.xlu1 %v415_v29  ;;  %470 = vadd.xlane.f32.xlu0 %v416_v59  ;;  %v2444_v59 = vld [vmem:[%s2804_s1] ss:$0 sm:$0xff] }
  0xdf   : > { %472 = vadd.xlane.f32.xlu1 %v417_v20 }
 0x128   : > { %v427_v13 = vpop.xlane.xlu0 %426 }
 0x129   : > { %v490_v30 = vmul.f32 0.0078125, %v427_v13 }
 0x12b   : > { %v522_v1 = vadd.f32 1e-05, %v490_v30 }
 0x12c   : > { %v429_v2 = vpop.xlane.xlu1 %428  ;;  %v475_v3 = vpop.xlane.xlu0 %474 }
 0x12d   : > { %1978 = vrsqrt.f32 %v522_v1  ;;  %v491_v31 = vmul.f32 0.0078125, %v429_v2  ;;  %v514_v14 = vmul.f32 0.0078125, %v475_v3 }
 0x12f   : > { %v523_v22 = vadd.f32 1e-05, %v491_v31  ;;  %v546_v5 = vadd.f32 1e-05, %v514_v14 }
 0x130   : > { %v477_v35 = vpop.xlane.xlu1 %476  ;;  %v431_v36 = vpop.xlane.xlu0 %430 }
 0x131   : > { %1980 = vrsqrt.f32 %v523_v22  ;;  %v515_v37 = vmul.f32 0.0078125, %v477_v35  ;;  %v492_v40 = vmul.f32 0.0078125, %v431_v36  ;;  %v2451_v35 = vld [vmem:[%s2805_s2] ss:$0 sm:$0xff] }
 0x132   : > { %1982 = vrsqrt.f32 %v546_v5 }
 0x133   : > { %v547_v16 = vadd.f32 1e-05, %v515_v37  ;;  %v524_v8 = vadd.f32 1e-05, %v492_v40 }
 0x134   : > { %v433_v17 = vpop.xlane.xlu1 %432  ;;  %v479_v44 = vpop.xlane.xlu0 %478 }
 0x135   : > { %1984 = vrsqrt.f32 %v547_v16  ;;  %v493_v47 = vmul.f32 0.0078125, %v433_v17  ;;  %v516_v48 = vmul.f32 0.0078125, %v479_v44 }
 0x136   : > { %1986 = vrsqrt.f32 %v524_v8 }
 0x137   : > { %v525_v10 = vadd.f32 1e-05, %v493_v47  ;;  %v548_v49 = vadd.f32 1e-05, %v516_v48 }
 0x138   : > { %v481_v27 = vpop.xlane.xlu1 %480  ;;  %v435_v11 = vpop.xlane.xlu0 %434 }
 0x139   : > { %1988 = vrsqrt.f32 %v525_v10  ;;  %v517_v19 = vmul.f32 0.0078125, %v481_v27  ;;  %v494_v56 = vmul.f32 0.0078125, %v435_v11 }
 0x13a   : > { %v1979_v57 = vpop.eup %1978  ;;  %1990 = vrsqrt.f32 %v548_v49 }
 0x13b   : > { %v549_v58 = vadd.f32 1e-05, %v517_v19  ;;  %v526_v29 = vadd.f32 1e-05, %v494_v56  ;;  %v586_v20 = vmul.f32 %v1979_v57, %v2232_v38 }
 0x13c   : > { %v437_v13 = vpop.xlane.xlu1 %436  ;;  %v483_v30 = vpop.xlane.xlu0 %482 }
 0x13d   : > { %1992 = vrsqrt.f32 %v549_v58  ;;  %v495_v1 = vmul.f32 0.0078125, %v437_v13  ;;  %v518_v2 = vmul.f32 0.0078125, %v483_v30  ;;  %v624_v31 = vmul.f32 %v2444_v59, %v586_v20 }
 0x13e   : > { %v1981_v3 = vpop.eup %1980  ;;  %1994 = vrsqrt.f32 %v526_v29 }
 0x13f   : > { %v1983_v14 = vpop.eup %1982  ;;  %v527_v22 = vadd.f32 1e-05, %v495_v1  ;;  %v550_v5 = vadd.f32 1e-05, %v518_v2  ;;  %v587_v36 = vmul.f32 %v1981_v3, %v2240_v45  ;;  %v662_v47 = vadd.f32 %v2451_v35, %v624_v31 }
 0x140   : > { %v485_v38 = vpop.xlane.xlu1 %484  ;;  %v439_v37 = vpop.xlane.xlu0 %438  ;;  %v610_v40 = vmul.f32 %v1983_v14, %v2235_v39 }
 0x141   : > { %1996 = vrsqrt.f32 %v527_v22  ;;  %v519_v16 = vmul.f32 0.0078125, %v485_v38  ;;  %v496_v8 = vmul.f32 0.0078125, %v439_v37  ;;  %v625_v17 = vmul.f32 %v2444_v59, %v587_v36 }
 0x142   : > { %v1985_v44 = vpop.eup %1984  ;;  %1998 = vrsqrt.f32 %v550_v5  ;;  %v648_v39 = vmul.f32 %v2444_v59, %v610_v40 }
 0x143   : > { %v1987_v48 = vpop.eup %1986  ;;  %v551_v10 = vadd.f32 1e-05, %v519_v16  ;;  %v528_v49 = vadd.f32 1e-05, %v496_v8  ;;  %v663_v27 = vadd.f32 %v2451_v35, %v625_v17  ;;  %v611_v45 = vmul.f32 %v1985_v44, %v2243_v46 }
 0x144   : > { %v441_v11 = vpop.xlane.xlu1 %440  ;;  %v487_v19 = vpop.xlane.xlu0 %486  ;;  %v588_v56 = vmul.f32 %v1987_v48, %v2250_v53  ;;  %v686_v14 = vadd.f32 %v2451_v35, %v648_v39 }
 0x145   : > { %2000 = vrsqrt.f32 %v551_v10  ;;  %v497_v57 = vmul.f32 0.0078125, %v441_v11  ;;  %v520_v58 = vmul.f32 0.0078125, %v487_v19  ;;  %v2461_v29 = vpack.c.bf16 %v663_v27, %v662_v47 }
 0x146   : > { %v1989_v20 = vpop.eup %1988  ;;  %2002 = vrsqrt.f32 %v528_v49  ;;  %v649_v13 = vmul.f32 %v2444_v59, %v611_v45  ;;  %v626_v30 = vmul.f32 %v2444_v59, %v588_v56 }
 0x147   : > { %v1991_v1 = vpop.eup %1990  ;;  %v529_v2 = vadd.f32 1e-05, %v497_v57  ;;  %v552_v46 = vadd.f32 1e-05, %v520_v58  ;;  %920 = vmatmul.mubr.bf16.vlgmr.msra.gmra.mxu0 %v2461_v29  ;;  %v589_v3 = vmul.f32 %v1989_v20, %v2253_v54  ;;  %v1971_v54 = vld [vmem:[%s2806_s3 + $0x98] ss:$12 sps:$4 sm:$0xff]  }
 0x148   : > { %v489_v31 = vpop.xlane.xlu1 %488  ;;  %v443_v53 = vpop.xlane.xlu0 %442  ;;  %v687_v22 = vadd.f32 %v2451_v35, %v649_v13  ;;  %929 = vmatprep.mubr.bf16.mxu0 %v2050_v4  ;;  %v612_v5 = vmul.f32 %v1991_v1, %v2260_v61  ;;  %v664_v8 = vadd.f32 %v2451_v35, %v626_v30 }
 0x149   : > { %2004 = vrsqrt.f32 %v529_v2  ;;  %v521_v36 = vmul.f32 0.0078125, %v489_v31  ;;  %v498_v38 = vmul.f32 0.0078125, %v443_v53  ;;  %v627_v37 = vmul.f32 %v2444_v59, %v589_v3 }
 0x14a   : > { %v1993_v40 = vpop.eup %1992  ;;  %2006 = vrsqrt.f32 %v552_v46  ;;  %v2472_v16 = vpack.c.bf16 %v687_v22, %v686_v14  ;;  %v650_v27 = vmul.f32 %v2444_v59, %v612_v5  ;;  %v1973_v5 = vld [vmem:[%s2806_s3 + $0x68] ss:$12 sps:$4 sm:$0xff]  }
 0x14b   : > { %v1995_v17 = vpop.eup %1994  ;;  %v553_v44 = vadd.f32 1e-05, %v521_v36  ;;  %v530_v47 = vadd.f32 1e-05, %v498_v38  ;;  %v665_v61 = vadd.f32 %v2451_v35, %v627_v37  ;;  %v613_v48 = vmul.f32 %v1993_v40, %v2263_v62  ;;  %v1972_v62 = vld [vmem:[%s2806_s3 + $0x80] ss:$12 sps:$4 sm:$0xff]  }
 0x14c   : > { %1040 = vmatmul.mubr.bf16.vlgmr.msra.gmra.mxu1 %v2472_v16  ;;  %v445_v10 = vpop.xlane.xlu1 %444  ;;  %v447_v49 = vpop.xlane.xlu0 %446  ;;  %v590_v45 = vmul.f32 %v1995_v17, %v2276_v7  ;;  %v688_v2 = vadd.f32 %v2451_v35, %v650_v27 }
 0x14d   : > { %2008 = vrsqrt.f32 %v553_v44  ;;  %1873 = vmatpush3.bf16.msra.mxu1 %v2396_v23  ;;  %v499_v11 = vmul.f32 0.0078125, %v445_v10  ;;  %v500_v19 = vmul.f32 0.0078125, %v447_v49  ;;  %v2484_v39 = vpack.c.bf16 %v665_v61, %v664_v8  ;;  %1049 = vmatprep.mubr.bf16.mxu1 %v2050_v4 }
 0x14e   : > { %v1997_v56 = vpop.eup %1996  ;;  %2010 = vrsqrt.f32 %v530_v47  ;;  %1874 = vmatprep.subr.bf16.mxu1 %v1971_v54  ;;  %v651_v57 = vmul.f32 %v2444_v59, %v613_v48  ;;  %v628_v13 = vmul.f32 %v2444_v59, %v590_v45 }
 0x14f   : > { %v1999_v58 = vpop.eup %1998  ;;  %v531_v7 = vadd.f32 1e-05, %v499_v11  ;;  %v532_v20 = vadd.f32 1e-05, %v500_v19  ;;  %930 = vmatmul.mubr.bf16.gmra.mxu0 %v2484_v39  ;;  %v591_v23 = vmul.f32 %v1997_v56, %v2279_v32 }
 0x150   : > { %v449_v30 = vpop.xlane.xlu1 %448  ;;  %v451_v1 = vpop.xlane.xlu0 %450  ;;  %v689_v46 = vadd.f32 %v2451_v35, %v651_v57  ;;  %939 = vmatprep.mubr.bf16.mxu0 %v2050_v4  ;;  %v614_v3 = vmul.f32 %v1999_v58, %v2289_v9  ;;  %v666_v37 = vadd.f32 %v2451_v35, %v628_v13 }
 0x151   : > { %2012 = vrsqrt.f32 %v531_v7  ;;  %1875 = vmatpush3.bf16.msra.mxu1 %v1971_v54  ;;  %v501_v31 = vmul.f32 0.0078125, %v449_v30  ;;  %v629_v53 = vmul.f32 %v2444_v59, %v591_v23  ;;  %v502_v32 = vmul.f32 0.0078125, %v451_v1  ;;  %v1975_v30 = vld [vmem:[%s2806_s3 + $0x38] ss:$12 sps:$4 sm:$0xff]  }
 0x152   : > { %v2001_v14 = vpop.eup %2000  ;;  %2014 = vrsqrt.f32 %v532_v20  ;;  %1876 = vmatprep.subr.bf16.mxu1 %v1972_v62  ;;  %v2499_v22 = vpack.c.bf16 %v689_v46, %v688_v2  ;;  %v652_v17 = vmul.f32 %v2444_v59, %v614_v3 }
 0x153   : > { %v2003_v36 = vpop.eup %2002  ;;  %v533_v38 = vadd.f32 1e-05, %v501_v31  ;;  %v667_v9 = vadd.f32 %v2451_v35, %v629_v53  ;;  %v615_v40 = vmul.f32 %v2001_v14, %v2292_v41  ;;  %v534_v10 = vadd.f32 1e-05, %v502_v32  ;;  %v1974_v41 = vld [vmem:[%s2806_s3 + $0x50] ss:$12 sps:$4 sm:$0xff]  }
 0x154   : > { %1050 = vmatmul.mubr.bf16.gmra.mxu1 %v2499_v22  ;;  %v453_v54 = vpop.xlane.xlu1 %452  ;;  %v455_v8 = vpop.xlane.xlu0 %454  ;;  %v592_v44 = vmul.f32 %v2003_v36, %v2305_v50  ;;  %v690_v57 = vadd.f32 %v2451_v35, %v652_v17 }
 0x155   : > { %2016 = vrsqrt.f32 %v533_v38  ;;  %1877 = vmatpush3.bf16.msra.mxu1 %v1972_v62  ;;  %v503_v47 = vmul.f32 0.0078125, %v453_v54  ;;  %v2510_v61 = vpack.c.bf16 %v667_v9, %v666_v37  ;;  %1059 = vmatprep.mubr.bf16.mxu1 %v2050_v4  ;;  %v653_v49 = vmul.f32 %v2444_v59, %v615_v40 }
 0x156   : > { %v2005_v48 = vpop.eup %2004  ;;  %1878 = vmatprep.subr.bf16.mxu1 %v1973_v5  ;;  %v504_v11 = vmul.f32 0.0078125, %v455_v8  ;;  %v630_v19 = vmul.f32 %v2444_v59, %v592_v44 }
 0x157   : > { %v2007_v27 = vpop.eup %2006  ;;  %v535_v45 = vadd.f32 1e-05, %v503_v47  ;;  %940 = vmatmul.mubr.bf16.gmra.mxu0 %v2510_v61  ;;  %v593_v50 = vmul.f32 %v2005_v48, %v2308_v51  ;;  %v691_v58 = vadd.f32 %v2451_v35, %v653_v49 }
 0x158   : > { %v457_v56 = vpop.xlane.xlu1 %456  ;;  %v459_v62 = vpop.xlane.xlu0 %458  ;;  %949 = vmatprep.mubr.bf16.mxu0 %v2050_v4  ;;  %v616_v7 = vmul.f32 %v2007_v27, %v2321_v60  ;;  %v536_v2 = vadd.f32 1e-05, %v504_v11  ;;  %v668_v46 = vadd.f32 %v2451_v35, %v630_v19  ;;  %v1977_v19 = vld [vmem:[%s2806_s3 + $0x8] ss:$12 sps:$4 sm:$0xff]  }
 0x159   : > { %2018 = vrsqrt.f32 %v535_v45  ;;  %1879 = vmatpush3.bf16.msra.mxu1 %v1973_v5  ;;  %v505_v20 = vmul.f32 0.0078125, %v457_v56  ;;  %v631_v23 = vmul.f32 %v2444_v59, %v593_v50  ;;  %v2525_v51 = vpack.c.bf16 %v691_v58, %v690_v57 }
 0x15a   : > { %v2009_v13 = vpop.eup %2008  ;;  %2020 = vrsqrt.f32 %v534_v10  ;;  %1880 = vmatprep.subr.bf16.mxu1 %v1974_v41  ;;  %v654_v32 = vmul.f32 %v2444_v59, %v616_v7  ;;  %v506_v44 = vmul.f32 0.0078125, %v459_v62 }
 0x15b   : > { %v2011_v1 = vpop.eup %2010  ;;  %v669_v60 = vadd.f32 %v2451_v35, %v631_v23  ;;  %v617_v3 = vmul.f32 %v2009_v13, %v2324_v63  ;;  %v537_v31 = vadd.f32 1e-05, %v505_v20  ;;  %v1976_v63 = vld [vmem:[%s2806_s3 + $0x20] ss:$12 sps:$4 sm:$0xff]   ;;  %2022 = vrsqrt.f32 %v536_v2 }
 0x15c   : > { %1060 = vmatmul.mubr.bf16.gmra.mxu1 %v2525_v51  ;;  %v461_v53 = vpop.xlane.xlu1 %460  ;;  %v463_v14 = vpop.xlane.xlu0 %462  ;;  %v594_v5 = vmul.f32 %v2011_v1, %v2337_v6  ;;  %v692_v10 = vadd.f32 %v2451_v35, %v654_v32  ;;  %v538_v23 = vadd.f32 1e-05, %v506_v44 }
 0x15d   : > { %1881 = vmatpush3.bf16.msra.mxu1 %v1974_v41  ;;  %v507_v36 = vmul.f32 0.0078125, %v461_v53  ;;  %v508_v38 = vmul.f32 0.0078125, %v463_v14  ;;  %v2536_v37 = vpack.c.bf16 %v669_v60, %v668_v46  ;;  %1069 = vmatprep.mubr.bf16.mxu1 %v2050_v4  ;;  %v655_v40 = vmul.f32 %v2444_v59, %v617_v3 }
 0x15e   : > { %v2013_v9 = vpop.eup %2012  ;;  %1882 = vmatprep.subr.bf16.mxu1 %v1975_v30  ;;  %v632_v54 = vmul.f32 %v2444_v59, %v594_v5  ;;  %2024 = vrsqrt.f32 %v537_v31 }
 0x15f   : > { %v2015_v8 = vpop.eup %2014  ;;  %v540_v6 = vadd.f32 1e-05, %v508_v38  ;;  %950 = vmatmul.mubr.bf16.gmra.mxu0 %v2536_v37  ;;  %v595_v17 = vmul.f32 %v2013_v9, %v2340_v33  ;;  %v693_v41 = vadd.f32 %v2451_v35, %v655_v40  ;;  %v539_v49 = vadd.f32 1e-05, %v507_v36 }
 0x160   : > { %v465_v47 = vpop.xlane.xlu1 %464  ;;  %v467_v48 = vpop.xlane.xlu0 %466  ;;  %959 = vmatprep.mubr.bf16.mxu0 %v2050_v4  ;;  %v670_v56 = vadd.f32 %v2451_v35, %v632_v54  ;;  %v596_v62 = vmul.f32 %v2015_v8, %v2353_v42 }
 0x161   : > { %1883 = vmatpush3.bf16.msra.mxu1 %v1975_v30  ;;  %v509_v27 = vmul.f32 0.0078125, %v465_v47  ;;  %v510_v45 = vmul.f32 0.0078125, %v467_v48  ;;  %v633_v11 = vmul.f32 %v2444_v59, %v595_v17  ;;  %2026 = vrsqrt.f32 %v540_v6 }
 0x162   : > { %v2017_v50 = vpop.eup %2016  ;;  %1884 = vmatprep.subr.bf16.mxu1 %v1976_v63  ;;  %v2550_v33 = vpack.c.bf16 %v693_v41, %v692_v10  ;;  %v634_v53 = vmul.f32 %v2444_v59, %v596_v62 }
 0x163   : > { %v541_v57 = vadd.f32 1e-05, %v509_v27  ;;  %v542_v58 = vadd.f32 1e-05, %v510_v45  ;;  %v671_v7 = vadd.f32 %v2451_v35, %v633_v11  ;;  %v597_v20 = vmul.f32 %v2017_v50, %v2356_v43 }
 0x164   : > { %1070 = vmatmul.mubr.bf16.gmra.mxu1 %v2550_v33  ;;  %v469_v13 = vpop.xlane.xlu1 %468  ;;  %v471_v30 = vpop.xlane.xlu0 %470  ;;  %v672_v38 = vadd.f32 %v2451_v35, %v634_v53 }
 0x165   : > { %2028 = vrsqrt.f32 %v541_v57  ;;  %1885 = vmatpush3.bf16.msra.mxu1 %v1976_v63  ;;  %v511_v1 = vmul.f32 0.0078125, %v469_v13  ;;  %1888 = vmatprep.mubr.bf16.mxu1 %v2461_v29  ;;  %v512_v2 = vmul.f32 0.0078125, %v471_v30  ;;  %v698_v46 = vpack.c.bf16 %v671_v7, %v670_v56 }
 0x166   : > { %v2019_v60 = vpop.eup %2018  ;;  %2030 = vrsqrt.f32 %v542_v58  ;;  %1886 = vmatprep.subr.bf16.mxu1 %v1977_v19  ;;  %v635_v42 = vmul.f32 %v2444_v59, %v597_v20 }
 0x167   : > { %v2021_v3 = vpop.eup %2020  ;;  %2032 = vrsqrt.f32 %v539_v49  ;;  %v543_v43 = vadd.f32 1e-05, %v511_v1  ;;  %v544_v31 = vadd.f32 1e-05, %v512_v2  ;;  %960 = vmatmul.mubr.bf16.gmra.mxu0 %v698_v46  ;;  %v599_v5 = vmul.f32 %v2019_v60, %v2372_v55 }
 0x168   : > { %2034 = vrsqrt.f32 %v538_v23  ;;  %v473_v14 = vpop.xlane.xlu1 %472  ;;  %969 = vmatprep.mubr.bf16.mxu0 %v2050_v4  ;;  %v673_v32 = vadd.f32 %v2451_v35, %v635_v42  ;;  %v598_v9 = vmul.f32 %v2021_v3, %v2369_v52  ;;  %v2023_v63 = vpop.eup %2022 }
 0x169   : > { %2036 = vrsqrt.f32 %v543_v43  ;;  %1887 = vmatpush3.bf16.msra.mxu1 %v1977_v19  ;;  %v513_v29 = vmul.f32 0.0078125, %v473_v14  ;;  %v637_v8 = vmul.f32 %v2444_v59, %v599_v5  ;;  %v600_v10 = vmul.f32 %v2023_v63, %v2382_v21 }
 0x16a   : > { %2038 = vrsqrt.f32 %v544_v31  ;;  %v699_v54 = vpack.c.bf16 %v673_v32, %v672_v38  ;;  %v636_v55 = vmul.f32 %v2444_v59, %v598_v9 }
 0x16b   : > { %v545_v36 = vadd.f32 1e-05, %v513_v29  ;;  %v2025_v40 = vpop.eup %2024  ;;  %v675_v52 = vadd.f32 %v2451_v35, %v637_v8 }
 0x16c   : > { %1889 = vmatmul.mubr.bf16.vlgmr.msra.gmra.mxu1 %v2484_v39  ;;  %v601_v44 = vmul.f32 %v2025_v40, %v2385_v0 }
 0x16d   : > { %2040 = vrsqrt.f32 %v545_v36  ;;  %1892 = vmatprep.mubr.bf16.mxu1 %v2510_v61  ;;  %v674_v61 = vadd.f32 %v2451_v35, %v636_v55 }
 0x16e   : > { %v2027_v6 = vpop.eup %2026  ;;  %v639_v11 = vmul.f32 %v2444_v59, %v601_v44 }
 0x16f   : > { %970 = vmatmul.mubr.bf16.gmra.mxu0 %v699_v54  ;;  %v604_v17 = vmul.f32 %v2027_v6, %v2410_v24  ;;  %v700_v0 = vpack.c.bf16 %v675_v52, %v674_v61 }
 0x170   : > { %979 = vmatprep.mubr.bf16.mxu0 %v2050_v4  ;;  %v677_v7 = vadd.f32 %v2451_v35, %v639_v11 }
 0x171   : > { %v642_v47 = vmul.f32 %v2444_v59, %v604_v17 }
 0x172   : > { %v2029_v39 = vpop.eup %2028 }
 0x173   : > { %v2031_v48 = vpop.eup %2030  ;;  %v605_v41 = vmul.f32 %v2029_v39, %v2413_v25  ;;  %v680_v27 = vadd.f32 %v2451_v35, %v642_v47  ;;  %v638_v25 = vmul.f32 %v2444_v59, %v600_v10 }
 0x174   : > { %v2033_v49 = vpop.eup %2032  ;;  %1893 = vmatmul.mubr.bf16.gmra.mxu1 %v2536_v37  ;;  %v606_v24 = vmul.f32 %v2031_v48, %v2420_v18 }
 0x175   : > { %v2035_v45 = vpop.eup %2034  ;;  %1896 = vmatprep.mubr.bf16.mxu1 %v698_v46  ;;  %v643_v50 = vmul.f32 %v2444_v59, %v605_v41  ;;  %v603_v37 = vmul.f32 %v2033_v49, %v2402_v34  ;;  %v676_v1 = vadd.f32 %v2451_v35, %v638_v25 }
 0x176   : > { %v2037_v19 = vpop.eup %2036  ;;  %v644_v56 = vmul.f32 %v2444_v59, %v606_v24  ;;  %v602_v20 = vmul.f32 %v2035_v45, %v2399_v15 }
 0x177   : > { %v2039_v21 = vpop.eup %2038  ;;  %980 = vmatmul.mubr.bf16.gmra.mxu0 %v700_v0  ;;  %v681_v62 = vadd.f32 %v2451_v35, %v643_v50  ;;  %v607_v18 = vmul.f32 %v2037_v19, %v2423_v26  ;;  %v641_v26 = vmul.f32 %v2444_v59, %v603_v37  ;;  %v701_v60 = vpack.c.bf16 %v677_v7, %v676_v1 }
 0x178   : > { %989 = vmatprep.mubr.bf16.mxu0 %v2050_v4  ;;  %v682_v57 = vadd.f32 %v2451_v35, %v644_v56  ;;  %v608_v58 = vmul.f32 %v2039_v21, %v2430_v12  ;;  %v640_v15 = vmul.f32 %v2444_v59, %v602_v20 }
 0x179   : > { %v703_v23 = vpack.c.bf16 %v681_v62, %v680_v27  ;;  %v645_v13 = vmul.f32 %v2444_v59, %v607_v18  ;;  %v679_v43 = vadd.f32 %v2451_v35, %v641_v26 }
 0x17a   : > { %v2041_v30 = vpop.eup %2040  ;;  %v646_v34 = vmul.f32 %v2444_v59, %v608_v58  ;;  %v678_v53 = vadd.f32 %v2451_v35, %v640_v15 }
 0x17b   : > { %v683_v2 = vadd.f32 %v2451_v35, %v645_v13  ;;  %v609_v46 = vmul.f32 %v2041_v30, %v2433_v28 }
 0x17c   : > { %1897 = vmatmul.mubr.bf16.gmra.mxu1 %v699_v54  ;;  %v684_v12 = vadd.f32 %v2451_v35, %v646_v34  ;;  %v702_v14 = vpack.c.bf16 %v679_v43, %v678_v53 }
 0x17d   : > { %1900 = vmatprep.mubr.bf16.mxu1 %v700_v0  ;;  %v704_v42 = vpack.c.bf16 %v683_v2, %v682_v57  ;;  %v647_v3 = vmul.f32 %v2444_v59, %v609_v46  ;;  %v744_v59 = vlaneseq }
 0x17f   : > { %990 = vmatmul.mubr.bf16.gmra.mxu0 %v701_v60  ;;  %v685_v31 = vadd.f32 %v2451_v35, %v647_v3  ;;  %v2615_v35 = vshrl.u32 %v744_v59, 7 }
 0x180   : > { %999 = vmatprep.mubr.bf16.mxu0 %v2050_v4 }
 0x181   : > { %v705_v28 = vpack.c.bf16 %v685_v31, %v684_v12  ;;  %v746_v29 = vsub.s32 0, %v2615_v35  ;;  %v750_v32 = vsub.s32 1, %v2615_v35 }
 0x184   : > { %1901 = vmatmul.mubr.bf16.gmra.mxu1 %v701_v60 }
 0x185   : > { %1904 = vmatprep.mubr.bf16.mxu1 %v702_v14 }
 0x187   : > { %1000 = vmatmul.mubr.bf16.gmra.mxu0 %v702_v14 }
 0x188   : > { %1009 = vmatprep.mubr.bf16.mxu0 %v2050_v4 }
 0x18c   : > { %1905 = vmatmul.mubr.bf16.gmra.mxu1 %v703_v23 }
 0x18d   : > { %1908 = vmatprep.mubr.bf16.mxu1 %v704_v42 }
 0x18f   : > { %1010 = vmatmul.mubr.bf16.gmra.mxu0 %v703_v23 }
 0x190   : > { %1019 = vmatprep.mubr.bf16.mxu0 %v2050_v4 }
 0x194   : > { %1909 = vmatmul.mubr.bf16.gmra.mxu1 %v705_v28 }
 0x195   : > { %1912 = vmatprep.mubr.bf16.mxu1 %v2472_v16  ;;  %v2622_v16 = vld [vmem:[%s2807_s4] sm:$0x7] }
 0x197   : > { %1020 = vmatmul.mubr.bf16.gmra.mxu0 %v704_v42 }
 0x198   : > { %1029 = vmatprep.mubr.bf16.mxu0 %v2050_v4  ;;  %v2625_v4 = vrot.slane %v2622_v16, %v746_v29 }
 0x19c   : > { %1913 = vmatmul.mubr.bf16.gmra.mxu1 %v2499_v22  ;;  %v2628_v22 = vrot.slane %v2622_v16, %v750_v32 }
 0x19d   : > { %1916 = vmatprep.mubr.bf16.mxu1 %v2525_v51 }
 0x19f   : > { %1030 = vmatmul.mubr.bf16.gmra.mxu0 %v705_v28 }
 0x1a4   : > { %1917 = vmatmul.mubr.bf16.gmra.mxu1 %v2550_v33 }
 0x207   : > { %v921_v51 = vpop.f32.mrf.mxu0 }
 0x208   : > { %v922_v5 = vadd.f32 %v921_v51, %v2625_v4 }
 0x209   : > { %v923_v33 = vpop.f32.mrf.mxu0 }
 0x20a   : > { %v924_v36 = vadd.f32 %v923_v33, %v2628_v22 }
 0x20b   : > { %v925_v38 = vpop.f32.mrf.mxu0 }
 0x20c   : > { %v1784_v9 = vpack.c.bf16 %v924_v36, %v922_v5  ;;  %v1041_v63 = vpop.f32.mrf.mxu1  ;;  %v926_v54 = vadd.f32 %v925_v38, %v2625_v4 }
 0x20d   : > { %v927_v40 = vpop.f32.mrf.mxu0  ;;  %v1042_v55 = vadd.f32 %v1041_v63, %v2625_v4 }
 0x20e   : > { %1561 = vst [vmem:[%s2636_s11] sm:$0xff] %v1784_v9  ;;  %v928_v8 = vadd.f32 %v927_v40, %v2628_v22  ;;  %v1043_v6 = vpop.f32.mrf.mxu1 }
 0x20f   : > { %v1044_v17 = vadd.f32 %v1043_v6, %v2628_v22  ;;  %v931_v52 = vpop.f32.mrf.mxu0 }
 0x210   : > { %v1786_v44 = vpack.c.bf16 %v928_v8, %v926_v54  ;;  %v1045_v39 = vpop.f32.mrf.mxu1  ;;  %v932_v61 = vadd.f32 %v931_v52, %v2625_v4  ;;  %v754_v54 = vsub.s32 2, %v2615_v35 }
 0x211   : > { %v1832_v47 = vpack.c.bf16 %v1044_v17, %v1042_v55  ;;  %v933_v48 = vpop.f32.mrf.mxu0  ;;  %v1046_v49 = vadd.f32 %v1045_v39, %v2625_v4 }
 0x212   : > { %1563 = vst [vmem:[%s2636_s11 + $0xc] sm:$0xff] %v1786_v44  ;;  %v934_v10 = vadd.f32 %v933_v48, %v2628_v22  ;;  %v1047_v41 = vpop.f32.mrf.mxu1  ;;  %v2681_v35 = vrot.slane %v2622_v16, %v754_v54 }
 0x213   : > { %1609 = vst [vmem:[%s2636_s11 + $0x120] sm:$0xff] %v1832_v47  ;;  %v1048_v27 = vadd.f32 %v1047_v41, %v2628_v22  ;;  %v935_v24 = vpop.f32.mrf.mxu0 }
 0x214   : > { %v1788_v45 = vpack.c.bf16 %v934_v10, %v932_v61  ;;  %v1051_v0 = vpop.f32.mrf.mxu1  ;;  %v936_v19 = vadd.f32 %v935_v24, %v2625_v4 }
 0x215   : > { %v1834_v11 = vpack.c.bf16 %v1048_v27, %v1046_v49  ;;  %v937_v50 = vpop.f32.mrf.mxu0  ;;  %v1052_v25 = vadd.f32 %v1051_v0, %v2625_v4 }
 0x216   : > { %1565 = vst [vmem:[%s2636_s11 + $0x18] sm:$0xff] %v1788_v45  ;;  %v938_v56 = vadd.f32 %v937_v50, %v2628_v22  ;;  %v1053_v21 = vpop.f32.mrf.mxu1 }
 0x217   : > { %1611 = vst [vmem:[%s2636_s11 + $0x12c] sm:$0xff] %v1834_v11  ;;  %v1054_v37 = vadd.f32 %v1053_v21, %v2628_v22  ;;  %v941_v62 = vpop.f32.mrf.mxu0 }
 0x218   : > { %v1790_v18 = vpack.c.bf16 %v938_v56, %v936_v19  ;;  %v1055_v57 = vpop.f32.mrf.mxu1  ;;  %v942_v20 = vadd.f32 %v941_v62, %v2625_v4 }
 0x219   : > { %v1836_v58 = vpack.c.bf16 %v1054_v37, %v1052_v25  ;;  %v943_v7 = vpop.f32.mrf.mxu0  ;;  %v1056_v30 = vadd.f32 %v1055_v57, %v2625_v4 }
 0x21a   : > { %1567 = vst [vmem:[%s2636_s11 + $0x24] sm:$0xff] %v1790_v18  ;;  %v944_v23 = vadd.f32 %v943_v7, %v2628_v22  ;;  %v1057_v13 = vpop.f32.mrf.mxu1 }
 0x21b   : > { %1613 = vst [vmem:[%s2636_s11 + $0x138] sm:$0xff] %v1836_v58  ;;  %v1058_v34 = vadd.f32 %v1057_v13, %v2628_v22  ;;  %v945_v1 = vpop.f32.mrf.mxu0 }
 0x21c   : > { %v1792_v26 = vpack.c.bf16 %v944_v23, %v942_v20  ;;  %v1061_v2 = vpop.f32.mrf.mxu1  ;;  %v946_v60 = vadd.f32 %v945_v1, %v2625_v4 }
 0x21d   : > { %v1838_v46 = vpack.c.bf16 %v1058_v34, %v1056_v30  ;;  %v947_v12 = vpop.f32.mrf.mxu0  ;;  %v1062_v3 = vadd.f32 %v1061_v2, %v2625_v4 }
 0x21e   : > { %1569 = vst [vmem:[%s2636_s11 + $0x30] sm:$0xff] %v1792_v26  ;;  %v948_v15 = vadd.f32 %v947_v12, %v2628_v22  ;;  %v1063_v42 = vpop.f32.mrf.mxu1 }
 0x21f   : > { %1615 = vst [vmem:[%s2636_s11 + $0x144] sm:$0xff] %v1838_v46  ;;  %v1064_v43 = vadd.f32 %v1063_v42, %v2628_v22  ;;  %v951_v31 = vpop.f32.mrf.mxu0 }
 0x220   : > { %v1794_v53 = vpack.c.bf16 %v948_v15, %v946_v60  ;;  %v1065_v28 = vpop.f32.mrf.mxu1  ;;  %v952_v29 = vadd.f32 %v951_v31, %v2625_v4 }
 0x221   : > { %v1840_v14 = vpack.c.bf16 %v1064_v43, %v1062_v3  ;;  %v953_v59 = vpop.f32.mrf.mxu0  ;;  %v1066_v33 = vadd.f32 %v1065_v28, %v2625_v4 }
 0x222   : > { %1571 = vst [vmem:[%s2636_s11 + $0x3c] sm:$0xff] %v1794_v53  ;;  %v954_v32 = vadd.f32 %v953_v59, %v2628_v22  ;;  %v1067_v51 = vpop.f32.mrf.mxu1 }
 0x223   : > { %1617 = vst [vmem:[%s2636_s11 + $0x150] sm:$0xff] %v1840_v14  ;;  %v1068_v5 = vadd.f32 %v1067_v51, %v2628_v22  ;;  %v955_v36 = vpop.f32.mrf.mxu0 }
 0x224   : > { %v1796_v38 = vpack.c.bf16 %v954_v32, %v952_v29  ;;  %v1071_v9 = vpop.f32.mrf.mxu1  ;;  %v956_v8 = vadd.f32 %v955_v36, %v2625_v4 }
 0x225   : > { %v1842_v63 = vpack.c.bf16 %v1068_v5, %v1066_v33  ;;  %v957_v40 = vpop.f32.mrf.mxu0  ;;  %v1072_v17 = vadd.f32 %v1071_v9, %v2625_v4 }
 0x226   : > { %1573 = vst [vmem:[%s2636_s11 + $0x48] sm:$0xff] %v1796_v38  ;;  %v958_v6 = vadd.f32 %v957_v40, %v2628_v22  ;;  %v1073_v55 = vpop.f32.mrf.mxu1 }
 0x227   : > { %1619 = vst [vmem:[%s2636_s11 + $0x15c] sm:$0xff] %v1842_v63  ;;  %v1074_v52 = vadd.f32 %v1073_v55, %v2628_v22  ;;  %v961_v44 = vpop.f32.mrf.mxu0 }
 0x228   : > { %v1798_v39 = vpack.c.bf16 %v958_v6, %v956_v8  ;;  %v1075_v47 = vpop.f32.mrf.mxu1  ;;  %v962_v10 = vadd.f32 %v961_v44, %v2625_v4 }
 0x229   : > { %v1844_v48 = vpack.c.bf16 %v1074_v52, %v1072_v17  ;;  %v963_v61 = vpop.f32.mrf.mxu0  ;;  %v1076_v27 = vadd.f32 %v1075_v47, %v2625_v4 }
 0x22a   : > { %1575 = vst [vmem:[%s2636_s11 + $0x54] sm:$0xff] %v1798_v39  ;;  %v964_v41 = vadd.f32 %v963_v61, %v2628_v22  ;;  %v1077_v49 = vpop.f32.mrf.mxu1 }
 0x22b   : > { %1621 = vst [vmem:[%s2636_s11 + $0x168] sm:$0xff] %v1844_v48  ;;  %v1078_v24 = vadd.f32 %v1077_v49, %v2628_v22  ;;  %v965_v45 = vpop.f32.mrf.mxu0 }
 0x22c   : > { %v1800_v0 = vpack.c.bf16 %v964_v41, %v962_v10  ;;  %v1890_v11 = vpop.f32.mrf.mxu1  ;;  %v966_v56 = vadd.f32 %v965_v45, %v2625_v4 }
 0x22d   : > { %v1846_v50 = vpack.c.bf16 %v1078_v24, %v1076_v27  ;;  %v1123_v16 = vadd.f32 %v1890_v11, %v2681_v35  ;;  %v967_v19 = vpop.f32.mrf.mxu0 }
 0x22e   : > { %1577 = vst [vmem:[%s2636_s11 + $0x60] sm:$0xff] %v1800_v0  ;;  %v968_v21 = vadd.f32 %v967_v19, %v2628_v22  ;;  %v1114_v25 = vpop.f32.mrf.mxu1 }
 0x22f   : > { %1623 = vst [vmem:[%s2636_s11 + $0x174] sm:$0xff] %v1846_v50  ;;  %v1789_v37 = vpack.c.bf16 %v1123_v16, %v1123_v16  ;;  %v1115_v62 = vadd.f32 %v1114_v25, %v2681_v35  ;;  %v971_v18 = vpop.f32.mrf.mxu0 }
 0x230   : > { %v1802_v57 = vpack.c.bf16 %v968_v21, %v966_v56  ;;  %v1891_v58 = vpop.f32.mrf.mxu1  ;;  %v972_v13 = vadd.f32 %v971_v18, %v2625_v4 }
 0x231   : > { %1566 = vst [vmem:[%s2636_s11 + $0x20] sm:$0xf] %v1789_v37  ;;  %v1785_v7 = vpack.c.bf16 %v1115_v62, %v1115_v62  ;;  %v1126_v20 = vadd.f32 %v1891_v58, %v2681_v35  ;;  %v973_v23 = vpop.f32.mrf.mxu0 }
 0x232   : > { %1579 = vst [vmem:[%s2636_s11 + $0x6c] sm:$0xff] %v1802_v57  ;;  %v974_v30 = vadd.f32 %v973_v23, %v2628_v22  ;;  %v1117_v34 = vpop.f32.mrf.mxu1 }
 0x233   : > { %1562 = vst [vmem:[%s2636_s11 + $0x8] sm:$0xf] %v1785_v7  ;;  %v1791_v1 = vpack.c.bf16 %v1126_v20, %v1126_v20  ;;  %v1118_v26 = vadd.f32 %v1117_v34, %v2681_v35  ;;  %v975_v2 = vpop.f32.mrf.mxu0 }
 0x234   : > { %v1804_v46 = vpack.c.bf16 %v974_v30, %v972_v13  ;;  %v1894_v12 = vpop.f32.mrf.mxu1  ;;  %v976_v3 = vadd.f32 %v975_v2, %v2625_v4 }
 0x235   : > { %1568 = vst [vmem:[%s2636_s11 + $0x2c] sm:$0xf] %v1791_v1  ;;  %v1787_v60 = vpack.c.bf16 %v1118_v26, %v1118_v26  ;;  %v1139_v15 = vadd.f32 %v1894_v12, %v2681_v35  ;;  %v977_v42 = vpop.f32.mrf.mxu0 }
 0x236   : > { %1581 = vst [vmem:[%s2636_s11 + $0x78] sm:$0xff] %v1804_v46  ;;  %v978_v43 = vadd.f32 %v977_v42, %v2628_v22  ;;  %v1130_v31 = vpop.f32.mrf.mxu1 }
 0x237   : > { %1564 = vst [vmem:[%s2636_s11 + $0x14] sm:$0xf] %v1787_v60  ;;  %v1797_v53 = vpack.c.bf16 %v1139_v15, %v1139_v15  ;;  %v1131_v28 = vadd.f32 %v1130_v31, %v2681_v35  ;;  %v981_v14 = vpop.f32.mrf.mxu0 }
 0x238   : > { %v1806_v59 = vpack.c.bf16 %v978_v43, %v976_v3  ;;  %v1895_v29 = vpop.f32.mrf.mxu1  ;;  %v982_v5 = vadd.f32 %v981_v14, %v2625_v4 }
 0x239   : > { %1574 = vst [vmem:[%s2636_s11 + $0x50] sm:$0xf] %v1797_v53  ;;  %v1793_v32 = vpack.c.bf16 %v1131_v28, %v1131_v28  ;;  %v1142_v51 = vadd.f32 %v1895_v29, %v2681_v35  ;;  %v983_v33 = vpop.f32.mrf.mxu0 }
 0x23a   : > { %1583 = vst [vmem:[%s2636_s11 + $0x84] sm:$0xff] %v1806_v59  ;;  %v984_v36 = vadd.f32 %v983_v33, %v2628_v22  ;;  %v1133_v38 = vpop.f32.mrf.mxu1 }
 0x23b   : > { %1570 = vst [vmem:[%s2636_s11 + $0x38] sm:$0xf] %v1793_v32  ;;  %v1799_v9 = vpack.c.bf16 %v1142_v51, %v1142_v51  ;;  %v1134_v63 = vadd.f32 %v1133_v38, %v2681_v35  ;;  %v985_v40 = vpop.f32.mrf.mxu0 }
 0x23c   : > { %v1808_v54 = vpack.c.bf16 %v984_v36, %v982_v5  ;;  %v1898_v8 = vpop.f32.mrf.mxu1  ;;  %v986_v52 = vadd.f32 %v985_v40, %v2625_v4 }
 0x23d   : > { %1576 = vst [vmem:[%s2636_s11 + $0x5c] sm:$0xf] %v1799_v9  ;;  %v1795_v6 = vpack.c.bf16 %v1134_v63, %v1134_v63  ;;  %v1155_v55 = vadd.f32 %v1898_v8, %v2681_v35  ;;  %v987_v17 = vpop.f32.mrf.mxu0 }
 0x23e   : > { %1585 = vst [vmem:[%s2636_s11 + $0x90] sm:$0xff] %v1808_v54  ;;  %v988_v44 = vadd.f32 %v987_v17, %v2628_v22  ;;  %v1146_v39 = vpop.f32.mrf.mxu1 }
 0x23f   : > { %1572 = vst [vmem:[%s2636_s11 + $0x44] sm:$0xf] %v1795_v6  ;;  %v1805_v47 = vpack.c.bf16 %v1155_v55, %v1155_v55  ;;  %v1147_v48 = vadd.f32 %v1146_v39, %v2681_v35  ;;  %v991_v61 = vpop.f32.mrf.mxu0 }
 0x240   : > { %v1810_v10 = vpack.c.bf16 %v988_v44, %v986_v52  ;;  %v1899_v41 = vpop.f32.mrf.mxu1  ;;  %v992_v45 = vadd.f32 %v991_v61, %v2625_v4 }
 0x241   : > { %1582 = vst [vmem:[%s2636_s11 + $0x80] sm:$0xf] %v1805_v47  ;;  %v1801_v49 = vpack.c.bf16 %v1147_v48, %v1147_v48  ;;  %v1158_v27 = vadd.f32 %v1899_v41, %v2681_v35  ;;  %v993_v24 = vpop.f32.mrf.mxu0 }
 0x242   : > { %1587 = vst [vmem:[%s2636_s11 + $0x9c] sm:$0xff] %v1810_v10  ;;  %v994_v0 = vadd.f32 %v993_v24, %v2628_v22  ;;  %v1149_v11 = vpop.f32.mrf.mxu1 }
 0x243   : > { %1578 = vst [vmem:[%s2636_s11 + $0x68] sm:$0xf] %v1801_v49  ;;  %v1807_v50 = vpack.c.bf16 %v1158_v27, %v1158_v27  ;;  %v1150_v16 = vadd.f32 %v1149_v11, %v2681_v35  ;;  %v995_v19 = vpop.f32.mrf.mxu0 }
 0x244   : > { %v1812_v56 = vpack.c.bf16 %v994_v0, %v992_v45  ;;  %v1902_v21 = vpop.f32.mrf.mxu1  ;;  %v996_v18 = vadd.f32 %v995_v19, %v2625_v4 }
 0x245   : > { %1584 = vst [vmem:[%s2636_s11 + $0x8c] sm:$0xf] %v1807_v50  ;;  %v1803_v25 = vpack.c.bf16 %v1150_v16, %v1150_v16  ;;  %v1171_v37 = vadd.f32 %v1902_v21, %v2681_v35  ;;  %v997_v62 = vpop.f32.mrf.mxu0 }
 0x246   : > { %1589 = vst [vmem:[%s2636_s11 + $0xa8] sm:$0xff] %v1812_v56  ;;  %v998_v57 = vadd.f32 %v997_v62, %v2628_v22  ;;  %v1162_v58 = vpop.f32.mrf.mxu1 }
 0x247   : > { %1580 = vst [vmem:[%s2636_s11 + $0x74] sm:$0xf] %v1803_v25  ;;  %v1813_v7 = vpack.c.bf16 %v1171_v37, %v1171_v37  ;;  %v1163_v20 = vadd.f32 %v1162_v58, %v2681_v35  ;;  %v1001_v23 = vpop.f32.mrf.mxu0 }
 0x248   : > { %v1814_v13 = vpack.c.bf16 %v998_v57, %v996_v18  ;;  %v1903_v30 = vpop.f32.mrf.mxu1  ;;  %v1002_v2 = vadd.f32 %v1001_v23, %v2625_v4 }
 0x249   : > { %1590 = vst [vmem:[%s2636_s11 + $0xb0] sm:$0xf] %v1813_v7  ;;  %v1809_v34 = vpack.c.bf16 %v1163_v20, %v1163_v20  ;;  %v1174_v1 = vadd.f32 %v1903_v30, %v2681_v35  ;;  %v1003_v26 = vpop.f32.mrf.mxu0 }
 0x24a   : > { %1591 = vst [vmem:[%s2636_s11 + $0xb4] sm:$0xff] %v1814_v13  ;;  %v1004_v46 = vadd.f32 %v1003_v26, %v2628_v22  ;;  %v1165_v12 = vpop.f32.mrf.mxu1 }
 0x24b   : > { %1586 = vst [vmem:[%s2636_s11 + $0x98] sm:$0xf] %v1809_v34  ;;  %v1815_v60 = vpack.c.bf16 %v1174_v1, %v1174_v1  ;;  %v1166_v15 = vadd.f32 %v1165_v12, %v2681_v35  ;;  %v1005_v42 = vpop.f32.mrf.mxu0 }
 0x24c   : > { %v1816_v3 = vpack.c.bf16 %v1004_v46, %v1002_v2  ;;  %v1906_v43 = vpop.f32.mrf.mxu1  ;;  %v1006_v14 = vadd.f32 %v1005_v42, %v2625_v4 }
 0x24d   : > { %1592 = vst [vmem:[%s2636_s11 + $0xbc] sm:$0xf] %v1815_v60  ;;  %v1811_v31 = vpack.c.bf16 %v1166_v15, %v1166_v15  ;;  %v1187_v53 = vadd.f32 %v1906_v43, %v2681_v35  ;;  %v1007_v28 = vpop.f32.mrf.mxu0 }
 0x24e   : > { %1593 = vst [vmem:[%s2636_s11 + $0xc0] sm:$0xff] %v1816_v3  ;;  %v1008_v59 = vadd.f32 %v1007_v28, %v2628_v22  ;;  %v1178_v29 = vpop.f32.mrf.mxu1 }
 0x24f   : > { %1588 = vst [vmem:[%s2636_s11 + $0xa4] sm:$0xf] %v1811_v31  ;;  %v1821_v32 = vpack.c.bf16 %v1187_v53, %v1187_v53  ;;  %v1179_v51 = vadd.f32 %v1178_v29, %v2681_v35  ;;  %v1011_v33 = vpop.f32.mrf.mxu0 }
 0x250   : > { %v1818_v5 = vpack.c.bf16 %v1008_v59, %v1006_v14  ;;  %v1907_v36 = vpop.f32.mrf.mxu1  ;;  %v1012_v40 = vadd.f32 %v1011_v33, %v2625_v4 }
 0x251   : > { %1598 = vst [vmem:[%s2636_s11 + $0xe0] sm:$0xf] %v1821_v32  ;;  %v1817_v38 = vpack.c.bf16 %v1179_v51, %v1179_v51  ;;  %v1190_v9 = vadd.f32 %v1907_v36, %v2681_v35  ;;  %v1013_v63 = vpop.f32.mrf.mxu0 }
 0x252   : > { %1595 = vst [vmem:[%s2636_s11 + $0xcc] sm:$0xff] %v1818_v5  ;;  %v1014_v54 = vadd.f32 %v1013_v63, %v2628_v22  ;;  %v1181_v8 = vpop.f32.mrf.mxu1 }
 0x253   : > { %1594 = vst [vmem:[%s2636_s11 + $0xc8] sm:$0xf] %v1817_v38  ;;  %v1823_v6 = vpack.c.bf16 %v1190_v9, %v1190_v9  ;;  %v1182_v55 = vadd.f32 %v1181_v8, %v2681_v35  ;;  %v1015_v17 = vpop.f32.mrf.mxu0 }
 0x254   : > { %v1820_v52 = vpack.c.bf16 %v1014_v54, %v1012_v40  ;;  %v1910_v44 = vpop.f32.mrf.mxu1  ;;  %v1016_v61 = vadd.f32 %v1015_v17, %v2625_v4 }
 0x255   : > { %1600 = vst [vmem:[%s2636_s11 + $0xec] sm:$0xf] %v1823_v6  ;;  %v1819_v39 = vpack.c.bf16 %v1182_v55, %v1182_v55  ;;  %v1203_v47 = vadd.f32 %v1910_v44, %v2681_v35  ;;  %v1017_v48 = vpop.f32.mrf.mxu0 }
 0x256   : > { %1597 = vst [vmem:[%s2636_s11 + $0xd8] sm:$0xff] %v1820_v52  ;;  %v1018_v10 = vadd.f32 %v1017_v48, %v2628_v22  ;;  %v1194_v41 = vpop.f32.mrf.mxu1 }
 0x257   : > { %1596 = vst [vmem:[%s2636_s11 + $0xd4] sm:$0xf] %v1819_v39  ;;  %v1829_v49 = vpack.c.bf16 %v1203_v47, %v1203_v47  ;;  %v1195_v27 = vadd.f32 %v1194_v41, %v2681_v35  ;;  %v1021_v24 = vpop.f32.mrf.mxu0 }
 0x258   : > { %v1822_v45 = vpack.c.bf16 %v1018_v10, %v1016_v61  ;;  %v1911_v0 = vpop.f32.mrf.mxu1  ;;  %v1022_v19 = vadd.f32 %v1021_v24, %v2625_v4 }
 0x259   : > { %1606 = vst [vmem:[%s2636_s11 + $0x110] sm:$0xf] %v1829_v49  ;;  %v1825_v11 = vpack.c.bf16 %v1195_v27, %v1195_v27  ;;  %v1206_v50 = vadd.f32 %v1911_v0, %v2681_v35  ;;  %v1023_v16 = vpop.f32.mrf.mxu0 }
 0x25a   : > { %1599 = vst [vmem:[%s2636_s11 + $0xe4] sm:$0xff] %v1822_v45  ;;  %v1024_v56 = vadd.f32 %v1023_v16, %v2628_v22  ;;  %v1197_v21 = vpop.f32.mrf.mxu1 }
 0x25b   : > { %1602 = vst [vmem:[%s2636_s11 + $0xf8] sm:$0xf] %v1825_v11  ;;  %v1831_v25 = vpack.c.bf16 %v1206_v50, %v1206_v50  ;;  %v1198_v37 = vadd.f32 %v1197_v21, %v2681_v35  ;;  %v1025_v62 = vpop.f32.mrf.mxu0 }
 0x25c   : > { %v1824_v18 = vpack.c.bf16 %v1024_v56, %v1022_v19  ;;  %v1914_v57 = vpop.f32.mrf.mxu1  ;;  %v1026_v23 = vadd.f32 %v1025_v62, %v2625_v4 }
 0x25d   : > { %1608 = vst [vmem:[%s2636_s11 + $0x11c] sm:$0xf] %v1831_v25  ;;  %v1827_v58 = vpack.c.bf16 %v1198_v37, %v1198_v37  ;;  %v1219_v7 = vadd.f32 %v1914_v57, %v2681_v35  ;;  %v1027_v20 = vpop.f32.mrf.mxu0 }
 0x25e   : > { %1601 = vst [vmem:[%s2636_s11 + $0xf0] sm:$0xff] %v1824_v18  ;;  %v1028_v13 = vadd.f32 %v1027_v20, %v2628_v22  ;;  %v1210_v30 = vpop.f32.mrf.mxu1 }
 0x25f   : > { %1604 = vst [vmem:[%s2636_s11 + $0x104] sm:$0xf] %v1827_v58  ;;  %v1837_v34 = vpack.c.bf16 %v1219_v7, %v1219_v7  ;;  %v1211_v1 = vadd.f32 %v1210_v30, %v2681_v35  ;;  %v1031_v26 = vpop.f32.mrf.mxu0 }
 0x260   : > { %v1826_v2 = vpack.c.bf16 %v1028_v13, %v1026_v23  ;;  %v1915_v46 = vpop.f32.mrf.mxu1  ;;  %v1032_v42 = vadd.f32 %v1031_v26, %v2625_v4 }
 0x261   : > { %1614 = vst [vmem:[%s2636_s11 + $0x140] sm:$0xf] %v1837_v34  ;;  %v1833_v12 = vpack.c.bf16 %v1211_v1, %v1211_v1  ;;  %v1222_v60 = vadd.f32 %v1915_v46, %v2681_v35  ;;  %v1033_v15 = vpop.f32.mrf.mxu0 }
 0x262   : > { %1603 = vst [vmem:[%s2636_s11 + $0xfc] sm:$0xff] %v1826_v2  ;;  %v1034_v3 = vadd.f32 %v1033_v15, %v2628_v22  ;;  %v1213_v43 = vpop.f32.mrf.mxu1 }
 0x263   : > { %1610 = vst [vmem:[%s2636_s11 + $0x128] sm:$0xf] %v1833_v12  ;;  %v1839_v31 = vpack.c.bf16 %v1222_v60, %v1222_v60  ;;  %v1214_v53 = vadd.f32 %v1213_v43, %v2681_v35  ;;  %v1035_v28 = vpop.f32.mrf.mxu0 }
 0x264   : > { %v1828_v14 = vpack.c.bf16 %v1034_v3, %v1032_v42  ;;  %v1918_v59 = vpop.f32.mrf.mxu1  ;;  %v1036_v33 = vadd.f32 %v1035_v28, %v2625_v4 }
 0x265   : > { %1616 = vst [vmem:[%s2636_s11 + $0x14c] sm:$0xf] %v1839_v31  ;;  %v1835_v29 = vpack.c.bf16 %v1214_v53, %v1214_v53  ;;  %v1235_v32 = vadd.f32 %v1918_v59, %v2681_v35  ;;  %v1037_v51 = vpop.f32.mrf.mxu0 }
 0x266   : > { %1605 = vst [vmem:[%s2636_s11 + $0x108] sm:$0xff] %v1828_v14  ;;  %v1038_v5 = vadd.f32 %v1037_v51, %v2628_v22  ;;  %v1226_v36 = vpop.f32.mrf.mxu1 }
 0x267   : > { %1612 = vst [vmem:[%s2636_s11 + $0x134] sm:$0xf] %v1835_v29  ;;  %v1845_v38 = vpack.c.bf16 %v1235_v32, %v1235_v32  ;;  %v1227_v9 = vadd.f32 %v1226_v36, %v2681_v35 }
 0x268   : > { %v1830_v63 = vpack.c.bf16 %v1038_v5, %v1036_v33  ;;  %v1919_v40 = vpop.f32.mrf.mxu1 }
 0x269   : > { %1622 = vst [vmem:[%s2636_s11 + $0x170] sm:$0xf] %v1845_v38  ;;  %v1841_v54 = vpack.c.bf16 %v1227_v9, %v1227_v9  ;;  %v1238_v8 = vadd.f32 %v1919_v40, %v2681_v35 }
 0x26a   : > { %1607 = vst [vmem:[%s2636_s11 + $0x114] sm:$0xff] %v1830_v63  ;;  %v1229_v6 = vpop.f32.mrf.mxu1 }
 0x26b   : > { %1618 = vst [vmem:[%s2636_s11 + $0x158] sm:$0xf] %v1841_v54  ;;  %v1847_v55 = vpack.c.bf16 %v1238_v8, %v1238_v8  ;;  %v1230_v4 = vadd.f32 %v1229_v6, %v2681_v35 }
 0x26d   : > { %1624 = vst [vmem:[%s2636_s11 + $0x17c] sm:$0xf] %v1847_v55  ;;  %v1843_v22 = vpack.c.bf16 %v1230_v4, %v1230_v4 }
 0x26f   : > { %1620 = vst [vmem:[%s2636_s11 + $0x164] sm:$0xf] %v1843_v22 }
 0x270 PF: > { %s15_s18 = sadd.s32 1, %s2048_s18  }
 0x271   : > { %p12_p4 = scmp.ge.s32.totalorder %s15_s18, 4  }
 0x273   :  { %14 = sbr.rel (!%p12_p4) target bundleno = 1 (0x1), region = 70 }

// kernel: gpt_forward.8
= control target key start
LH: loop header
LB: loop body
LE: loop exit
PB: predicated region body
PF: predicated region fallthrough
CT: control target
= control target key end

     0   :  { %s2178_s12 = smov 0   ;;  %s2180_s13 = smov 0   ;;  %s2810_s0 = inlined_call_operand.vmem [shape: bf16[8,256,32], index: 0, kind: input, shape index: {}]   ;;  %s2811_s1 = inlined_call_operand.vmem [shape: bf16[8,256,32], index: 1, kind: input, shape index: {}]   ;;  %s2812_s2 = inlined_call_operand.vmem [shape: bf16[8,256,32], index: 2, kind: input, shape index: {}]   ;;  %s2813_s3 = inlined_call_operand.vmem [shape: bf16[8,256,32], index: 3, kind: output, shape index: {}]  }
   0x1   :  { %s2182_s14 = smov 0   ;;  %s2184_s15 = smov 0  }
   0x2   :  { %s2186_s16 = smov 0   ;;  %s2188_s17 = smov 0  }
   0x3   :  { %s2190_s18 = smov 0  }
   0x4 LB: > { %s25_s19 = sadd.s32 1, %s2140_s15  ;;  %s28_s20 = sadd.s32 1, %s2144_s16  ;;  %s2152_s18 = sphi %s2190_s18, %s13_s18   ;;  %s2148_s17 = sphi %s2188_s17, %s2819_s17   ;;  %s2144_s16 = sphi %s2186_s16, %s2818_s16   ;;  %s2140_s15 = sphi %s2184_s15, %s2817_s15   ;;  %s2136_s14 = sphi %s2182_s14, %s2816_s14   ;;  %s2132_s13 = sphi %s2180_s13, %s2815_s13   ;;  %s2128_s12 = sphi %s2178_s12, %s2814_s12  }
   0x5   : > { %p26_p0 = scmp.ge.s32.totalorder %s25_s19, 2  ;;  %p1726_p1 = scmp.ge.s32.totalorder %s2152_s18, 1 }
   0x6   : > { %p199_p2 = scmp.lt.s32.totalorder %s2152_s18, 33  ;;  %s32_s21 = sadd.s32 1, %s2148_s17 }
   0x7   : > { %s2821_s19 = smov (%p26_p0, %s25_s19), 0  ;;  %s2823_s20 = smov (!%p26_p0, %s28_s20), %s2144_s16 }
   0x8   : > { %p200_p3 = pnand %p1726_p1, %p199_p2  ;;  %p30_p4 = scmp.ge.s32.totalorder %s2823_s20, 2 }
   0x9   : > { %s1727_s22 = sshll.u32 (!%p200_p3), %s2132_s13, 4  ;;  %p250_p6 = scmp.lt.s32.totalorder (!%p200_p3), %s2136_s14, 7 }
   0xa   : > { %s2825_s20 = smov (%p30_p4, %s2823_s20), 0  ;;  %s2827_s21 = smov (!%p30_p4, %s32_s21), %s2148_s17 }
   0xb   : > { %p34_p5 = scmp.ge.s32.totalorder %s2827_s21, 8  ;;  %203 = sbr.rel (%p200_p3) target bundleno = 1030 (0x406), region = 32 }
   0xc   : > { %p252_p7 = scmp.lt.s32.totalorder (!%p200_p3), %s1727_s22, 31  ;;  %s1730_s23 = sshll.u32 (!%p200_p3), %s2128_s12, 4 }
   0xd   : > { %s2829_s21 = smov (%p34_p5, %s2827_s21), 0  ;;  %p262_p8 = scmp.lt.s32.totalorder (!%p200_p3), %s1730_s23, 31 }
   0xe   : > { %p1739_p9 = scmp.ne.s32.totalorder (!%p200_p3), %s2128_s12, 0 }
  0x10   : > { %s2831_s14 = smov (!%p250_p6, %s2136_s14), 7  ;;  %s2833_s22 = smov (!%p252_p7, %s1727_s22), 31 }
  0x11   : > { %s1728_s24 = sshll.u32 %s2831_s14, 5  ;;  %s2835_s23 = smov (!%p262_p8, %s1730_s23), 31 }
  0x12   : > { %s255_s25 = sadd.s32 %s1728_s24, %s2833_s22  ;;  %s265_s6 = sadd.s32 %s1728_s24, %s2835_s23 }
  0x13   : > { %s1729_s26 = sshll.u32 %s255_s25, 2  ;;  %s1732_s7 = sshll.u32 %s265_s6, 2 }
  0x14   : > { %s2229_s29 = scalar_lea.vmem %s2810_s0, %s1729_s26  ;;  %s2234_s5 = scalar_lea.vmem %s2813_s3, %s1729_s26 }
  0x15   : > { %s2239_s10 = scalar_lea.vmem %s2811_s1, %s1732_s7  ;;  %s2244_s22 = scalar_lea.vmem %s2812_s2, %s1732_s7 }
  0x16   : > { %293 = sbr.rel (%p1739_p9) target bundleno = 52 (0x34), region = 36 }
  0x1b   : > { %vm294_vm0 = vcmask 7168   ;;  %vm327_vm1 = vcmask 261120   ;;  %v2154_v0 = vmov -inf   ;;  %v2155_v1 = vmov 0.0  }
  0x1c   : > { %295 = vst.msk [vmem:[#allocation2] sm:$0xff] %vm294_vm0, %v2154_v0  ;;  %296 = vst.msk [vmem:[#allocation2 + $0x8] sm:$0xff] %vm294_vm0, %v2154_v0 }
  0x1d   : > { %297 = vst.msk [vmem:[#allocation2 + $0x10] sm:$0xff] %vm294_vm0, %v2154_v0  ;;  %298 = vst.msk [vmem:[#allocation2 + $0x18] sm:$0xff] %vm294_vm0, %v2154_v0 }
  0x1e   : > { %299 = vst.msk [vmem:[#allocation2 + $0x20] sm:$0xff] %vm294_vm0, %v2154_v0  ;;  %300 = vst.msk [vmem:[#allocation2 + $0x28] sm:$0xff] %vm294_vm0, %v2154_v0 }
  0x1f   : > { %301 = vst.msk [vmem:[#allocation2 + $0x30] sm:$0xff] %vm294_vm0, %v2154_v0  ;;  %302 = vst.msk [vmem:[#allocation2 + $0x38] sm:$0xff] %vm294_vm0, %v2154_v0 }
  0x20   : > { %303 = vst.msk [vmem:[#allocation2 + $0x40] sm:$0xff] %vm294_vm0, %v2154_v0  ;;  %304 = vst.msk [vmem:[#allocation2 + $0x48] sm:$0xff] %vm294_vm0, %v2154_v0 }
  0x21   : > { %305 = vst.msk [vmem:[#allocation2 + $0x50] sm:$0xff] %vm294_vm0, %v2154_v0  ;;  %306 = vst.msk [vmem:[#allocation2 + $0x58] sm:$0xff] %vm294_vm0, %v2154_v0 }
  0x22   : > { %307 = vst.msk [vmem:[#allocation2 + $0x60] sm:$0xff] %vm294_vm0, %v2154_v0  ;;  %308 = vst.msk [vmem:[#allocation2 + $0x68] sm:$0xff] %vm294_vm0, %v2154_v0 }
  0x23   : > { %309 = vst.msk [vmem:[#allocation2 + $0x70] sm:$0xff] %vm294_vm0, %v2154_v0  ;;  %310 = vst.msk [vmem:[#allocation2 + $0x78] sm:$0xff] %vm294_vm0, %v2154_v0 }
  0x24   : > { %311 = vst.msk [vmem:[#allocation3] sm:$0xff] %vm294_vm0, %v2155_v1  ;;  %312 = vst.msk [vmem:[#allocation3 + $0x8] sm:$0xff] %vm294_vm0, %v2155_v1 }
  0x25   : > { %313 = vst.msk [vmem:[#allocation3 + $0x10] sm:$0xff] %vm294_vm0, %v2155_v1  ;;  %314 = vst.msk [vmem:[#allocation3 + $0x18] sm:$0xff] %vm294_vm0, %v2155_v1 }
  0x26   : > { %315 = vst.msk [vmem:[#allocation3 + $0x20] sm:$0xff] %vm294_vm0, %v2155_v1  ;;  %316 = vst.msk [vmem:[#allocation3 + $0x28] sm:$0xff] %vm294_vm0, %v2155_v1 }
  0x27   : > { %317 = vst.msk [vmem:[#allocation3 + $0x30] sm:$0xff] %vm294_vm0, %v2155_v1  ;;  %318 = vst.msk [vmem:[#allocation3 + $0x38] sm:$0xff] %vm294_vm0, %v2155_v1 }
  0x28   : > { %319 = vst.msk [vmem:[#allocation3 + $0x40] sm:$0xff] %vm294_vm0, %v2155_v1  ;;  %320 = vst.msk [vmem:[#allocation3 + $0x48] sm:$0xff] %vm294_vm0, %v2155_v1 }
  0x29   : > { %321 = vst.msk [vmem:[#allocation3 + $0x50] sm:$0xff] %vm294_vm0, %v2155_v1  ;;  %322 = vst.msk [vmem:[#allocation3 + $0x58] sm:$0xff] %vm294_vm0, %v2155_v1 }
  0x2a   : > { %323 = vst.msk [vmem:[#allocation3 + $0x60] sm:$0xff] %vm294_vm0, %v2155_v1  ;;  %324 = vst.msk [vmem:[#allocation3 + $0x68] sm:$0xff] %vm294_vm0, %v2155_v1 }
  0x2b   : > { %325 = vst.msk [vmem:[#allocation3 + $0x70] sm:$0xff] %vm294_vm0, %v2155_v1  ;;  %326 = vst.msk [vmem:[#allocation3 + $0x78] sm:$0xff] %vm294_vm0, %v2155_v1 }
  0x2c   : > { %328 = vst.msk [vmem:[#allocation4] sm:$0xff] %vm327_vm1, %v2155_v1  ;;  %329 = vst.msk [vmem:[#allocation4 + $0x8] sm:$0xff] %vm327_vm1, %v2155_v1 }
  0x2d   : > { %330 = vst.msk [vmem:[#allocation4 + $0x10] sm:$0xff] %vm327_vm1, %v2155_v1  ;;  %331 = vst.msk [vmem:[#allocation4 + $0x18] sm:$0xff] %vm327_vm1, %v2155_v1 }
  0x2e   : > { %332 = vst.msk [vmem:[#allocation4 + $0x20] sm:$0xff] %vm327_vm1, %v2155_v1  ;;  %333 = vst.msk [vmem:[#allocation4 + $0x28] sm:$0xff] %vm327_vm1, %v2155_v1 }
  0x2f   : > { %334 = vst.msk [vmem:[#allocation4 + $0x30] sm:$0xff] %vm327_vm1, %v2155_v1  ;;  %335 = vst.msk [vmem:[#allocation4 + $0x38] sm:$0xff] %vm327_vm1, %v2155_v1 }
  0x30   : > { %336 = vst.msk [vmem:[#allocation4 + $0x40] sm:$0xff] %vm327_vm1, %v2155_v1  ;;  %337 = vst.msk [vmem:[#allocation4 + $0x48] sm:$0xff] %vm327_vm1, %v2155_v1 }
  0x31   : > { %338 = vst.msk [vmem:[#allocation4 + $0x50] sm:$0xff] %vm327_vm1, %v2155_v1  ;;  %339 = vst.msk [vmem:[#allocation4 + $0x58] sm:$0xff] %vm327_vm1, %v2155_v1 }
  0x32   : > { %340 = vst.msk [vmem:[#allocation4 + $0x60] sm:$0xff] %vm327_vm1, %v2155_v1  ;;  %341 = vst.msk [vmem:[#allocation4 + $0x68] sm:$0xff] %vm327_vm1, %v2155_v1 }
  0x33   : > { %342 = vst.msk [vmem:[#allocation4 + $0x70] sm:$0xff] %vm327_vm1, %v2155_v1  ;;  %343 = vst.msk [vmem:[#allocation4 + $0x78] sm:$0xff] %vm327_vm1, %v2155_v1 }
  0x34 PF: > { %s1740_s23 = sshll.u32 %s2128_s12, 7  ;;  %s1741_s24 = sshll.u32 %s2132_s13, 7 }
  0x35   : > { %s346_s25 = sadd.s32 127, %s1741_s24 }
  0x36   : > { %p1742_p10 = scmp.gt.s32.totalorder %s1740_s23, %s346_s25 }
  0x38   : > { %350 = sbr.rel (%p1742_p10) target bundleno = 850 (0x352), region = 40 }
  0x3d   : > { %v1976_v2 = vld [vmem:[%s2239_s10 + $0x38] sm:$0xff]   ;;  %vm479_vm2 = vcmask 261120   ;;  %v1977_v3 = vld [vmem:[%s2239_s10 + $0x30] sm:$0xff]   ;;  %v1978_v5 = vld [vmem:[%s2239_s10 + $0x28] sm:$0xff]   ;;  %v641_v26 = vlaneseq  ;;  %v2346_v30 = vstv %s1741_s24 }
  0x3e   : > { %1906 = vmatprep.subr.msk.bf16.mxu0 %vm479_vm2, %v1976_v2  ;;  %v526_v4 = vsel %vm479_vm2, %v1976_v2, 0  ;;  %v523_v6 = vsel %vm479_vm2, %v1977_v3, 0  ;;  %v1984_v7 = vld [vmem:[%s2229_s29] sm:$0xff]   ;;  %v520_v8 = vsel %vm479_vm2, %v1978_v5, 0  ;;  %v1980_v11 = vld [vmem:[%s2239_s10 + $0x18] sm:$0xff]   ;;  %v1981_v13 = vld [vmem:[%s2239_s10 + $0x10] sm:$0xff]   ;;  %v677_v31 = vstv %s1740_s23 }
  0x3f   : > { %1843 = vmatpush3.bf16.xpose.msra.mxu0 %v526_v4  ;;  %1858 = vmatprep.mubr.msk.bf16.mxu0 %vm479_vm2, %v1984_v7  ;;  %v1979_v9 = vld [vmem:[%s2239_s10 + $0x20] sm:$0xff]   ;;  %v514_v12 = vsel %vm479_vm2, %v1980_v11, 0  ;;  %v511_v14 = vsel %vm479_vm2, %v1981_v13, 0  ;;  %v1982_v15 = vld [vmem:[%s2239_s10 + $0x8] sm:$0xff]   ;;  %v1986_v20 = vld [vmem:[%s2229_s29 + $0x10] sm:$0xff]   ;;  %v2341_v27 = vshrl.u32 %v641_v26, 7 }
  0x40   : > { %1907 = vmatprep.subr.msk.bf16.mxu0 %vm479_vm2, %v1977_v3  ;;  %v517_v10 = vsel %vm479_vm2, %v1979_v9, 0  ;;  %v508_v16 = vsel %vm479_vm2, %v1982_v15, 0  ;;  %v1983_v17 = vld [vmem:[%s2239_s10] sm:$0xff]   ;;  %v1985_v19 = vld [vmem:[%s2229_s29 + $0x8] sm:$0xff]   ;;  %v1987_v21 = vld [vmem:[%s2229_s29 + $0x18] sm:$0xff]   ;;  %v676_v29 = vand.u32 127, %v641_v26 }
  0x41   : > { %v505_v18 = vsel %vm479_vm2, %v1983_v17, 0  ;;  %v1988_v22 = vld [vmem:[%s2229_s29 + $0x20] sm:$0xff]   ;;  %v1989_v23 = vld [vmem:[%s2229_s29 + $0x28] sm:$0xff]   ;;  %v1990_v24 = vld [vmem:[%s2229_s29 + $0x30] sm:$0xff]   ;;  %v644_v28 = vadd.s32 16, %v2341_v27  ;;  %v645_v34 = vadd.s32 24, %v2341_v27  ;;  %v659_v35 = vadd.s32 %v2346_v30, %v2341_v27 }
  0x42   : > { %v1991_v25 = vld [vmem:[%s2229_s29 + $0x38] sm:$0xff]   ;;  %v2351_v33 = vadd.s32 %v677_v31, %v676_v29  ;;  %v643_v36 = vadd.s32 8, %v2341_v27  ;;  %v646_v42 = vadd.s32 32, %v2341_v27  ;;  %v649_v46 = vadd.s32 56, %v2341_v27 }
  0x43   : > { %v661_v32 = vadd.s32 %v2346_v30, %v644_v28  ;;  %v662_v38 = vadd.s32 %v2346_v30, %v645_v34  ;;  %v648_v51 = vadd.s32 48, %v2341_v27  ;;  %v647_v56 = vadd.s32 40, %v2341_v27 }
  0x44   : > { %vm679_vm4 = vcmp.le.s32.totalorder %v2351_v33, %v659_v35  ;;  %v660_v41 = vadd.s32 %v2346_v30, %v643_v36  ;;  %v663_v50 = vadd.s32 %v2346_v30, %v646_v42  ;;  %v666_v55 = vadd.s32 %v2346_v30, %v649_v46 }
  0x45   : > { %vm681_vm3 = vcmp.le.s32.totalorder %v2351_v33, %v661_v32  ;;  %vm682_vm5 = vcmp.le.s32.totalorder %v2351_v33, %v662_v38  ;;  %v665_v59 = vadd.s32 %v2346_v30, %v648_v51  ;;  %v650_v60 = vadd.s32 64, %v2341_v27  ;;  %v1992_v51 = vld [vmem:[%s2244_s22 + $0x38] sm:$0xff]  }
  0x46   : > { %vm680_vm6 = vcmp.le.s32.totalorder %v2351_v33, %v660_v41  ;;  %vm683_vm7 = vcmp.le.s32.totalorder %v2351_v33, %v663_v50  ;;  %v653_v62 = vadd.s32 88, %v2341_v27  ;;  %vm686_vm8 = vcmp.le.s32.totalorder %v2351_v33, %v666_v55  ;;  %1874 = vmatprep.subr.bf16.mxu1 %v1992_v51 }
  0x47   : > { %1845 = vmatpush3.bf16.xpose.msra.mxu0 %v523_v6  ;;  %v664_v0 = vadd.s32 %v2346_v30, %v647_v56  ;;  %v652_v1 = vadd.s32 80, %v2341_v27  ;;  %vm685_vm9 = vcmp.le.s32.totalorder %v2351_v33, %v665_v59  ;;  %v667_v6 = vadd.s32 %v2346_v30, %v650_v60  ;;  %1875 = vmatpush3.bf16.msra.mxu1 %v1992_v51  ;;  %v2451_v56 = vld [vmem:[#allocation2] sm:$0xff]  ;;  %v2456_v59 = vld [vmem:[#allocation2 + $0x18] sm:$0xff]  ;;  %v1994_v60 = vld [vmem:[%s2244_s22 + $0x28] sm:$0xff]  }
  0x48   : > { %1908 = vmatprep.subr.msk.bf16.mxu0 %vm479_vm2, %v1978_v5 }
  0x49   : > { %vm684_vm10 = vcmp.le.s32.totalorder %v2351_v33, %v664_v0  ;;  %vm687_vm11 = vcmp.le.s32.totalorder %v2351_v33, %v667_v6 }
  0x4f   : > { %1847 = vmatpush3.bf16.xpose.msra.mxu0 %v520_v8 }
  0x50   : > { %1909 = vmatprep.subr.msk.bf16.mxu0 %vm479_vm2, %v1979_v9  ;;  %v670_v9 = vadd.s32 %v2346_v30, %v653_v62 }
  0x52   : > { %vm690_vm12 = vcmp.le.s32.totalorder %v2351_v33, %v670_v9  ;;  %v1996_v9 = vld [vmem:[%s2244_s22 + $0x18] sm:$0xff]  }
  0x57   : > { %1849 = vmatpush3.bf16.xpose.msra.mxu0 %v517_v10  ;;  %v2156_v10 = vmov 0  }
  0x58   : > { %1910 = vmatprep.subr.msk.bf16.mxu0 %vm479_vm2, %v1980_v11  ;;  %1975 = vset.pattern.permute.xlu1 %v2156_v10 }
  0x59   : > { %1974 = vset.pattern.permute.xlu0 %v2156_v10 }
  0x5f   : > { %1851 = vmatpush3.bf16.xpose.msra.mxu0 %v514_v12  ;;  %v669_v12 = vadd.s32 %v2346_v30, %v652_v1 }
  0x60   : > { %1911 = vmatprep.subr.msk.bf16.mxu0 %vm479_vm2, %v1981_v13  ;;  %v651_v13 = vadd.s32 72, %v2341_v27 }
  0x61   : > { %vm689_vm13 = vcmp.le.s32.totalorder %v2351_v33, %v669_v12  ;;  %v2491_v12 = vld [vmem:[#allocation2 + $0x30] sm:$0xff] }
  0x67   : > { %1853 = vmatpush3.bf16.xpose.msra.mxu0 %v511_v14 }
  0x68   : > { %1912 = vmatprep.subr.msk.bf16.mxu0 %vm479_vm2, %v1982_v15 }
  0x6f   : > { %1855 = vmatpush3.bf16.xpose.msra.mxu0 %v508_v16  ;;  %v654_v16 = vadd.s32 96, %v2341_v27 }
  0x70   : > { %1913 = vmatprep.subr.msk.bf16.mxu0 %vm479_vm2, %v1983_v17 }
  0x71   : > { %v671_v28 = vadd.s32 %v2346_v30, %v654_v16  ;;  %v2498_v16 = vld [vmem:[#allocation2 + $0x28] sm:$0xff] }
  0x73   : > { %vm691_vm15 = vcmp.le.s32.totalorder %v2351_v33, %v671_v28 }
  0x77   : > { %1857 = vmatpush3.bf16.xpose.msra.mxu0 %v505_v18 }
  0x7e   : > { %1859 = vmatmul.mubr.msk.bf16.vlgmr.msra.gmra.mxu0 %vm479_vm2, %v1985_v19 }
  0x7f   : > { %1862 = vmatprep.mubr.msk.bf16.mxu0 %vm479_vm2, %v1986_v20 }
  0x86   : > { %1863 = vmatmul.mubr.msk.bf16.gmra.mxu0 %vm479_vm2, %v1987_v21  ;;  %v668_v21 = vadd.s32 %v2346_v30, %v651_v13 }
  0x87   : > { %1866 = vmatprep.mubr.msk.bf16.mxu0 %vm479_vm2, %v1988_v22  ;;  %v657_v22 = vadd.s32 120, %v2341_v27 }
  0x88   : > { %vm688_vm14 = vcmp.le.s32.totalorder %v2351_v33, %v668_v21  ;;  %v2506_v21 = vld [vmem:[#allocation2 + $0x40] sm:$0xff] }
  0x89   : > { %v674_v35 = vadd.s32 %v2346_v30, %v657_v22 }
  0x8b   : > { %vm694_vm0 = vcmp.le.s32.totalorder %v2351_v33, %v674_v35 }
  0x8e   : > { %1867 = vmatmul.mubr.msk.bf16.gmra.mxu0 %vm479_vm2, %v1989_v23  ;;  %v656_v23 = vadd.s32 112, %v2341_v27 }
  0x8f   : > { %1870 = vmatprep.mubr.msk.bf16.mxu0 %vm479_vm2, %v1990_v24 }
  0x90   : > { %v673_v36 = vadd.s32 %v2346_v30, %v656_v23 }
  0x92   : > { %vm693_vm1 = vcmp.le.s32.totalorder %v2351_v33, %v673_v36 }
  0x96   : > { %1871 = vmatmul.mubr.msk.bf16.gmra.mxu0 %vm479_vm2, %v1991_v25 }
 0x13e   : > { %v1860_v37 = vpop.f32.mrf.mxu0 }
 0x13f   : > { %v627_v39 = vmul.f32 0.17677669, %v1860_v37  ;;  %v655_v37 = vadd.s32 104, %v2341_v27 }
 0x140   : > { %v562_v40 = vpop.f32.mrf.mxu0 }
 0x141   : > { %v625_v43 = vmul.f32 0.17677669, %v562_v40  ;;  %v2362_v44 = vsel %vm681_vm3, %v627_v39, -1e+30 }
 0x142   : > { %731 = vmax.xlane.f32.xlu1 %v2362_v44  ;;  %v1861_v45 = vpop.f32.mrf.mxu0 }
 0x143   : > { %v628_v47 = vmul.f32 0.17677669, %v1861_v45  ;;  %v2367_v48 = vsel %vm679_vm4, %v625_v43, -1e+30  ;;  %v672_v43 = vadd.s32 %v2346_v30, %v655_v37  ;;  %vm1031_vm4 = vcmask 7168  }
 0x144   : > { %727 = vmax.xlane.f32.xlu0 %v2367_v48  ;;  %v565_v49 = vpop.f32.mrf.mxu0 }
 0x145   : > { %v626_v52 = vmul.f32 0.17677669, %v565_v49  ;;  %v2373_v53 = vsel %vm682_vm5, %v628_v47, -1e+30  ;;  %vm692_vm3 = vcmp.le.s32.totalorder %v2351_v33, %v672_v43 }
 0x146   : > { %733 = vmax.xlane.f32.xlu1 %v2373_v53  ;;  %v1864_v54 = vpop.f32.mrf.mxu0 }
 0x147   : > { %v2378_v57 = vsel %vm680_vm6, %v626_v52, -1e+30  ;;  %v631_v2 = vmul.f32 0.17677669, %v1864_v54  ;;  %v2448_v52 = vld [vmem:[#allocation2 + $0x10] sm:$0xff] }
 0x148   : > { %729 = vmax.xlane.f32.xlu0 %v2378_v57  ;;  %v578_v58 = vpop.f32.mrf.mxu0  ;;  %v1993_v54 = vld [vmem:[%s2244_s22 + $0x30] sm:$0xff]  }
 0x149   : > { %v629_v61 = vmul.f32 0.17677669, %v578_v58  ;;  %v2400_v14 = vsel %vm685_vm9, %v631_v2, -1e+30  ;;  %1876 = vmatprep.subr.bf16.mxu1 %v1993_v54  ;;  %v1995_v2 = vld [vmem:[%s2244_s22 + $0x20] sm:$0xff]  }
 0x14a   : > { %v1865_v63 = vpop.f32.mrf.mxu0  ;;  %1877 = vmatpush3.bf16.msra.mxu1 %v1993_v54  ;;  %v2545_v54 = vld [vmem:[#allocation2 + $0x78] sm:$0xff] }
 0x14b   : > { %v632_v3 = vmul.f32 0.17677669, %v1865_v63  ;;  %v2388_v4 = vsel %vm683_vm7, %v629_v61, -1e+30  ;;  %v2465_v63 = vld [vmem:[#allocation2 + $0x8] sm:$0xff]  ;;  %1878 = vmatprep.subr.bf16.mxu1 %v1994_v60 }
 0x14c   : > { %735 = vmax.xlane.f32.xlu0 %v2388_v4  ;;  %v581_v5 = vpop.f32.mrf.mxu0 }
 0x14d   : > { %v630_v7 = vmul.f32 0.17677669, %v581_v5  ;;  %v2393_v8 = vsel %vm686_vm8, %v632_v3, -1e+30  ;;  %v2480_v5 = vld [vmem:[#allocation2 + $0x20] sm:$0xff] }
 0x14e   : > { %741 = vmax.xlane.f32.xlu1 %v2393_v8  ;;  %v1868_v11 = vpop.f32.mrf.mxu0  ;;  %1879 = vmatpush3.bf16.msra.mxu1 %v1994_v60  ;;  %v2553_v60 = vld [vmem:[#allocation2 + $0x70] sm:$0xff] }
 0x14f   : > { %v635_v17 = vmul.f32 0.17677669, %v1868_v11  ;;  %v2405_v19 = vsel %vm684_vm10, %v630_v7, -1e+30  ;;  %1880 = vmatprep.subr.bf16.mxu1 %v1995_v2  ;;  %v2484_v7 = vld [vmem:[#allocation2 + $0x38] sm:$0xff] }
 0x150   : > { %739 = vmax.xlane.f32.xlu0 %v2400_v14  ;;  %v594_v15 = vpop.f32.mrf.mxu0 }
 0x151   : > { %v633_v18 = vmul.f32 0.17677669, %v594_v15  ;;  %v2419_v32 = vsel %vm689_vm13, %v635_v17, -1e+30  ;;  %v1997_v17 = vld [vmem:[%s2244_s22 + $0x10] sm:$0xff]  }
 0x152   : > { %737 = vmax.xlane.f32.xlu1 %v2405_v19  ;;  %v1869_v20 = vpop.f32.mrf.mxu0  ;;  %1881 = vmatpush3.bf16.msra.mxu1 %v1995_v2 }
 0x153   : > { %v636_v24 = vmul.f32 0.17677669, %v1869_v20  ;;  %v2413_v25 = vsel %vm687_vm11, %v633_v18, -1e+30  ;;  %1882 = vmatprep.subr.bf16.mxu1 %v1996_v9 }
 0x154   : > { %743 = vmax.xlane.f32.xlu0 %v2413_v25  ;;  %v597_v26 = vpop.f32.mrf.mxu0 }
 0x155   : > { %v634_v29 = vmul.f32 0.17677669, %v597_v26  ;;  %v2417_v31 = vsel %vm690_vm12, %v636_v24, -1e+30  ;;  %v2514_v24 = vld [vmem:[#allocation2 + $0x58] sm:$0xff]  ;;  %v1998_v26 = vld [vmem:[%s2244_s22 + $0x8] sm:$0xff]  }
 0x156   : > { %749 = vmax.xlane.f32.xlu1 %v2417_v31  ;;  %v1872_v34 = vpop.f32.mrf.mxu0  ;;  %1883 = vmatpush3.bf16.msra.mxu1 %v1996_v9 }
 0x157   : > { %v639_v39 = vmul.f32 0.17677669, %v1872_v34  ;;  %v2428_v41 = vsel %vm688_vm14, %v634_v29, -1e+30  ;;  %1884 = vmatprep.subr.bf16.mxu1 %v1997_v17  ;;  %v2522_v34 = vld [vmem:[#allocation2 + $0x50] sm:$0xff] }
 0x158   : > { %747 = vmax.xlane.f32.xlu0 %v2419_v32  ;;  %v610_v38 = vpop.f32.mrf.mxu0 }
 0x159   : > { %v637_v40 = vmul.f32 0.17677669, %v610_v38  ;;  %v2439_v50 = vsel %vm693_vm1, %v639_v39, -1e+30  ;;  %v2530_v38 = vld [vmem:[#allocation2 + $0x48] sm:$0xff]  ;;  %v1999_v39 = vld [vmem:[%s2244_s22] sm:$0xff]  }
 0x15a   : > { %745 = vmax.xlane.f32.xlu1 %v2428_v41  ;;  %v1873_v42 = vpop.f32.mrf.mxu0  ;;  %1885 = vmatpush3.bf16.msra.mxu1 %v1997_v17 }
 0x15b   : > { %v640_v27 = vmul.f32 0.17677669, %v1873_v42  ;;  %v2434_v45 = vsel %vm691_vm15, %v637_v40, -1e+30  ;;  %1886 = vmatprep.subr.bf16.mxu1 %v1998_v26 }
 0x15c   : > { %751 = vmax.xlane.f32.xlu0 %v2434_v45  ;;  %v613_v46 = vpop.f32.mrf.mxu0 }
 0x15d   : > { %v638_v47 = vmul.f32 0.17677669, %v613_v46  ;;  %v2437_v49 = vsel %vm694_vm0, %v640_v27, -1e+30  ;;  %v2539_v27 = vld [vmem:[#allocation2 + $0x60] sm:$0xff] }
 0x15e   : > { %757 = vmax.xlane.f32.xlu1 %v2437_v49  ;;  %1887 = vmatpush3.bf16.msra.mxu1 %v1998_v26 }
 0x15f   : > { %v2444_v30 = vsel %vm692_vm3, %v638_v47, -1e+30  ;;  %1888 = vmatprep.subr.bf16.mxu1 %v1999_v39 }
 0x160   : > { %755 = vmax.xlane.f32.xlu0 %v2439_v50 }
 0x162   : > { %753 = vmax.xlane.f32.xlu1 %v2444_v30  ;;  %1889 = vmatpush3.bf16.msra.mxu1 %v1999_v39 }
 0x1cb   : > { %v732_v55 = vpop.xlane.xlu1 %731 }
 0x1cc   : > { %v2454_v33 = vmax.f32 %v2448_v52, %v732_v55 }
 0x1cd   : > { %v728_v58 = vpop.xlane.xlu0 %727 }
 0x1ce   : > { %1347 = vst.msk [vmem:[#allocation2 + $0x10] sm:$0xff] %vm1031_vm4, %v2454_v33  ;;  %v2462_v61 = vmax.f32 %v2451_v56, %v728_v58  ;;  %835 = vperm.xlu1 %1975, %v2454_v33  }
 0x1cf   : > { %v734_v62 = vpop.xlane.xlu1 %733 }
 0x1d0   : > { %1345 = vst.msk [vmem:[#allocation2] sm:$0xff] %vm1031_vm4, %v2462_v61  ;;  %v2470_v0 = vmax.f32 %v2456_v59, %v734_v62  ;;  %825 = vperm.xlu0 %1974, %v2462_v61   ;;  %v775_v35 = vsub.f32 %v2451_v56, %v2462_v61 }
 0x1d1   : > { %v730_v1 = vpop.xlane.xlu0 %729 }
 0x1d2   : > { %1348 = vst.msk [vmem:[#allocation2 + $0x18] sm:$0xff] %vm1031_vm4, %v2470_v0  ;;  %v2477_v3 = vmax.f32 %v2465_v63, %v730_v1  ;;  %840 = vperm.xlu1 %1975, %v2470_v0   ;;  %v778_v42 = vsub.f32 %v2456_v59, %v2470_v0  ;;  %v791_v46 = vmul.f32 1.442695, %v775_v35  ;;  %v724_v0 = vld [vmem:[#allocation2 + $0x68] sm:$0xff]  ;;  %v777_v1 = vsub.f32 %v2448_v52, %v2454_v33 }
 0x1d4   : > { %1346 = vst.msk [vmem:[#allocation2 + $0x8] sm:$0xff] %vm1031_vm4, %v2477_v3  ;;  %v776_v55 = vsub.f32 %v2465_v63, %v2477_v3  ;;  %v797_v58 = vmul.f32 1.442695, %v778_v42  ;;  %2000 = vpow2.f32 %v791_v46 }
 0x1d5   : > { %v736_v6 = vpop.xlane.xlu0 %735 }
 0x1d6   : > { %v2488_v10 = vmax.f32 %v2480_v5, %v736_v6  ;;  %830 = vperm.xlu1 %1975, %v2477_v3   ;;  %v793_v2 = vmul.f32 1.442695, %v776_v55  ;;  %2002 = vpow2.f32 %v797_v58 }
 0x1d7   : > { %v742_v11 = vpop.xlane.xlu1 %741 }
 0x1d8   : > { %1349 = vst.msk [vmem:[#allocation2 + $0x20] sm:$0xff] %vm1031_vm4, %v2488_v10  ;;  %v2496_v13 = vmax.f32 %v2484_v7, %v742_v11  ;;  %2004 = vpow2.f32 %v793_v2 }
 0x1d9   : > { %v740_v15 = vpop.xlane.xlu0 %739 }
 0x1da   : > { %1352 = vst.msk [vmem:[#allocation2 + $0x38] sm:$0xff] %vm1031_vm4, %v2496_v13  ;;  %v2504_v18 = vmax.f32 %v2491_v12, %v740_v15  ;;  %v782_v61 = vsub.f32 %v2484_v7, %v2496_v13  ;;  %v779_v15 = vsub.f32 %v2480_v5, %v2488_v10 }
 0x1db   : > { %v738_v20 = vpop.xlane.xlu1 %737 }
 0x1dc   : > { %1351 = vst.msk [vmem:[#allocation2 + $0x30] sm:$0xff] %vm1031_vm4, %v2504_v18  ;;  %v2511_v22 = vmax.f32 %v2498_v16, %v738_v20  ;;  %855 = vperm.xlu1 %1975, %v2504_v18   ;;  %v805_v9 = vmul.f32 1.442695, %v782_v61  ;;  %v799_v20 = vmul.f32 1.442695, %v779_v15 }
 0x1dd   : > { %v744_v23 = vpop.xlane.xlu0 %743 }
 0x1de   : > { %1350 = vst.msk [vmem:[#allocation2 + $0x28] sm:$0xff] %vm1031_vm4, %v2511_v22  ;;  %v2520_v28 = vmax.f32 %v2506_v21, %v744_v23  ;;  %v780_v11 = vsub.f32 %v2498_v16, %v2511_v22  ;;  %2006 = vpow2.f32 %v805_v9 }
 0x1df   : > { %v750_v29 = vpop.xlane.xlu1 %749 }
 0x1e0   : > { %1353 = vst.msk [vmem:[#allocation2 + $0x40] sm:$0xff] %vm1031_vm4, %v2520_v28  ;;  %v770_v36 = vmax.f32 %v2514_v24, %v750_v29  ;;  %845 = vperm.xlu1 %1975, %v2488_v10   ;;  %v801_v17 = vmul.f32 1.442695, %v780_v11  ;;  %v783_v35 = vsub.f32 %v2506_v21, %v2520_v28 }
 0x1e1   : > { %v748_v37 = vpop.xlane.xlu0 %747  ;;  %v2589_v10 = vpop.eup %2000 }
 0x1e2   : > { %1356 = vst.msk [vmem:[#allocation2 + $0x58] sm:$0xff] %vm1031_vm4, %v770_v36  ;;  %v2535_v40 = vmax.f32 %v2522_v34, %v748_v37  ;;  %v786_v16 = vsub.f32 %v2514_v24, %v770_v36  ;;  %v807_v39 = vmul.f32 1.442695, %v783_v35 }
 0x1e3   : > { %v746_v43 = vpop.xlane.xlu1 %745  ;;  %v2594_v29 = vpop.eup %2002 }
 0x1e4   : > { %1355 = vst.msk [vmem:[#allocation2 + $0x50] sm:$0xff] %vm1031_vm4, %v2535_v40  ;;  %v768_v47 = vmax.f32 %v2530_v38, %v746_v43  ;;  %850 = vperm.xlu1 %1975, %v2511_v22   ;;  %v781_v22 = vsub.f32 %v2491_v12, %v2504_v18  ;;  %v813_v23 = vmul.f32 1.442695, %v786_v16  ;;  %v785_v24 = vsub.f32 %v2522_v34, %v2535_v40 }
 0x1e5   : > { %v752_v51 = vpop.xlane.xlu0 %751  ;;  %v2600_v37 = vpop.eup %2004 }
 0x1e6   : > { %1354 = vst.msk [vmem:[#allocation2 + $0x48] sm:$0xff] %vm1031_vm4, %v768_v47  ;;  %v2551_v56 = vmax.f32 %v2539_v27, %v752_v51  ;;  %870 = vperm.xlu0 %1974, %v768_v47   ;;  %v784_v5 = vsub.f32 %v2530_v38, %v768_v47  ;;  %v803_v26 = vmul.f32 1.442695, %v781_v22 }
 0x1e7   : > { %v758_v59 = vpop.xlane.xlu1 %757 }
 0x1e8   : > { %1357 = vst.msk [vmem:[#allocation2 + $0x60] sm:$0xff] %vm1031_vm4, %v2551_v56  ;;  %v2560_v62 = vmax.f32 %v2545_v54, %v758_v59  ;;  %860 = vperm.xlu1 %1975, %v2496_v13   ;;  %v795_v13 = vmul.f32 1.442695, %v777_v1  ;;  %v809_v12 = vmul.f32 1.442695, %v784_v5 }
 0x1e9   : > { %v756_v63 = vpop.xlane.xlu0 %755 }
 0x1ea   : > { %v790_v3 = vsub.f32 %v2545_v54, %v2560_v62  ;;  %1360 = vst.msk [vmem:[#allocation2 + $0x78] sm:$0xff] %vm1031_vm4, %v2560_v62  ;;  %v2570_v6 = vmax.f32 %v2553_v60, %v756_v63  ;;  %880 = vperm.xlu0 %1974, %v770_v36   ;;  %2008 = vpow2.f32 %v795_v13  ;;  %v811_v36 = vmul.f32 1.442695, %v785_v24 }
 0x1eb   : > { %v754_v7 = vpop.xlane.xlu1 %753  ;;  %2010 = vpow2.f32 %v801_v17  ;;  %v2603_v38 = vpop.eup %2006 }
 0x1ec   : > { %v789_v52 = vsub.f32 %v2553_v60, %v2570_v6  ;;  %1359 = vst.msk [vmem:[#allocation2 + $0x70] sm:$0xff] %vm1031_vm4, %v2570_v6  ;;  %v772_v33 = vmax.f32 %v724_v0, %v754_v7  ;;  %865 = vperm.xlu1 %1975, %v2520_v28   ;;  %2012 = vpow2.f32 %v799_v20 }
 0x1ed   : > { %2014 = vpow2.f32 %v813_v23 }
 0x1ee   : > { %1358 = vst.msk [vmem:[#allocation2 + $0x68] sm:$0xff] %vm1031_vm4, %v772_v33  ;;  %890 = vperm.xlu0 %1974, %v772_v33   ;;  %v788_v18 = vsub.f32 %v724_v0, %v772_v33  ;;  %2016 = vpow2.f32 %v803_v26 }
 0x1ef   : > { %2018 = vpow2.f32 %v809_v12 }
 0x1f0   : > { %875 = vperm.xlu1 %1975, %v2535_v40   ;;  %v817_v34 = vmul.f32 1.442695, %v788_v18  ;;  %2020 = vpow2.f32 %v811_v36  ;;  %v787_v40 = vsub.f32 %v2539_v27, %v2551_v56 }
 0x1f2   : > { %900 = vperm.xlu0 %1974, %v2560_v62   ;;  %2022 = vpow2.f32 %v817_v34  ;;  %v815_v28 = vmul.f32 1.442695, %v787_v40 }
 0x1f3   : > { %2024 = vpow2.f32 %v807_v39 }
 0x1f4   : > { %885 = vperm.xlu1 %1975, %v2551_v56   ;;  %2026 = vpow2.f32 %v815_v28 }
 0x1f6   : > { %1066 = vperm.xlu0 %1974, %v2589_v10  }
 0x1f7   : > { %v2608_v42 = vpop.eup %2008 }
 0x1f8   : > { %895 = vperm.xlu1 %1975, %v2570_v6   ;;  %v2611_v21 = vpop.eup %2010 }
 0x1f9   : > { %v2614_v43 = vpop.eup %2012 }
 0x1fa   : > { %1081 = vperm.xlu0 %1974, %v2594_v29   ;;  %v2617_v46 = vpop.eup %2014 }
 0x1fb   : > { %v2620_v27 = vpop.eup %2016 }
 0x1fc   : > { %1071 = vperm.xlu1 %1975, %v2600_v37   ;;  %v2623_v47 = vpop.eup %2018 }
 0x1fd   : > { %v2626_v51 = vpop.eup %2020 }
 0x1fe   : > { %1101 = vperm.xlu0 %1974, %v2603_v38  }
 0x1ff   : > { %v2629_v55 = vpop.eup %2022 }
 0x200   : > { %1076 = vperm.xlu1 %1975, %v2608_v42   ;;  %v2632_v56 = vpop.eup %2024 }
 0x201   : > { %v2635_v58 = vpop.eup %2026 }
 0x202   : > { %1091 = vperm.xlu0 %1974, %v2611_v21  }
 0x204   : > { %1086 = vperm.xlu1 %1975, %v2614_v43  }
 0x206   : > { %1121 = vperm.xlu0 %1974, %v2617_v46  }
 0x208   : > { %1096 = vperm.xlu1 %1975, %v2620_v27  }
 0x20a   : > { %1111 = vperm.xlu0 %1974, %v2623_v47  }
 0x20c   : > { %1116 = vperm.xlu1 %1975, %v2626_v51  }
 0x20e   : > { %1131 = vperm.xlu0 %1974, %v2629_v55  }
 0x210   : > { %1106 = vperm.xlu1 %1975, %v2632_v56  }
 0x214   : > { %1126 = vperm.xlu1 %1975, %v2635_v58  }
 0x249   : > { %v836_v59 = vpop.permute.xlu1 %835 }
 0x24a   : > { %v905_v61 = vsub.f32 %v2362_v44, %v836_v59 }
 0x24b   : > { %v826_v63 = vpop.permute.xlu0 %825 }
 0x24c   : > { %v923_v0 = vmul.f32 1.442695, %v905_v61  ;;  %v903_v1 = vsub.f32 %v2367_v48, %v826_v63 }
 0x24d   : > { %v841_v2 = vpop.permute.xlu1 %840 }
 0x24e   : > { %2028 = vpow2.f32 %v923_v0  ;;  %v919_v7 = vmul.f32 1.442695, %v903_v1  ;;  %v906_v9 = vsub.f32 %v2373_v53, %v841_v2 }
 0x250   : > { %2030 = vpow2.f32 %v919_v7  ;;  %v925_v11 = vmul.f32 1.442695, %v906_v9 }
 0x251   : > { %v831_v33 = vpop.permute.xlu1 %830 }
 0x252   : > { %v904_v13 = vsub.f32 %v2378_v57, %v831_v33  ;;  %2032 = vpow2.f32 %v925_v11 }
 0x254   : > { %v921_v15 = vmul.f32 1.442695, %v904_v13 }
 0x256   : > { %2034 = vpow2.f32 %v921_v15 }
 0x257   : > { %v856_v17 = vpop.permute.xlu1 %855 }
 0x258   : > { %v909_v44 = vsub.f32 %v2400_v14, %v856_v17 }
 0x25a   : > { %v931_v16 = vmul.f32 1.442695, %v909_v44 }
 0x25b   : > { %v2029_v20 = vpop.eup %2028  ;;  %v846_v22 = vpop.permute.xlu1 %845 }
 0x25c   : > { %2036 = vpow2.f32 %v931_v16  ;;  %v907_v48 = vsub.f32 %v2388_v4, %v846_v22  ;;  %987 = vadd.xlane.f32.xlu0 %v2029_v20 }
 0x25d   : > { %v2031_v23 = vpop.eup %2030 }
 0x25e   : > { %v927_v53 = vmul.f32 1.442695, %v907_v48  ;;  %983 = vadd.xlane.f32.xlu1 %v2031_v23 }
 0x25f   : > { %v851_v5 = vpop.permute.xlu1 %850  ;;  %v2033_v26 = vpop.eup %2032 }
 0x260   : > { %2038 = vpow2.f32 %v927_v53  ;;  %v908_v57 = vsub.f32 %v2405_v19, %v851_v5  ;;  %v1161_v39 = vpack.c.bf16 %v2033_v26, %v2029_v20 }
 0x261   : > { %v871_v24 = vpop.permute.xlu0 %870 }
 0x262   : > { %v929_v12 = vmul.f32 1.442695, %v908_v57  ;;  %989 = vadd.xlane.f32.xlu1 %v2033_v26  ;;  %v912_v14 = vsub.f32 %v2428_v41, %v871_v24 }
 0x263   : > { %v2035_v18 = vpop.eup %2034  ;;  %v861_v35 = vpop.permute.xlu1 %860 }
 0x264   : > { %2040 = vpow2.f32 %v929_v12  ;;  %v910_v36 = vsub.f32 %v2393_v8, %v861_v35  ;;  %985 = vadd.xlane.f32.xlu0 %v2035_v18  ;;  %v1160_v4 = vpack.c.bf16 %v2035_v18, %v2031_v23  ;;  %v937_v28 = vmul.f32 1.442695, %v912_v14 }
 0x265   : > { %v881_v34 = vpop.permute.xlu0 %880 }
 0x266   : > { %v933_v40 = vmul.f32 1.442695, %v910_v36  ;;  %1890 = vmatprep.mubr.bf16.mxu1 %v1160_v4  ;;  %v914_v19 = vsub.f32 %v2417_v31, %v881_v34  ;;  %v819_v36 = vmul.f32 1.442695, %v789_v52  ;;  %v821_v4 = vmul.f32 1.442695, %v790_v3 }
 0x267   : > { %1891 = vmatmul.mubr.bf16.vlgmr.msra.gmra.mxu1 %v1161_v39  ;;  %v866_v59 = vpop.permute.xlu1 %865 }
 0x268   : > { %2042 = vpow2.f32 %v933_v40  ;;  %v911_v61 = vsub.f32 %v2413_v25, %v866_v59  ;;  %v941_v8 = vmul.f32 1.442695, %v914_v19 }
 0x269   : > { %v2037_v63 = vpop.eup %2036  ;;  %v891_v41 = vpop.permute.xlu0 %890  ;;  %2044 = vpow2.f32 %v937_v28 }
 0x26a   : > { %v935_v0 = vmul.f32 1.442695, %v911_v61  ;;  %995 = vadd.xlane.f32.xlu0 %v2037_v63  ;;  %v916_v1 = vsub.f32 %v2444_v30, %v891_v41 }
 0x26b   : > { %v876_v2 = vpop.permute.xlu1 %875 }
 0x26c   : > { %2046 = vpow2.f32 %v935_v0  ;;  %v913_v7 = vsub.f32 %v2419_v32, %v876_v2  ;;  %v945_v33 = vmul.f32 1.442695, %v916_v1  ;;  %v953_v0 = vld [vmem:[#allocation3 + $0x10] sm:$0xff]  ;;  %v951_v1 = vld [vmem:[#allocation3] sm:$0xff] }
 0x26d   : > { %v2039_v9 = vpop.eup %2038  ;;  %v901_v11 = vpop.permute.xlu0 %900  ;;  %2048 = vpow2.f32 %v941_v8  ;;  %v969_v2 = vmul.f32 %v2608_v42, %v953_v0 }
 0x26e   : > { %v939_v31 = vmul.f32 1.442695, %v913_v7  ;;  %991 = vadd.xlane.f32.xlu0 %v2039_v9  ;;  %v918_v25 = vsub.f32 %v2437_v49, %v901_v11  ;;  %v967_v11 = vmul.f32 %v2589_v10, %v951_v1 }
 0x26f   : > { %v886_v13 = vpop.permute.xlu1 %885 }
 0x270   : > { %2050 = vpow2.f32 %v939_v31  ;;  %v915_v15 = vsub.f32 %v2434_v45, %v886_v13  ;;  %v949_v30 = vmul.f32 1.442695, %v918_v25  ;;  %v952_v13 = vld [vmem:[#allocation3 + $0x8] sm:$0xff] }
 0x271   : > { %v2041_v17 = vpop.eup %2040  ;;  %2052 = vpow2.f32 %v945_v33  ;;  %v2666_v40 = vpop.permute.xlu0 %1066  ;;  %v954_v33 = vld [vmem:[#allocation3 + $0x18] sm:$0xff] }
 0x272   : > { %v943_v44 = vmul.f32 1.442695, %v915_v15  ;;  %v1162_v16 = vpack.c.bf16 %v2041_v17, %v2039_v9  ;;  %v970_v15 = vmul.f32 %v2594_v29, %v954_v33 }
 0x273   : > { %v896_v20 = vpop.permute.xlu1 %895 }
 0x274   : > { %2054 = vpow2.f32 %v943_v44  ;;  %v917_v32 = vsub.f32 %v2439_v50, %v896_v20  ;;  %1894 = vmatprep.mubr.bf16.mxu1 %v1162_v16  ;;  %v968_v16 = vmul.f32 %v2600_v37, %v952_v13  ;;  %v957_v20 = vld [vmem:[#allocation3 + $0x30] sm:$0xff]  ;;  %v958_v37 = vld [vmem:[#allocation3 + $0x38] sm:$0xff] }
 0x275   : > { %v2043_v22 = vpop.eup %2042  ;;  %2056 = vpow2.f32 %v949_v30  ;;  %v2670_v6 = vpop.permute.xlu0 %1081  ;;  %v973_v10 = vmul.f32 %v2620_v27, %v957_v20 }
 0x276   : > { %v947_v48 = vmul.f32 1.442695, %v917_v32  ;;  %997 = vadd.xlane.f32.xlu1 %v2043_v22  ;;  %v1163_v23 = vpack.c.bf16 %v2043_v22, %v2037_v63  ;;  %v2045_v49 = vpop.eup %2044  ;;  %v955_v22 = vld [vmem:[#allocation3 + $0x20] sm:$0xff] }
 0x277   : > { %v2668_v60 = vpop.permute.xlu1 %1071  ;;  %v971_v29 = vmul.f32 %v2614_v43, %v955_v22  ;;  %v1051_v22 = vld [vmem:[#allocation4 + $0x18] sm:$0xff] }
 0x278   : > { %2058 = vpow2.f32 %v947_v48  ;;  %1895 = vmatmul.mubr.bf16.gmra.mxu1 %v1163_v23 }
 0x279   : > { %v2047_v53 = vpop.eup %2046  ;;  %2060 = vpow2.f32 %v819_v36  ;;  %v2674_v28 = vpop.permute.xlu0 %1101  ;;  %v960_v36 = vld [vmem:[#allocation3 + $0x48] sm:$0xff] }
 0x27a   : > { %993 = vadd.xlane.f32.xlu1 %v2041_v17  ;;  %v1164_v45 = vpack.c.bf16 %v2045_v49, %v2047_v53  ;;  %v2049_v5 = vpop.eup %2048  ;;  %2062 = vpow2.f32 %v821_v4  ;;  %v976_v1 = vmul.f32 %v2623_v47, %v960_v36 }
 0x27b   : > { %v2672_v52 = vpop.permute.xlu1 %1076 }
 0x27c   : > { %1898 = vmatprep.mubr.bf16.mxu1 %v1164_v45 }
 0x27d   : > { %v2051_v57 = vpop.eup %2050  ;;  %v2678_v62 = vpop.permute.xlu0 %1091 }
 0x27e   : > { %1005 = vadd.xlane.f32.xlu1 %v2049_v5  ;;  %1003 = vadd.xlane.f32.xlu0 %v2051_v57  ;;  %v1165_v26 = vpack.c.bf16 %v2049_v5, %v2051_v57  ;;  %v2053_v24 = vpop.eup %2052  ;;  %v956_v5 = vld [vmem:[#allocation3 + $0x28] sm:$0xff] }
 0x27f   : > { %v2676_v54 = vpop.permute.xlu1 %1086  ;;  %v972_v27 = vmul.f32 %v2611_v21, %v956_v5 }
 0x280   : > { %1899 = vmatmul.mubr.bf16.gmra.mxu1 %v1165_v26 }
 0x281   : > { %v2055_v50 = vpop.eup %2054  ;;  %v2682_v19 = vpop.permute.xlu0 %1121 }
 0x282   : > { %1001 = vadd.xlane.f32.xlu1 %v2045_v49  ;;  %999 = vadd.xlane.f32.xlu0 %v2047_v53  ;;  %v1166_v12 = vpack.c.bf16 %v2053_v24, %v2055_v50  ;;  %v2057_v18 = vpop.eup %2056  ;;  %v974_v53 = vmul.f32 %v2603_v38, %v958_v37  ;;  %v959_v38 = vld [vmem:[#allocation3 + $0x40] sm:$0xff] }
 0x283   : > { %v2680_v3 = vpop.permute.xlu1 %1096  ;;  %v975_v21 = vmul.f32 %v2632_v56, %v959_v38  ;;  %v964_v56 = vld [vmem:[#allocation3 + $0x68] sm:$0xff] }
 0x284   : > { %1902 = vmatprep.mubr.bf16.mxu1 %v1166_v12 }
 0x285   : > { %v2059_v14 = vpop.eup %2058  ;;  %v2686_v61 = vpop.permute.xlu0 %1111 }
 0x286   : > { %1013 = vadd.xlane.f32.xlu1 %v2057_v18  ;;  %1011 = vadd.xlane.f32.xlu0 %v2059_v14  ;;  %v1167_v35 = vpack.c.bf16 %v2057_v18, %v2059_v14  ;;  %v2660_v34 = vpop.eup %2060 }
 0x287   : > { %v2663_v39 = vpop.eup %2062  ;;  %v2684_v59 = vpop.permute.xlu1 %1116 }
 0x288   : > { %1903 = vmatmul.mubr.bf16.gmra.mxu1 %v1167_v35 }
 0x289   : > { %v2690_v41 = vpop.permute.xlu0 %1131 }
 0x28a   : > { %1009 = vadd.xlane.f32.xlu1 %v2053_v24  ;;  %1007 = vadd.xlane.f32.xlu0 %v2055_v50  ;;  %v961_v24 = vld [vmem:[#allocation3 + $0x50] sm:$0xff]  ;;  %v962_v50 = vld [vmem:[#allocation3 + $0x58] sm:$0xff] }
 0x28b   : > { %v2688_v63 = vpop.permute.xlu1 %1106  ;;  %v977_v43 = vmul.f32 %v2626_v51, %v961_v24  ;;  %v978_v18 = vmul.f32 %v2617_v46, %v962_v50  ;;  %v966_v51 = vld [vmem:[#allocation3 + $0x78] sm:$0xff] }
 0x28c   : > { %v982_v33 = vmul.f32 %v2663_v39, %v966_v51 }
 0x28f   : > { %v2692_v8 = vpop.permute.xlu1 %1126 }
 0x29b   : > { %1136 = vperm.xlu1 %1975, %v2660_v34  }
 0x2a0   : > { %1141 = vperm.xlu0 %1974, %v2663_v39   ;;  %v1050_v39 = vld [vmem:[#allocation4 + $0x10] sm:$0xff] }
 0x2e5   : > { %v988_v7 = vpop.xlane.xlu0 %987 }
 0x2e6   : > { %v1017_v9 = vadd.f32 %v988_v7, %v969_v2 }
 0x2e7   : > { %v984_v31 = vpop.xlane.xlu1 %983 }
 0x2e8   : > { %1034 = vst.msk [vmem:[#allocation3 + $0x10] sm:$0xff] %vm1031_vm4, %v1017_v9  ;;  %v1015_v25 = vadd.f32 %v984_v31, %v967_v11  ;;  %v965_v9 = vld [vmem:[#allocation3 + $0x70] sm:$0xff] }
 0x2e9   : > { %v981_v31 = vmul.f32 %v2660_v34, %v965_v9  ;;  %v1057_v9 = vld [vmem:[#allocation4 + $0x48] sm:$0xff] }
 0x2ea   : > { %1032 = vst.msk [vmem:[#allocation3] sm:$0xff] %vm1031_vm4, %v1015_v25 }
 0x2eb   : > { %v990_v17 = vpop.xlane.xlu1 %989 }
 0x2ec   : > { %v1018_v44 = vadd.f32 %v990_v17, %v970_v15  ;;  %v963_v15 = vld [vmem:[#allocation3 + $0x60] sm:$0xff] }
 0x2ed   : > { %v986_v30 = vpop.xlane.xlu0 %985 }
 0x2ee   : > { %1035 = vst.msk [vmem:[#allocation3 + $0x18] sm:$0xff] %vm1031_vm4, %v1018_v44  ;;  %v1016_v42 = vadd.f32 %v986_v30, %v968_v16  ;;  %v979_v44 = vmul.f32 %v2635_v58, %v963_v15  ;;  %v980_v16 = vmul.f32 %v2629_v55, %v964_v56  ;;  %v1049_v58 = vld [vmem:[#allocation4 + $0x8] sm:$0xff]  ;;  %v1147_v55 = vmul.f32 %v2670_v6, %v1051_v22  ;;  %v1055_v6 = vld [vmem:[#allocation4 + $0x38] sm:$0xff] }
 0x2f0   : > { %1033 = vst.msk [vmem:[#allocation3 + $0x8] sm:$0xff] %vm1031_vm4, %v1016_v42 }
 0x2f3   : > { %v996_v32 = vpop.xlane.xlu0 %995 }
 0x2f4   : > { %v1021_v48 = vadd.f32 %v996_v32, %v973_v10  ;;  %v1048_v10 = vld [vmem:[#allocation4] sm:$0xff]  ;;  %v1146_v32 = vmul.f32 %v2672_v52, %v1050_v39 }
 0x2f6   : > { %1038 = vst.msk [vmem:[#allocation3 + $0x30] sm:$0xff] %vm1031_vm4, %v1021_v48 }
 0x2f7   : > { %v992_v23 = vpop.xlane.xlu0 %991 }
 0x2f8   : > { %v1019_v49 = vadd.f32 %v992_v23, %v971_v29  ;;  %v1144_v29 = vmul.f32 %v2666_v40, %v1048_v10  ;;  %v1054_v40 = vld [vmem:[#allocation4 + $0x30] sm:$0xff] }
 0x2fa   : > { %1036 = vst.msk [vmem:[#allocation3 + $0x20] sm:$0xff] %vm1031_vm4, %v1019_v49 }
 0x2ff   : > { %v998_v45 = vpop.xlane.xlu1 %997 }
 0x300   : > { %v1022_v57 = vadd.f32 %v998_v45, %v974_v53  ;;  %v1145_v45 = vmul.f32 %v2668_v60, %v1049_v58 }
 0x302   : > { %1039 = vst.msk [vmem:[#allocation3 + $0x38] sm:$0xff] %vm1031_vm4, %v1022_v57 }
 0x303   : > { %v994_v26 = vpop.xlane.xlu1 %993 }
 0x304   : > { %v1020_v12 = vadd.f32 %v994_v26, %v972_v27  ;;  %v1052_v27 = vld [vmem:[#allocation4 + $0x20] sm:$0xff]  ;;  %v1150_v26 = vmul.f32 %v2680_v3, %v1054_v40 }
 0x305   : > { %v1148_v50 = vmul.f32 %v2676_v54, %v1052_v27  ;;  %v1056_v3 = vld [vmem:[#allocation4 + $0x40] sm:$0xff] }
 0x306   : > { %1037 = vst.msk [vmem:[#allocation3 + $0x28] sm:$0xff] %vm1031_vm4, %v1020_v12 }
 0x307   : > { %v1004_v14 = vpop.xlane.xlu0 %1003  ;;  %v1006_v35 = vpop.xlane.xlu1 %1005 }
 0x308   : > { %v1025_v4 = vadd.f32 %v1004_v14, %v977_v43  ;;  %v1026_v0 = vadd.f32 %v1006_v35, %v978_v18  ;;  %v1053_v43 = vld [vmem:[#allocation4 + $0x28] sm:$0xff]  ;;  %v1151_v18 = vmul.f32 %v2674_v28, %v1055_v6  ;;  %v1058_v35 = vld [vmem:[#allocation4 + $0x50] sm:$0xff]  ;;  %v1152_v28 = vmul.f32 %v2688_v63, %v1056_v3 }
 0x309   : > { %v1149_v36 = vmul.f32 %v2678_v62, %v1053_v43 }
 0x30a   : > { %1042 = vst.msk [vmem:[#allocation3 + $0x50] sm:$0xff] %vm1031_vm4, %v1025_v4  ;;  %1043 = vst.msk [vmem:[#allocation3 + $0x58] sm:$0xff] %vm1031_vm4, %v1026_v0 }
 0x30b   : > { %v1000_v2 = vpop.xlane.xlu0 %999  ;;  %v1002_v7 = vpop.xlane.xlu1 %1001 }
 0x30c   : > { %v1023_v11 = vadd.f32 %v1000_v2, %v975_v21  ;;  %v1024_v46 = vadd.f32 %v1002_v7, %v976_v1  ;;  %v1154_v21 = vmul.f32 %v2684_v59, %v1058_v35  ;;  %v1059_v1 = vld [vmem:[#allocation4 + $0x58] sm:$0xff] }
 0x30d   : > { %v1155_v62 = vmul.f32 %v2682_v19, %v1059_v1 }
 0x30e   : > { %1040 = vst.msk [vmem:[#allocation3 + $0x40] sm:$0xff] %vm1031_vm4, %v1023_v11  ;;  %1041 = vst.msk [vmem:[#allocation3 + $0x48] sm:$0xff] %vm1031_vm4, %v1024_v46  ;;  %v1062_v46 = vld [vmem:[#allocation4 + $0x70] sm:$0xff] }
 0x30f   : > { %v1012_v25 = vpop.xlane.xlu0 %1011  ;;  %v1014_v13 = vpop.xlane.xlu1 %1013 }
 0x310   : > { %v1029_v17 = vadd.f32 %v1012_v25, %v981_v31  ;;  %v1030_v47 = vadd.f32 %v1014_v13, %v982_v33  ;;  %v1153_v33 = vmul.f32 %v2686_v61, %v1057_v9  ;;  %v1060_v13 = vld [vmem:[#allocation4 + $0x60] sm:$0xff] }
 0x312   : > { %1046 = vst.msk [vmem:[#allocation3 + $0x70] sm:$0xff] %vm1031_vm4, %v1029_v17  ;;  %1047 = vst.msk [vmem:[#allocation3 + $0x78] sm:$0xff] %vm1031_vm4, %v1030_v47  ;;  %v1063_v17 = vld [vmem:[#allocation4 + $0x78] sm:$0xff] }
 0x313   : > { %v1008_v30 = vpop.xlane.xlu0 %1007  ;;  %v1010_v42 = vpop.xlane.xlu1 %1009 }
 0x314   : > { %v1027_v20 = vadd.f32 %v1008_v30, %v979_v44  ;;  %v1028_v34 = vadd.f32 %v1010_v42, %v980_v16  ;;  %v1156_v44 = vmul.f32 %v2692_v8, %v1060_v13  ;;  %v1061_v30 = vld [vmem:[#allocation4 + $0x68] sm:$0xff] }
 0x315   : > { %v1157_v39 = vmul.f32 %v2690_v41, %v1061_v30 }
 0x316   : > { %1044 = vst.msk [vmem:[#allocation3 + $0x60] sm:$0xff] %vm1031_vm4, %v1027_v20  ;;  %1045 = vst.msk [vmem:[#allocation3 + $0x68] sm:$0xff] %vm1031_vm4, %v1028_v34 }
 0x317   : > { %v1137_v31 = vpop.permute.xlu1 %1136 }
 0x318   : > { %v1158_v15 = vmul.f32 %v1137_v31, %v1062_v46 }
 0x31b   : > { %v1142_v47 = vpop.permute.xlu0 %1141 }
 0x31c   : > { %v1159_v61 = vmul.f32 %v1142_v47, %v1063_v17 }
 0x327   : > { %v1892_v48 = vpop.f32.mrf.mxu1 }
 0x328   : > { %v1315_v23 = vadd.f32 %v1892_v48, %v1146_v32 }
 0x329   : > { %v1250_v49 = vpop.f32.mrf.mxu1 }
 0x32a   : > { %1331 = vst.msk [vmem:[#allocation4 + $0x10] sm:$0xff] %vm479_vm2, %v1315_v23  ;;  %v1313_v37 = vadd.f32 %v1250_v49, %v1144_v29 }
 0x32b   : > { %v1893_v53 = vpop.f32.mrf.mxu1 }
 0x32c   : > { %1329 = vst.msk [vmem:[#allocation4] sm:$0xff] %vm479_vm2, %v1313_v37  ;;  %v1316_v5 = vadd.f32 %v1893_v53, %v1147_v55 }
 0x32d   : > { %v1253_v57 = vpop.f32.mrf.mxu1 }
 0x32e   : > { %1332 = vst.msk [vmem:[#allocation4 + $0x18] sm:$0xff] %vm479_vm2, %v1316_v5  ;;  %v1314_v52 = vadd.f32 %v1253_v57, %v1145_v45 }
 0x330   : > { %1330 = vst.msk [vmem:[#allocation4 + $0x8] sm:$0xff] %vm479_vm2, %v1314_v52 }
 0x338   : > { %v1896_v24 = vpop.f32.mrf.mxu1 }
 0x339   : > { %v1319_v12 = vadd.f32 %v1896_v24, %v1150_v26 }
 0x33a   : > { %v1266_v60 = vpop.f32.mrf.mxu1 }
 0x33b   : > { %1335 = vst.msk [vmem:[#allocation4 + $0x30] sm:$0xff] %vm479_vm2, %v1319_v12  ;;  %v1317_v14 = vadd.f32 %v1266_v60, %v1148_v50 }
 0x33c   : > { %v1897_v38 = vpop.f32.mrf.mxu1 }
 0x33d   : > { %1333 = vst.msk [vmem:[#allocation4 + $0x20] sm:$0xff] %vm479_vm2, %v1317_v14  ;;  %v1320_v4 = vadd.f32 %v1897_v38, %v1151_v18 }
 0x33e   : > { %v1269_v0 = vpop.f32.mrf.mxu1 }
 0x33f   : > { %1336 = vst.msk [vmem:[#allocation4 + $0x38] sm:$0xff] %vm479_vm2, %v1320_v4  ;;  %v1318_v54 = vadd.f32 %v1269_v0, %v1149_v36 }
 0x340   : > { %v1900_v2 = vpop.f32.mrf.mxu1 }
 0x341   : > { %1334 = vst.msk [vmem:[#allocation4 + $0x28] sm:$0xff] %vm479_vm2, %v1318_v54  ;;  %v1323_v7 = vadd.f32 %v1900_v2, %v1154_v21 }
 0x342   : > { %v1282_v51 = vpop.f32.mrf.mxu1 }
 0x343   : > { %1339 = vst.msk [vmem:[#allocation4 + $0x50] sm:$0xff] %vm479_vm2, %v1323_v7  ;;  %v1321_v11 = vadd.f32 %v1282_v51, %v1152_v28 }
 0x344   : > { %v1901_v59 = vpop.f32.mrf.mxu1 }
 0x345   : > { %1337 = vst.msk [vmem:[#allocation4 + $0x40] sm:$0xff] %vm479_vm2, %v1321_v11  ;;  %v1324_v25 = vadd.f32 %v1901_v59, %v1155_v62 }
 0x346   : > { %v1285_v63 = vpop.f32.mrf.mxu1 }
 0x347   : > { %1340 = vst.msk [vmem:[#allocation4 + $0x58] sm:$0xff] %vm479_vm2, %v1324_v25  ;;  %v1322_v56 = vadd.f32 %v1285_v63, %v1153_v33 }
 0x348   : > { %v1904_v19 = vpop.f32.mrf.mxu1 }
 0x349   : > { %1338 = vst.msk [vmem:[#allocation4 + $0x48] sm:$0xff] %vm479_vm2, %v1322_v56  ;;  %v1327_v16 = vadd.f32 %v1904_v19, %v1158_v15 }
 0x34a   : > { %v1298_v42 = vpop.f32.mrf.mxu1 }
 0x34b   : > { %1343 = vst.msk [vmem:[#allocation4 + $0x70] sm:$0xff] %vm479_vm2, %v1327_v16  ;;  %v1325_v20 = vadd.f32 %v1298_v42, %v1156_v44 }
 0x34c   : > { %v1905_v34 = vpop.f32.mrf.mxu1 }
 0x34d   : > { %1341 = vst.msk [vmem:[#allocation4 + $0x60] sm:$0xff] %vm479_vm2, %v1325_v20  ;;  %v1328_v10 = vadd.f32 %v1905_v34, %v1159_v61 }
 0x34e   : > { %v1301_v32 = vpop.f32.mrf.mxu1 }
 0x34f   : > { %1344 = vst.msk [vmem:[#allocation4 + $0x78] sm:$0xff] %vm479_vm2, %v1328_v10  ;;  %v1326_v22 = vadd.f32 %v1301_v32, %v1157_v39 }
 0x351   : > { %1342 = vst.msk [vmem:[#allocation4 + $0x68] sm:$0xff] %vm479_vm2, %v1326_v22 }
 0x352 PF: > { %p1775_p11 = scmp.ne.s32.totalorder %s2128_s12, 1 }
 0x354   : > { %1364 = sbr.rel (%p1775_p11) target bundleno = 1030 (0x406), region = 44 }
 0x359   : > { %v1383_v8 = vld [vmem:[#allocation3 + $0x10] sm:$0xff]  ;;  %v1381_v48 = vld [vmem:[#allocation3] sm:$0xff]  ;;  %v1384_v29 = vld [vmem:[#allocation3 + $0x18] sm:$0xff]  ;;  %v2157_v23 = vmov 0   ;;  %vm1573_vm2 = vcmask 257024  }
 0x35a   : > { %2065 = vset.pattern.permute.xlu1 %v2157_v23  ;;  %2064 = vset.pattern.permute.xlu0 %v2157_v23  ;;  %2066 = vrcp.f32 %v1383_v8  ;;  %v1382_v41 = vld [vmem:[#allocation3 + $0x8] sm:$0xff]  ;;  %v1385_v49 = vld [vmem:[#allocation3 + $0x20] sm:$0xff]  ;;  %v1388_v55 = vld [vmem:[#allocation3 + $0x38] sm:$0xff] }
 0x35b   : > { %2068 = vrcp.f32 %v1381_v48  ;;  %v1386_v58 = vld [vmem:[#allocation3 + $0x28] sm:$0xff]  ;;  %v1387_v37 = vld [vmem:[#allocation3 + $0x30] sm:$0xff]  ;;  %v1389_v45 = vld [vmem:[#allocation3 + $0x40] sm:$0xff] }
 0x35c   : > { %2070 = vrcp.f32 %v1384_v29  ;;  %v1390_v53 = vld [vmem:[#allocation3 + $0x48] sm:$0xff]  ;;  %v1392_v40 = vld [vmem:[#allocation3 + $0x58] sm:$0xff]  ;;  %v1391_v26 = vld [vmem:[#allocation3 + $0x50] sm:$0xff] }
 0x35d   : > { %2072 = vrcp.f32 %v1382_v41  ;;  %v1394_v24 = vld [vmem:[#allocation3 + $0x68] sm:$0xff]  ;;  %v1393_v12 = vld [vmem:[#allocation3 + $0x60] sm:$0xff]  ;;  %v1396_v60 = vld [vmem:[#allocation3 + $0x78] sm:$0xff] }
 0x35e   : > { %2074 = vrcp.f32 %v1386_v58  ;;  %v1395_v14 = vld [vmem:[#allocation3 + $0x70] sm:$0xff]  ;;  %v1365_v2 = vld [vmem:[#allocation4] sm:$0xff]  ;;  %v1368_v62 = vld [vmem:[#allocation4 + $0x18] sm:$0xff] }
 0x35f   : > { %2076 = vrcp.f32 %v1385_v49  ;;  %v1367_v1 = vld [vmem:[#allocation4 + $0x10] sm:$0xff]  ;;  %v1366_v46 = vld [vmem:[#allocation4 + $0x8] sm:$0xff]  ;;  %v1369_v56 = vld [vmem:[#allocation4 + $0x20] sm:$0xff] }
 0x360   : > { %2078 = vrcp.f32 %v1388_v55  ;;  %v1370_v63 = vld [vmem:[#allocation4 + $0x28] sm:$0xff]  ;;  %v1372_v30 = vld [vmem:[#allocation4 + $0x38] sm:$0xff]  ;;  %v1371_v61 = vld [vmem:[#allocation4 + $0x30] sm:$0xff] }
 0x361   : > { %2080 = vrcp.f32 %v1387_v37  ;;  %v1374_v22 = vld [vmem:[#allocation4 + $0x48] sm:$0xff]  ;;  %v1373_v48 = vld [vmem:[#allocation4 + $0x40] sm:$0xff]  ;;  %v1376_v55 = vld [vmem:[#allocation4 + $0x58] sm:$0xff] }
 0x362   : > { %2082 = vrcp.f32 %v1390_v53  ;;  %v1375_v53 = vld [vmem:[#allocation4 + $0x50] sm:$0xff] }
 0x363   : > { %2084 = vrcp.f32 %v1389_v45 }
 0x364   : > { %2086 = vrcp.f32 %v1392_v40 }
 0x365   : > { %2088 = vrcp.f32 %v1391_v26 }
 0x366   : > { %2090 = vrcp.f32 %v1394_v24 }
 0x367   : > { %v2067_v5 = vpop.eup %2066  ;;  %2092 = vrcp.f32 %v1393_v12 }
 0x368   : > { %v2069_v57 = vpop.eup %2068  ;;  %1425 = vperm.xlu1 %2065, %v2067_v5   ;;  %2094 = vrcp.f32 %v1396_v60 }
 0x369   : > { %v2071_v52 = vpop.eup %2070  ;;  %1415 = vperm.xlu0 %2064, %v2069_v57   ;;  %2096 = vrcp.f32 %v1395_v14 }
 0x36a   : > { %v2073_v27 = vpop.eup %2072 }
 0x36b   : > { %v2075_v6 = vpop.eup %2074 }
 0x36c   : > { %1430 = vperm.xlu1 %2065, %v2071_v52   ;;  %v2077_v50 = vpop.eup %2076 }
 0x36d   : > { %1420 = vperm.xlu0 %2064, %v2073_v27   ;;  %v2079_v43 = vpop.eup %2078  ;;  %v1378_v27 = vld [vmem:[#allocation4 + $0x68] sm:$0xff] }
 0x36e   : > { %v2081_v18 = vpop.eup %2080 }
 0x36f   : > { %v2083_v35 = vpop.eup %2082 }
 0x370   : > { %1440 = vperm.xlu1 %2065, %v2075_v6   ;;  %v2085_v38 = vpop.eup %2084  ;;  %v1377_v6 = vld [vmem:[#allocation4 + $0x60] sm:$0xff] }
 0x371   : > { %1435 = vperm.xlu0 %2064, %v2077_v50   ;;  %v2087_v36 = vpop.eup %2086 }
 0x372   : > { %v2089_v4 = vpop.eup %2088 }
 0x373   : > { %v2091_v3 = vpop.eup %2090 }
 0x374   : > { %1450 = vperm.xlu1 %2065, %v2079_v43   ;;  %v2093_v0 = vpop.eup %2092 }
 0x375   : > { %1445 = vperm.xlu0 %2064, %v2081_v18   ;;  %v2095_v21 = vpop.eup %2094  ;;  %v1380_v18 = vld [vmem:[#allocation4 + $0x78] sm:$0xff] }
 0x376   : > { %v2097_v54 = vpop.eup %2096 }
 0x378   : > { %1460 = vperm.xlu1 %2065, %v2083_v35   ;;  %v1379_v35 = vld [vmem:[#allocation4 + $0x70] sm:$0xff] }
 0x379   : > { %1455 = vperm.xlu0 %2064, %v2085_v38  }
 0x37c   : > { %1470 = vperm.xlu1 %2065, %v2087_v36  }
 0x37d   : > { %1465 = vperm.xlu0 %2064, %v2089_v4  }
 0x380   : > { %1480 = vperm.xlu1 %2065, %v2091_v3  }
 0x381   : > { %1475 = vperm.xlu0 %2064, %v2093_v0  }
 0x384   : > { %1490 = vperm.xlu1 %2065, %v2095_v21  }
 0x385   : > { %1485 = vperm.xlu0 %2064, %v2097_v54  }
 0x3e3   : > { %v1426_v28 = vpop.permute.xlu1 %1425 }
 0x3e4   : > { %v1495_v7 = vmul.f32 %v1426_v28, %v1367_v1  ;;  %v1416_v9 = vpop.permute.xlu0 %1415 }
 0x3e5   : > { %v1493_v51 = vmul.f32 %v1416_v9, %v1365_v2 }
 0x3e6   : > { %v1796_v11 = vpack.c.bf16 %v1495_v7, %v1495_v7 }
 0x3e7   : > { %v1794_v31 = vpack.c.bf16 %v1493_v51, %v1493_v51  ;;  %v1431_v59 = vpop.permute.xlu1 %1430 }
 0x3e8   : > { %1576 = vst.msk [vmem:[%s2234_s5 + $0x8] sm:$0xf] %vm1573_vm2, %v1796_v11  ;;  %v1496_v33 = vmul.f32 %v1431_v59, %v1368_v62  ;;  %v1421_v25 = vpop.permute.xlu0 %1420 }
 0x3e9   : > { %1574 = vst.msk [vmem:[%s2234_s5] sm:$0xf] %vm1573_vm2, %v1794_v31  ;;  %v1494_v13 = vmul.f32 %v1421_v25, %v1366_v46 }
 0x3ea   : > { %v1797_v15 = vpack.c.bf16 %v1496_v33, %v1496_v33 }
 0x3eb   : > { %v1795_v17 = vpack.c.bf16 %v1494_v13, %v1494_v13  ;;  %v1441_v47 = vpop.permute.xlu1 %1440 }
 0x3ec   : > { %1577 = vst.msk [vmem:[%s2234_s5 + $0xc] sm:$0xf] %vm1573_vm2, %v1797_v15  ;;  %v1498_v19 = vmul.f32 %v1441_v47, %v1370_v63  ;;  %v1436_v44 = vpop.permute.xlu0 %1435 }
 0x3ed   : > { %1575 = vst.msk [vmem:[%s2234_s5 + $0x4] sm:$0xf] %vm1573_vm2, %v1795_v17  ;;  %v1497_v16 = vmul.f32 %v1436_v44, %v1369_v56 }
 0x3ee   : > { %v1799_v42 = vpack.c.bf16 %v1498_v19, %v1498_v19 }
 0x3ef   : > { %v1798_v20 = vpack.c.bf16 %v1497_v16, %v1497_v16  ;;  %v1451_v34 = vpop.permute.xlu1 %1450 }
 0x3f0   : > { %1579 = vst.msk [vmem:[%s2234_s5 + $0x14] sm:$0xf] %vm1573_vm2, %v1799_v42  ;;  %v1500_v39 = vmul.f32 %v1451_v34, %v1372_v30  ;;  %v1446_v10 = vpop.permute.xlu0 %1445 }
 0x3f1   : > { %1578 = vst.msk [vmem:[%s2234_s5 + $0x10] sm:$0xf] %vm1573_vm2, %v1798_v20  ;;  %v1499_v32 = vmul.f32 %v1446_v10, %v1371_v61 }
 0x3f2   : > { %v1801_v8 = vpack.c.bf16 %v1500_v39, %v1500_v39 }
 0x3f3   : > { %v1800_v29 = vpack.c.bf16 %v1499_v32, %v1499_v32  ;;  %v1461_v23 = vpop.permute.xlu1 %1460 }
 0x3f4   : > { %1581 = vst.msk [vmem:[%s2234_s5 + $0x1c] sm:$0xf] %vm1573_vm2, %v1801_v8  ;;  %v1502_v41 = vmul.f32 %v1461_v23, %v1374_v22  ;;  %v1456_v58 = vpop.permute.xlu0 %1455 }
 0x3f5   : > { %1580 = vst.msk [vmem:[%s2234_s5 + $0x18] sm:$0xf] %vm1573_vm2, %v1800_v29  ;;  %v1501_v49 = vmul.f32 %v1456_v58, %v1373_v48 }
 0x3f6   : > { %v1803_v37 = vpack.c.bf16 %v1502_v41, %v1502_v41 }
 0x3f7   : > { %v1802_v45 = vpack.c.bf16 %v1501_v49, %v1501_v49  ;;  %v1471_v5 = vpop.permute.xlu1 %1470 }
 0x3f8   : > { %1583 = vst.msk [vmem:[%s2234_s5 + $0x24] sm:$0xf] %vm1573_vm2, %v1803_v37  ;;  %v1504_v57 = vmul.f32 %v1471_v5, %v1376_v55  ;;  %v1466_v52 = vpop.permute.xlu0 %1465 }
 0x3f9   : > { %1582 = vst.msk [vmem:[%s2234_s5 + $0x20] sm:$0xf] %vm1573_vm2, %v1802_v45  ;;  %v1503_v40 = vmul.f32 %v1466_v52, %v1375_v53 }
 0x3fa   : > { %v1805_v26 = vpack.c.bf16 %v1504_v57, %v1504_v57 }
 0x3fb   : > { %v1804_v24 = vpack.c.bf16 %v1503_v40, %v1503_v40  ;;  %v1481_v50 = vpop.permute.xlu1 %1480 }
 0x3fc   : > { %1585 = vst.msk [vmem:[%s2234_s5 + $0x2c] sm:$0xf] %vm1573_vm2, %v1805_v26  ;;  %v1506_v12 = vmul.f32 %v1481_v50, %v1378_v27  ;;  %v1476_v43 = vpop.permute.xlu0 %1475 }
 0x3fd   : > { %1584 = vst.msk [vmem:[%s2234_s5 + $0x28] sm:$0xf] %vm1573_vm2, %v1804_v24  ;;  %v1505_v60 = vmul.f32 %v1476_v43, %v1377_v6 }
 0x3fe   : > { %v1807_v14 = vpack.c.bf16 %v1506_v12, %v1506_v12 }
 0x3ff   : > { %v1806_v38 = vpack.c.bf16 %v1505_v60, %v1505_v60  ;;  %v1491_v36 = vpop.permute.xlu1 %1490 }
 0x400   : > { %1587 = vst.msk [vmem:[%s2234_s5 + $0x34] sm:$0xf] %vm1573_vm2, %v1807_v14  ;;  %v1508_v4 = vmul.f32 %v1491_v36, %v1380_v18  ;;  %v1486_v3 = vpop.permute.xlu0 %1485 }
 0x401   : > { %1586 = vst.msk [vmem:[%s2234_s5 + $0x30] sm:$0xf] %vm1573_vm2, %v1806_v38  ;;  %v1507_v0 = vmul.f32 %v1486_v3, %v1379_v35 }
 0x402   : > { %v1809_v21 = vpack.c.bf16 %v1508_v4, %v1508_v4 }
 0x403   : > { %v1808_v54 = vpack.c.bf16 %v1507_v0, %v1507_v0 }
 0x404   : > { %1589 = vst.msk [vmem:[%s2234_s5 + $0x3c] sm:$0xf] %vm1573_vm2, %v1809_v21 }
 0x405   : > { %1588 = vst.msk [vmem:[%s2234_s5 + $0x38] sm:$0xf] %vm1573_vm2, %v1808_v54 }
 0x406 PF: > { %s13_s18 = sadd.s32 1, %s2152_s18   ;;  %s2814_s12 = smov %s2140_s15 }
 0x407   : > { %p10_p12 = scmp.ge.s32.totalorder %s13_s18, 34   ;;  %s2815_s13 = smov %s2144_s16 }
 0x408   : > { %s2816_s14 = smov %s2148_s17  ;;  %s2817_s15 = smov %s2821_s19 }
 0x409   : > { %s2818_s16 = smov %s2825_s20  ;;  %s2819_s17 = smov %s2829_s21 }
 0x40a   :  { %12 = sbr.rel (!%p10_p12) target bundleno = 4 (0x4), region = 80 }

// kernel: gpt_forward.13
= control target key start
LH: loop header
LB: loop body
LE: loop exit
PB: predicated region body
PF: predicated region fallthrough
CT: control target
= control target key end

     0   :  { %9 = vsyncpa [#allocation3], 0  ;;  %s2176_s0 = inlined_call_operand.vmem [shape: f32[512,128], index: 0, kind: input, shape index: {}]   ;;  %s2177_s1 = inlined_call_operand.vmem [shape: f32[1,128], index: 1, kind: input, shape index: {}]   ;;  %s2178_s2 = inlined_call_operand.vmem [shape: f32[1,128], index: 2, kind: input, shape index: {}]   ;;  %s2179_s3 = inlined_call_operand.vmem [shape: bf16[256,128], index: 3, kind: input, shape index: {}]   ;;  %s2180_s4 = inlined_call_operand.hbm [shape: f32[512,256], index: 4, kind: output, shape index: {}]  }
   0x1   :  { %11 = vsyncpa [#allocation3 + $0x1], 0  ;;  %s1548_s15 = smov 0   ;;  %s1550_s16 = smov 0  }
   0x2   :  { %s1552_s17 = smov 0   ;;  %s1554_s18 = smov 0  }
   0x3   :  { %s1556_s19 = smov 0   ;;  %s1558_s20 = smov 0  }
   0x4 LB: > { %s1206_s21 = sadd.s32 4294967295, %s1518_s20   ;;  %s1207_s22 = sadd.s32 4294967294, %s1518_s20   ;;  %s1518_s20 = sphi %s1558_s20, %s17_s20   ;;  %s1514_s19 = sphi %s1556_s19, %s2187_s19   ;;  %s1510_s18 = sphi %s1554_s18, %s2186_s18   ;;  %s1506_s17 = sphi %s1552_s17, %s2185_s17   ;;  %s1502_s16 = sphi %s1550_s16, %s2184_s16   ;;  %s1498_s15 = sphi %s1548_s15, %s2183_s15  }
   0x5   : > { %s29_s23 = sadd.s32 1, %s1514_s19  ;;  %s132_s24 = sadd.s32 1, %s1506_s17 }
   0x6   : > { %p31_p0 = scmp.ge.s32.totalorder %s29_s23, 2  ;;  %p142_p1 = scmp.ne.s32.totalorder %s1506_s17, %s1502_s16 }
   0x7   : > { %p143_p2 = scmp.eq.s32.totalorder %s1206_s21, 1  ;;  %p148_p3 = scmp.ne.s32.totalorder %s1502_s16, %s1498_s15 }
   0x8   : > { %s2189_s23 = smov (%p31_p0, %s29_s23), 0  ;;  %p149_p5 = scmp.eq.s32.totalorder %s1207_s22, 1 }
   0x9   : > { %p1588_p4 = por %p143_p2, %p142_p1  ;;  %s127_s26 = ssub.s32 %s1514_s19, %s2189_s23 }
   0xa   : > { %p1211_p6 = scmp.ge.s32.totalorder %s1518_s20, 1  ;;  %p130_p7 = scmp.eq.s32.totalorder %s127_s26, 0 }
   0xb   : > { %p1595_p8 = por %p149_p5, %p148_p3  ;;  %p191_p9 = scmp.lt.s32.totalorder %s1518_s20, 3 }
   0xc   : > { %s1601_s28 = scalar_select %p130_p7, %s1506_s17, %s132_s24  }
   0xd   : > { %p192_p10 = pnand %p1211_p6, %p191_p9 }
   0xe   : > { %s1213_s29 = sshll.u32 (!%p192_p10), %s1510_s18, 5  ;;  %s219_s12 = sand.u32 (!%p192_p10), 1, %s1502_s16  }
   0xf   : > { %195 = sbr.rel (%p192_p10) target bundleno = 611 (0x263), region = 36  ;;  %p223_p11 = scmp.lt.s32.totalorder (!%p192_p10), %s1213_s29, 63 }
  0x10   : > { %s1212_s13 = sshll.u32 (!%p192_p10), %s219_s12, 9  ;;  %s1240_s21 = sshll.u32 (!%p192_p10), %s1510_s18, 13 }
  0x11   : > { %s2054_s14 = scalar_lea.vmem (!%p192_p10), [#allocation2], %s1212_s13  ;;  %s2131_s18 = scalar_lea.sflag (!%p192_p10), [#allocation3], %s219_s12 }
  0x12   : > { %s1118_s22 = sshll.u32 (!%p192_p10), %s2054_s14, 4  ;;  %s1520_s5 = smov (!%p192_p10), [#allocation2]   ;;  %s2125_s22 = int_to_ptr.vmem [resolvable:$true] %s1118_s22 }
  0x13   : > { %s1446_s6 = sshll.u32 (!%p192_p10), %s1520_s5, 4  ;;  %s1447_s6 = int_to_ptr.vmem [resolvable:$false] %s1446_s6 }
  0x14   : > { %s2191_s29 = smov (!%p223_p11, %s1213_s29), 63  ;;  %v1362_v32 = vld [vmem:[%s2179_s3 + $0x78] sm:$0xff]   ;;  %v1364_v34 = vld [vmem:[%s2179_s3 + $0x70] sm:$0xff]   ;;  %v1366_v36 = vld [vmem:[%s2179_s3 + $0x68] sm:$0xff]   ;;  %p1449_p1 = scmp.lt.s32.totalorder %s2125_s22, %s1447_s6 }
  0x15   : > { %s1214_s30 = sshll.u32 %s2191_s29, 3  ;;  %v1363_v33 = vld [vmem:[%s2179_s3 + $0x38] sm:$0xff]   ;;  %1241 = vmatprep.subr.bf16.mxu0 %v1362_v32  ;;  %1289 = vmatprep.subr.bf16.mxu1 %v1362_v32  ;;  %v1365_v35 = vld [vmem:[%s2179_s3 + $0x30] sm:$0xff]   ;;  %v1367_v37 = vld [vmem:[%s2179_s3 + $0x28] sm:$0xff]   ;;  %s2123_s29 = scalar_lea.hbm %s2180_s4, %s1240_s21 }
  0x16   : > { %s1607_s7 = scalar_lea.vmem %s2176_s0, %s1214_s30  ;;  %1242 = vmatpush3.bf16.xpose.msra.mxu0 %v1363_v33  ;;  %1297 = vmatpush3.bf16.xpose.msra.mxu1 %v1363_v33  ;;  %v1368_v38 = vld [vmem:[%s2179_s3 + $0x60] sm:$0xff]   ;;  %v1370_v40 = vld [vmem:[%s2179_s3 + $0x58] sm:$0xff]   ;;  %s1442_s30 = scalar_lea.vmem %s2125_s22, 8192 }
  0x17   : > { %v1610_v0 = vld [vmem:[%s1607_s7] sm:$0xff]  ;;  %v1618_v2 = vld [vmem:[%s1607_s7 + $0x8] sm:$0xff]  ;;  %v1626_v4 = vld [vmem:[%s1607_s7 + $0x10] sm:$0xff]  ;;  %1243 = vmatprep.subr.bf16.mxu0 %v1364_v34  ;;  %1290 = vmatprep.subr.bf16.mxu1 %v1364_v34  ;;  %p1443_p12 = scmp.ne.s32.totalorder %s2125_s22, %s1442_s30 }
  0x18   : > { %v1613_v1 = vld [vmem:[%s1607_s7 + $0x80] sm:$0xff]  ;;  %271 = vadd.xlane.f32.xlu0 %v1610_v0  ;;  %v1621_v3 = vld [vmem:[%s1607_s7 + $0x88] sm:$0xff]  ;;  %v1629_v5 = vld [vmem:[%s1607_s7 + $0x18] sm:$0xff] }
  0x19   : > { %303 = vadd.xlane.f32.xlu1 %v1613_v1  ;;  %v1634_v6 = vld [vmem:[%s1607_s7 + $0x90] sm:$0xff]  ;;  %v1637_v7 = vld [vmem:[%s1607_s7 + $0x98] sm:$0xff]  ;;  %v1640_v8 = vld [vmem:[%s1607_s7 + $0x20] sm:$0xff]  ;;  %p1444_p13 = pnand %p1443_p12, %p1588_p4 }
  0x1a   : > { %v1643_v9 = vld [vmem:[%s1607_s7 + $0x28] sm:$0xff]  ;;  %v1650_v10 = vld [vmem:[%s1607_s7 + $0xa0] sm:$0xff]  ;;  %v1658_v12 = vld [vmem:[%s1607_s7 + $0x30] sm:$0xff] }
  0x1b   : > { %v1653_v11 = vld [vmem:[%s1607_s7 + $0xa8] sm:$0xff]  ;;  %v1661_v13 = vld [vmem:[%s1607_s7 + $0x38] sm:$0xff]  ;;  %v1666_v14 = vld [vmem:[%s1607_s7 + $0xb0] sm:$0xff]  ;;  %p1445_p0 = pneg %p1444_p13 }
  0x1c   : > { %273 = vadd.xlane.f32.xlu0 %v1618_v2  ;;  %v1669_v15 = vld [vmem:[%s1607_s7 + $0xb8] sm:$0xff]  ;;  %v1674_v16 = vld [vmem:[%s1607_s7 + $0x40] sm:$0xff]  ;;  %v1677_v17 = vld [vmem:[%s1607_s7 + $0x48] sm:$0xff] }
  0x1d   : > { %305 = vadd.xlane.f32.xlu1 %v1621_v3  ;;  %v1682_v18 = vld [vmem:[%s1607_s7 + $0xc0] sm:$0xff]  ;;  %v1685_v19 = vld [vmem:[%s1607_s7 + $0xc8] sm:$0xff]  ;;  %v1690_v20 = vld [vmem:[%s1607_s7 + $0x50] sm:$0xff] }
  0x1e   : > { %v1693_v21 = vld [vmem:[%s1607_s7 + $0x58] sm:$0xff]  ;;  %v1698_v22 = vld [vmem:[%s1607_s7 + $0xd0] sm:$0xff]  ;;  %v1706_v24 = vld [vmem:[%s1607_s7 + $0x60] sm:$0xff]  ;;  %1244 = vmatpush3.bf16.xpose.msra.mxu0 %v1365_v35  ;;  %1298 = vmatpush3.bf16.xpose.msra.mxu1 %v1365_v35 }
  0x1f   : > { %v1701_v23 = vld [vmem:[%s1607_s7 + $0xd8] sm:$0xff]  ;;  %v1709_v25 = vld [vmem:[%s1607_s7 + $0x68] sm:$0xff]  ;;  %v1714_v26 = vld [vmem:[%s1607_s7 + $0xe0] sm:$0xff]  ;;  %1245 = vmatprep.subr.bf16.mxu0 %v1366_v36  ;;  %1291 = vmatprep.subr.bf16.mxu1 %v1366_v36 }
  0x20   : > { %275 = vadd.xlane.f32.xlu0 %v1626_v4  ;;  %v1717_v27 = vld [vmem:[%s1607_s7 + $0xe8] sm:$0xff]  ;;  %v1722_v28 = vld [vmem:[%s1607_s7 + $0x70] sm:$0xff]  ;;  %v1725_v29 = vld [vmem:[%s1607_s7 + $0x78] sm:$0xff] }
  0x21   : > { %277 = vadd.xlane.f32.xlu1 %v1629_v5  ;;  %v1730_v30 = vld [vmem:[%s1607_s7 + $0xf0] sm:$0xff]  ;;  %v1733_v31 = vld [vmem:[%s1607_s7 + $0xf8] sm:$0xff]  ;;  %v1369_v39 = vld [vmem:[%s2179_s3 + $0x20] sm:$0xff]   ;;  %s1448_s7 = scalar_lea.vmem %s1447_s6, 16384 }
  0x22   : > { %v1371_v33 = vld [vmem:[%s2179_s3 + $0x18] sm:$0xff]   ;;  %p1450_p2 = scmp.lt.s32.totalorder %s1448_s7, %s1442_s30 }
  0x24   : > { %307 = vadd.xlane.f32.xlu0 %v1634_v6  ;;  %p1451_p3 = por %p1450_p2, %p1449_p1 }
  0x25   : > { %309 = vadd.xlane.f32.xlu1 %v1637_v7 }
  0x26   : > { %1246 = vmatpush3.bf16.xpose.msra.mxu0 %v1367_v37  ;;  %1299 = vmatpush3.bf16.xpose.msra.mxu1 %v1367_v37  ;;  %p1452_p5 = pnand %p1451_p3, %p1445_p0 }
  0x27   : > { %1247 = vmatprep.subr.bf16.mxu0 %v1368_v38  ;;  %1292 = vmatprep.subr.bf16.mxu1 %v1368_v38 }
  0x28   : > { %279 = vadd.xlane.f32.xlu0 %v1640_v8 }
  0x29   : > { %281 = vadd.xlane.f32.xlu1 %v1643_v9 }
  0x2c   : > { %311 = vadd.xlane.f32.xlu0 %v1650_v10 }
  0x2d   : > { %313 = vadd.xlane.f32.xlu1 %v1653_v11 }
  0x2e   : > { %1248 = vmatpush3.bf16.xpose.msra.mxu0 %v1369_v39  ;;  %1300 = vmatpush3.bf16.xpose.msra.mxu1 %v1369_v39 }
  0x2f   : > { %1249 = vmatprep.subr.bf16.mxu0 %v1370_v40  ;;  %1293 = vmatprep.subr.bf16.mxu1 %v1370_v40 }
  0x30   : > { %283 = vadd.xlane.f32.xlu0 %v1658_v12 }
  0x31   : > { %285 = vadd.xlane.f32.xlu1 %v1661_v13 }
  0x34   : > { %315 = vadd.xlane.f32.xlu0 %v1666_v14 }
  0x35   : > { %317 = vadd.xlane.f32.xlu1 %v1669_v15 }
  0x36   : > { %1250 = vmatpush3.bf16.xpose.msra.mxu0 %v1371_v33  ;;  %1301 = vmatpush3.bf16.xpose.msra.mxu1 %v1371_v33  ;;  %v1375_v33 = vld [vmem:[%s2179_s3 + $0x8] sm:$0xff]  }
  0x38   : > { %287 = vadd.xlane.f32.xlu0 %v1674_v16 }
  0x39   : > { %289 = vadd.xlane.f32.xlu1 %v1677_v17 }
  0x3c   : > { %319 = vadd.xlane.f32.xlu0 %v1682_v18 }
  0x3d   : > { %321 = vadd.xlane.f32.xlu1 %v1685_v19 }
  0x40   : > { %291 = vadd.xlane.f32.xlu0 %v1690_v20 }
  0x41   : > { %293 = vadd.xlane.f32.xlu1 %v1693_v21 }
  0x44   : > { %323 = vadd.xlane.f32.xlu0 %v1698_v22 }
  0x45   : > { %325 = vadd.xlane.f32.xlu1 %v1701_v23 }
  0x48   : > { %295 = vadd.xlane.f32.xlu0 %v1706_v24 }
  0x49   : > { %297 = vadd.xlane.f32.xlu1 %v1709_v25 }
  0x4c   : > { %327 = vadd.xlane.f32.xlu0 %v1714_v26 }
  0x4d   : > { %329 = vadd.xlane.f32.xlu1 %v1717_v27 }
  0x50   : > { %299 = vadd.xlane.f32.xlu0 %v1722_v28 }
  0x51   : > { %301 = vadd.xlane.f32.xlu1 %v1725_v29 }
  0x54   : > { %331 = vadd.xlane.f32.xlu0 %v1730_v30 }
  0x55   : > { %333 = vadd.xlane.f32.xlu1 %v1733_v31 }
  0xa1   : > { %v272_v41 = vpop.xlane.xlu0 %271 }
  0xa2   : > { %v304_v42 = vpop.xlane.xlu1 %303  ;;  %v336_v43 = vmul.f32 0.0078125, %v272_v41 }
  0xa3   : > { %v352_v44 = vmul.f32 0.0078125, %v304_v42 }
  0xa4   : > { %v1765_v45 = vsub.f32 %v1610_v0, %v336_v43 }
  0xa5   : > { %v1768_v46 = vsub.f32 %v1613_v1, %v352_v44  ;;  %v274_v47 = vpop.xlane.xlu0 %273 }
  0xa6   : > { %v306_v48 = vpop.xlane.xlu1 %305  ;;  %v337_v49 = vmul.f32 0.0078125, %v274_v47  ;;  %v400_v50 = vmul.f32 %v1765_v45, %v1765_v45 }
  0xa7   : > { %v353_v51 = vmul.f32 0.0078125, %v306_v48  ;;  %v416_v54 = vmul.f32 %v1768_v46, %v1768_v46  ;;  %v1372_v48 = vld [vmem:[%s2179_s3 + $0x50] sm:$0xff]  }
  0xa8   : > { %v1773_v52 = vsub.f32 %v1618_v2, %v337_v49  ;;  %432 = vadd.xlane.f32.xlu0 %v400_v50  ;;  %1251 = vmatprep.subr.bf16.mxu0 %v1372_v48 }
  0xa9   : > { %v1776_v53 = vsub.f32 %v1621_v3, %v353_v51  ;;  %v276_v55 = vpop.xlane.xlu0 %275  ;;  %v1373_v51 = vld [vmem:[%s2179_s3 + $0x10] sm:$0xff]   ;;  %1294 = vmatprep.subr.bf16.mxu1 %v1372_v48 }
  0xaa   : > { %v278_v56 = vpop.xlane.xlu1 %277  ;;  %v338_v57 = vmul.f32 0.0078125, %v276_v55  ;;  %v401_v58 = vmul.f32 %v1773_v52, %v1773_v52  ;;  %1252 = vmatpush3.bf16.xpose.msra.mxu0 %v1373_v51  ;;  %1302 = vmatpush3.bf16.xpose.msra.mxu1 %v1373_v51 }
  0xab   : > { %v339_v59 = vmul.f32 0.0078125, %v278_v56  ;;  %v417_v62 = vmul.f32 %v1776_v53, %v1776_v53 }
  0xac   : > { %v1783_v60 = vsub.f32 %v1626_v4, %v338_v57  ;;  %464 = vadd.xlane.f32.xlu0 %v416_v54  ;;  %434 = vadd.xlane.f32.xlu1 %v401_v58 }
  0xad   : > { %v1786_v61 = vsub.f32 %v1629_v5, %v339_v59  ;;  %v308_v63 = vpop.xlane.xlu0 %307 }
  0xae   : > { %v310_v0 = vpop.xlane.xlu1 %309  ;;  %v354_v1 = vmul.f32 0.0078125, %v308_v63  ;;  %v402_v2 = vmul.f32 %v1783_v60, %v1783_v60 }
  0xaf   : > { %v355_v3 = vmul.f32 0.0078125, %v310_v0  ;;  %v403_v5 = vmul.f32 %v1786_v61, %v1786_v61 }
  0xb0   : > { %v1793_v32 = vsub.f32 %v1634_v6, %v354_v1  ;;  %466 = vadd.xlane.f32.xlu1 %v417_v62  ;;  %436 = vadd.xlane.f32.xlu0 %v402_v2  ;;  %v1374_v2 = vld [vmem:[%s2179_s3 + $0x48] sm:$0xff]  }
  0xb1   : > { %v1796_v4 = vsub.f32 %v1637_v7, %v355_v3  ;;  %v280_v34 = vpop.xlane.xlu0 %279  ;;  %1253 = vmatprep.subr.bf16.mxu0 %v1374_v2  ;;  %1295 = vmatprep.subr.bf16.mxu1 %v1374_v2 }
  0xb2   : > { %v282_v35 = vpop.xlane.xlu1 %281  ;;  %v340_v36 = vmul.f32 0.0078125, %v280_v34  ;;  %v418_v37 = vmul.f32 %v1793_v32, %v1793_v32  ;;  %1254 = vmatpush3.bf16.xpose.msra.mxu0 %v1375_v33  ;;  %1303 = vmatpush3.bf16.xpose.msra.mxu1 %v1375_v33 }
  0xb3   : > { %v341_v6 = vmul.f32 0.0078125, %v282_v35  ;;  %v419_v39 = vmul.f32 %v1796_v4, %v1796_v4 }
  0xb4   : > { %v1806_v38 = vsub.f32 %v1640_v8, %v340_v36  ;;  %438 = vadd.xlane.f32.xlu1 %v403_v5  ;;  %468 = vadd.xlane.f32.xlu0 %v418_v37 }
  0xb5   : > { %v1809_v7 = vsub.f32 %v1643_v9, %v341_v6  ;;  %v312_v40 = vpop.xlane.xlu0 %311 }
  0xb6   : > { %v314_v41 = vpop.xlane.xlu1 %313  ;;  %v356_v42 = vmul.f32 0.0078125, %v312_v40  ;;  %v404_v43 = vmul.f32 %v1806_v38, %v1806_v38 }
  0xb7   : > { %v357_v44 = vmul.f32 0.0078125, %v314_v41  ;;  %v405_v9 = vmul.f32 %v1809_v7, %v1809_v7 }
  0xb8   : > { %v1816_v47 = vsub.f32 %v1650_v10, %v356_v42  ;;  %470 = vadd.xlane.f32.xlu1 %v419_v39  ;;  %440 = vadd.xlane.f32.xlu0 %v404_v43 }
  0xb9   : > { %v1819_v8 = vsub.f32 %v1653_v11, %v357_v44  ;;  %v284_v49 = vpop.xlane.xlu0 %283  ;;  %v1376_v44 = vld [vmem:[%s2179_s3 + $0x40] sm:$0xff]  }
  0xba   : > { %v286_v50 = vpop.xlane.xlu1 %285  ;;  %v342_v10 = vmul.f32 0.0078125, %v284_v49  ;;  %v420_v54 = vmul.f32 %v1816_v47, %v1816_v47  ;;  %v1377_v49 = vld [vmem:[%s2179_s3] sm:$0xff]   ;;  %1255 = vmatprep.subr.bf16.mxu0 %v1376_v44  ;;  %1296 = vmatprep.subr.bf16.mxu1 %v1376_v44 }
  0xbb   : > { %v343_v55 = vmul.f32 0.0078125, %v286_v50  ;;  %v421_v57 = vmul.f32 %v1819_v8, %v1819_v8  ;;  %1256 = vmatpush3.bf16.xpose.msra.mxu0 %v1377_v49  ;;  %1304 = vmatpush3.bf16.xpose.msra.mxu1 %v1377_v49 }
  0xbc   : > { %v1832_v11 = vsub.f32 %v1658_v12, %v342_v10  ;;  %442 = vadd.xlane.f32.xlu1 %v405_v9  ;;  %472 = vadd.xlane.f32.xlu0 %v420_v54 }
  0xbd   : > { %v1835_v56 = vsub.f32 %v1661_v13, %v343_v55  ;;  %v316_v58 = vpop.xlane.xlu0 %315 }
  0xbe   : > { %v318_v59 = vpop.xlane.xlu1 %317  ;;  %v358_v62 = vmul.f32 0.0078125, %v316_v58  ;;  %v406_v63 = vmul.f32 %v1832_v11, %v1832_v11 }
  0xbf   : > { %v359_v0 = vmul.f32 0.0078125, %v318_v59  ;;  %v407_v13 = vmul.f32 %v1835_v56, %v1835_v56 }
  0xc0   : > { %v1842_v1 = vsub.f32 %v1666_v14, %v358_v62  ;;  %474 = vadd.xlane.f32.xlu1 %v421_v57  ;;  %444 = vadd.xlane.f32.xlu0 %v406_v63 }
  0xc1   : > { %v1845_v12 = vsub.f32 %v1669_v15, %v359_v0  ;;  %v288_v3 = vpop.xlane.xlu0 %287 }
  0xc2   : > { %v290_v5 = vpop.xlane.xlu1 %289  ;;  %v344_v14 = vmul.f32 0.0078125, %v288_v3  ;;  %v422_v34 = vmul.f32 %v1842_v1, %v1842_v1 }
  0xc3   : > { %v345_v35 = vmul.f32 0.0078125, %v290_v5  ;;  %v423_v37 = vmul.f32 %v1845_v12, %v1845_v12 }
  0xc4   : > { %v1858_v15 = vsub.f32 %v1674_v16, %v344_v14  ;;  %446 = vadd.xlane.f32.xlu1 %v407_v13  ;;  %476 = vadd.xlane.f32.xlu0 %v422_v34 }
  0xc5   : > { %v1861_v36 = vsub.f32 %v1677_v17, %v345_v35  ;;  %v320_v6 = vpop.xlane.xlu0 %319 }
  0xc6   : > { %v322_v39 = vpop.xlane.xlu1 %321  ;;  %v360_v40 = vmul.f32 0.0078125, %v320_v6  ;;  %v408_v41 = vmul.f32 %v1858_v15, %v1858_v15 }
  0xc7   : > { %v361_v42 = vmul.f32 0.0078125, %v322_v39  ;;  %v409_v17 = vmul.f32 %v1861_v36, %v1861_v36 }
  0xc8   : > { %v1868_v43 = vsub.f32 %v1682_v18, %v360_v40  ;;  %478 = vadd.xlane.f32.xlu1 %v423_v37  ;;  %448 = vadd.xlane.f32.xlu0 %v408_v41 }
  0xc9   : > { %v1871_v16 = vsub.f32 %v1685_v19, %v361_v42  ;;  %v292_v9 = vpop.xlane.xlu0 %291 }
  0xca   : > { %v294_v48 = vpop.xlane.xlu1 %293  ;;  %v346_v18 = vmul.f32 0.0078125, %v292_v9  ;;  %v424_v50 = vmul.f32 %v1868_v43, %v1868_v43 }
  0xcb   : > { %v347_v51 = vmul.f32 0.0078125, %v294_v48  ;;  %v425_v54 = vmul.f32 %v1871_v16, %v1871_v16 }
  0xcc   : > { %v1884_v19 = vsub.f32 %v1690_v20, %v346_v18  ;;  %450 = vadd.xlane.f32.xlu1 %v409_v17  ;;  %480 = vadd.xlane.f32.xlu0 %v424_v50 }
  0xcd   : > { %v1887_v10 = vsub.f32 %v1693_v21, %v347_v51  ;;  %v324_v55 = vpop.xlane.xlu0 %323 }
  0xce   : > { %v326_v57 = vpop.xlane.xlu1 %325  ;;  %v362_v58 = vmul.f32 0.0078125, %v324_v55  ;;  %v410_v59 = vmul.f32 %v1884_v19, %v1884_v19 }
  0xcf   : > { %v363_v62 = vmul.f32 0.0078125, %v326_v57  ;;  %v411_v21 = vmul.f32 %v1887_v10, %v1887_v10 }
  0xd0   : > { %v1894_v63 = vsub.f32 %v1698_v22, %v362_v58  ;;  %482 = vadd.xlane.f32.xlu1 %v425_v54  ;;  %452 = vadd.xlane.f32.xlu0 %v410_v59 }
  0xd1   : > { %v1897_v20 = vsub.f32 %v1701_v23, %v363_v62  ;;  %v296_v0 = vpop.xlane.xlu0 %295 }
  0xd2   : > { %v298_v13 = vpop.xlane.xlu1 %297  ;;  %v348_v2 = vmul.f32 0.0078125, %v296_v0  ;;  %v426_v3 = vmul.f32 %v1894_v63, %v1894_v63 }
  0xd3   : > { %v349_v5 = vmul.f32 0.0078125, %v298_v13  ;;  %v427_v23 = vmul.f32 %v1897_v20, %v1897_v20 }
  0xd4   : > { %v1904_v33 = vsub.f32 %v1706_v24, %v348_v2  ;;  %454 = vadd.xlane.f32.xlu1 %v411_v21  ;;  %484 = vadd.xlane.f32.xlu0 %v426_v3 }
  0xd5   : > { %v1907_v22 = vsub.f32 %v1709_v25, %v349_v5  ;;  %v328_v14 = vpop.xlane.xlu0 %327 }
  0xd6   : > { %v330_v34 = vpop.xlane.xlu1 %329  ;;  %v364_v35 = vmul.f32 0.0078125, %v328_v14  ;;  %v412_v37 = vmul.f32 %v1904_v33, %v1904_v33 }
  0xd7   : > { %v365_v6 = vmul.f32 0.0078125, %v330_v34  ;;  %v413_v25 = vmul.f32 %v1907_v22, %v1907_v22 }
  0xd8   : > { %v1914_v39 = vsub.f32 %v1714_v26, %v364_v35  ;;  %486 = vadd.xlane.f32.xlu1 %v427_v23  ;;  %456 = vadd.xlane.f32.xlu0 %v412_v37 }
  0xd9   : > { %v1917_v24 = vsub.f32 %v1717_v27, %v365_v6  ;;  %v300_v40 = vpop.xlane.xlu0 %299 }
  0xda   : > { %v302_v41 = vpop.xlane.xlu1 %301  ;;  %v350_v42 = vmul.f32 0.0078125, %v300_v40  ;;  %v428_v17 = vmul.f32 %v1914_v39, %v1914_v39 }
  0xdb   : > { %v351_v44 = vmul.f32 0.0078125, %v302_v41  ;;  %v429_v27 = vmul.f32 %v1917_v24, %v1917_v24 }
  0xdc   : > { %v1924_v9 = vsub.f32 %v1722_v28, %v350_v42  ;;  %458 = vadd.xlane.f32.xlu1 %v413_v25  ;;  %488 = vadd.xlane.f32.xlu0 %v428_v17 }
  0xdd   : > { %v1927_v26 = vsub.f32 %v1725_v29, %v351_v44  ;;  %v332_v48 = vpop.xlane.xlu0 %331 }
  0xde   : > { %v334_v49 = vpop.xlane.xlu1 %333  ;;  %v366_v18 = vmul.f32 0.0078125, %v332_v48  ;;  %v414_v50 = vmul.f32 %v1924_v9, %v1924_v9 }
  0xdf   : > { %v367_v51 = vmul.f32 0.0078125, %v334_v49  ;;  %v415_v29 = vmul.f32 %v1927_v26, %v1927_v26 }
  0xe0   : > { %v1934_v54 = vsub.f32 %v1730_v30, %v366_v18  ;;  %490 = vadd.xlane.f32.xlu1 %v429_v27  ;;  %460 = vadd.xlane.f32.xlu0 %v414_v50 }
  0xe1   : > { %v1937_v28 = vsub.f32 %v1733_v31, %v367_v51  ;;  %v1948_v51 = vld [vmem:[%s2177_s1] ss:$0 sm:$0xff] }
  0xe2   : > { %v430_v55 = vmul.f32 %v1934_v54, %v1934_v54 }
  0xe3   : > { %v431_v57 = vmul.f32 %v1937_v28, %v1937_v28 }
  0xe4   : > { %462 = vadd.xlane.f32.xlu1 %v415_v29  ;;  %492 = vadd.xlane.f32.xlu0 %v430_v55 }
  0xe8   : > { %494 = vadd.xlane.f32.xlu1 %v431_v57 }
 0x131   : > { %v433_v58 = vpop.xlane.xlu0 %432 }
 0x132   : > { %v496_v30 = vmul.f32 0.0078125, %v433_v58 }
 0x134   : > { %v528_v59 = vadd.f32 1e-05, %v496_v30 }
 0x135   : > { %v435_v62 = vpop.xlane.xlu1 %434  ;;  %v465_v21 = vpop.xlane.xlu0 %464 }
 0x136   : > { %1378 = vrsqrt.f32 %v528_v59  ;;  %v497_v31 = vmul.f32 0.0078125, %v435_v62  ;;  %v512_v0 = vmul.f32 0.0078125, %v465_v21 }
 0x138   : > { %v529_v13 = vadd.f32 1e-05, %v497_v31  ;;  %v544_v2 = vadd.f32 1e-05, %v512_v0 }
 0x139   : > { %v467_v3 = vpop.xlane.xlu1 %466  ;;  %v437_v5 = vpop.xlane.xlu0 %436 }
 0x13a   : > { %1380 = vrsqrt.f32 %v529_v13  ;;  %v513_v23 = vmul.f32 0.0078125, %v467_v3  ;;  %v498_v14 = vmul.f32 0.0078125, %v437_v5  ;;  %v1955_v13 = vld [vmem:[%s2178_s2] ss:$0 sm:$0xff] }
 0x13b   : > { %1382 = vrsqrt.f32 %v544_v2 }
 0x13c   : > { %v545_v34 = vadd.f32 1e-05, %v513_v23  ;;  %v530_v35 = vadd.f32 1e-05, %v498_v14 }
 0x13d   : > { %v439_v37 = vpop.xlane.xlu1 %438  ;;  %v469_v6 = vpop.xlane.xlu0 %468 }
 0x13e   : > { %1384 = vrsqrt.f32 %v545_v34  ;;  %v499_v25 = vmul.f32 0.0078125, %v439_v37  ;;  %v514_v40 = vmul.f32 0.0078125, %v469_v6 }
 0x13f   : > { %1386 = vrsqrt.f32 %v530_v35 }
 0x140   : > { %v531_v41 = vadd.f32 1e-05, %v499_v25  ;;  %v546_v42 = vadd.f32 1e-05, %v514_v40 }
 0x141   : > { %v471_v17 = vpop.xlane.xlu1 %470  ;;  %v441_v44 = vpop.xlane.xlu0 %440 }
 0x142   : > { %1388 = vrsqrt.f32 %v531_v41  ;;  %v515_v27 = vmul.f32 0.0078125, %v471_v17  ;;  %v500_v48 = vmul.f32 0.0078125, %v441_v44 }
 0x143   : > { %v1379_v49 = vpop.eup %1378  ;;  %1390 = vrsqrt.f32 %v546_v42 }
 0x144   : > { %v547_v18 = vadd.f32 1e-05, %v515_v27  ;;  %v532_v50 = vadd.f32 1e-05, %v500_v48  ;;  %v592_v29 = vmul.f32 %v1379_v49, %v1765_v45 }
 0x145   : > { %v443_v55 = vpop.xlane.xlu1 %442  ;;  %v473_v57 = vpop.xlane.xlu0 %472 }
 0x146   : > { %1392 = vrsqrt.f32 %v547_v18  ;;  %v501_v58 = vmul.f32 0.0078125, %v443_v55  ;;  %v516_v30 = vmul.f32 0.0078125, %v473_v57  ;;  %v630_v62 = vmul.f32 %v1948_v51, %v592_v29 }
 0x147   : > { %v1381_v59 = vpop.eup %1380  ;;  %1394 = vrsqrt.f32 %v532_v50 }
 0x148   : > { %v1383_v21 = vpop.eup %1382  ;;  %v533_v31 = vadd.f32 1e-05, %v501_v58  ;;  %v548_v0 = vadd.f32 1e-05, %v516_v30  ;;  %v593_v2 = vmul.f32 %v1381_v59, %v1773_v52  ;;  %v668_v37 = vadd.f32 %v1955_v13, %v630_v62 }
 0x149   : > { %v475_v45 = vpop.xlane.xlu1 %474  ;;  %v445_v3 = vpop.xlane.xlu0 %444  ;;  %v608_v5 = vmul.f32 %v1383_v21, %v1768_v46 }
 0x14a   : > { %1396 = vrsqrt.f32 %v533_v31  ;;  %v517_v23 = vmul.f32 0.0078125, %v475_v45  ;;  %v502_v14 = vmul.f32 0.0078125, %v445_v3  ;;  %v631_v34 = vmul.f32 %v1948_v51, %v593_v2 }
 0x14b   : > { %v1385_v35 = vpop.eup %1384  ;;  %1398 = vrsqrt.f32 %v548_v0  ;;  %v646_v46 = vmul.f32 %v1948_v51, %v608_v5 }
 0x14c   : > { %v1387_v6 = vpop.eup %1386  ;;  %v549_v25 = vadd.f32 1e-05, %v517_v23  ;;  %v534_v40 = vadd.f32 1e-05, %v502_v14  ;;  %v669_v41 = vadd.f32 %v1955_v13, %v631_v34  ;;  %v609_v52 = vmul.f32 %v1385_v35, %v1776_v53 }
 0x14d   : > { %v447_v42 = vpop.xlane.xlu1 %446  ;;  %v477_v17 = vpop.xlane.xlu0 %476  ;;  %v594_v44 = vmul.f32 %v1387_v6, %v1783_v60  ;;  %v684_v60 = vadd.f32 %v1955_v13, %v646_v46 }
 0x14e   : > { %1400 = vrsqrt.f32 %v549_v25  ;;  %v503_v27 = vmul.f32 0.0078125, %v447_v42  ;;  %v518_v48 = vmul.f32 0.0078125, %v477_v17  ;;  %v700_v49 = vpack.c.bf16 %v669_v41, %v668_v37 }
 0x14f   : > { %v1389_v18 = vpop.eup %1388  ;;  %1402 = vrsqrt.f32 %v534_v40  ;;  %v647_v50 = vmul.f32 %v1948_v51, %v609_v52  ;;  %v632_v29 = vmul.f32 %v1948_v51, %v594_v44 }
 0x150   : > { %v1391_v55 = vpop.eup %1390  ;;  %v535_v57 = vadd.f32 1e-05, %v503_v27  ;;  %v550_v58 = vadd.f32 1e-05, %v518_v48  ;;  %1257 = vmatprep.mubr.bf16.mxu0 %v700_v49  ;;  %v595_v53 = vmul.f32 %v1389_v18, %v1786_v61 }
 0x151   : > { %v479_v30 = vpop.xlane.xlu1 %478  ;;  %1258 = vmatmul.mubr.bf16.vlgmr.msra.gmra.mxu0 %v700_v49  ;;  %v449_v59 = vpop.xlane.xlu0 %448  ;;  %v685_v62 = vadd.f32 %v1955_v13, %v647_v50  ;;  %v610_v21 = vmul.f32 %v1391_v55, %v1793_v32  ;;  %v670_v5 = vadd.f32 %v1955_v13, %v632_v29 }
 0x152   : > { %1404 = vrsqrt.f32 %v535_v57  ;;  %v519_v31 = vmul.f32 0.0078125, %v479_v30  ;;  %v504_v0 = vmul.f32 0.0078125, %v449_v59  ;;  %v633_v2 = vmul.f32 %v1948_v51, %v595_v53 }
 0x153   : > { %v1393_v45 = vpop.eup %1392  ;;  %1406 = vrsqrt.f32 %v550_v58  ;;  %v708_v3 = vpack.c.bf16 %v685_v62, %v684_v60  ;;  %v648_v6 = vmul.f32 %v1948_v51, %v610_v21 }
 0x154   : > { %v1395_v61 = vpop.eup %1394  ;;  %v551_v23 = vadd.f32 1e-05, %v519_v31  ;;  %v536_v14 = vadd.f32 1e-05, %v504_v0  ;;  %v671_v34 = vadd.f32 %v1955_v13, %v633_v2  ;;  %v611_v35 = vmul.f32 %v1393_v45, %v1796_v4 }
 0x155   : > { %1273 = vmatprep.mubr.bf16.mxu1 %v708_v3  ;;  %v451_v37 = vpop.xlane.xlu1 %450  ;;  %v481_v32 = vpop.xlane.xlu0 %480  ;;  %v596_v25 = vmul.f32 %v1395_v61, %v1806_v38  ;;  %v686_v18 = vadd.f32 %v1955_v13, %v648_v6 }
 0x156   : > { %1408 = vrsqrt.f32 %v551_v23  ;;  %v505_v40 = vmul.f32 0.0078125, %v451_v37  ;;  %1274 = vmatmul.mubr.bf16.vlgmr.msra.gmra.mxu1 %v708_v3  ;;  %v520_v41 = vmul.f32 0.0078125, %v481_v32  ;;  %v701_v52 = vpack.c.bf16 %v671_v34, %v670_v5 }
 0x157   : > { %v1397_v42 = vpop.eup %1396  ;;  %1410 = vrsqrt.f32 %v536_v14  ;;  %v649_v17 = vmul.f32 %v1948_v51, %v611_v35  ;;  %v634_v46 = vmul.f32 %v1948_v51, %v596_v25 }
 0x158   : > { %v1399_v44 = vpop.eup %1398  ;;  %v537_v4 = vadd.f32 1e-05, %v505_v40  ;;  %v552_v27 = vadd.f32 1e-05, %v520_v41  ;;  %1259 = vmatprep.mubr.bf16.mxu0 %v701_v52  ;;  %v597_v48 = vmul.f32 %v1397_v42, %v1809_v7 }
 0x159   : > { %v483_v49 = vpop.xlane.xlu1 %482  ;;  %1260 = vmatmul.mubr.bf16.gmra.mxu0 %v701_v52  ;;  %v453_v38 = vpop.xlane.xlu0 %452  ;;  %v687_v50 = vadd.f32 %v1955_v13, %v649_v17  ;;  %v612_v29 = vmul.f32 %v1399_v44, %v1816_v47  ;;  %v672_v59 = vadd.f32 %v1955_v13, %v634_v46 }
 0x15a   : > { %1412 = vrsqrt.f32 %v537_v4  ;;  %v521_v55 = vmul.f32 0.0078125, %v483_v49  ;;  %v506_v57 = vmul.f32 0.0078125, %v453_v38  ;;  %v635_v58 = vmul.f32 %v1948_v51, %v597_v48 }
 0x15b   : > { %v1401_v53 = vpop.eup %1400  ;;  %1414 = vrsqrt.f32 %v552_v27  ;;  %v709_v30 = vpack.c.bf16 %v687_v50, %v686_v18  ;;  %v650_v2 = vmul.f32 %v1948_v51, %v612_v29 }
 0x15c   : > { %v1403_v7 = vpop.eup %1402  ;;  %v553_v60 = vadd.f32 1e-05, %v521_v55  ;;  %v538_v62 = vadd.f32 1e-05, %v506_v57  ;;  %v673_v21 = vadd.f32 %v1955_v13, %v635_v58  ;;  %v613_v31 = vmul.f32 %v1401_v53, %v1819_v8 }
 0x15d   : > { %1275 = vmatprep.mubr.bf16.mxu1 %v709_v30  ;;  %v455_v0 = vpop.xlane.xlu1 %454  ;;  %v485_v47 = vpop.xlane.xlu0 %484  ;;  %v598_v45 = vmul.f32 %v1403_v7, %v1832_v11  ;;  %v688_v25 = vadd.f32 %v1955_v13, %v650_v2 }
 0x15e   : > { %1416 = vrsqrt.f32 %v553_v60  ;;  %v507_v3 = vmul.f32 0.0078125, %v455_v0  ;;  %1276 = vmatmul.mubr.bf16.gmra.mxu1 %v709_v30  ;;  %v522_v5 = vmul.f32 0.0078125, %v485_v47  ;;  %v702_v61 = vpack.c.bf16 %v673_v21, %v672_v59 }
 0x15f   : > { %v1405_v23 = vpop.eup %1404  ;;  %1418 = vrsqrt.f32 %v538_v62  ;;  %v651_v14 = vmul.f32 %v1948_v51, %v613_v31  ;;  %v636_v34 = vmul.f32 %v1948_v51, %v598_v45 }
 0x160   : > { %v1407_v35 = vpop.eup %1406  ;;  %v539_v8 = vadd.f32 1e-05, %v507_v3  ;;  %v554_v37 = vadd.f32 1e-05, %v522_v5  ;;  %1261 = vmatprep.mubr.bf16.mxu0 %v702_v61  ;;  %v599_v32 = vmul.f32 %v1405_v23, %v1835_v56 }
 0x161   : > { %v487_v6 = vpop.xlane.xlu1 %486  ;;  %1262 = vmatmul.mubr.bf16.gmra.mxu0 %v702_v61  ;;  %v457_v11 = vpop.xlane.xlu0 %456  ;;  %v689_v40 = vadd.f32 %v1955_v13, %v651_v14  ;;  %v614_v41 = vmul.f32 %v1407_v35, %v1842_v1  ;;  %v674_v4 = vadd.f32 %v1955_v13, %v636_v34 }
 0x162   : > { %1420 = vrsqrt.f32 %v539_v8  ;;  %v523_v52 = vmul.f32 0.0078125, %v487_v6  ;;  %v508_v42 = vmul.f32 0.0078125, %v457_v11  ;;  %v637_v17 = vmul.f32 %v1948_v51, %v599_v32 }
 0x163   : > { %v1409_v46 = vpop.eup %1408  ;;  %1422 = vrsqrt.f32 %v554_v37  ;;  %v710_v44 = vpack.c.bf16 %v689_v40, %v688_v25  ;;  %v652_v50 = vmul.f32 %v1948_v51, %v614_v41 }
 0x164   : > { %v1411_v56 = vpop.eup %1410  ;;  %v555_v27 = vadd.f32 1e-05, %v523_v52  ;;  %v540_v48 = vadd.f32 1e-05, %v508_v42  ;;  %v675_v49 = vadd.f32 %v1955_v13, %v637_v17  ;;  %v615_v38 = vmul.f32 %v1409_v46, %v1845_v12 }
 0x165   : > { %1277 = vmatprep.mubr.bf16.mxu1 %v710_v44  ;;  %v459_v18 = vpop.xlane.xlu1 %458  ;;  %v489_v1 = vpop.xlane.xlu0 %488  ;;  %v600_v29 = vmul.f32 %v1411_v56, %v1858_v15  ;;  %v690_v31 = vadd.f32 %v1955_v13, %v652_v50 }
 0x166   : > { %1424 = vrsqrt.f32 %v555_v27  ;;  %v509_v55 = vmul.f32 0.0078125, %v459_v18  ;;  %1278 = vmatmul.mubr.bf16.gmra.mxu1 %v710_v44  ;;  %v524_v57 = vmul.f32 0.0078125, %v489_v1  ;;  %v703_v58 = vpack.c.bf16 %v675_v49, %v674_v4 }
 0x167   : > { %v1413_v53 = vpop.eup %1412  ;;  %1426 = vrsqrt.f32 %v540_v48  ;;  %v653_v30 = vmul.f32 %v1948_v51, %v615_v38  ;;  %v638_v59 = vmul.f32 %v1948_v51, %v600_v29 }
 0x168   : > { %v1415_v7 = vpop.eup %1414  ;;  %v541_v12 = vadd.f32 1e-05, %v509_v55  ;;  %v556_v60 = vadd.f32 1e-05, %v524_v57  ;;  %1263 = vmatprep.mubr.bf16.mxu0 %v703_v58  ;;  %v601_v62 = vmul.f32 %v1413_v53, %v1861_v36 }
 0x169   : > { %v491_v21 = vpop.xlane.xlu1 %490  ;;  %1264 = vmatmul.mubr.bf16.gmra.mxu0 %v703_v58  ;;  %v461_v15 = vpop.xlane.xlu0 %460  ;;  %v691_v0 = vadd.f32 %v1955_v13, %v653_v30  ;;  %v616_v47 = vmul.f32 %v1415_v7, %v1868_v43  ;;  %v676_v23 = vadd.f32 %v1955_v13, %v638_v59 }
 0x16a   : > { %1428 = vrsqrt.f32 %v541_v12  ;;  %v525_v2 = vmul.f32 0.0078125, %v491_v21  ;;  %v510_v45 = vmul.f32 0.0078125, %v461_v15  ;;  %v639_v3 = vmul.f32 %v1948_v51, %v601_v62 }
 0x16b   : > { %v1417_v5 = vpop.eup %1416  ;;  %1430 = vrsqrt.f32 %v556_v60  ;;  %v711_v61 = vpack.c.bf16 %v691_v0, %v690_v31  ;;  %v654_v32 = vmul.f32 %v1948_v51, %v616_v47 }
 0x16c   : > { %v1419_v36 = vpop.eup %1418  ;;  %v557_v14 = vadd.f32 1e-05, %v525_v2  ;;  %v542_v34 = vadd.f32 1e-05, %v510_v45  ;;  %v677_v35 = vadd.f32 %v1955_v13, %v639_v3  ;;  %v617_v8 = vmul.f32 %v1417_v5, %v1871_v16 }
 0x16d   : > { %1279 = vmatprep.mubr.bf16.mxu1 %v711_v61  ;;  %v463_v37 = vpop.xlane.xlu1 %462  ;;  %v493_v43 = vpop.xlane.xlu0 %492  ;;  %v602_v6 = vmul.f32 %v1419_v36, %v1884_v19  ;;  %v692_v19 = vadd.f32 %v1955_v13, %v654_v32 }
 0x16e   : > { %1432 = vrsqrt.f32 %v557_v14  ;;  %v511_v11 = vmul.f32 0.0078125, %v463_v37  ;;  %1280 = vmatmul.mubr.bf16.gmra.mxu1 %v711_v61  ;;  %v526_v25 = vmul.f32 0.0078125, %v493_v43  ;;  %v704_v40 = vpack.c.bf16 %v677_v35, %v676_v23 }
 0x16f   : > { %v1421_v41 = vpop.eup %1420  ;;  %1434 = vrsqrt.f32 %v542_v34  ;;  %v655_v52 = vmul.f32 %v1948_v51, %v617_v8  ;;  %v640_v42 = vmul.f32 %v1948_v51, %v602_v6 }
 0x170   : > { %v1423_v17 = vpop.eup %1422  ;;  %v543_v16 = vadd.f32 1e-05, %v511_v11  ;;  %v558_v46 = vadd.f32 1e-05, %v526_v25  ;;  %1265 = vmatprep.mubr.bf16.mxu0 %v704_v40  ;;  %v603_v44 = vmul.f32 %v1421_v41, %v1887_v10 }
 0x171   : > { %v495_v4 = vpop.xlane.xlu1 %494  ;;  %1266 = vmatmul.mubr.bf16.gmra.mxu0 %v704_v40  ;;  %v693_v56 = vadd.f32 %v1955_v13, %v655_v52  ;;  %v618_v27 = vmul.f32 %v1423_v17, %v1894_v63  ;;  %v678_v1 = vadd.f32 %v1955_v13, %v640_v42 }
 0x172   : > { %1436 = vrsqrt.f32 %v543_v16  ;;  %v527_v48 = vmul.f32 0.0078125, %v495_v4  ;;  %v641_v49 = vmul.f32 %v1948_v51, %v603_v44 }
 0x173   : > { %v1425_v38 = vpop.eup %1424  ;;  %1438 = vrsqrt.f32 %v558_v46  ;;  %v712_v18 = vpack.c.bf16 %v693_v56, %v692_v19  ;;  %v656_v57 = vmul.f32 %v1948_v51, %v618_v27 }
 0x174   : > { %v1427_v50 = vpop.eup %1426  ;;  %v559_v29 = vadd.f32 1e-05, %v527_v48  ;;  %v679_v10 = vadd.f32 %v1955_v13, %v641_v49  ;;  %v619_v55 = vmul.f32 %v1425_v38, %v1897_v20 }
 0x175   : > { %1281 = vmatprep.mubr.bf16.mxu1 %v712_v18  ;;  %v604_v63 = vmul.f32 %v1427_v50, %v1904_v33  ;;  %v694_v7 = vadd.f32 %v1955_v13, %v656_v57 }
 0x176   : > { %1440 = vrsqrt.f32 %v559_v29  ;;  %1282 = vmatmul.mubr.bf16.gmra.mxu1 %v712_v18  ;;  %v705_v58 = vpack.c.bf16 %v679_v10, %v678_v1  ;;  %v657_v53 = vmul.f32 %v1948_v51, %v619_v55 }
 0x177   : > { %v1429_v30 = vpop.eup %1428  ;;  %v642_v20 = vmul.f32 %v1948_v51, %v604_v63 }
 0x178   : > { %v1431_v59 = vpop.eup %1430  ;;  %1267 = vmatprep.mubr.bf16.mxu0 %v705_v58  ;;  %v695_v12 = vadd.f32 %v1955_v13, %v657_v53  ;;  %v605_v60 = vmul.f32 %v1429_v30, %v1907_v22 }
 0x179   : > { %1268 = vmatmul.mubr.bf16.gmra.mxu0 %v705_v58  ;;  %v620_v62 = vmul.f32 %v1431_v59, %v1914_v39  ;;  %v680_v0 = vadd.f32 %v1955_v13, %v642_v20 }
 0x17a   : > { %v713_v33 = vpack.c.bf16 %v695_v12, %v694_v7  ;;  %v643_v21 = vmul.f32 %v1948_v51, %v605_v60 }
 0x17b   : > { %v1433_v15 = vpop.eup %1432  ;;  %v658_v45 = vmul.f32 %v1948_v51, %v620_v62 }
 0x17c   : > { %v1435_v31 = vpop.eup %1434  ;;  %1283 = vmatprep.mubr.bf16.mxu1 %v713_v33  ;;  %v681_v47 = vadd.f32 %v1955_v13, %v643_v21  ;;  %v621_v2 = vmul.f32 %v1433_v15, %v1917_v24 }
 0x17d   : > { %v606_v22 = vmul.f32 %v1435_v31, %v1924_v9  ;;  %v696_v23 = vadd.f32 %v1955_v13, %v658_v45 }
 0x17e   : > { %1284 = vmatmul.mubr.bf16.gmra.mxu1 %v713_v33  ;;  %v706_v3 = vpack.c.bf16 %v681_v47, %v680_v0  ;;  %v659_v39 = vmul.f32 %v1948_v51, %v621_v2 }
 0x17f   : > { %v1437_v5 = vpop.eup %1436  ;;  %v644_v34 = vmul.f32 %v1948_v51, %v606_v22 }
 0x180   : > { %v1439_v61 = vpop.eup %1438  ;;  %1269 = vmatprep.mubr.bf16.mxu0 %v706_v3  ;;  %v697_v36 = vadd.f32 %v1955_v13, %v659_v39  ;;  %v607_v14 = vmul.f32 %v1437_v5, %v1927_v26 }
 0x181   : > { %1270 = vmatmul.mubr.bf16.gmra.mxu0 %v706_v3  ;;  %v622_v24 = vmul.f32 %v1439_v61, %v1934_v54  ;;  %v682_v37 = vadd.f32 %v1955_v13, %v644_v34 }
 0x182   : > { %v714_v35 = vpack.c.bf16 %v697_v36, %v696_v23  ;;  %v645_v9 = vmul.f32 %v1948_v51, %v607_v14 }
 0x183   : > { %v1441_v8 = vpop.eup %1440  ;;  %v660_v26 = vmul.f32 %v1948_v51, %v622_v24 }
 0x184   : > { %1285 = vmatprep.mubr.bf16.mxu1 %v714_v35  ;;  %v683_v43 = vadd.f32 %v1955_v13, %v645_v9  ;;  %v623_v32 = vmul.f32 %v1441_v8, %v1937_v28 }
 0x185   : > { %v698_v54 = vadd.f32 %v1955_v13, %v660_v26 }
 0x186   : > { %1286 = vmatmul.mubr.bf16.gmra.mxu1 %v714_v35  ;;  %v707_v6 = vpack.c.bf16 %v683_v43, %v682_v37  ;;  %v661_v11 = vmul.f32 %v1948_v51, %v623_v32 }
 0x188   : > { %1271 = vmatprep.mubr.bf16.mxu0 %v707_v6  ;;  %v699_v25 = vadd.f32 %v1955_v13, %v661_v11 }
 0x189   : > { %1272 = vmatmul.mubr.bf16.gmra.mxu0 %v707_v6 }
 0x18a   : > { %v715_v40 = vpack.c.bf16 %v699_v25, %v698_v54 }
 0x18c   : > { %1287 = vmatprep.mubr.bf16.mxu1 %v715_v40 }
 0x18e   : > { %1288 = vmatmul.mubr.bf16.gmra.mxu1 %v715_v40 }
 0x211   : > { %v878_v41 = vpop.f32.mrf.mxu0 }
 0x212   : > { %1037 = vst [vmem:[%s2054_s14] sm:$0xff] %v878_v41 }
 0x213   : > { %v880_v28 = vpop.f32.mrf.mxu0 }
 0x214   : > { %1038 = vst [vmem:[%s2054_s14 + $0x8] sm:$0xff] %v880_v28 }
 0x215   : > { %v882_v51 = vpop.f32.mrf.mxu0 }
 0x216   : > { %1039 = vst [vmem:[%s2054_s14 + $0x10] sm:$0xff] %v882_v51  ;;  %v958_v13 = vpop.f32.mrf.mxu1 }
 0x217   : > { %1069 = vst [vmem:[%s2054_s14 + $0x100] sm:$0xff] %v958_v13  ;;  %v884_v52 = vpop.f32.mrf.mxu0 }
 0x218   : > { %1040 = vst [vmem:[%s2054_s14 + $0x18] sm:$0xff] %v884_v52  ;;  %v960_v42 = vpop.f32.mrf.mxu1 }
 0x219   : > { %1070 = vst [vmem:[%s2054_s14 + $0x108] sm:$0xff] %v960_v42  ;;  %v888_v17 = vpop.f32.mrf.mxu0 }
 0x21a   : > { %1041 = vst [vmem:[%s2054_s14 + $0x20] sm:$0xff] %v888_v17  ;;  %v962_v16 = vpop.f32.mrf.mxu1 }
 0x21b   : > { %1071 = vst [vmem:[%s2054_s14 + $0x110] sm:$0xff] %v962_v16  ;;  %v890_v46 = vpop.f32.mrf.mxu0 }
 0x21c   : > { %1042 = vst [vmem:[%s2054_s14 + $0x28] sm:$0xff] %v890_v46  ;;  %v964_v44 = vpop.f32.mrf.mxu1 }
 0x21d   : > { %1072 = vst [vmem:[%s2054_s14 + $0x118] sm:$0xff] %v964_v44  ;;  %v892_v4 = vpop.f32.mrf.mxu0 }
 0x21e   : > { %1043 = vst [vmem:[%s2054_s14 + $0x30] sm:$0xff] %v892_v4  ;;  %v968_v19 = vpop.f32.mrf.mxu1 }
 0x21f   : > { %1073 = vst [vmem:[%s2054_s14 + $0x120] sm:$0xff] %v968_v19  ;;  %v894_v56 = vpop.f32.mrf.mxu0 }
 0x220   : > { %1044 = vst [vmem:[%s2054_s14 + $0x38] sm:$0xff] %v894_v56  ;;  %v970_v27 = vpop.f32.mrf.mxu1 }
 0x221   : > { %1074 = vst [vmem:[%s2054_s14 + $0x128] sm:$0xff] %v970_v27  ;;  %v898_v48 = vpop.f32.mrf.mxu0 }
 0x222   : > { %1045 = vst [vmem:[%s2054_s14 + $0x40] sm:$0xff] %v898_v48  ;;  %v972_v49 = vpop.f32.mrf.mxu1 }
 0x223   : > { %1075 = vst [vmem:[%s2054_s14 + $0x130] sm:$0xff] %v972_v49  ;;  %v900_v38 = vpop.f32.mrf.mxu0 }
 0x224   : > { %1046 = vst [vmem:[%s2054_s14 + $0x48] sm:$0xff] %v900_v38  ;;  %v974_v18 = vpop.f32.mrf.mxu1 }
 0x225   : > { %1076 = vst [vmem:[%s2054_s14 + $0x138] sm:$0xff] %v974_v18  ;;  %v902_v1 = vpop.f32.mrf.mxu0 }
 0x226   : > { %1047 = vst [vmem:[%s2054_s14 + $0x50] sm:$0xff] %v902_v1  ;;  %v978_v50 = vpop.f32.mrf.mxu1 }
 0x227   : > { %1077 = vst [vmem:[%s2054_s14 + $0x140] sm:$0xff] %v978_v50  ;;  %v904_v29 = vpop.f32.mrf.mxu0 }
 0x228   : > { %1048 = vst [vmem:[%s2054_s14 + $0x58] sm:$0xff] %v904_v29  ;;  %v980_v10 = vpop.f32.mrf.mxu1 }
 0x229   : > { %1078 = vst [vmem:[%s2054_s14 + $0x148] sm:$0xff] %v980_v10  ;;  %v908_v55 = vpop.f32.mrf.mxu0 }
 0x22a   : > { %1049 = vst [vmem:[%s2054_s14 + $0x60] sm:$0xff] %v908_v55  ;;  %v982_v57 = vpop.f32.mrf.mxu1 }
 0x22b   : > { %1079 = vst [vmem:[%s2054_s14 + $0x150] sm:$0xff] %v982_v57  ;;  %v910_v63 = vpop.f32.mrf.mxu0 }
 0x22c   : > { %1050 = vst [vmem:[%s2054_s14 + $0x68] sm:$0xff] %v910_v63  ;;  %v984_v58 = vpop.f32.mrf.mxu1 }
 0x22d   : > { %1080 = vst [vmem:[%s2054_s14 + $0x158] sm:$0xff] %v984_v58  ;;  %v912_v53 = vpop.f32.mrf.mxu0 }
 0x22e   : > { %1051 = vst [vmem:[%s2054_s14 + $0x70] sm:$0xff] %v912_v53  ;;  %v988_v30 = vpop.f32.mrf.mxu1 }
 0x22f   : > { %1081 = vst [vmem:[%s2054_s14 + $0x160] sm:$0xff] %v988_v30  ;;  %v914_v59 = vpop.f32.mrf.mxu0 }
 0x230   : > { %1052 = vst [vmem:[%s2054_s14 + $0x78] sm:$0xff] %v914_v59  ;;  %v990_v7 = vpop.f32.mrf.mxu1 }
 0x231   : > { %1082 = vst [vmem:[%s2054_s14 + $0x168] sm:$0xff] %v990_v7  ;;  %v918_v12 = vpop.f32.mrf.mxu0 }
 0x232   : > { %1053 = vst [vmem:[%s2054_s14 + $0x80] sm:$0xff] %v918_v12  ;;  %v992_v60 = vpop.f32.mrf.mxu1 }
 0x233   : > { %1083 = vst [vmem:[%s2054_s14 + $0x170] sm:$0xff] %v992_v60  ;;  %v920_v20 = vpop.f32.mrf.mxu0 }
 0x234   : > { %1054 = vst [vmem:[%s2054_s14 + $0x88] sm:$0xff] %v920_v20  ;;  %v994_v62 = vpop.f32.mrf.mxu1 }
 0x235   : > { %1084 = vst [vmem:[%s2054_s14 + $0x178] sm:$0xff] %v994_v62  ;;  %v922_v33 = vpop.f32.mrf.mxu0 }
 0x236   : > { %1055 = vst [vmem:[%s2054_s14 + $0x90] sm:$0xff] %v922_v33  ;;  %v998_v21 = vpop.f32.mrf.mxu1 }
 0x237   : > { %1085 = vst [vmem:[%s2054_s14 + $0x180] sm:$0xff] %v998_v21  ;;  %v924_v15 = vpop.f32.mrf.mxu0 }
 0x238   : > { %1056 = vst [vmem:[%s2054_s14 + $0x98] sm:$0xff] %v924_v15  ;;  %v1000_v31 = vpop.f32.mrf.mxu1 }
 0x239   : > { %1086 = vst [vmem:[%s2054_s14 + $0x188] sm:$0xff] %v1000_v31  ;;  %v928_v0 = vpop.f32.mrf.mxu0 }
 0x23a   : > { %1057 = vst [vmem:[%s2054_s14 + $0xa0] sm:$0xff] %v928_v0  ;;  %v1002_v47 = vpop.f32.mrf.mxu1 }
 0x23b   : > { %1087 = vst [vmem:[%s2054_s14 + $0x190] sm:$0xff] %v1002_v47  ;;  %v930_v2 = vpop.f32.mrf.mxu0 }
 0x23c   : > { %1058 = vst [vmem:[%s2054_s14 + $0xa8] sm:$0xff] %v930_v2  ;;  %v1004_v45 = vpop.f32.mrf.mxu1 }
 0x23d   : > { %1088 = vst [vmem:[%s2054_s14 + $0x198] sm:$0xff] %v1004_v45  ;;  %v932_v22 = vpop.f32.mrf.mxu0 }
 0x23e   : > { %1059 = vst [vmem:[%s2054_s14 + $0xb0] sm:$0xff] %v932_v22  ;;  %v1008_v3 = vpop.f32.mrf.mxu1 }
 0x23f   : > { %1089 = vst [vmem:[%s2054_s14 + $0x1a0] sm:$0xff] %v1008_v3  ;;  %v934_v39 = vpop.f32.mrf.mxu0 }
 0x240   : > { %1060 = vst [vmem:[%s2054_s14 + $0xb8] sm:$0xff] %v934_v39  ;;  %v1010_v5 = vpop.f32.mrf.mxu1 }
 0x241   : > { %1090 = vst [vmem:[%s2054_s14 + $0x1a8] sm:$0xff] %v1010_v5  ;;  %v938_v61 = vpop.f32.mrf.mxu0 }
 0x242   : > { %1061 = vst [vmem:[%s2054_s14 + $0xc0] sm:$0xff] %v938_v61  ;;  %v1012_v23 = vpop.f32.mrf.mxu1 }
 0x243   : > { %1091 = vst [vmem:[%s2054_s14 + $0x1b0] sm:$0xff] %v1012_v23  ;;  %v940_v36 = vpop.f32.mrf.mxu0 }
 0x244   : > { %1062 = vst [vmem:[%s2054_s14 + $0xc8] sm:$0xff] %v940_v36  ;;  %v1014_v14 = vpop.f32.mrf.mxu1 }
 0x245   : > { %1092 = vst [vmem:[%s2054_s14 + $0x1b8] sm:$0xff] %v1014_v14  ;;  %v942_v34 = vpop.f32.mrf.mxu0 }
 0x246   : > { %1063 = vst [vmem:[%s2054_s14 + $0xd0] sm:$0xff] %v942_v34  ;;  %v1018_v24 = vpop.f32.mrf.mxu1 }
 0x247   : > { %1093 = vst [vmem:[%s2054_s14 + $0x1c0] sm:$0xff] %v1018_v24  ;;  %v944_v35 = vpop.f32.mrf.mxu0 }
 0x248   : > { %1064 = vst [vmem:[%s2054_s14 + $0xd8] sm:$0xff] %v944_v35  ;;  %v1020_v9 = vpop.f32.mrf.mxu1 }
 0x249   : > { %1094 = vst [vmem:[%s2054_s14 + $0x1c8] sm:$0xff] %v1020_v9  ;;  %v948_v8 = vpop.f32.mrf.mxu0 }
 0x24a   : > { %1065 = vst [vmem:[%s2054_s14 + $0xe0] sm:$0xff] %v948_v8  ;;  %v1022_v37 = vpop.f32.mrf.mxu1 }
 0x24b   : > { %1095 = vst [vmem:[%s2054_s14 + $0x1d0] sm:$0xff] %v1022_v37  ;;  %v950_v43 = vpop.f32.mrf.mxu0 }
 0x24c   : > { %1066 = vst [vmem:[%s2054_s14 + $0xe8] sm:$0xff] %v950_v43  ;;  %v1024_v32 = vpop.f32.mrf.mxu1 }
 0x24d   : > { %1096 = vst [vmem:[%s2054_s14 + $0x1d8] sm:$0xff] %v1024_v32  ;;  %v952_v26 = vpop.f32.mrf.mxu0 }
 0x24e   : > { %1067 = vst [vmem:[%s2054_s14 + $0xf0] sm:$0xff] %v952_v26  ;;  %v1028_v6 = vpop.f32.mrf.mxu1 }
 0x24f   : > { %1097 = vst [vmem:[%s2054_s14 + $0x1e0] sm:$0xff] %v1028_v6  ;;  %v954_v11 = vpop.f32.mrf.mxu0 }
 0x250   : > { %1068 = vst [vmem:[%s2054_s14 + $0xf8] sm:$0xff] %v954_v11  ;;  %v1030_v54 = vpop.f32.mrf.mxu1 }
 0x251   : > { %1098 = vst [vmem:[%s2054_s14 + $0x1e8] sm:$0xff] %v1030_v54 }
 0x252   : > { %v1032_v25 = vpop.f32.mrf.mxu1 }
 0x253   : > { %1099 = vst [vmem:[%s2054_s14 + $0x1f0] sm:$0xff] %v1032_v25 }
 0x254   : > { %v1034_v40 = vpop.f32.mrf.mxu1 }
 0x255   : > { %1100 = vst [vmem:[%s2054_s14 + $0x1f8] sm:$0xff] %v1034_v40 }
 0x256   : > { %1455 = shalt.err (!%p1452_p5)
}
 0x257   : > { %s1456_s8 = scalar_lea.hbm %s2123_s29, 8192  ;;  %s1460_s11 = scalar_lea.hbm %s2180_s4, 16384 }
 0x258   : > { %p1457_p6 = scmp.ne.s32.totalorder %s2123_s29, %s1456_s8  ;;  %p1461_p10 = scmp.lt.s32.totalorder %s2123_s29, %s2180_s4 }
 0x259   : > { %p1462_p11 = scmp.lt.s32.totalorder %s1460_s11, %s1456_s8 }
 0x25a   : > { %p1458_p7 = pnand %p1457_p6, %p1588_p4 }
 0x25b   : > { %p1463_p12 = por %p1462_p11, %p1461_p10 }
 0x25c   : > { %p1459_p9 = pneg %p1458_p7 }
 0x25e   : > { %p1464_p13 = pnand %p1463_p12, %p1459_p9 }
 0x260   : > { %1467 = shalt.err (!%p1464_p13)
}
 0x261   : > { %s1521_s14 = smov 256   ;;  %s1522_s21 = smov 16  }
 0x262   : > { %1305 = dma.vmem_to_hbm [thread:$0]  (%p1588_p4), %s2125_s22, 8192, %s2123_s29, %s2131_s18, %s1521_s14, %s1521_s14, %s1522_s21  }
 0x263 PF: > { %p1311_p0 = scmp.ge.s32.totalorder %s1518_s20, 2  ;;  %s1133_s24 = sand.u32 1, %s1498_s15  }
 0x264   : > { %s1134_s26 = scalar_lea.sflag [#allocation3], %s1133_s24 }
 0x265   : > { %p1308_p1 = pnand %p1311_p0, %p1595_p8 }
 0x267   : > { %p1309_p2 = pneg %p1308_p1 }
 0x269   : > { %1493 = dma.done.wait (%p1309_p2), %s1134_s26, 8192  }
 0x26a   : > { %1495 = vsyncadd (%p1309_p2), %s1134_s26, 4294959104  ;;  %s17_s20 = sadd.s32 1, %s1518_s20   ;;  %s2183_s15 = smov %s1502_s16 }
 0x26b   : > { %p14_p3 = scmp.ge.s32.totalorder %s17_s20, 4   ;;  %s2184_s16 = smov %s1506_s17 }
 0x26c   : > { %s2185_s17 = smov %s1601_s28  ;;  %s2186_s18 = smov %s1514_s19 }
 0x26d   : > { %s2187_s19 = smov %s2189_s23  ;;  %16 = sbr.rel (!%p14_p3) target bundleno = 4 (0x4), region = 74 }
 0x272   :  { %1139 = vsyncpa [#allocation3], 1 }
 0x273   :  { %1141 = vsyncpa [#allocation3 + $0x1], 1 }

// kernel: gpt_forward.9
= control target key start
LH: loop header
LB: loop body
LE: loop exit
PB: predicated region body
PF: predicated region fallthrough
CT: control target
= control target key end

     0   :  { %s4704_s13 = smov 0   ;;  %s7492_s0 = inlined_call_operand.vmem [shape: f32[512,128], index: 0, kind: input, shape index: {}, may-alias: {0,10}]   ;;  %s7493_s1 = inlined_call_operand.vmem [shape: bf16[512,128], index: 1, kind: input, shape index: {}]   ;;  %s7494_s2 = inlined_call_operand.vmem [shape: bf16[128,128], index: 2, kind: input, shape index: {}]   ;;  %s7495_s3 = inlined_call_operand.vmem [shape: f32[1,128], index: 3, kind: input, shape index: {}]   ;;  %s7496_s4 = inlined_call_operand.vmem [shape: f32[1,128], index: 4, kind: input, shape index: {}]   ;;  %s7497_s5 = inlined_call_operand.vmem [shape: f32[1,128], index: 5, kind: input, shape index: {}]   ;;  %s7498_s6 = inlined_call_operand.vmem [shape: bf16[128,512], index: 6, kind: input, shape index: {}]   ;;  %s7499_s7 = inlined_call_operand.vmem [shape: f32[1,512], index: 7, kind: input, shape index: {}]   ;;  %s7500_s8 = inlined_call_operand.vmem [shape: bf16[512,128], index: 8, kind: input, shape index: {}]   ;;  %s7501_s9 = inlined_call_operand.vmem [shape: f32[1,128], index: 9, kind: input, shape index: {}]   ;;  %s7502_s10 = inlined_call_operand.vmem [shape: f32[512,128], index: 10, kind: output, shape index: {}, may-alias: {0,10}]  }
   0x1 LB: > { %s3790_s14 = sadd.s32 4294967295, %s4646_s13   ;;  %p3794_p0 = scmp.ge.s32.totalorder %s4646_s13, 1  ;;  %s4646_s13 = sphi %s4704_s13, %s20_s13  }
   0x2   : > { %p324_p1 = scmp.lt.s32.totalorder %s4646_s13, 3 }
   0x4   : > { %p325_p2 = pnand %p3794_p0, %p324_p1 }
   0x6   : > { %328 = sbr.rel (%p325_p2) target bundleno = 1307 (0x51b), region = 60 }
   0xb   : > { %v4216_v0 = vld [vmem:[%s7494_s2 + $0x38] sm:$0xff]   ;;  %s3795_s17 = sshll.u32 %s3790_s14, 5  ;;  %v4217_v1 = vld [vmem:[%s7494_s2 + $0x30] sm:$0xff]   ;;  %v4218_v2 = vld [vmem:[%s7494_s2 + $0x28] sm:$0xff]  }
   0xc   : > { %p368_p3 = scmp.lt.s32.totalorder %s3795_s17, 63  ;;  %4143 = vmatprep.subr.bf16.mxu0 %v4216_v0  ;;  %4191 = vmatprep.subr.bf16.mxu1 %v4216_v0  ;;  %v4219_v3 = vld [vmem:[%s7494_s2 + $0x20] sm:$0xff]   ;;  %v4220_v5 = vld [vmem:[%s7494_s2 + $0x18] sm:$0xff]   ;;  %v4221_v6 = vld [vmem:[%s7494_s2 + $0x10] sm:$0xff]  }
   0xd   : > { %4144 = vmatpush3.bf16.msra.mxu0 %v4216_v0  ;;  %4199 = vmatpush3.bf16.msra.mxu1 %v4216_v0  ;;  %v4222_v8 = vld [vmem:[%s7494_s2 + $0x8] sm:$0xff]   ;;  %v4223_v9 = vld [vmem:[%s7494_s2] sm:$0xff]  }
   0xe   : > { %s7980_s17 = smov (!%p368_p3, %s3795_s17), 63  ;;  %4145 = vmatprep.subr.bf16.mxu0 %v4217_v1  ;;  %4192 = vmatprep.subr.bf16.mxu1 %v4217_v1  ;;  %v4771_v24 = vld [vmem:[%s7495_s3] ss:$0 sm:$0xff] }
   0xf   : > { %s3798_s22 = sshll.u32 %s7980_s17, 2  ;;  %s3796_s18 = sshll.u32 %s7980_s17, 3 }
  0x10   : > { %s4730_s27 = scalar_lea.vmem %s7493_s1, %s3798_s22  ;;  %s4766_s21 = scalar_lea.vmem %s7492_s0, %s3796_s18 }
  0x11   : > { %4146 = vmatpush3.bf16.msra.mxu0 %v4217_v1  ;;  %4200 = vmatpush3.bf16.msra.mxu1 %v4217_v1  ;;  %v4224_v4 = vld [vmem:[%s4730_s27] sm:$0xff]   ;;  %v4225_v10 = vld [vmem:[%s4730_s27 + $0x8] sm:$0xff]   ;;  %v4226_v12 = vld [vmem:[%s4730_s27 + $0x10] sm:$0xff]   ;;  %s7365_s29 = scalar_lea.vmem %s7502_s10, %s3796_s18 }
  0x12   : > { %4147 = vmatprep.subr.bf16.mxu0 %v4218_v2  ;;  %4193 = vmatprep.subr.bf16.mxu1 %v4218_v2  ;;  %v4232_v7 = vld [vmem:[%s4730_s27 + $0x40] sm:$0xff]   ;;  %v4233_v11 = vld [vmem:[%s4730_s27 + $0x48] sm:$0xff]   ;;  %v4234_v13 = vld [vmem:[%s4730_s27 + $0x50] sm:$0xff]  }
  0x13   : > { %4159 = vmatprep.mubr.bf16.mxu0 %v4224_v4  ;;  %4175 = vmatprep.mubr.bf16.mxu1 %v4232_v7  ;;  %v4227_v14 = vld [vmem:[%s4730_s27 + $0x18] sm:$0xff]   ;;  %v4228_v16 = vld [vmem:[%s4730_s27 + $0x20] sm:$0xff]   ;;  %v4229_v18 = vld [vmem:[%s4730_s27 + $0x28] sm:$0xff]  }
  0x14   : > { %v4235_v15 = vld [vmem:[%s4730_s27 + $0x58] sm:$0xff]   ;;  %v4236_v17 = vld [vmem:[%s4730_s27 + $0x60] sm:$0xff]   ;;  %v4237_v19 = vld [vmem:[%s4730_s27 + $0x68] sm:$0xff]  }
  0x15   : > { %4148 = vmatpush3.bf16.msra.mxu0 %v4218_v2  ;;  %4201 = vmatpush3.bf16.msra.mxu1 %v4218_v2  ;;  %v4230_v20 = vld [vmem:[%s4730_s27 + $0x30] sm:$0xff]   ;;  %v4231_v22 = vld [vmem:[%s4730_s27 + $0x38] sm:$0xff]   ;;  %v746_v29 = vld [vmem:[%s4766_s21] sm:$0xff] }
  0x16   : > { %4149 = vmatprep.subr.bf16.mxu0 %v4219_v3  ;;  %4194 = vmatprep.subr.bf16.mxu1 %v4219_v3  ;;  %v4238_v21 = vld [vmem:[%s4730_s27 + $0x70] sm:$0xff]   ;;  %v4239_v23 = vld [vmem:[%s4730_s27 + $0x78] sm:$0xff]   ;;  %v747_v37 = vld [vmem:[%s4766_s21 + $0x8] sm:$0xff] }
  0x17   : > { %v748_v26 = vld [vmem:[%s4766_s21 + $0x10] sm:$0xff]  ;;  %v749_v33 = vld [vmem:[%s4766_s21 + $0x18] sm:$0xff]  ;;  %v750_v43 = vld [vmem:[%s4766_s21 + $0x20] sm:$0xff] }
  0x18   : > { %v752_v46 = vld [vmem:[%s4766_s21 + $0x30] sm:$0xff]  ;;  %v751_v50 = vld [vmem:[%s4766_s21 + $0x28] sm:$0xff]  ;;  %v753_v56 = vld [vmem:[%s4766_s21 + $0x38] sm:$0xff] }
  0x19   : > { %4150 = vmatpush3.bf16.msra.mxu0 %v4219_v3  ;;  %4202 = vmatpush3.bf16.msra.mxu1 %v4219_v3  ;;  %v754_v58 = vld [vmem:[%s4766_s21 + $0x40] sm:$0xff]  ;;  %v756_v61 = vld [vmem:[%s4766_s21 + $0x50] sm:$0xff]  ;;  %v755_v3 = vld [vmem:[%s4766_s21 + $0x48] sm:$0xff] }
  0x1a   : > { %4151 = vmatprep.subr.bf16.mxu0 %v4220_v5  ;;  %4195 = vmatprep.subr.bf16.mxu1 %v4220_v5  ;;  %v757_v7 = vld [vmem:[%s4766_s21 + $0x58] sm:$0xff] }
  0x1d   : > { %4152 = vmatpush3.bf16.msra.mxu0 %v4220_v5  ;;  %4203 = vmatpush3.bf16.msra.mxu1 %v4220_v5 }
  0x1e   : > { %4153 = vmatprep.subr.bf16.mxu0 %v4221_v6  ;;  %4196 = vmatprep.subr.bf16.mxu1 %v4221_v6 }
  0x21   : > { %4154 = vmatpush3.bf16.msra.mxu0 %v4221_v6  ;;  %4204 = vmatpush3.bf16.msra.mxu1 %v4221_v6 }
  0x22   : > { %4155 = vmatprep.subr.bf16.mxu0 %v4222_v8  ;;  %4197 = vmatprep.subr.bf16.mxu1 %v4222_v8 }
  0x25   : > { %4156 = vmatpush3.bf16.msra.mxu0 %v4222_v8  ;;  %4205 = vmatpush3.bf16.msra.mxu1 %v4222_v8 }
  0x26   : > { %4157 = vmatprep.subr.bf16.mxu0 %v4223_v9  ;;  %4198 = vmatprep.subr.bf16.mxu1 %v4223_v9 }
  0x29   : > { %4158 = vmatpush3.bf16.msra.mxu0 %v4223_v9  ;;  %4206 = vmatpush3.bf16.msra.mxu1 %v4223_v9 }
  0x2c   : > { %4160 = vmatmul.mubr.bf16.vlgmr.msra.gmra.mxu0 %v4225_v10  ;;  %4176 = vmatmul.mubr.bf16.vlgmr.msra.gmra.mxu1 %v4233_v11 }
  0x2d   : > { %4163 = vmatprep.mubr.bf16.mxu0 %v4226_v12  ;;  %4179 = vmatprep.mubr.bf16.mxu1 %v4234_v13  ;;  %v758_v12 = vld [vmem:[%s4766_s21 + $0x60] sm:$0xff] }
  0x34   : > { %4164 = vmatmul.mubr.bf16.gmra.mxu0 %v4227_v14  ;;  %4180 = vmatmul.mubr.bf16.gmra.mxu1 %v4235_v15 }
  0x35   : > { %4167 = vmatprep.mubr.bf16.mxu0 %v4228_v16  ;;  %4183 = vmatprep.mubr.bf16.mxu1 %v4236_v17  ;;  %v760_v16 = vld [vmem:[%s4766_s21 + $0x70] sm:$0xff] }
  0x3c   : > { %4168 = vmatmul.mubr.bf16.gmra.mxu0 %v4229_v18  ;;  %4184 = vmatmul.mubr.bf16.gmra.mxu1 %v4237_v19 }
  0x3d   : > { %4171 = vmatprep.mubr.bf16.mxu0 %v4230_v20  ;;  %4187 = vmatprep.mubr.bf16.mxu1 %v4238_v21  ;;  %v759_v21 = vld [vmem:[%s4766_s21 + $0x68] sm:$0xff] }
  0x44   : > { %4172 = vmatmul.mubr.bf16.gmra.mxu0 %v4231_v22  ;;  %4188 = vmatmul.mubr.bf16.gmra.mxu1 %v4239_v23 }
  0xec   : > { %v4161_v25 = vpop.f32.mrf.mxu0  ;;  %v4177_v63 = vpop.f32.mrf.mxu1 }
  0xed   : > { %v628_v27 = vadd.f32 %v4161_v25, %v4771_v24 }
  0xee   : > { %v619_v28 = vpop.f32.mrf.mxu0  ;;  %v683_v9 = vpop.f32.mrf.mxu1 }
  0xef   : > { %v4776_v30 = vadd.f32 %v748_v26, %v628_v27  ;;  %v620_v31 = vadd.f32 %v4771_v24, %v619_v28  ;;  %v684_v22 = vadd.f32 %v4771_v24, %v683_v9  ;;  %v761_v27 = vld [vmem:[%s4766_s21 + $0x78] sm:$0xff]  ;;  %v762_v28 = vld [vmem:[%s4766_s21 + $0x80] sm:$0xff] }
  0xf0   : > { %v4162_v32 = vpop.f32.mrf.mxu0  ;;  %v4178_v18 = vpop.f32.mrf.mxu1 }
  0xf1   : > { %7645 = vst [vmem:[#allocation2_spill] sm:$0xff] %v4776_v30  ;;  %v4780_v34 = vadd.f32 %v746_v29, %v620_v31  ;;  %v631_v35 = vadd.f32 %v4162_v32, %v4771_v24  ;;  %816 = vadd.xlane.f32.xlu1 %v4776_v30  ;;  %v692_v32 = vadd.f32 %v4177_v63, %v4771_v24  ;;  %v766_v63 = vld [vmem:[%s4766_s21 + $0xa0] sm:$0xff] }
  0xf2   : > { %v622_v36 = vpop.f32.mrf.mxu0  ;;  %v686_v29 = vpop.f32.mrf.mxu1 }
  0xf3   : > { %7646 = vst [vmem:[#allocation3_spill] sm:$0xff] %v4780_v34  ;;  %v4785_v38 = vadd.f32 %v749_v33, %v631_v35  ;;  %v623_v39 = vadd.f32 %v4771_v24, %v622_v36  ;;  %812 = vadd.xlane.f32.xlu0 %v4780_v34  ;;  %v4853_v35 = vadd.f32 %v762_v28, %v684_v22 }
  0xf4   : > { %v4165_v40 = vpop.f32.mrf.mxu0  ;;  %v687_v36 = vadd.f32 %v4771_v24, %v686_v29 }
  0xf5   : > { %7647 = vst [vmem:[#allocation4_spill] sm:$0xff] %v4785_v38  ;;  %v4789_v41 = vadd.f32 %v747_v37, %v623_v39  ;;  %818 = vadd.xlane.f32.xlu1 %v4785_v38  ;;  %v644_v44 = vadd.f32 %v4165_v40, %v4771_v24  ;;  %7661 = vst [vmem:[#allocation18_spill] sm:$0xff] %v4853_v35  ;;  %v764_v37 = vld [vmem:[%s4766_s21 + $0x90] sm:$0xff]  ;;  %v763_v39 = vld [vmem:[%s4766_s21 + $0x88] sm:$0xff] }
  0xf6   : > { %v635_v42 = vpop.f32.mrf.mxu0  ;;  %v4860_v40 = vadd.f32 %v764_v37, %v692_v32 }
  0xf7   : > { %7648 = vst [vmem:[#allocation5_spill] sm:$0xff] %v4789_v41  ;;  %v636_v45 = vadd.f32 %v4771_v24, %v635_v42  ;;  %814 = vadd.xlane.f32.xlu0 %v4789_v41  ;;  %v4800_v51 = vadd.f32 %v752_v46, %v644_v44  ;;  %v695_v42 = vadd.f32 %v4178_v18, %v4771_v24  ;;  %v765_v44 = vld [vmem:[%s4766_s21 + $0x98] sm:$0xff]  ;;  %v4240_v46 = vld [vmem:[%s7498_s6 + $0xe0] ss:$16 sps:$4 sm:$0xff]  }
  0xf8   : > { %v4166_v47 = vpop.f32.mrf.mxu0  ;;  %7662 = vst [vmem:[#allocation19_spill] sm:$0xff] %v4860_v40 }
  0xf9   : > { %v4797_v48 = vadd.f32 %v750_v43, %v636_v45  ;;  %7650 = vst [vmem:[#allocation7_spill] sm:$0xff] %v4800_v51  ;;  %v647_v54 = vadd.f32 %v4166_v47, %v4771_v24  ;;  %v4863_v43 = vadd.f32 %v763_v39, %v687_v36  ;;  %v4868_v45 = vadd.f32 %v765_v44, %v695_v42  ;;  %v4242_v47 = vld [vmem:[%s7498_s6 + $0xe4] ss:$16 sps:$4 sm:$0xff]   ;;  %v4251_v44 = vld [vmem:[%s7498_s6 + $0xcc] ss:$16 sps:$4 sm:$0xff]  }
  0xfa   : > { %v638_v49 = vpop.f32.mrf.mxu0  ;;  %1471 = vmatprep.subr.bf16.mxu1 %v4242_v47  ;;  %v4248_v42 = vld [vmem:[%s7498_s6 + $0xc4] ss:$16 sps:$4 sm:$0xff]  }
  0xfb   : > { %7649 = vst [vmem:[#allocation6_spill] sm:$0xff] %v4797_v48  ;;  %v639_v52 = vadd.f32 %v4771_v24, %v638_v49  ;;  %820 = vadd.xlane.f32.xlu0 %v4797_v48  ;;  %v4814_v0 = vadd.f32 %v753_v56, %v647_v54  ;;  %7663 = vst [vmem:[#allocation20_spill] sm:$0xff] %v4863_v43  ;;  %v4243_v49 = vld [vmem:[%s7498_s6 + $0xe8] ss:$16 sps:$4 sm:$0xff]   ;;  %1472 = vmatpush1.bf16.msra.mxu1 %v4240_v46 }
  0xfc   : > { %v4169_v53 = vpop.f32.mrf.mxu0  ;;  %7664 = vst [vmem:[#allocation21_spill] sm:$0xff] %v4868_v45  ;;  %v769_v46 = vld [vmem:[%s4766_s21 + $0xb8] sm:$0xff]  ;;  %1473 = vmatprep.subr.bf16.mxu1 %v4248_v42 }
  0xfd   : > { %v4805_v55 = vadd.f32 %v751_v50, %v639_v52  ;;  %v660_v59 = vadd.f32 %v4169_v53, %v4771_v24  ;;  %7652 = vst [vmem:[#allocation9_spill] sm:$0xff] %v4814_v0  ;;  %v4245_v50 = vld [vmem:[%s7498_s6 + $0xec] ss:$16 sps:$4 sm:$0xff]   ;;  %v4181_v52 = vpop.f32.mrf.mxu1 }
  0xfe   : > { %v651_v57 = vpop.f32.mrf.mxu0  ;;  %1664 = vmatprep.subr.bf16.mxu0 %v4245_v50  ;;  %v708_v18 = vadd.f32 %v4181_v52, %v4771_v24  ;;  %v4246_v50 = vld [vmem:[%s7498_s6 + $0xc0] ss:$16 sps:$4 sm:$0xff]   ;;  %v4249_v52 = vld [vmem:[%s7498_s6 + $0xc8] ss:$16 sps:$4 sm:$0xff]  }
  0xff   : > { %7651 = vst [vmem:[#allocation8_spill] sm:$0xff] %v4805_v55  ;;  %v652_v60 = vadd.f32 %v4771_v24, %v651_v57  ;;  %822 = vadd.xlane.f32.xlu1 %v4805_v55  ;;  %824 = vadd.xlane.f32.xlu0 %v4800_v51  ;;  %v4819_v4 = vadd.f32 %v756_v61, %v660_v59  ;;  %v699_v53 = vpop.f32.mrf.mxu1 }
 0x100   : > { %v4170_v62 = vpop.f32.mrf.mxu0  ;;  %1665 = vmatpush1.bf16.msra.mxu0 %v4243_v49  ;;  %1474 = vmatpush1.bf16.msra.mxu1 %v4246_v50  ;;  %v4269_v50 = vld [vmem:[%s7498_s6 + $0x6c] ss:$16 sps:$4 sm:$0xff]  }
 0x101   : > { %v4816_v1 = vadd.f32 %v754_v58, %v652_v60  ;;  %7654 = vst [vmem:[#allocation11_spill] sm:$0xff] %v4819_v4  ;;  %v663_v5 = vadd.f32 %v4170_v62, %v4771_v24  ;;  %v4182_v58 = vpop.f32.mrf.mxu1  ;;  %v700_v60 = vadd.f32 %v4771_v24, %v699_v53  ;;  %1666 = vmatprep.subr.bf16.mxu0 %v4251_v44 }
 0x102   : > { %v654_v2 = vpop.f32.mrf.mxu0  ;;  %v711_v32 = vadd.f32 %v4182_v58, %v4771_v24  ;;  %v770_v58 = vld [vmem:[%s4766_s21 + $0xc0] sm:$0xff] }
 0x103   : > { %7653 = vst [vmem:[#allocation10_spill] sm:$0xff] %v4816_v1  ;;  %v655_v6 = vadd.f32 %v4771_v24, %v654_v2  ;;  %826 = vadd.xlane.f32.xlu1 %v4814_v0  ;;  %828 = vadd.xlane.f32.xlu0 %v4816_v1  ;;  %v4829_v13 = vadd.f32 %v757_v7, %v663_v5 }
 0x104   : > { %v4173_v8 = vpop.f32.mrf.mxu0  ;;  %1667 = vmatpush1.bf16.msra.mxu0 %v4249_v52  ;;  %v772_v52 = vld [vmem:[%s4766_s21 + $0xd0] sm:$0xff] }
 0x105   : > { %v4826_v10 = vadd.f32 %v755_v3, %v655_v6  ;;  %7656 = vst [vmem:[#allocation13_spill] sm:$0xff] %v4829_v13  ;;  %v676_v14 = vadd.f32 %v4173_v8, %v4771_v24  ;;  %v702_v6 = vpop.f32.mrf.mxu1  ;;  %v4895_v8 = vadd.f32 %v766_v63, %v700_v60 }
 0x106   : > { %v667_v11 = vpop.f32.mrf.mxu0 }
 0x107   : > { %7655 = vst [vmem:[#allocation12_spill] sm:$0xff] %v4826_v10  ;;  %v668_v15 = vadd.f32 %v4771_v24, %v667_v11  ;;  %830 = vadd.xlane.f32.xlu1 %v4826_v10  ;;  %832 = vadd.xlane.f32.xlu0 %v4819_v4  ;;  %v4840_v23 = vadd.f32 %v760_v16, %v676_v14  ;;  %7665 = vst [vmem:[#allocation22_spill] sm:$0xff] %v4895_v8 }
 0x108   : > { %v4174_v17 = vpop.f32.mrf.mxu0 }
 0x109   : > { %v4836_v19 = vadd.f32 %v758_v12, %v668_v15  ;;  %7658 = vst [vmem:[#allocation15_spill] sm:$0xff] %v4840_v23  ;;  %v679_v25 = vadd.f32 %v4174_v17, %v4771_v24  ;;  %v703_v12 = vadd.f32 %v4771_v24, %v702_v6  ;;  %v767_v15 = vld [vmem:[%s4766_s21 + $0xa8] sm:$0xff]  ;;  %v4904_v17 = vpop.f32.mrf.mxu1 }
 0x10a   : > { %v670_v20 = vpop.f32.mrf.mxu0 }
 0x10b   : > { %7657 = vst [vmem:[#allocation14_spill] sm:$0xff] %v4836_v19  ;;  %v671_v26 = vadd.f32 %v4771_v24, %v670_v20  ;;  %834 = vadd.xlane.f32.xlu1 %v4829_v13  ;;  %836 = vadd.xlane.f32.xlu0 %v4836_v19  ;;  %v4851_v33 = vadd.f32 %v761_v27, %v679_v25  ;;  %v768_v20 = vld [vmem:[%s4766_s21 + $0xb0] sm:$0xff]  ;;  %v715_v28 = vpop.f32.mrf.mxu1 }
 0x10c   : > { %v4912_v22 = vadd.f32 %v767_v15, %v703_v12  ;;  %v4917_v29 = vadd.f32 %v768_v20, %v708_v18  ;;  %v716_v53 = vadd.f32 %v4771_v24, %v715_v28  ;;  %v4260_v20 = vld [vmem:[%s7498_s6 + $0x84] ss:$16 sps:$4 sm:$0xff]   ;;  %v4261_v28 = vld [vmem:[%s7498_s6 + $0x88] ss:$16 sps:$4 sm:$0xff]  }
 0x10d   : > { %v4848_v31 = vadd.f32 %v759_v21, %v671_v26  ;;  %7660 = vst [vmem:[#allocation17_spill] sm:$0xff] %v4851_v33  ;;  %v4186_v49 = vpop.f32.mrf.mxu1 }
 0x10e   : > { %7666 = vst [vmem:[#allocation23_spill] sm:$0xff] %v4912_v22  ;;  %7667 = vst [vmem:[#allocation24_spill] sm:$0xff] %v4917_v29  ;;  %v4961_v6 = vadd.f32 %v770_v58, %v716_v53  ;;  %v4267_v58 = vld [vmem:[%s7498_s6 + $0x68] ss:$16 sps:$4 sm:$0xff]  }
 0x10f   : > { %7659 = vst [vmem:[#allocation16_spill] sm:$0xff] %v4848_v31  ;;  %838 = vadd.xlane.f32.xlu1 %v4848_v31  ;;  %840 = vadd.xlane.f32.xlu0 %v4840_v23 }
 0x110   : > { %7669 = vst [vmem:[#allocation26_spill] sm:$0xff] %v4961_v6 }
 0x113   : > { %842 = vadd.xlane.f32.xlu1 %v4851_v33  ;;  %844 = vadd.xlane.f32.xlu0 %v4853_v35 }
 0x117   : > { %846 = vadd.xlane.f32.xlu1 %v4863_v43  ;;  %848 = vadd.xlane.f32.xlu0 %v4860_v40 }
 0x11b   : > { %850 = vadd.xlane.f32.xlu1 %v4868_v45 }
 0x17a   : > { %v817_v54 = vpop.xlane.xlu1 %816 }
 0x17b   : > { %v879_v62 = vmul.f32 0.0078125, %v817_v54  ;;  %v4940_v54 = vadd.f32 %v769_v46, %v711_v32  ;;  %v724_v32 = vadd.f32 %v4904_v17, %v4771_v24  ;;  %v4266_v17 = vld [vmem:[%s7498_s6 + $0x64] ss:$16 sps:$4 sm:$0xff]  }
 0x17c   : > { %v813_v56 = vpop.xlane.xlu0 %812 }
 0x17d   : > { %v877_v57 = vmul.f32 0.0078125, %v813_v56  ;;  %v4898_v9 = vsub.f32 %v4776_v30, %v879_v62  ;;  %7668 = vst [vmem:[#allocation25_spill] sm:$0xff] %v4940_v54  ;;  %v4257_v62 = vld [vmem:[%s7498_s6 + $0xac] ss:$16 sps:$4 sm:$0xff]  }
 0x17e   : > { %v819_v5 = vpop.xlane.xlu1 %818  ;;  %1668 = vmatprep.subr.bf16.mxu0 %v4257_v62 }
 0x17f   : > { %v4886_v59 = vsub.f32 %v4780_v34, %v877_v57  ;;  %v880_v11 = vmul.f32 0.0078125, %v819_v5  ;;  %v943_v26 = vmul.f32 %v4898_v9, %v4898_v9  ;;  %v4255_v5 = vld [vmem:[%s7498_s6 + $0xa8] ss:$16 sps:$4 sm:$0xff]  }
 0x180   : > { %v815_v61 = vpop.xlane.xlu0 %814  ;;  %1669 = vmatpush1.bf16.msra.mxu0 %v4255_v5 }
 0x181   : > { %v878_v2 = vmul.f32 0.0078125, %v815_v61  ;;  %v941_v3 = vmul.f32 %v4886_v59, %v4886_v59  ;;  %v4910_v21 = vsub.f32 %v4785_v38, %v880_v11  ;;  %v4254_v61 = vld [vmem:[%s7498_s6 + $0xa4] ss:$16 sps:$4 sm:$0xff]  }
 0x182   : > { %1475 = vmatprep.subr.bf16.mxu1 %v4254_v61  ;;  %v5009_v61 = vadd.f32 %v772_v52, %v724_v32 }
 0x183   : > { %v4893_v7 = vsub.f32 %v4789_v41, %v878_v2  ;;  %973 = vadd.xlane.f32.xlu0 %v941_v3  ;;  %v944_v39 = vmul.f32 %v4910_v21, %v4910_v21  ;;  %v718_v2 = vpop.f32.mrf.mxu1  ;;  %v4252_v3 = vld [vmem:[%s7498_s6 + $0xa0] ss:$16 sps:$4 sm:$0xff]  }
 0x184   : > { %v821_v16 = vpop.xlane.xlu0 %820  ;;  %v719_v15 = vadd.f32 %v4771_v24, %v718_v2  ;;  %1476 = vmatpush1.bf16.msra.mxu1 %v4252_v3  ;;  %7671 = vst [vmem:[#allocation28_spill] sm:$0xff] %v5009_v61 }
 0x185   : > { %v942_v14 = vmul.f32 %v4893_v7, %v4893_v7  ;;  %v881_v25 = vmul.f32 0.0078125, %v821_v16  ;;  %v4969_v18 = vpop.f32.mrf.mxu1  ;;  %1477 = vmatprep.subr.bf16.mxu1 %v4260_v20 }
 0x187   : > { %852 = vadd.xlane.f32.xlu0 %v4895_v8  ;;  %975 = vadd.xlane.f32.xlu1 %v942_v14  ;;  %v4921_v36 = vsub.f32 %v4797_v48, %v881_v25  ;;  %v4263_v25 = vld [vmem:[%s7498_s6 + $0x8c] ss:$16 sps:$4 sm:$0xff]  }
 0x188   : > { %v823_v27 = vpop.xlane.xlu1 %822  ;;  %v825_v47 = vpop.xlane.xlu0 %824  ;;  %1670 = vmatprep.subr.bf16.mxu0 %v4263_v25 }
 0x189   : > { %v882_v37 = vmul.f32 0.0078125, %v823_v27  ;;  %v883_v57 = vmul.f32 0.0078125, %v825_v47  ;;  %v945_v60 = vmul.f32 %v4921_v36, %v4921_v36  ;;  %v4258_v27 = vld [vmem:[%s7498_s6 + $0x80] ss:$16 sps:$4 sm:$0xff]   ;;  %v731_v47 = vpop.f32.mrf.mxu1  ;;  %1671 = vmatpush1.bf16.msra.mxu0 %v4261_v28 }
 0x18a   : > { %1478 = vmatpush1.bf16.msra.mxu1 %v4258_v27  ;;  %1672 = vmatprep.subr.bf16.mxu0 %v4269_v50  ;;  %v732_v28 = vadd.f32 %v4771_v24, %v731_v47  ;;  %v4276_v47 = vld [vmem:[%s7498_s6 + $0x20] ss:$16 sps:$4 sm:$0xff]   ;;  %v4279_v50 = vld [vmem:[%s7498_s6 + $0x28] ss:$16 sps:$4 sm:$0xff]  }
 0x18b   : > { %977 = vadd.xlane.f32.xlu0 %v943_v26  ;;  %854 = vadd.xlane.f32.xlu1 %v4912_v22  ;;  %v4943_v56 = vsub.f32 %v4805_v55, %v882_v37  ;;  %v4964_v12 = vsub.f32 %v4800_v51, %v883_v57  ;;  %v771_v26 = vld [vmem:[%s4766_s21 + $0xc8] sm:$0xff]  ;;  %v4264_v57 = vld [vmem:[%s7498_s6 + $0x60] ss:$16 sps:$4 sm:$0xff]   ;;  %v5015_v3 = vpop.f32.mrf.mxu1 }
 0x18c   : > { %v827_v63 = vpop.xlane.xlu1 %826  ;;  %v829_v11 = vpop.xlane.xlu0 %828  ;;  %v4990_v44 = vadd.f32 %v771_v26, %v719_v15  ;;  %1479 = vmatprep.subr.bf16.mxu1 %v4266_v17  ;;  %v4270_v15 = vld [vmem:[%s7498_s6 + $0x40] ss:$16 sps:$4 sm:$0xff]  }
 0x18d   : > { %v884_v14 = vmul.f32 0.0078125, %v827_v63  ;;  %v946_v16 = vmul.f32 %v4943_v56, %v4943_v56  ;;  %v885_v42 = vmul.f32 0.0078125, %v829_v11  ;;  %v947_v46 = vmul.f32 %v4964_v12, %v4964_v12  ;;  %v773_v63 = vld [vmem:[%s4766_s21 + $0xd8] sm:$0xff]  ;;  %1673 = vmatpush1.bf16.msra.mxu0 %v4267_v58  ;;  %v734_v32 = vpop.f32.mrf.mxu1  ;;  %v774_v17 = vld [vmem:[%s4766_s21 + $0xe0] sm:$0xff] }
 0x18e   : > { %7670 = vst [vmem:[#allocation27_spill] sm:$0xff] %v4990_v44  ;;  %1480 = vmatpush1.bf16.msra.mxu1 %v4264_v57  ;;  %v4275_v11 = vld [vmem:[%s7498_s6 + $0x4c] ss:$16 sps:$4 sm:$0xff]  }
 0x18f   : > { %856 = vadd.xlane.f32.xlu0 %v4917_v29  ;;  %979 = vadd.xlane.f32.xlu1 %v944_v39  ;;  %v4988_v39 = vsub.f32 %v4814_v0, %v884_v14  ;;  %v5012_v62 = vsub.f32 %v4816_v1, %v885_v42  ;;  %v4278_v42 = vld [vmem:[%s7498_s6 + $0x24] ss:$16 sps:$4 sm:$0xff]  }
 0x190   : > { %v831_v37 = vpop.xlane.xlu1 %830  ;;  %v833_v53 = vpop.xlane.xlu0 %832  ;;  %1674 = vmatprep.subr.bf16.mxu0 %v4275_v11 }
 0x191   : > { %v886_v2 = vmul.f32 0.0078125, %v831_v37  ;;  %v948_v5 = vmul.f32 %v4988_v39, %v4988_v39  ;;  %v887_v27 = vmul.f32 0.0078125, %v833_v53  ;;  %v949_v37 = vmul.f32 %v5012_v62, %v5012_v62 }
 0x192   : > { %v735_v53 = vadd.f32 %v4771_v24, %v734_v32 }
 0x193   : > { %858 = vadd.xlane.f32.xlu1 %v4940_v54  ;;  %981 = vadd.xlane.f32.xlu0 %v945_v60  ;;  %v727_v60 = vadd.f32 %v4186_v49, %v4771_v24  ;;  %v4272_v49 = vld [vmem:[%s7498_s6 + $0x44] ss:$16 sps:$4 sm:$0xff]   ;;  %v5035_v26 = vsub.f32 %v4826_v10, %v886_v2  ;;  %v5056_v57 = vsub.f32 %v4819_v4, %v887_v27 }
 0x194   : > { %v835_v14 = vpop.xlane.xlu1 %834  ;;  %v837_v25 = vpop.xlane.xlu0 %836  ;;  %1481 = vmatprep.subr.bf16.mxu1 %v4272_v49  ;;  %v4287_v49 = vld [vmem:[%s7498_s6 + $0xc] ss:$16 sps:$4 sm:$0xff]  }
 0x195   : > { %v5032_v20 = vadd.f32 %v773_v63, %v727_v60  ;;  %1482 = vmatpush1.bf16.msra.mxu1 %v4270_v15  ;;  %v888_v58 = vmul.f32 0.0078125, %v835_v14  ;;  %v5058_v60 = vadd.f32 %v774_v17, %v732_v28  ;;  %v775_v63 = vld [vmem:[%s4766_s21 + $0xe8] sm:$0xff]  ;;  %v950_v2 = vmul.f32 %v5035_v26, %v5035_v26  ;;  %v4282_v14 = vld [vmem:[%s7498_s6] ss:$16 sps:$4 sm:$0xff]  }
 0x196   : > { %1483 = vmatprep.subr.bf16.mxu1 %v4278_v42  ;;  %v4285_v15 = vld [vmem:[%s7498_s6 + $0x8] ss:$16 sps:$4 sm:$0xff]   ;;  %v5078_v27 = vadd.f32 %v775_v63, %v735_v53  ;;  %v889_v32 = vmul.f32 0.0078125, %v837_v25  ;;  %v951_v42 = vmul.f32 %v5056_v57, %v5056_v57  ;;  %v7503_v17 = vmov 0  }
 0x197   : > { %983 = vadd.xlane.f32.xlu1 %v946_v16  ;;  %860 = vadd.xlane.f32.xlu0 %v4961_v6  ;;  %v4273_v16 = vld [vmem:[%s7498_s6 + $0x48] ss:$16 sps:$4 sm:$0xff]   ;;  %7672 = vst [vmem:[#allocation29_spill] sm:$0xff] %v5032_v20  ;;  %7673 = vst [vmem:[#allocation30_spill] sm:$0xff] %v5058_v60  ;;  %v5081_v28 = vsub.f32 %v4829_v13, %v888_v58  ;;  %v743_v58 = vadd.f32 %v5015_v3, %v4771_v24 }
 0x198   : > { %1675 = vmatpush1.bf16.msra.mxu0 %v4273_v16  ;;  %v839_v52 = vpop.xlane.xlu1 %838  ;;  %v841_v11 = vpop.xlane.xlu0 %840  ;;  %v740_v16 = vadd.f32 %v4969_v18, %v4771_v24  ;;  %7674 = vst [vmem:[#allocation31_spill] sm:$0xff] %v5078_v27  ;;  %1503 = vmatprep.mubr.bf16.mxu1 %v7503_v17 }
 0x199   : > { %1484 = vmatpush1.bf16.msra.mxu1 %v4276_v47  ;;  %1696 = vmatprep.mubr.bf16.mxu0 %v7503_v17  ;;  %v890_v18 = vmul.f32 0.0078125, %v839_v52  ;;  %v891_v53 = vmul.f32 0.0078125, %v841_v11  ;;  %v952_v63 = vmul.f32 %v5081_v28, %v5081_v28 }
 0x19b   : > { %862 = vadd.xlane.f32.xlu1 %v4990_v44  ;;  %985 = vadd.xlane.f32.xlu0 %v947_v46  ;;  %v4281_v46 = vld [vmem:[%s7498_s6 + $0x2c] ss:$16 sps:$4 sm:$0xff]  }
 0x19c   : > { %1676 = vmatprep.subr.bf16.mxu0 %v4281_v46  ;;  %v843_v46 = vpop.xlane.xlu1 %842  ;;  %v845_v25 = vpop.xlane.xlu0 %844 }
 0x19d   : > { %1677 = vmatpush1.bf16.msra.mxu0 %v4279_v50  ;;  %v5092_v50 = vsub.f32 %v4836_v19, %v889_v32  ;;  %v892_v52 = vmul.f32 0.0078125, %v843_v46 }
 0x19e   : > { %1678 = vmatprep.subr.bf16.mxu0 %v4287_v49 }
 0x19f   : > { %987 = vadd.xlane.f32.xlu1 %v948_v5  ;;  %864 = vadd.xlane.f32.xlu0 %v5009_v61  ;;  %v4284_v5 = vld [vmem:[%s7498_s6 + $0x4] ss:$16 sps:$4 sm:$0xff]   ;;  %v953_v24 = vmul.f32 %v5092_v50, %v5092_v50 }
 0x1a0   : > { %1485 = vmatprep.subr.bf16.mxu1 %v4284_v5  ;;  %v5101_v5 = vsub.f32 %v4848_v31, %v890_v18  ;;  %v847_v49 = vpop.xlane.xlu1 %846  ;;  %v849_v3 = vpop.xlane.xlu0 %848 }
 0x1a1   : > { %1486 = vmatpush1.bf16.msra.mxu1 %v4282_v14  ;;  %1679 = vmatpush1.bf16.msra.mxu0 %v4285_v15  ;;  %v5104_v14 = vsub.f32 %v4840_v23, %v891_v53  ;;  %v893_v15 = vmul.f32 0.0078125, %v845_v25  ;;  %v895_v46 = vmul.f32 0.0078125, %v849_v3 }
 0x1a2   : > { %v954_v32 = vmul.f32 %v5101_v5, %v5101_v5 }
 0x1a3   : > { %866 = vadd.xlane.f32.xlu1 %v5032_v20  ;;  %989 = vadd.xlane.f32.xlu0 %v949_v37  ;;  %v776_v37 = vld [vmem:[%s4766_s21 + $0xf0] sm:$0xff]  ;;  %v955_v18 = vmul.f32 %v5104_v14, %v5104_v14 }
 0x1a4   : > { %v5089_v47 = vadd.f32 %v776_v37, %v740_v16  ;;  %v5112_v16 = vsub.f32 %v4851_v33, %v892_v52  ;;  %v5117_v37 = vsub.f32 %v4853_v35, %v893_v15  ;;  %v851_v25 = vpop.xlane.xlu1 %850 }
 0x1a6   : > { %7675 = vst [vmem:[#allocation32_spill] sm:$0xff] %v5089_v47  ;;  %v956_v53 = vmul.f32 %v5112_v16, %v5112_v16  ;;  %v957_v52 = vmul.f32 %v5117_v37, %v5117_v37 }
 0x1a7   : > { %991 = vadd.xlane.f32.xlu1 %v950_v2  ;;  %868 = vadd.xlane.f32.xlu0 %v5058_v60  ;;  %v777_v2 = vld [vmem:[%s4766_s21 + $0xf8] sm:$0xff] }
 0x1a8   : > { %v5106_v11 = vadd.f32 %v777_v2, %v743_v58  ;;  %v896_v2 = vmul.f32 0.0078125, %v851_v25 }
 0x1aa   : > { %7676 = vst [vmem:[#allocation33_spill] sm:$0xff] %v5106_v11 }
 0x1ab   : > { %870 = vadd.xlane.f32.xlu1 %v5078_v27  ;;  %993 = vadd.xlane.f32.xlu0 %v951_v42  ;;  %v894_v42 = vmul.f32 0.0078125, %v847_v49  ;;  %v5132_v49 = vsub.f32 %v4868_v45, %v896_v2 }
 0x1ad   : > { %v5124_v58 = vsub.f32 %v4863_v43, %v894_v42  ;;  %v960_v3 = vmul.f32 %v5132_v49, %v5132_v49  ;;  %v5176_v43 = vld [vmem:[%s7497_s5] ss:$0 sm:$0xff] }
 0x1af   : > { %995 = vadd.xlane.f32.xlu1 %v952_v63  ;;  %872 = vadd.xlane.f32.xlu0 %v5089_v47  ;;  %v5127_v63 = vsub.f32 %v4860_v40, %v895_v46  ;;  %v958_v15 = vmul.f32 %v5124_v58, %v5124_v58 }
 0x1b3   : > { %874 = vadd.xlane.f32.xlu1 %v5106_v11  ;;  %997 = vadd.xlane.f32.xlu0 %v953_v24  ;;  %v959_v24 = vmul.f32 %v5127_v63, %v5127_v63 }
 0x1b7   : > { %999 = vadd.xlane.f32.xlu1 %v954_v32  ;;  %1001 = vadd.xlane.f32.xlu0 %v955_v18 }
 0x1bb   : > { %1003 = vadd.xlane.f32.xlu1 %v956_v53  ;;  %1005 = vadd.xlane.f32.xlu0 %v957_v52 }
 0x1bf   : > { %1007 = vadd.xlane.f32.xlu1 %v958_v15  ;;  %1009 = vadd.xlane.f32.xlu0 %v959_v24 }
 0x1c3   : > { %1011 = vadd.xlane.f32.xlu1 %v960_v3 }
 0x20c   : > { %v974_v32 = vpop.xlane.xlu0 %973 }
 0x20d   : > { %v1037_v42 = vmul.f32 0.0078125, %v974_v32 }
 0x20f   : > { %v1069_v46 = vadd.f32 1e-05, %v1037_v42 }
 0x210   : > { %v976_v18 = vpop.xlane.xlu1 %975  ;;  %v853_v25 = vpop.xlane.xlu0 %852 }
 0x211   : > { %4320 = vrsqrt.f32 %v1069_v46  ;;  %v1038_v53 = vmul.f32 0.0078125, %v976_v18  ;;  %v897_v2 = vmul.f32 0.0078125, %v853_v25 }
 0x213   : > { %v1070_v52 = vadd.f32 1e-05, %v1038_v53  ;;  %v5141_v17 = vsub.f32 %v4895_v8, %v897_v2 }
 0x214   : > { %v855_v45 = vpop.xlane.xlu1 %854  ;;  %v978_v40 = vpop.xlane.xlu0 %977 }
 0x215   : > { %4322 = vrsqrt.f32 %v1070_v52  ;;  %v898_v15 = vmul.f32 0.0078125, %v855_v45  ;;  %v1039_v24 = vmul.f32 0.0078125, %v978_v40  ;;  %v961_v3 = vmul.f32 %v5141_v17, %v5141_v17 }
 0x217   : > { %v5146_v32 = vsub.f32 %v4912_v22, %v898_v15  ;;  %v1071_v42 = vadd.f32 1e-05, %v1039_v24  ;;  %1013 = vadd.xlane.f32.xlu0 %v961_v3 }
 0x218   : > { %v980_v46 = vpop.xlane.xlu1 %979  ;;  %v857_v18 = vpop.xlane.xlu0 %856 }
 0x219   : > { %4324 = vrsqrt.f32 %v1071_v42  ;;  %v1040_v25 = vmul.f32 0.0078125, %v980_v46  ;;  %v899_v53 = vmul.f32 0.0078125, %v857_v18  ;;  %v962_v2 = vmul.f32 %v5146_v32, %v5146_v32 }
 0x21b   : > { %v1072_v8 = vadd.f32 1e-05, %v1040_v25  ;;  %v5151_v45 = vsub.f32 %v4917_v29, %v899_v53  ;;  %1015 = vadd.xlane.f32.xlu1 %v962_v2 }
 0x21c   : > { %v859_v40 = vpop.xlane.xlu1 %858  ;;  %v982_v52 = vpop.xlane.xlu0 %981 }
 0x21d   : > { %4326 = vrsqrt.f32 %v1072_v8  ;;  %v900_v15 = vmul.f32 0.0078125, %v859_v40  ;;  %v1041_v22 = vmul.f32 0.0078125, %v982_v52  ;;  %v963_v24 = vmul.f32 %v5151_v45, %v5151_v45  ;;  %v5164_v40 = vld [vmem:[%s7496_s4] ss:$0 sm:$0xff] }
 0x21e   : > { %v4321_v3 = vpop.eup %4320 }
 0x21f   : > { %v5156_v42 = vsub.f32 %v4940_v54, %v900_v15  ;;  %v1073_v46 = vadd.f32 1e-05, %v1041_v22  ;;  %1017 = vadd.xlane.f32.xlu0 %v963_v24  ;;  %v1133_v18 = vmul.f32 %v4321_v3, %v4886_v59 }
 0x220   : > { %v984_v25 = vpop.xlane.xlu1 %983  ;;  %v861_v53 = vpop.xlane.xlu0 %860 }
 0x221   : > { %4328 = vrsqrt.f32 %v1073_v46  ;;  %v1042_v2 = vmul.f32 0.0078125, %v984_v25  ;;  %v901_v29 = vmul.f32 0.0078125, %v861_v53  ;;  %v964_v8 = vmul.f32 %v5156_v42, %v5156_v42 }
 0x222   : > { %v4323_v52 = vpop.eup %4322  ;;  %v1171_v46 = vmul.f32 %v5164_v40, %v1133_v18 }
 0x223   : > { %v1134_v15 = vmul.f32 %v4323_v52, %v4893_v7  ;;  %v1074_v22 = vadd.f32 1e-05, %v1042_v2  ;;  %v5168_v24 = vsub.f32 %v4961_v6, %v901_v29  ;;  %1019 = vadd.xlane.f32.xlu1 %v964_v8 }
 0x224   : > { %v863_v59 = vpop.xlane.xlu1 %862  ;;  %v986_v3 = vpop.xlane.xlu0 %985 }
 0x225   : > { %4330 = vrsqrt.f32 %v1074_v22  ;;  %v902_v25 = vmul.f32 0.0078125, %v863_v59  ;;  %v1043_v53 = vmul.f32 0.0078125, %v986_v3  ;;  %v965_v54 = vmul.f32 %v5168_v24, %v5168_v24 }
 0x226   : > { %v4325_v7 = vpop.eup %4324  ;;  %v1172_v29 = vmul.f32 %v5164_v40, %v1134_v15  ;;  %v1209_v22 = vadd.f32 %v5176_v43, %v1171_v46 }
 0x227   : > { %v5180_v2 = vsub.f32 %v4990_v44, %v902_v25  ;;  %v1075_v8 = vadd.f32 1e-05, %v1043_v53  ;;  %1021 = vadd.xlane.f32.xlu0 %v965_v54  ;;  %v1135_v3 = vmul.f32 %v4325_v7, %v4898_v9 }
 0x228   : > { %v988_v18 = vpop.xlane.xlu1 %987  ;;  %v865_v52 = vpop.xlane.xlu0 %864  ;;  %v1210_v59 = vadd.f32 %v5176_v43, %v1172_v29 }
 0x229   : > { %4332 = vrsqrt.f32 %v1075_v8  ;;  %v1044_v6 = vmul.f32 0.0078125, %v988_v18  ;;  %v903_v35 = vmul.f32 0.0078125, %v865_v52  ;;  %v966_v33 = vmul.f32 %v5180_v2, %v5180_v2 }
 0x22a   : > { %v4327_v15 = vpop.eup %4326  ;;  %v1241_v23 = vpack.c.bf16 %v1210_v59, %v1209_v22  ;;  %v1173_v9 = vmul.f32 %v5164_v40, %v1135_v3  ;;  %v7677_v52 = vmov 0  }
 0x22b   : > { %v1076_v25 = vadd.f32 1e-05, %v1044_v6  ;;  %v5188_v53 = vsub.f32 %v5009_v61, %v903_v35  ;;  %1023 = vadd.xlane.f32.xlu1 %v966_v33  ;;  %v1136_v54 = vmul.f32 %v4327_v15, %v4910_v21 }
 0x22c   : > { %1504 = vmatmul.mubr.bf16.vlgmr.msra.gmra.mxu1 %v1241_v23  ;;  %1697 = vmatmul.mubr.bf16.vlgmr.msra.gmra.mxu0 %v1241_v23  ;;  %v867_v46 = vpop.xlane.xlu1 %866  ;;  %v990_v29 = vpop.xlane.xlu0 %989  ;;  %v1211_v59 = vadd.f32 %v5176_v43, %v1173_v9 }
 0x22d   : > { %4334 = vrsqrt.f32 %v1076_v25  ;;  %v904_v7 = vmul.f32 0.0078125, %v867_v46  ;;  %v1045_v8 = vmul.f32 0.0078125, %v990_v29  ;;  %v967_v18 = vmul.f32 %v5188_v53, %v5188_v53  ;;  %1513 = vmatprep.mubr.bf16.mxu1 %v7677_v52  ;;  %1706 = vmatprep.mubr.bf16.mxu0 %v7677_v52 }
 0x22e   : > { %v4329_v35 = vpop.eup %4328  ;;  %v1174_v33 = vmul.f32 %v5164_v40, %v1136_v54 }
 0x22f   : > { %v5198_v21 = vsub.f32 %v5032_v20, %v904_v7  ;;  %v1077_v23 = vadd.f32 1e-05, %v1045_v8  ;;  %1025 = vadd.xlane.f32.xlu0 %v967_v18  ;;  %v1137_v15 = vmul.f32 %v4329_v35, %v4921_v36 }
 0x230   : > { %v992_v6 = vpop.xlane.xlu1 %991  ;;  %v869_v22 = vpop.xlane.xlu0 %868  ;;  %v1212_v3 = vadd.f32 %v5176_v43, %v1174_v33 }
 0x231   : > { %4336 = vrsqrt.f32 %v1077_v23  ;;  %v1046_v25 = vmul.f32 0.0078125, %v992_v6  ;;  %v905_v46 = vmul.f32 0.0078125, %v869_v22  ;;  %v968_v29 = vmul.f32 %v5198_v21, %v5198_v21 }
 0x232   : > { %v4331_v54 = vpop.eup %4330  ;;  %v1242_v61 = vpack.c.bf16 %v1212_v3, %v1211_v59  ;;  %v1175_v36 = vmul.f32 %v5164_v40, %v1137_v15 }
 0x233   : > { %v1078_v7 = vadd.f32 1e-05, %v1046_v25  ;;  %v5206_v8 = vsub.f32 %v5058_v60, %v905_v46  ;;  %1027 = vadd.xlane.f32.xlu1 %v968_v29  ;;  %v1138_v18 = vmul.f32 %v4331_v54, %v4943_v56 }
 0x234   : > { %1514 = vmatmul.mubr.bf16.gmra.mxu1 %v1242_v61  ;;  %1707 = vmatmul.mubr.bf16.gmra.mxu0 %v1242_v61  ;;  %v871_v9 = vpop.xlane.xlu1 %870  ;;  %v994_v33 = vpop.xlane.xlu0 %993  ;;  %v1213_v25 = vadd.f32 %v5176_v43, %v1175_v36 }
 0x235   : > { %4338 = vrsqrt.f32 %v1078_v7  ;;  %v906_v35 = vmul.f32 0.0078125, %v871_v9  ;;  %v1047_v23 = vmul.f32 0.0078125, %v994_v33  ;;  %v969_v6 = vmul.f32 %v5206_v8, %v5206_v8  ;;  %1523 = vmatprep.mubr.bf16.mxu1 %v7677_v52  ;;  %1716 = vmatprep.mubr.bf16.mxu0 %v7677_v52 }
 0x236   : > { %v4333_v22 = vpop.eup %4332  ;;  %v1176_v59 = vmul.f32 %v5164_v40, %v1138_v18 }
 0x237   : > { %v5216_v56 = vsub.f32 %v5078_v27, %v906_v35  ;;  %v1079_v61 = vadd.f32 1e-05, %v1047_v23  ;;  %1029 = vadd.xlane.f32.xlu0 %v969_v6  ;;  %v1139_v29 = vmul.f32 %v4333_v22, %v4964_v12 }
 0x238   : > { %v996_v3 = vpop.xlane.xlu1 %995  ;;  %v873_v15 = vpop.xlane.xlu0 %872  ;;  %v1214_v46 = vadd.f32 %v5176_v43, %v1176_v59 }
 0x239   : > { %4340 = vrsqrt.f32 %v1079_v61  ;;  %v1048_v54 = vmul.f32 0.0078125, %v996_v3  ;;  %v907_v7 = vmul.f32 0.0078125, %v873_v15  ;;  %v970_v9 = vmul.f32 %v5216_v56, %v5216_v56 }
 0x23a   : > { %v4335_v18 = vpop.eup %4334  ;;  %v1243_v33 = vpack.c.bf16 %v1214_v46, %v1213_v25  ;;  %v1177_v12 = vmul.f32 %v5164_v40, %v1139_v29 }
 0x23b   : > { %v1080_v35 = vadd.f32 1e-05, %v1048_v54  ;;  %v5224_v23 = vsub.f32 %v5089_v47, %v907_v7  ;;  %1031 = vadd.xlane.f32.xlu1 %v970_v9  ;;  %v1140_v6 = vmul.f32 %v4335_v18, %v4988_v39 }
 0x23c   : > { %1524 = vmatmul.mubr.bf16.gmra.mxu1 %v1243_v33  ;;  %1717 = vmatmul.mubr.bf16.gmra.mxu0 %v1243_v33  ;;  %v875_v36 = vpop.xlane.xlu1 %874  ;;  %v998_v59 = vpop.xlane.xlu0 %997  ;;  %v1215_v9 = vadd.f32 %v5176_v43, %v1177_v12 }
 0x23d   : > { %4342 = vrsqrt.f32 %v1080_v35  ;;  %v908_v22 = vmul.f32 0.0078125, %v875_v36  ;;  %v1049_v61 = vmul.f32 0.0078125, %v998_v59  ;;  %v971_v3 = vmul.f32 %v5224_v23, %v5224_v23  ;;  %1533 = vmatprep.mubr.bf16.mxu1 %v7677_v52  ;;  %1726 = vmatprep.mubr.bf16.mxu0 %v7677_v52 }
 0x23e   : > { %v4337_v15 = vpop.eup %4336  ;;  %v1178_v25 = vmul.f32 %v5164_v40, %v1140_v6 }
 0x23f   : > { %v5234_v39 = vsub.f32 %v5106_v11, %v908_v22  ;;  %v1081_v46 = vadd.f32 1e-05, %v1049_v61  ;;  %1033 = vadd.xlane.f32.xlu0 %v971_v3  ;;  %v1141_v29 = vmul.f32 %v4337_v15, %v5012_v62 }
 0x240   : > { %v1000_v54 = vpop.xlane.xlu1 %999  ;;  %v1002_v7 = vpop.xlane.xlu0 %1001  ;;  %v1216_v18 = vadd.f32 %v5176_v43, %v1178_v25 }
 0x241   : > { %4344 = vrsqrt.f32 %v1081_v46  ;;  %v1050_v33 = vmul.f32 0.0078125, %v1000_v54  ;;  %v1051_v35 = vmul.f32 0.0078125, %v1002_v7  ;;  %v972_v36 = vmul.f32 %v5234_v39, %v5234_v39 }
 0x242   : > { %v4339_v6 = vpop.eup %4338  ;;  %v1244_v59 = vpack.c.bf16 %v1216_v18, %v1215_v9  ;;  %v1179_v62 = vmul.f32 %v5164_v40, %v1141_v29 }
 0x243   : > { %v1082_v22 = vadd.f32 1e-05, %v1050_v33  ;;  %1035 = vadd.xlane.f32.xlu1 %v972_v36  ;;  %v1142_v61 = vmul.f32 %v4339_v6, %v5035_v26  ;;  %v1083_v3 = vadd.f32 1e-05, %v1051_v35 }
 0x244   : > { %1534 = vmatmul.mubr.bf16.gmra.mxu1 %v1244_v59  ;;  %1727 = vmatmul.mubr.bf16.gmra.mxu0 %v1244_v59  ;;  %v1004_v12 = vpop.xlane.xlu1 %1003  ;;  %v1006_v25 = vpop.xlane.xlu0 %1005  ;;  %v1217_v9 = vadd.f32 %v5176_v43, %v1179_v62 }
 0x245   : > { %4346 = vrsqrt.f32 %v1082_v22  ;;  %v1052_v15 = vmul.f32 0.0078125, %v1004_v12  ;;  %1543 = vmatprep.mubr.bf16.mxu1 %v7677_v52  ;;  %1736 = vmatprep.mubr.bf16.mxu0 %v7677_v52  ;;  %v1180_v46 = vmul.f32 %v5164_v40, %v1142_v61  ;;  %v1053_v18 = vmul.f32 0.0078125, %v1006_v25 }
 0x246   : > { %v4341_v54 = vpop.eup %4340  ;;  %4348 = vrsqrt.f32 %v1083_v3 }
 0x247   : > { %v1084_v7 = vadd.f32 1e-05, %v1052_v15  ;;  %v1218_v26 = vadd.f32 %v5176_v43, %v1180_v46  ;;  %v1143_v29 = vmul.f32 %v4341_v54, %v5056_v57  ;;  %v1085_v12 = vadd.f32 1e-05, %v1053_v18 }
 0x248   : > { %v1008_v33 = vpop.xlane.xlu1 %1007  ;;  %v1010_v15 = vpop.xlane.xlu0 %1009 }
 0x249   : > { %4350 = vrsqrt.f32 %v1084_v7  ;;  %v1054_v35 = vmul.f32 0.0078125, %v1008_v33  ;;  %v1245_v36 = vpack.c.bf16 %v1218_v26, %v1217_v9  ;;  %v1181_v61 = vmul.f32 %v5164_v40, %v1143_v29  ;;  %v4288_v26 = vld [vmem:[%s7500_s8 + $0x78] sm:$0xff]  }
 0x24a   : > { %v4343_v6 = vpop.eup %4342  ;;  %v1055_v7 = vmul.f32 0.0078125, %v1010_v15  ;;  %3919 = vmatprep.subr.bf16.mxu1 %v4288_v26  ;;  %v4291_v15 = vld [vmem:[%s7500_s8 + $0xb8] sm:$0xff]   ;;  %v4292_v26 = vld [vmem:[%s7500_s8 + $0x70] sm:$0xff]  }
 0x24b   : > { %v1086_v59 = vadd.f32 1e-05, %v1054_v35  ;;  %v1144_v22 = vmul.f32 %v4343_v6, %v5081_v28  ;;  %v1219_v46 = vadd.f32 %v5176_v43, %v1181_v61 }
 0x24c   : > { %1544 = vmatmul.mubr.bf16.gmra.mxu1 %v1245_v36  ;;  %1737 = vmatmul.mubr.bf16.gmra.mxu0 %v1245_v36  ;;  %v1012_v62 = vpop.xlane.xlu1 %1011  ;;  %v1087_v36 = vadd.f32 1e-05, %v1055_v7 }
 0x24d   : > { %1553 = vmatprep.mubr.bf16.mxu1 %v7677_v52  ;;  %1746 = vmatprep.mubr.bf16.mxu0 %v7677_v52  ;;  %v1182_v57 = vmul.f32 %v5164_v40, %v1144_v22  ;;  %4352 = vrsqrt.f32 %v1086_v59  ;;  %v1056_v25 = vmul.f32 0.0078125, %v1012_v62  ;;  %v4290_v62 = vld [vmem:[%s7500_s8 + $0xf8] sm:$0xff]  }
 0x24e   : > { %v4345_v3 = vpop.eup %4344  ;;  %4354 = vrsqrt.f32 %v1085_v12  ;;  %v4289_v12 = vld [vmem:[%s7500_s8 + $0x38] sm:$0xff]   ;;  %4031 = vmatprep.subr.bf16.mxu0 %v4290_v62 }
 0x24f   : > { %v1220_v28 = vadd.f32 %v5176_v43, %v1182_v57  ;;  %v1145_v54 = vmul.f32 %v4345_v3, %v5092_v50  ;;  %v1088_v18 = vadd.f32 1e-05, %v1056_v25  ;;  %3920 = vmatpush3.bf16.msra.mxu1 %v4289_v12  ;;  %4032 = vmatpush3.bf16.msra.mxu0 %v4291_v15 }
 0x250   : > { %3921 = vmatprep.subr.bf16.mxu1 %v4292_v26  ;;  %v4306_v26 = vld [vmem:[%s7500_s8 + $0x18] sm:$0xff]  }
 0x251   : > { %v1246_v9 = vpack.c.bf16 %v1220_v28, %v1219_v46  ;;  %v1183_v35 = vmul.f32 %v5164_v40, %v1145_v54  ;;  %4356 = vrsqrt.f32 %v1088_v18 }
 0x252   : > { %v4347_v29 = vpop.eup %4346  ;;  %4358 = vrsqrt.f32 %v1087_v36 }
 0x253   : > { %v1146_v33 = vmul.f32 %v4347_v29, %v5101_v5  ;;  %v4349_v6 = vpop.eup %4348  ;;  %v1221_v22 = vadd.f32 %v5176_v43, %v1183_v35 }
 0x254   : > { %1554 = vmatmul.mubr.bf16.gmra.mxu1 %v1246_v9  ;;  %1747 = vmatmul.mubr.bf16.gmra.mxu0 %v1246_v9  ;;  %v1147_v57 = vmul.f32 %v4349_v6, %v5104_v14  ;;  %v4293_v6 = vld [vmem:[%s7500_s8 + $0x30] sm:$0xff]  }
 0x255   : > { %1563 = vmatprep.mubr.bf16.mxu1 %v7677_v52  ;;  %1756 = vmatprep.mubr.bf16.mxu0 %v7677_v52  ;;  %v1184_v50 = vmul.f32 %v5164_v40, %v1146_v33 }
 0x256   : > { %v4351_v59 = vpop.eup %4350  ;;  %v1185_v46 = vmul.f32 %v5164_v40, %v1147_v57  ;;  %3922 = vmatpush3.bf16.msra.mxu1 %v4293_v6  ;;  %v4314_v6 = vld [vmem:[%s7500_s8 + $0x8] sm:$0xff]  }
 0x257   : > { %v1222_v61 = vadd.f32 %v5176_v43, %v1184_v50  ;;  %v1148_v5 = vmul.f32 %v4351_v59, %v5112_v16  ;;  %v4294_v50 = vld [vmem:[%s7500_s8 + $0xf0] sm:$0xff]  }
 0x258   : > { %v1223_v7 = vadd.f32 %v5176_v43, %v1185_v46  ;;  %v4295_v59 = vld [vmem:[%s7500_s8 + $0xb0] sm:$0xff]   ;;  %4033 = vmatprep.subr.bf16.mxu0 %v4294_v50  ;;  %v4300_v46 = vld [vmem:[%s7500_s8 + $0x60] sm:$0xff]   ;;  %v4315_v50 = vld [vmem:[%s7500_s8 + $0x88] sm:$0xff]  }
 0x259   : > { %v1247_v3 = vpack.c.bf16 %v1222_v61, %v1221_v22  ;;  %v1186_v16 = vmul.f32 %v5164_v40, %v1148_v5  ;;  %4034 = vmatpush3.bf16.msra.mxu0 %v4295_v59  ;;  %v4316_v59 = vld [vmem:[%s7500_s8 + $0x40] sm:$0xff]  }
 0x25a   : > { %v4353_v25 = vpop.eup %4352 }
 0x25b   : > { %v4355_v28 = vpop.eup %4354  ;;  %v1224_v54 = vadd.f32 %v5176_v43, %v1186_v16  ;;  %v1150_v14 = vmul.f32 %v4353_v25, %v5124_v58  ;;  %v4297_v16 = vld [vmem:[%s7500_s8 + $0x28] sm:$0xff]  }
 0x25c   : > { %1564 = vmatmul.mubr.bf16.gmra.mxu1 %v1247_v3  ;;  %1757 = vmatmul.mubr.bf16.gmra.mxu0 %v1247_v3  ;;  %v1149_v9 = vmul.f32 %v4355_v28, %v5117_v37  ;;  %v4298_v3 = vld [vmem:[%s7500_s8 + $0xe8] sm:$0xff]   ;;  %v4301_v28 = vld [vmem:[%s7500_s8 + $0xe0] sm:$0xff]  }
 0x25d   : > { %1573 = vmatprep.mubr.bf16.mxu1 %v7677_v52  ;;  %1766 = vmatprep.mubr.bf16.mxu0 %v7677_v52  ;;  %v1248_v29 = vpack.c.bf16 %v1224_v54, %v1223_v7  ;;  %v1188_v18 = vmul.f32 %v5164_v40, %v1150_v14  ;;  %v4299_v25 = vld [vmem:[%s7500_s8 + $0xa8] sm:$0xff]   ;;  %v4302_v54 = vld [vmem:[%s7500_s8 + $0x20] sm:$0xff]   ;;  %v4304_v7 = vld [vmem:[%s7500_s8 + $0x58] sm:$0xff]  }
 0x25e   : > { %v4357_v33 = vpop.eup %4356  ;;  %v1187_v35 = vmul.f32 %v5164_v40, %v1149_v9  ;;  %4035 = vmatprep.subr.bf16.mxu0 %v4298_v3  ;;  %v4303_v14 = vld [vmem:[%s7500_s8 + $0xa0] sm:$0xff]   ;;  %v4305_v9 = vld [vmem:[%s7500_s8 + $0xd8] sm:$0xff]  }
 0x25f   : > { %v4359_v36 = vpop.eup %4358  ;;  %v1226_v37 = vadd.f32 %v5176_v43, %v1188_v18  ;;  %v1152_v58 = vmul.f32 %v4357_v33, %v5132_v49  ;;  %4036 = vmatpush3.bf16.msra.mxu0 %v4299_v25  ;;  %v4308_v18 = vld [vmem:[%s7500_s8 + $0x50] sm:$0xff]  }
 0x260   : > { %v1225_v22 = vadd.f32 %v5176_v43, %v1187_v35  ;;  %v1151_v61 = vmul.f32 %v4359_v36, %v5127_v63  ;;  %v4296_v63 = vld [vmem:[%s7500_s8 + $0x68] sm:$0xff]   ;;  %4037 = vmatprep.subr.bf16.mxu0 %v4301_v28  ;;  %v4309_v33 = vld [vmem:[%s7500_s8 + $0xd0] sm:$0xff]  }
 0x261   : > { %v1190_v49 = vmul.f32 %v5164_v40, %v1152_v58  ;;  %3923 = vmatprep.subr.bf16.mxu1 %v4296_v63  ;;  %v4310_v35 = vld [vmem:[%s7500_s8 + $0x10] sm:$0xff]   ;;  %v4313_v58 = vld [vmem:[%s7500_s8 + $0xc8] sm:$0xff]  }
 0x262   : > { %v1249_v5 = vpack.c.bf16 %v1226_v37, %v1225_v22  ;;  %v1189_v12 = vmul.f32 %v5164_v40, %v1151_v61  ;;  %3924 = vmatpush3.bf16.msra.mxu1 %v4297_v16  ;;  %v4311_v36 = vld [vmem:[%s7500_s8 + $0x90] sm:$0xff]   ;;  %v4312_v37 = vld [vmem:[%s7500_s8 + $0x48] sm:$0xff]   ;;  %v4317_v22 = vld [vmem:[%s7500_s8 + $0xc0] sm:$0xff]  }
 0x263   : > { %v1228_v62 = vadd.f32 %v5176_v43, %v1190_v49  ;;  %3925 = vmatprep.subr.bf16.mxu1 %v4300_v46  ;;  %4038 = vmatpush3.bf16.msra.mxu0 %v4303_v14  ;;  %v4318_v61 = vld [vmem:[%s7500_s8] sm:$0xff]  }
 0x264   : > { %1574 = vmatmul.mubr.bf16.gmra.mxu1 %v1248_v29  ;;  %1767 = vmatmul.mubr.bf16.gmra.mxu0 %v1248_v29  ;;  %v1227_v15 = vadd.f32 %v5176_v43, %v1189_v12  ;;  %v4307_v29 = vld [vmem:[%s7500_s8 + $0x98] sm:$0xff]  }
 0x265   : > { %1583 = vmatprep.mubr.bf16.mxu1 %v7677_v52  ;;  %1776 = vmatprep.mubr.bf16.mxu0 %v7677_v52 }
 0x266   : > { %v1250_v57 = vpack.c.bf16 %v1228_v62, %v1227_v15  ;;  %3926 = vmatpush3.bf16.msra.mxu1 %v4302_v54  ;;  %4039 = vmatprep.subr.bf16.mxu0 %v4305_v9 }
 0x267   : > { %3927 = vmatprep.subr.bf16.mxu1 %v4304_v7  ;;  %4040 = vmatpush3.bf16.msra.mxu0 %v4307_v29 }
 0x268   : > { %4041 = vmatprep.subr.bf16.mxu0 %v4309_v33 }
 0x26a   : > { %3928 = vmatpush3.bf16.msra.mxu1 %v4306_v26 }
 0x26b   : > { %3929 = vmatprep.subr.bf16.mxu1 %v4308_v18  ;;  %4042 = vmatpush3.bf16.msra.mxu0 %v4311_v36 }
 0x26c   : > { %1584 = vmatmul.mubr.bf16.gmra.mxu1 %v1249_v5  ;;  %1777 = vmatmul.mubr.bf16.gmra.mxu0 %v1249_v5  ;;  %v4319_v5 = vld [vmem:[%s7500_s8 + $0x80] sm:$0xff]  }
 0x26d   : > { %1593 = vmatprep.mubr.bf16.mxu1 %v7677_v52  ;;  %1786 = vmatprep.mubr.bf16.mxu0 %v7677_v52 }
 0x26e   : > { %3930 = vmatpush3.bf16.msra.mxu1 %v4310_v35  ;;  %4043 = vmatprep.subr.bf16.mxu0 %v4313_v58 }
 0x26f   : > { %3931 = vmatprep.subr.bf16.mxu1 %v4312_v37  ;;  %4044 = vmatpush3.bf16.msra.mxu0 %v4315_v50 }
 0x270   : > { %4045 = vmatprep.subr.bf16.mxu0 %v4317_v22 }
 0x272   : > { %3932 = vmatpush3.bf16.msra.mxu1 %v4314_v6 }
 0x273   : > { %3933 = vmatprep.subr.bf16.mxu1 %v4316_v59  ;;  %4046 = vmatpush3.bf16.msra.mxu0 %v4319_v5 }
 0x274   : > { %1594 = vmatmul.mubr.bf16.gmra.mxu1 %v1250_v57  ;;  %1787 = vmatmul.mubr.bf16.gmra.mxu0 %v1250_v57 }
 0x275   : > { %1603 = vmatprep.mubr.bf16.mxu1 %v7677_v52  ;;  %1796 = vmatprep.mubr.bf16.mxu0 %v7677_v52 }
 0x276   : > { %3934 = vmatpush3.bf16.msra.mxu1 %v4318_v61 }
 0x2a0   : > { %v1014_v49 = vpop.xlane.xlu0 %1013 }
 0x2a1   : > { %v1057_v12 = vmul.f32 0.0078125, %v1014_v49 }
 0x2a3   : > { %v1089_v62 = vadd.f32 1e-05, %v1057_v12 }
 0x2a4   : > { %v1016_v15 = vpop.xlane.xlu1 %1015 }
 0x2a5   : > { %4360 = vrsqrt.f32 %v1089_v62  ;;  %v1058_v57 = vmul.f32 0.0078125, %v1016_v15 }
 0x2a7   : > { %v1090_v63 = vadd.f32 1e-05, %v1058_v57 }
 0x2a8   : > { %v1018_v3 = vpop.xlane.xlu0 %1017 }
 0x2a9   : > { %4362 = vrsqrt.f32 %v1090_v63  ;;  %v1059_v16 = vmul.f32 0.0078125, %v1018_v3 }
 0x2ab   : > { %v1091_v25 = vadd.f32 1e-05, %v1059_v16 }
 0x2ac   : > { %v1020_v46 = vpop.xlane.xlu1 %1019 }
 0x2ad   : > { %4364 = vrsqrt.f32 %v1091_v25  ;;  %v1060_v28 = vmul.f32 0.0078125, %v1020_v46 }
 0x2af   : > { %v1092_v54 = vadd.f32 1e-05, %v1060_v28 }
 0x2b0   : > { %v1022_v14 = vpop.xlane.xlu0 %1021 }
 0x2b1   : > { %4366 = vrsqrt.f32 %v1092_v54  ;;  %v1061_v7 = vmul.f32 0.0078125, %v1022_v14 }
 0x2b2   : > { %v4361_v9 = vpop.eup %4360 }
 0x2b3   : > { %v1093_v26 = vadd.f32 1e-05, %v1061_v7  ;;  %v1153_v29 = vmul.f32 %v4361_v9, %v5141_v17 }
 0x2b4   : > { %v1024_v18 = vpop.xlane.xlu1 %1023 }
 0x2b5   : > { %4368 = vrsqrt.f32 %v1093_v26  ;;  %v1062_v33 = vmul.f32 0.0078125, %v1024_v18  ;;  %v1191_v58 = vmul.f32 %v5164_v40, %v1153_v29 }
 0x2b6   : > { %v4363_v35 = vpop.eup %4362 }
 0x2b7   : > { %v1094_v36 = vadd.f32 1e-05, %v1062_v33  ;;  %v1154_v37 = vmul.f32 %v4363_v35, %v5146_v32  ;;  %v1229_v5 = vadd.f32 %v5176_v43, %v1191_v58 }
 0x2b8   : > { %v1026_v6 = vpop.xlane.xlu0 %1025 }
 0x2b9   : > { %4370 = vrsqrt.f32 %v1094_v36  ;;  %v1063_v50 = vmul.f32 0.0078125, %v1026_v6  ;;  %v1192_v59 = vmul.f32 %v5164_v40, %v1154_v37 }
 0x2ba   : > { %v4365_v22 = vpop.eup %4364 }
 0x2bb   : > { %v1095_v61 = vadd.f32 1e-05, %v1063_v50  ;;  %v1230_v17 = vadd.f32 %v5176_v43, %v1192_v59  ;;  %v1155_v49 = vmul.f32 %v4365_v22, %v5151_v45 }
 0x2bc   : > { %v1028_v12 = vpop.xlane.xlu1 %1027 }
 0x2bd   : > { %4372 = vrsqrt.f32 %v1095_v61  ;;  %v1064_v62 = vmul.f32 0.0078125, %v1028_v12  ;;  %v1251_v15 = vpack.c.bf16 %v1230_v17, %v1229_v5  ;;  %v1193_v3 = vmul.f32 %v5164_v40, %v1155_v49 }
 0x2be   : > { %v4367_v32 = vpop.eup %4366 }
 0x2bf   : > { %v1096_v57 = vadd.f32 1e-05, %v1064_v62  ;;  %1604 = vmatmul.mubr.bf16.gmra.mxu1 %v1251_v15  ;;  %1797 = vmatmul.mubr.bf16.gmra.mxu0 %v1251_v15  ;;  %v1156_v63 = vmul.f32 %v4367_v32, %v5156_v42  ;;  %v1231_v54 = vadd.f32 %v5176_v43, %v1193_v3 }
 0x2c0   : > { %v1030_v16 = vpop.xlane.xlu0 %1029  ;;  %1613 = vmatprep.mubr.bf16.mxu1 %v7677_v52  ;;  %1806 = vmatprep.mubr.bf16.mxu0 %v7677_v52 }
 0x2c1   : > { %4374 = vrsqrt.f32 %v1096_v57  ;;  %v1065_v25 = vmul.f32 0.0078125, %v1030_v16  ;;  %v1194_v45 = vmul.f32 %v5164_v40, %v1156_v63 }
 0x2c2   : > { %v4369_v46 = vpop.eup %4368 }
 0x2c3   : > { %v1097_v28 = vadd.f32 1e-05, %v1065_v25  ;;  %v1232_v14 = vadd.f32 %v5176_v43, %v1194_v45  ;;  %v1157_v7 = vmul.f32 %v4369_v46, %v5168_v24 }
 0x2c4   : > { %v1032_v42 = vpop.xlane.xlu1 %1031 }
 0x2c5   : > { %4376 = vrsqrt.f32 %v1097_v28  ;;  %v1066_v9 = vmul.f32 0.0078125, %v1032_v42  ;;  %v1252_v26 = vpack.c.bf16 %v1232_v14, %v1231_v54  ;;  %v1195_v35 = vmul.f32 %v5164_v40, %v1157_v7 }
 0x2c6   : > { %v4371_v29 = vpop.eup %4370  ;;  %v1291_v7 = vlaneseq }
 0x2c7   : > { %v1098_v18 = vadd.f32 1e-05, %v1066_v9  ;;  %1614 = vmatmul.mubr.bf16.gmra.mxu1 %v1252_v26  ;;  %1807 = vmatmul.mubr.bf16.gmra.mxu0 %v1252_v26  ;;  %v1158_v33 = vmul.f32 %v4371_v29, %v5180_v2  ;;  %v1233_v50 = vadd.f32 %v5176_v43, %v1195_v35 }
 0x2c8   : > { %v1034_v36 = vpop.xlane.xlu0 %1033  ;;  %1623 = vmatprep.mubr.bf16.mxu1 %v7677_v52  ;;  %1816 = vmatprep.mubr.bf16.mxu0 %v7677_v52  ;;  %v1292_v29 = vshrl.u32 %v1291_v7, 7 }
 0x2c9   : > { %4378 = vrsqrt.f32 %v1098_v18  ;;  %v1067_v37 = vmul.f32 0.0078125, %v1034_v36  ;;  %v1196_v24 = vmul.f32 %v5164_v40, %v1158_v33 }
 0x2ca   : > { %v4373_v58 = vpop.eup %4372  ;;  %v1293_v35 = vsub.s32 0, %v1292_v29  ;;  %v1301_v36 = vsub.s32 2, %v1292_v29 }
 0x2cb   : > { %v1099_v6 = vadd.f32 1e-05, %v1067_v37  ;;  %v1234_v59 = vadd.f32 %v5176_v43, %v1196_v24  ;;  %v1159_v22 = vmul.f32 %v4373_v58, %v5188_v53  ;;  %v1297_v37 = vsub.s32 1, %v1292_v29 }
 0x2cc   : > { %v1036_v2 = vpop.xlane.xlu1 %1035  ;;  %v1305_v24 = vsub.s32 3, %v1292_v29 }
 0x2cd   : > { %4380 = vrsqrt.f32 %v1099_v6  ;;  %v1068_v61 = vmul.f32 0.0078125, %v1036_v2  ;;  %v1253_v5 = vpack.c.bf16 %v1234_v59, %v1233_v50  ;;  %v1197_v62 = vmul.f32 %v5164_v40, %v1159_v22 }
 0x2ce   : > { %v4375_v17 = vpop.eup %4374 }
 0x2cf   : > { %v1100_v49 = vadd.f32 1e-05, %v1068_v61  ;;  %1624 = vmatmul.mubr.bf16.gmra.mxu1 %v1253_v5  ;;  %1817 = vmatmul.mubr.bf16.gmra.mxu0 %v1253_v5  ;;  %v1160_v12 = vmul.f32 %v4375_v17, %v5198_v21  ;;  %v1235_v32 = vadd.f32 %v5176_v43, %v1197_v62 }
 0x2d0   : > { %1633 = vmatprep.mubr.bf16.mxu1 %v7677_v52  ;;  %1826 = vmatprep.mubr.bf16.mxu0 %v7677_v52 }
 0x2d1   : > { %4382 = vrsqrt.f32 %v1100_v49  ;;  %v1198_v15 = vmul.f32 %v5164_v40, %v1160_v12 }
 0x2d2   : > { %v4377_v53 = vpop.eup %4376 }
 0x2d3   : > { %v1236_v57 = vadd.f32 %v5176_v43, %v1198_v15  ;;  %v1161_v63 = vmul.f32 %v4377_v53, %v5206_v8 }
 0x2d5   : > { %v1254_v3 = vpack.c.bf16 %v1236_v57, %v1235_v32  ;;  %v1199_v25 = vmul.f32 %v5164_v40, %v1161_v63 }
 0x2d6   : > { %v4379_v16 = vpop.eup %4378 }
 0x2d7   : > { %1634 = vmatmul.mubr.bf16.gmra.mxu1 %v1254_v3  ;;  %1827 = vmatmul.mubr.bf16.gmra.mxu0 %v1254_v3  ;;  %v1162_v21 = vmul.f32 %v4379_v16, %v5216_v56  ;;  %v1237_v28 = vadd.f32 %v5176_v43, %v1199_v25 }
 0x2d8   : > { %1643 = vmatprep.mubr.bf16.mxu1 %v7677_v52  ;;  %1836 = vmatprep.mubr.bf16.mxu0 %v7677_v52 }
 0x2d9   : > { %v1200_v45 = vmul.f32 %v5164_v40, %v1162_v21 }
 0x2da   : > { %v4381_v46 = vpop.eup %4380 }
 0x2db   : > { %v1238_v54 = vadd.f32 %v5176_v43, %v1200_v45  ;;  %v1163_v8 = vmul.f32 %v4381_v46, %v5224_v23 }
 0x2dd   : > { %v1255_v14 = vpack.c.bf16 %v1238_v54, %v1237_v28  ;;  %v1201_v9 = vmul.f32 %v5164_v40, %v1163_v8 }
 0x2de   : > { %v4383_v42 = vpop.eup %4382 }
 0x2df   : > { %1644 = vmatmul.mubr.bf16.gmra.mxu1 %v1255_v14  ;;  %1837 = vmatmul.mubr.bf16.gmra.mxu0 %v1255_v14  ;;  %v1164_v56 = vmul.f32 %v4383_v42, %v5234_v39  ;;  %v1239_v18 = vadd.f32 %v5176_v43, %v1201_v9  ;;  %v1289_v39 = vld [vmem:[%s7499_s7] sm:$0xf] }
 0x2e0   : > { %1653 = vmatprep.mubr.bf16.mxu1 %v7677_v52  ;;  %1846 = vmatprep.mubr.bf16.mxu0 %v7677_v52  ;;  %v5435_v58 = vrot.slane %v1289_v39, %v1293_v35  ;;  %v5437_v52 = vrot.slane %v1289_v39, %v1301_v36  ;;  %v5439_v50 = vrot.slane %v1289_v39, %v1297_v37 }
 0x2e1   : > { %v1202_v26 = vmul.f32 %v5164_v40, %v1164_v56 }
 0x2e2   : > { %7678 = vst [vmem:[#allocation34_spill] sm:$0xff] %v5435_v58  ;;  %7679 = vst [vmem:[#allocation35_spill] sm:$0xff] %v5437_v52 }
 0x2e3   : > { %v1240_v23 = vadd.f32 %v5176_v43, %v1202_v26  ;;  %7680 = vst [vmem:[#allocation36_spill] sm:$0xff] %v5439_v50  ;;  %v5441_v43 = vrot.slane %v1289_v39, %v1305_v24 }
 0x2e5   : > { %v1256_v33 = vpack.c.bf16 %v1240_v23, %v1239_v18  ;;  %7681 = vst [vmem:[#allocation37_spill] sm:$0xff] %v5441_v43 }
 0x2e7   : > { %1654 = vmatmul.mubr.bf16.gmra.mxu1 %v1256_v33  ;;  %1847 = vmatmul.mubr.bf16.gmra.mxu0 %v1256_v33 }
 0x2ec   : > { %v1505_v40 = vpop.f32.mrf.mxu1  ;;  %v1698_v6 = vpop.f32.mrf.mxu0 }
 0x2ed   : > { %v1506_v59 = vadd.f32 %v1505_v40, %v5435_v58  ;;  %v1699_v22 = vadd.f32 %v1698_v6, %v5437_v52 }
 0x2ee   : > { %v1507_v2 = vpop.f32.mrf.mxu1  ;;  %v1700_v61 = vpop.f32.mrf.mxu0 }
 0x2ef   : > { %v1985_v5 = vmul.f32 0.044715, %v1506_v59  ;;  %v1987_v17 = vmul.f32 0.044715, %v1699_v22  ;;  %v5446_v49 = vadd.f32 %v1507_v2, %v5439_v50  ;;  %v5449_v12 = vadd.f32 %v1700_v61, %v5441_v43 }
 0x2f0   : > { %v1509_v62 = vpop.f32.mrf.mxu1  ;;  %v1702_v15 = vpop.f32.mrf.mxu0  ;;  %v5455_v45 = vmul.f32 0.5, %v1506_v59  ;;  %v5457_v8 = vmul.f32 0.5, %v1699_v22 }
 0x2f1   : > { %v2113_v53 = vmul.f32 %v1985_v5, %v1506_v59  ;;  %v2115_v32 = vmul.f32 %v1987_v17, %v1699_v22  ;;  %v1510_v57 = vadd.f32 %v1509_v62, %v5435_v58  ;;  %v1703_v63 = vadd.f32 %v1702_v15, %v5437_v52 }
 0x2f2   : > { %v1986_v3 = vmul.f32 0.044715, %v5446_v49  ;;  %v1988_v16 = vmul.f32 0.044715, %v5449_v12  ;;  %v1511_v21 = vpop.f32.mrf.mxu1  ;;  %v1704_v25 = vpop.f32.mrf.mxu0  ;;  %v5460_v56 = vmul.f32 0.5, %v5446_v49  ;;  %v5463_v9 = vmul.f32 0.5, %v5449_v12 }
 0x2f3   : > { %v2241_v46 = vmul.f32 %v2113_v53, %v1506_v59  ;;  %v2243_v28 = vmul.f32 %v2115_v32, %v1699_v22  ;;  %v1989_v54 = vmul.f32 0.044715, %v1510_v57  ;;  %v1991_v14 = vmul.f32 0.044715, %v1703_v63 }
 0x2f4   : > { %v1515_v7 = vpop.f32.mrf.mxu1  ;;  %v1708_v42 = vpop.f32.mrf.mxu0  ;;  %v5466_v23 = vadd.f32 %v1511_v21, %v5439_v50  ;;  %v2114_v33 = vmul.f32 %v1986_v3, %v5446_v49  ;;  %v2116_v35 = vmul.f32 %v1988_v16, %v5449_v12  ;;  %v5471_v39 = vadd.f32 %v1704_v25, %v5441_v43 }
 0x2f5   : > { %v2369_v26 = vadd.f32 %v2241_v46, %v1506_v59  ;;  %v2371_v29 = vadd.f32 %v2243_v28, %v1699_v22  ;;  %v2117_v18 = vmul.f32 %v1989_v54, %v1510_v57  ;;  %v2119_v36 = vmul.f32 %v1991_v14, %v1703_v63 }
 0x2f6   : > { %v1517_v37 = vpop.f32.mrf.mxu1  ;;  %v1710_v24 = vpop.f32.mrf.mxu0  ;;  %v1990_v59 = vmul.f32 0.044715, %v5466_v23  ;;  %v1992_v61 = vmul.f32 0.044715, %v5471_v39  ;;  %v5476_v5 = vadd.f32 %v1515_v7, %v5435_v58  ;;  %v5479_v17 = vadd.f32 %v1708_v42, %v5437_v52 }
 0x2f7   : > { %v2497_v40 = vmul.f32 0.7978846, %v2369_v26  ;;  %v2499_v6 = vmul.f32 0.7978846, %v2371_v29  ;;  %v2245_v2 = vmul.f32 %v2117_v18, %v1510_v57  ;;  %v2247_v22 = vmul.f32 %v2119_v36, %v1703_v63 }
 0x2f8   : > { %7682 = vst [vmem:[#allocation38_spill] sm:$0xff] %v5479_v17  ;;  %v1519_v62 = vpop.f32.mrf.mxu1  ;;  %v1712_v15 = vpop.f32.mrf.mxu0  ;;  %v5481_v53 = vmul.f32 0.5, %v1510_v57  ;;  %v2118_v3 = vmul.f32 %v1990_v59, %v5466_v23  ;;  %v5485_v16 = vadd.f32 %v1517_v37, %v5439_v50  ;;  %v5487_v21 = vmul.f32 0.5, %v1703_v63 }
 0x2f9   : > { %v2373_v32 = vadd.f32 %v2245_v2, %v1510_v57  ;;  %v2375_v25 = vadd.f32 %v2247_v22, %v1703_v63  ;;  %v2120_v46 = vmul.f32 %v1992_v61, %v5471_v39  ;;  %v1993_v28 = vmul.f32 0.044715, %v5476_v5 }
 0x2fa   : > { %v1521_v54 = vpop.f32.mrf.mxu1  ;;  %v1714_v14 = vpop.f32.mrf.mxu0  ;;  %4384 = vtanh.f32 %v2497_v40  ;;  %v1995_v42 = vmul.f32 0.044715, %v5479_v17  ;;  %v1994_v57 = vmul.f32 0.044715, %v5485_v16  ;;  %v5494_v26 = vmul.f32 %v2114_v33, %v5446_v49 }
 0x2fb   : > { %v2501_v7 = vmul.f32 0.7978846, %v2373_v32  ;;  %4386 = vtanh.f32 %v2499_v6  ;;  %v5497_v29 = vmul.f32 %v2116_v35, %v5449_v12  ;;  %v5500_v63 = vadd.f32 %v1710_v24, %v5441_v43 }
 0x2fc   : > { %v1525_v18 = vpop.f32.mrf.mxu1  ;;  %v1718_v36 = vpop.f32.mrf.mxu0  ;;  %v2503_v37 = vmul.f32 0.7978846, %v2375_v25  ;;  %v5503_v40 = vmul.f32 %v2118_v3, %v5466_v23  ;;  %v5506_v2 = vmul.f32 %v2120_v46, %v5471_v39  ;;  %v5509_v6 = vadd.f32 %v1519_v62, %v5435_v58 }
 0x2fd   : > { %4388 = vtanh.f32 %v2501_v7  ;;  %v2121_v33 = vmul.f32 %v1993_v28, %v5476_v5  ;;  %v1996_v35 = vmul.f32 0.044715, %v5500_v63  ;;  %v5514_v24 = vadd.f32 %v1712_v15, %v5437_v52 }
 0x2fe   : > { %7683 = vst [vmem:[#allocation39_spill] sm:$0xff] %v5509_v6  ;;  %v1527_v59 = vpop.f32.mrf.mxu1  ;;  %v1720_v22 = vpop.f32.mrf.mxu0  ;;  %v2123_v61 = vmul.f32 %v1995_v42, %v5479_v17  ;;  %v2122_v32 = vmul.f32 %v1994_v57, %v5485_v16  ;;  %v1997_v3 = vmul.f32 0.044715, %v5509_v6  ;;  %v5520_v25 = vadd.f32 %v1521_v54, %v5439_v50 }
 0x2ff   : > { %7684 = vst [vmem:[#allocation40_spill] sm:$0xff] %v5514_v24  ;;  %v2124_v62 = vmul.f32 %v1996_v35, %v5500_v63  ;;  %v1999_v46 = vmul.f32 0.044715, %v5514_v24  ;;  %v5525_v28 = vadd.f32 %v1714_v14, %v5441_v43  ;;  %v5528_v15 = vadd.f32 %v1525_v18, %v5435_v58 }
 0x300   : > { %v1529_v7 = vpop.f32.mrf.mxu1  ;;  %v1722_v11 = vpop.f32.mrf.mxu0  ;;  %v2125_v42 = vmul.f32 %v1997_v3, %v5509_v6  ;;  %v1998_v57 = vmul.f32 0.044715, %v5520_v25  ;;  %v5533_v47 = vadd.f32 %v1718_v36, %v5437_v52  ;;  %v5536_v54 = vadd.f32 %v1527_v59, %v5439_v50 }
 0x301   : > { %7685 = vst [vmem:[#allocation41_spill] sm:$0xff] %v5528_v15  ;;  %4390 = vtanh.f32 %v2503_v37  ;;  %v2127_v35 = vmul.f32 %v1999_v46, %v5514_v24  ;;  %v2000_v14 = vmul.f32 0.044715, %v5525_v28  ;;  %v2001_v18 = vmul.f32 0.044715, %v5528_v15 }
 0x302   : > { %7686 = vst [vmem:[#allocation42_spill] sm:$0xff] %v5533_v47  ;;  %7687 = vst [vmem:[#allocation43_spill] sm:$0xff] %v5536_v54  ;;  %v1531_v27 = vpop.f32.mrf.mxu1  ;;  %v1724_v60 = vpop.f32.mrf.mxu0  ;;  %v5542_v20 = vmul.f32 %v2121_v33, %v5476_v5  ;;  %v2126_v3 = vmul.f32 %v1998_v57, %v5520_v25  ;;  %v2003_v36 = vmul.f32 0.044715, %v5533_v47  ;;  %v2002_v44 = vmul.f32 0.044715, %v5536_v54 }
 0x303   : > { %v5548_v59 = vmul.f32 %v2123_v61, %v5479_v17  ;;  %v5551_v37 = vmul.f32 %v2122_v32, %v5485_v16  ;;  %v5554_v46 = vmul.f32 %v2124_v62, %v5500_v63  ;;  %v5557_v31 = vadd.f32 %v1720_v22, %v5441_v43 }
 0x304   : > { %7688 = vst [vmem:[#allocation44_spill] sm:$0xff] %v5542_v20  ;;  %v1535_v33 = vpop.f32.mrf.mxu1  ;;  %v1728_v19 = vpop.f32.mrf.mxu0  ;;  %v5560_v57 = vmul.f32 %v2125_v42, %v5509_v6  ;;  %v5563_v13 = vmul.f32 %v2127_v35, %v5514_v24  ;;  %v2128_v61 = vmul.f32 %v2000_v14, %v5525_v28  ;;  %v5567_v4 = vadd.f32 %v1529_v7, %v5435_v58 }
 0x305   : > { %7689 = vst [vmem:[#allocation45_spill] sm:$0xff] %v5548_v59  ;;  %7690 = vst [vmem:[#allocation46_spill] sm:$0xff] %v5557_v31  ;;  %v5570_v32 = vmul.f32 %v2126_v3, %v5520_v25  ;;  %v2129_v62 = vmul.f32 %v2001_v18, %v5528_v15  ;;  %v2004_v22 = vmul.f32 0.044715, %v5557_v31  ;;  %v5575_v10 = vadd.f32 %v1722_v11, %v5437_v52 }
 0x306   : > { %7691 = vst [vmem:[#allocation47_spill] sm:$0xff] %v5560_v57  ;;  %7692 = vst [vmem:[#allocation48_spill] sm:$0xff] %v5563_v13  ;;  %v1537_v42 = vpop.f32.mrf.mxu1  ;;  %v1730_v1 = vpop.f32.mrf.mxu0  ;;  %v2131_v35 = vmul.f32 %v2003_v36, %v5533_v47  ;;  %v2130_v0 = vmul.f32 %v2002_v44, %v5536_v54  ;;  %v2005_v14 = vmul.f32 0.044715, %v5567_v4  ;;  %v5581_v7 = vadd.f32 %v1531_v27, %v5439_v50 }
 0x307   : > { %7693 = vst [vmem:[#allocation49_spill] sm:$0xff] %v5567_v4  ;;  %7694 = vst [vmem:[#allocation50_spill] sm:$0xff] %v5575_v10  ;;  %v5583_v3 = vpop.eup %4384  ;;  %v2132_v18 = vmul.f32 %v2004_v22, %v5557_v31  ;;  %v2007_v51 = vmul.f32 0.044715, %v5575_v10  ;;  %v5588_v11 = vadd.f32 %v1724_v60, %v5441_v43  ;;  %v5591_v55 = vadd.f32 %v1535_v33, %v5435_v58 }
 0x308   : > { %7695 = vst [vmem:[#allocation51_spill] sm:$0xff] %v5581_v7  ;;  %v1539_v36 = vpop.f32.mrf.mxu1  ;;  %v1732_v48 = vpop.f32.mrf.mxu0  ;;  %v2133_v38 = vmul.f32 %v2005_v14, %v5567_v4  ;;  %v2006_v27 = vmul.f32 0.044715, %v5581_v7  ;;  %v5598_v30 = vadd.f32 %v1728_v19, %v5437_v52  ;;  %v5601_v22 = vadd.f32 %v1537_v42, %v5439_v50 }
 0x309   : > { %7696 = vst [vmem:[#allocation52_spill] sm:$0xff] %v5588_v11  ;;  %7697 = vst [vmem:[#allocation53_spill] sm:$0xff] %v5591_v55  ;;  %v5593_v44 = vpop.eup %4386  ;;  %v5604_v60 = vmul.f32 %v2128_v61, %v5525_v28  ;;  %v2135_v33 = vmul.f32 %v2007_v51, %v5575_v10  ;;  %v2008_v41 = vmul.f32 0.044715, %v5588_v11  ;;  %v2009_v34 = vmul.f32 0.044715, %v5591_v55 }
 0x30a   : > { %7698 = vst [vmem:[#allocation54_spill] sm:$0xff] %v5598_v30  ;;  %v1541_v13 = vpop.f32.mrf.mxu1  ;;  %v1734_v24 = vpop.f32.mrf.mxu0  ;;  %v5612_v59 = vmul.f32 %v2129_v62, %v5528_v15  ;;  %v2134_v19 = vmul.f32 %v2006_v27, %v5581_v7  ;;  %v2011_v42 = vmul.f32 0.044715, %v5598_v30  ;;  %v2010_v61 = vmul.f32 0.044715, %v5601_v22 }
 0x30b   : > { %v5609_v14 = vpop.eup %4388  ;;  %v5618_v17 = vmul.f32 %v2131_v35, %v5533_v47  ;;  %v5621_v51 = vmul.f32 %v2130_v0, %v5536_v54  ;;  %v5624_v57 = vmul.f32 %v2132_v18, %v5557_v31  ;;  %v5627_v6 = vadd.f32 %v1730_v1, %v5441_v43 }
 0x30c   : > { %7699 = vst [vmem:[#allocation55_spill] sm:$0xff] %v5612_v59  ;;  %v1545_v62 = vpop.f32.mrf.mxu1  ;;  %v1738_v59 = vpop.f32.mrf.mxu0  ;;  %v5630_v27 = vmul.f32 %v2133_v38, %v5567_v4  ;;  %v5633_v15 = vmul.f32 %v2135_v33, %v5575_v10  ;;  %v2136_v35 = vmul.f32 %v2008_v41, %v5588_v11  ;;  %v5640_v0 = vmul.f32 %v2134_v19, %v5581_v7 }
 0x30d   : > { %7700 = vst [vmem:[#allocation56_spill] sm:$0xff] %v5618_v17  ;;  %7701 = vst [vmem:[#allocation57_spill] sm:$0xff] %v5621_v51  ;;  %v5637_v17 = vadd.f32 %v1539_v36, %v5435_v58  ;;  %v2137_v18 = vmul.f32 %v2009_v34, %v5591_v55  ;;  %v2012_v1 = vmul.f32 0.044715, %v5627_v6  ;;  %v5645_v47 = vadd.f32 %v1732_v48, %v5437_v52 }
 0x30e   : > { %7702 = vst [vmem:[#allocation58_spill] sm:$0xff] %v5624_v57  ;;  %7703 = vst [vmem:[#allocation59_spill] sm:$0xff] %v5630_v27  ;;  %v1547_v38 = vpop.f32.mrf.mxu1  ;;  %v1740_v27 = vpop.f32.mrf.mxu0  ;;  %v2139_v33 = vmul.f32 %v2011_v42, %v5598_v30  ;;  %v2138_v41 = vmul.f32 %v2010_v61, %v5601_v22  ;;  %v5653_v19 = vadd.f32 %v1541_v13, %v5439_v50 }
 0x30f   : > { %7704 = vst [vmem:[#allocation60_spill] sm:$0xff] %v5633_v15  ;;  %7705 = vst [vmem:[#allocation61_spill] sm:$0xff] %v5640_v0  ;;  %v5647_v4 = vpop.eup %4390  ;;  %v2013_v36 = vmul.f32 0.044715, %v5637_v17  ;;  %v2140_v34 = vmul.f32 %v2012_v1, %v5627_v6  ;;  %v2015_v15 = vmul.f32 0.044715, %v5645_v47  ;;  %v5658_v48 = vadd.f32 %v1734_v24, %v5441_v43 }
 0x310   : > { %7706 = vst [vmem:[#allocation62_spill] sm:$0xff] %v5645_v47  ;;  %v5661_v10 = vadd.f32 %v1545_v62, %v5435_v58  ;;  %v1549_v57 = vpop.f32.mrf.mxu1  ;;  %v1742_v31 = vpop.f32.mrf.mxu0  ;;  %v2014_v61 = vmul.f32 0.044715, %v5653_v19  ;;  %v5666_v0 = vadd.f32 %v1738_v59, %v5437_v52  ;;  %v5669_v13 = vadd.f32 %v1547_v38, %v5439_v50 }
 0x311   : > { %v2141_v42 = vmul.f32 %v2013_v36, %v5637_v17  ;;  %v5672_v1 = vmul.f32 %v2136_v35, %v5588_v11  ;;  %v5675_v24 = vmul.f32 %v2137_v18, %v5591_v55  ;;  %v2016_v62 = vmul.f32 0.044715, %v5658_v48 }
 0x312   : > { %7707 = vst [vmem:[#allocation63_spill] sm:$0xff] %v5661_v10  ;;  %7708 = vst [vmem:[#allocation64_spill] sm:$0xff] %v5666_v0  ;;  %v2017_v7 = vmul.f32 0.044715, %v5661_v10  ;;  %v1551_v51 = vpop.f32.mrf.mxu1  ;;  %v1744_v36 = vpop.f32.mrf.mxu0  ;;  %v2143_v54 = vmul.f32 %v2015_v15, %v5645_v47  ;;  %v2142_v59 = vmul.f32 %v2014_v61, %v5653_v19  ;;  %v2019_v20 = vmul.f32 0.044715, %v5666_v0 }
 0x313   : > { %7709 = vst [vmem:[#allocation65_spill] sm:$0xff] %v5672_v1  ;;  %7710 = vst [vmem:[#allocation66_spill] sm:$0xff] %v5675_v24  ;;  %v2018_v38 = vmul.f32 0.044715, %v5669_v13  ;;  %v5684_v35 = vmul.f32 %v2139_v33, %v5598_v30  ;;  %v5687_v18 = vmul.f32 %v2138_v41, %v5601_v22  ;;  %v2144_v24 = vmul.f32 %v2016_v62, %v5658_v48 }
 0x314   : > { %v5691_v55 = vadd.f32 %v1740_v27, %v5441_v43  ;;  %v5694_v1 = vmul.f32 %v2140_v34, %v5627_v6  ;;  %v5697_v15 = vmul.f32 %v2141_v42, %v5637_v17  ;;  %v2145_v61 = vmul.f32 %v2017_v7, %v5661_v10  ;;  %v1748_v34 = vpop.f32.mrf.mxu0 }
 0x315   : > { %7711 = vst [vmem:[#allocation67_spill] sm:$0xff] %v5684_v35  ;;  %v5701_v11 = vadd.f32 %v1549_v57, %v5435_v58  ;;  %v2147_v33 = vmul.f32 %v2019_v20, %v5666_v0  ;;  %v2146_v41 = vmul.f32 %v2018_v38, %v5669_v13  ;;  %v5707_v27 = vadd.f32 %v1742_v31, %v5437_v52  ;;  %v1555_v35 = vpop.f32.mrf.mxu1 }
 0x316   : > { %7712 = vst [vmem:[#allocation68_spill] sm:$0xff] %v5691_v55  ;;  %7713 = vst [vmem:[#allocation69_spill] sm:$0xff] %v5697_v15  ;;  %v2020_v62 = vmul.f32 0.044715, %v5691_v55  ;;  %v5710_v30 = vmul.f32 %v2143_v54, %v5645_v47  ;;  %v5713_v42 = vmul.f32 %v2142_v59, %v5653_v19  ;;  %v5717_v7 = vadd.f32 %v1551_v51, %v5439_v50 }
 0x317   : > { %v2021_v57 = vmul.f32 0.044715, %v5701_v11  ;;  %v5720_v20 = vmul.f32 %v2144_v24, %v5658_v48  ;;  %v2023_v31 = vmul.f32 0.044715, %v5707_v27  ;;  %v5725_v15 = vadd.f32 %v1744_v36, %v5441_v43 }
 0x318   : > { %7714 = vst [vmem:[#allocation70_spill] sm:$0xff] %v5710_v30  ;;  %v2148_v38 = vmul.f32 %v2020_v62, %v5691_v55  ;;  %v5728_v54 = vmul.f32 %v2145_v61, %v5661_v10  ;;  %v2022_v59 = vmul.f32 0.044715, %v5717_v7  ;;  %v2370_v30 = vadd.f32 %v5494_v26, %v5446_v49  ;;  %v1557_v61 = vpop.f32.mrf.mxu1 }
 0x319   : > { %v2374_v51 = vadd.f32 %v5503_v40, %v5466_v23  ;;  %v5736_v24 = vmul.f32 %v2147_v33, %v5666_v0  ;;  %v5739_v62 = vmul.f32 %v2146_v41, %v5669_v13  ;;  %v2024_v36 = vmul.f32 0.044715, %v5725_v15 }
 0x31a   : > { %7715 = vst [vmem:[#allocation71_spill] sm:$0xff] %v5728_v54  ;;  %v5743_v47 = vmul.f32 0.5, %v5466_v23  ;;  %v1750_v54 = vpop.f32.mrf.mxu0  ;;  %v5746_v10 = vmul.f32 %v2148_v38, %v5691_v55  ;;  %v2149_v49 = vmul.f32 %v2021_v57, %v5701_v11  ;;  %v2498_v26 = vmul.f32 0.7978846, %v2370_v30 }
 0x31b   : > { %7716 = vst [vmem:[#allocation72_spill] sm:$0xff] %v5736_v24  ;;  %v2502_v40 = vmul.f32 0.7978846, %v2374_v51  ;;  %v2151_v33 = vmul.f32 %v2023_v31, %v5707_v27  ;;  %v5751_v24 = vmul.f32 0.5, %v5471_v39  ;;  %v2372_v41 = vadd.f32 %v5497_v29, %v5449_v12 }
 0x31c   : > { %7717 = vst [vmem:[#allocation73_spill] sm:$0xff] %v5746_v10  ;;  %v2376_v23 = vadd.f32 %v5506_v2, %v5471_v39  ;;  %v2150_v0 = vmul.f32 %v2022_v59, %v5717_v7  ;;  %4392 = vtanh.f32 %v2498_v26  ;;  %v5759_v38 = vadd.f32 %v1555_v35, %v5435_v58  ;;  %v1559_v10 = vpop.f32.mrf.mxu1  ;;  %v1752_v55 = vpop.f32.mrf.mxu0 }
 0x31d   : > { %v5762_v30 = vadd.f32 %v1748_v34, %v5437_v52  ;;  %v2152_v57 = vmul.f32 %v2024_v36, %v5725_v15  ;;  %4394 = vtanh.f32 %v2502_v40  ;;  %v2500_v31 = vmul.f32 0.7978846, %v2372_v41 }
 0x31e   : > { %7718 = vst [vmem:[#allocation74_spill] sm:$0xff] %v5759_v38  ;;  %v2504_v51 = vmul.f32 0.7978846, %v2376_v23  ;;  %v2025_v12 = vmul.f32 0.044715, %v5759_v38  ;;  %v2753_v29 = vadd.f32 1.0, %v5583_v3  ;;  %v5772_v59 = vadd.f32 %v1557_v61, %v5439_v50  ;;  %v1561_v61 = vpop.f32.mrf.mxu1  ;;  %v1754_v41 = vpop.f32.mrf.mxu0 }
 0x31f   : > { %7719 = vst [vmem:[#allocation75_spill] sm:$0xff] %v5762_v30  ;;  %v2027_v39 = vmul.f32 0.044715, %v5762_v30  ;;  %v2757_v2 = vadd.f32 1.0, %v5609_v14  ;;  %4396 = vtanh.f32 %v2500_v31  ;;  %v2755_v35 = vadd.f32 1.0, %v5593_v44 }
 0x320   : > { %v2759_v34 = vadd.f32 1.0, %v5647_v4  ;;  %v5775_v36 = vmul.f32 %v2149_v49, %v5701_v11  ;;  %v5778_v26 = vmul.f32 %v2151_v33, %v5707_v27  ;;  %v5781_v40 = vmul.f32 %v2150_v0, %v5717_v7 }
 0x321   : > { %4398 = vtanh.f32 %v2504_v51  ;;  %v2153_v3 = vmul.f32 %v2025_v12, %v5759_v38  ;;  %v2155_v14 = vmul.f32 %v2027_v39, %v5762_v30  ;;  %v5786_v44 = vmul.f32 %v2757_v2, %v5481_v53 }
 0x322   : > { %v2026_v4 = vmul.f32 0.044715, %v5772_v59  ;;  %v5790_v49 = vmul.f32 %v2152_v57, %v5725_v15  ;;  %v5793_v33 = vmul.f32 %v2753_v29, %v5455_v45  ;;  %v5796_v0 = vadd.f32 %v1750_v54, %v5441_v43 }
 0x323   : > { %v5799_v23 = vadd.f32 %v1559_v10, %v5435_v58  ;;  %v5802_v31 = vmul.f32 %v2755_v35, %v5457_v8  ;;  %v5805_v53 = vmul.f32 %v2759_v34, %v5487_v21  ;;  %v5809_v57 = vadd.f32 %v1752_v55, %v5437_v52 }
 0x324   : > { %v2154_v51 = vmul.f32 %v2026_v4, %v5772_v59  ;;  %v2028_v45 = vmul.f32 0.044715, %v5796_v0  ;;  %v5814_v54 = vadd.f32 %v1561_v61, %v5439_v50  ;;  %v5817_v10 = vadd.f32 %v1754_v41, %v5441_v43  ;;  %v1565_v61 = vpop.f32.mrf.mxu1 }
 0x325   : > { %7720 = vst [vmem:[#allocation76_spill] sm:$0xff] %v5799_v23  ;;  %7721 = vst [vmem:[#allocation77_spill] sm:$0xff] %v5809_v57  ;;  %v2029_v12 = vmul.f32 0.044715, %v5799_v23  ;;  %v5820_v8 = vmul.f32 %v2153_v3, %v5759_v38  ;;  %v5823_v21 = vmul.f32 %v2155_v14, %v5762_v30  ;;  %v3009_v55 = vpack.c.bf16 %v5786_v44, %v5793_v33 }
 0x326   : > { %7722 = vst [vmem:[#allocation78_spill] sm:$0xff] %v5817_v10  ;;  %v2031_v39 = vmul.f32 0.044715, %v5809_v57  ;;  %v2156_v29 = vmul.f32 %v2028_v45, %v5796_v0  ;;  %v2030_v35 = vmul.f32 0.044715, %v5814_v54  ;;  %v5835_v4 = vmul.f32 %v2154_v51, %v5772_v59  ;;  %v1758_v51 = vpop.f32.mrf.mxu0 }
 0x327   : > { %7723 = vst [vmem:[#allocation79_spill] sm:$0xff] %v5820_v8  ;;  %7724 = vst [vmem:[#allocation80_spill] sm:$0xff] %v5823_v21  ;;  %v2157_v2 = vmul.f32 %v2029_v12, %v5799_v23  ;;  %v2032_v34 = vmul.f32 0.044715, %v5817_v10  ;;  %v2378_v14 = vadd.f32 %v5551_v37, %v5485_v16  ;;  %v2382_v44 = vadd.f32 %v5570_v32, %v5520_v25 }
 0x328   : > { %7725 = vst [vmem:[#allocation81_spill] sm:$0xff] %v5835_v4  ;;  %v2159_v41 = vmul.f32 %v2031_v39, %v5809_v57  ;;  %v5843_v33 = vmul.f32 0.5, %v5485_v16  ;;  %v5846_v45 = vmul.f32 0.5, %v5520_v25  ;;  %v5849_v12 = vmul.f32 0.5, %v5500_v63 }
 0x329   : > { %v4393_v3 = vpop.eup %4392  ;;  %v5852_v21 = vmul.f32 %v2156_v29, %v5796_v0  ;;  %v5855_v37 = vmul.f32 %v2157_v2, %v5799_v23  ;;  %v2506_v32 = vmul.f32 0.7978846, %v2378_v14  ;;  %v2510_v30 = vmul.f32 0.7978846, %v2382_v44  ;;  %v1567_v2 = vpop.f32.mrf.mxu1 }
 0x32a   : > { %v4395_v39 = vpop.eup %4394  ;;  %v2754_v8 = vadd.f32 1.0, %v4393_v3  ;;  %v2158_v16 = vmul.f32 %v2030_v35, %v5814_v54  ;;  %v2160_v25 = vmul.f32 %v2032_v34, %v5817_v10  ;;  %v2380_v38 = vadd.f32 %v5554_v46, %v5500_v63  ;;  %v1760_v34 = vpop.f32.mrf.mxu0 }
 0x32b   : > { %7726 = vst [vmem:[#allocation82_spill] sm:$0xff] %v5852_v21  ;;  %7727 = vst [vmem:[#allocation83_spill] sm:$0xff] %v5855_v37  ;;  %v2758_v4 = vadd.f32 1.0, %v4395_v39  ;;  %4400 = vtanh.f32 %v2506_v32  ;;  %v2384_v29 = vadd.f32 %v5604_v60, %v5525_v28  ;;  %v5864_v21 = vadd.f32 %v1565_v61, %v5435_v58 }
 0x32c   : > { %v4397_v14 = vpop.eup %4396  ;;  %v2882_v44 = vmul.f32 %v2754_v8, %v5460_v56  ;;  %4402 = vtanh.f32 %v2510_v30  ;;  %v2508_v3 = vmul.f32 0.7978846, %v2380_v38  ;;  %v5868_v35 = vadd.f32 %v1758_v51, %v5437_v52 }
 0x32d   : > { %7728 = vst [vmem:[#allocation84_spill] sm:$0xff] %v5864_v21  ;;  %v2886_v63 = vmul.f32 %v2758_v4, %v5743_v47  ;;  %v2756_v46 = vadd.f32 1.0, %v4397_v14  ;;  %v2512_v32 = vmul.f32 0.7978846, %v2384_v29  ;;  %v2033_v60 = vmul.f32 0.044715, %v5864_v21  ;;  %v1569_v47 = vpop.f32.mrf.mxu1  ;;  %v1762_v14 = vpop.f32.mrf.mxu0 }
 0x32e   : > { %7729 = vst [vmem:[#allocation85_spill] sm:$0xff] %v5868_v35  ;;  %v4399_v37 = vpop.eup %4398  ;;  %v5873_v61 = vmul.f32 %v2159_v41, %v5809_v57  ;;  %4404 = vtanh.f32 %v2508_v3  ;;  %v2035_v56 = vmul.f32 0.044715, %v5868_v35  ;;  %v5877_v38 = vmul.f32 %v2158_v16, %v5814_v54  ;;  %v7732_v41 = vld [vmem:[#allocation44_spill] sm:$0xff]  ;;  %v7733_v3 = vld [vmem:[#allocation39_spill] sm:$0xff] }
 0x32f   : > { %v2760_v39 = vadd.f32 1.0, %v4399_v37  ;;  %v3010_v30 = vpack.c.bf16 %v2886_v63, %v2882_v44  ;;  %v5880_v8 = vmul.f32 0.5, %v5525_v28  ;;  %4406 = vtanh.f32 %v2512_v32  ;;  %v7734_v63 = vld [vmem:[#allocation47_spill] sm:$0xff]  ;;  %v7735_v32 = vld [vmem:[#allocation38_spill] sm:$0xff] }
 0x330   : > { %7730 = vst [vmem:[#allocation86_spill] sm:$0xff] %v5873_v61  ;;  %v2884_v4 = vmul.f32 %v2756_v46, %v5463_v9  ;;  %v5885_v37 = vmul.f32 %v2160_v25, %v5817_v10  ;;  %v2377_v29 = vadd.f32 %v7732_v41, %v5476_v5  ;;  %v2161_v16 = vmul.f32 %v2033_v60, %v5864_v21  ;;  %v7737_v61 = vld [vmem:[#allocation40_spill] sm:$0xff] }
 0x331   : > { %v2888_v51 = vmul.f32 %v2760_v39, %v5751_v24  ;;  %3368 = vmatprep.mubr.bf16.mxu1 %v3010_v30  ;;  %v2163_v44 = vmul.f32 %v2035_v56, %v5868_v35  ;;  %v5892_v28 = vmul.f32 0.5, %v5476_v5  ;;  %v2381_v9 = vadd.f32 %v7734_v63, %v7733_v3  ;;  %v7736_v39 = vld [vmem:[#allocation45_spill] sm:$0xff]  ;;  %v7738_v60 = vld [vmem:[#allocation48_spill] sm:$0xff]  ;;  %v1571_v63 = vpop.f32.mrf.mxu1 }
 0x332   : > { %7731 = vst [vmem:[#allocation87_spill] sm:$0xff] %v5885_v37  ;;  %3369 = vmatmul.mubr.bf16.vlgmr.msra.gmra.mxu1 %v3009_v55  ;;  %v5897_v24 = vmul.f32 0.5, %v7733_v3  ;;  %v2505_v25 = vmul.f32 0.7978846, %v2377_v29  ;;  %v2379_v41 = vadd.f32 %v7736_v39, %v7735_v32  ;;  %v2383_v57 = vadd.f32 %v7738_v60, %v7737_v61  ;;  %v1764_v29 = vpop.f32.mrf.mxu0 }
 0x333   : > { %v3012_v46 = vpack.c.bf16 %v2888_v51, %v2884_v4  ;;  %v2509_v30 = vmul.f32 0.7978846, %v2381_v9  ;;  %v5904_v56 = vadd.f32 %v1567_v2, %v5439_v50  ;;  %v5907_v5 = vadd.f32 %v1760_v34, %v5441_v43  ;;  %v1575_v23 = vpop.f32.mrf.mxu1 }
 0x334   : > { %4408 = vtanh.f32 %v2505_v25  ;;  %v2507_v55 = vmul.f32 0.7978846, %v2379_v41  ;;  %v5910_v4 = vadd.f32 %v1569_v47, %v5435_v58  ;;  %v5913_v51 = vadd.f32 %v1762_v14, %v5437_v52 }
 0x335   : > { %7739 = vst [vmem:[#allocation44_spill] sm:$0xff] %v5904_v56  ;;  %7740 = vst [vmem:[#allocation39_spill] sm:$0xff] %v5907_v5  ;;  %3529 = vmatprep.mubr.bf16.mxu0 %v3012_v46  ;;  %v7743_v3 = vpack.c.bf16 %v5805_v53, %v5802_v31  ;;  %4410 = vtanh.f32 %v2509_v30  ;;  %v2511_v2 = vmul.f32 0.7978846, %v2383_v57  ;;  %v2034_v34 = vmul.f32 0.044715, %v5904_v56 }
 0x336   : > { %7741 = vst [vmem:[#allocation47_spill] sm:$0xff] %v5910_v4  ;;  %7742 = vst [vmem:[#allocation38_spill] sm:$0xff] %v5913_v51  ;;  %v2036_v9 = vmul.f32 0.044715, %v5907_v5  ;;  %4412 = vtanh.f32 %v2507_v55  ;;  %v2037_v46 = vmul.f32 0.044715, %v5910_v4  ;;  %v5923_v25 = vadd.f32 %v1571_v63, %v5439_v50 }
 0x337   : > { %3530 = vmatmul.mubr.bf16.vlgmr.msra.gmra.mxu0 %v7743_v3  ;;  %v2039_v47 = vmul.f32 0.044715, %v5913_v51  ;;  %4414 = vtanh.f32 %v2511_v2  ;;  %v2162_v14 = vmul.f32 %v2034_v34, %v5904_v56  ;;  %v5928_v53 = vadd.f32 %v1764_v29, %v5441_v43 }
 0x338   : > { %v2164_v31 = vmul.f32 %v2036_v9, %v5907_v5  ;;  %v4401_v57 = vpop.eup %4400  ;;  %v5931_v39 = vmul.f32 %v2161_v16, %v5864_v21  ;;  %v5934_v41 = vmul.f32 0.5, %v7735_v32  ;;  %v5937_v30 = vmul.f32 0.5, %v7737_v61  ;;  %v7748_v9 = vld [vmem:[#allocation43_spill] sm:$0xff] }
 0x339   : > { %7744 = vst [vmem:[#allocation45_spill] sm:$0xff] %v5928_v53  ;;  %v2038_v60 = vmul.f32 0.044715, %v5923_v25  ;;  %v4403_v63 = vpop.eup %4402  ;;  %v2762_v55 = vadd.f32 1.0, %v4401_v57  ;;  %v2165_v3 = vmul.f32 %v2037_v46, %v5910_v4  ;;  %v2167_v2 = vmul.f32 %v2039_v47, %v5913_v51  ;;  %v7750_v47 = vld [vmem:[#allocation57_spill] sm:$0xff] }
 0x33a   : > { %7745 = vst [vmem:[#allocation40_spill] sm:$0xff] %v5931_v39  ;;  %v2040_v29 = vmul.f32 0.044715, %v5928_v53  ;;  %v2766_v34 = vadd.f32 1.0, %v4403_v63  ;;  %v5944_v16 = vmul.f32 %v2163_v44, %v5868_v35  ;;  %v5947_v32 = vmul.f32 %v2162_v14, %v5904_v56  ;;  %v7752_v56 = vld [vmem:[#allocation61_spill] sm:$0xff] }
 0x33b   : > { %v5950_v61 = vmul.f32 0.5, %v7748_v9  ;;  %v4405_v39 = vpop.eup %4404  ;;  %v2890_v21 = vmul.f32 %v2762_v55, %v5843_v33  ;;  %v5954_v57 = vmul.f32 %v2164_v31, %v5907_v5  ;;  %v2166_v46 = vmul.f32 %v2038_v60, %v5923_v25  ;;  %v1768_v55 = vpop.f32.mrf.mxu0 }
 0x33c   : > { %7746 = vst [vmem:[#allocation48_spill] sm:$0xff] %v5944_v16  ;;  %7747 = vst [vmem:[#allocation88_spill] sm:$0xff] %v5947_v32  ;;  %v2386_v63 = vadd.f32 %v7750_v47, %v7748_v9  ;;  %v4407_v44 = vpop.eup %4406  ;;  %v2894_v16 = vmul.f32 %v2766_v34, %v5846_v45  ;;  %v2764_v14 = vadd.f32 1.0, %v4405_v39  ;;  %v2168_v35 = vmul.f32 %v2040_v29, %v5928_v53  ;;  %v7751_v32 = vld [vmem:[#allocation51_spill] sm:$0xff]  ;;  %v7756_v34 = vld [vmem:[#allocation58_spill] sm:$0xff] }
 0x33d   : > { %7749 = vst [vmem:[#allocation43_spill] sm:$0xff] %v5954_v57  ;;  %v2390_v37 = vadd.f32 %v7752_v56, %v7751_v32  ;;  %v2768_v10 = vadd.f32 1.0, %v4407_v44  ;;  %v5964_v33 = vmul.f32 %v2165_v3, %v5910_v4  ;;  %v5967_v31 = vmul.f32 %v2167_v2, %v5913_v51  ;;  %v7755_v56 = vld [vmem:[#allocation46_spill] sm:$0xff]  ;;  %v7757_v3 = vld [vmem:[#allocation52_spill] sm:$0xff]  ;;  %v1577_v2 = vpop.f32.mrf.mxu1 }
 0x33e   : > { %v2514_v60 = vmul.f32 0.7978846, %v2386_v63  ;;  %v3014_v9 = vpack.c.bf16 %v2894_v16, %v2890_v21  ;;  %v2892_v47 = vmul.f32 %v2764_v14, %v5849_v12  ;;  %v5971_v45 = vmul.f32 0.5, %v7751_v32  ;;  %v1770_v14 = vpop.f32.mrf.mxu0 }
 0x33f   : > { %7753 = vst [vmem:[#allocation57_spill] sm:$0xff] %v5964_v33  ;;  %7754 = vst [vmem:[#allocation51_spill] sm:$0xff] %v5967_v31  ;;  %v2518_v39 = vmul.f32 0.7978846, %v2390_v37  ;;  %v2896_v29 = vmul.f32 %v2768_v10, %v5880_v8  ;;  %v2388_v44 = vadd.f32 %v7756_v34, %v7755_v56  ;;  %v7758_v33 = vld [vmem:[#allocation65_spill] sm:$0xff]  ;;  %v5979_v63 = vmul.f32 %v2166_v46, %v5923_v25 }
 0x340   : > { %4416 = vtanh.f32 %v2514_v60  ;;  %v2392_v4 = vadd.f32 %v7758_v33, %v7757_v3  ;;  %3376 = vmatprep.mubr.bf16.mxu1 %v3014_v9  ;;  %v5982_v21 = vmul.f32 %v2168_v35, %v5928_v53  ;;  %v5985_v12 = vadd.f32 %v1575_v23, %v5435_v58  ;;  %v7761_v35 = vld [vmem:[#allocation41_spill] sm:$0xff] }
 0x341   : > { %4418 = vtanh.f32 %v2518_v39  ;;  %v4409_v10 = vpop.eup %4408  ;;  %v3016_v8 = vpack.c.bf16 %v2896_v29, %v2892_v47  ;;  %v5988_v37 = vmul.f32 0.5, %v7755_v56  ;;  %v2516_v16 = vmul.f32 0.7978846, %v2388_v44  ;;  %v7762_v39 = vld [vmem:[#allocation55_spill] sm:$0xff]  ;;  %v7763_v29 = vld [vmem:[#allocation49_spill] sm:$0xff]  ;;  %v1579_v44 = vpop.f32.mrf.mxu1 }
 0x342   : > { %7759 = vst [vmem:[#allocation61_spill] sm:$0xff] %v5982_v21  ;;  %v2520_v32 = vmul.f32 0.7978846, %v2392_v4  ;;  %v4411_v33 = vpop.eup %4410  ;;  %v2761_v60 = vadd.f32 1.0, %v4409_v10  ;;  %v2041_v46 = vmul.f32 0.044715, %v5985_v12  ;;  %v5992_v9 = vadd.f32 %v1768_v55, %v5437_v52 }
 0x343   : > { %v2385_v34 = vadd.f32 %v7762_v39, %v7761_v35  ;;  %v4413_v23 = vpop.eup %4412  ;;  %3537 = vmatprep.mubr.bf16.mxu0 %v3016_v8  ;;  %v2765_v31 = vadd.f32 1.0, %v4411_v33  ;;  %v5997_v47 = vmul.f32 0.5, %v7757_v3  ;;  %4420 = vtanh.f32 %v2516_v16  ;;  %v7764_v4 = vld [vmem:[#allocation59_spill] sm:$0xff]  ;;  %v1772_v16 = vpop.f32.mrf.mxu0 }
 0x344   : > { %7760 = vst [vmem:[#allocation46_spill] sm:$0xff] %v5992_v9  ;;  %v2389_v56 = vadd.f32 %v7764_v4, %v7763_v29  ;;  %v4415_v10 = vpop.eup %4414  ;;  %v2763_v51 = vadd.f32 1.0, %v4413_v23  ;;  %4422 = vtanh.f32 %v2520_v32  ;;  %v6002_v55 = vmul.f32 0.5, %v7761_v35  ;;  %v7765_v23 = vld [vmem:[#allocation42_spill] sm:$0xff] }
 0x345   : > { %v6005_v21 = vmul.f32 0.5, %v7763_v29  ;;  %v2889_v8 = vmul.f32 %v2761_v60, %v5892_v28  ;;  %v2893_v33 = vmul.f32 %v2765_v31, %v5897_v24  ;;  %v2767_v3 = vadd.f32 1.0, %v4415_v10  ;;  %v1581_v28 = vpop.f32.mrf.mxu1  ;;  %v7766_v24 = vld [vmem:[#allocation56_spill] sm:$0xff]  ;;  %v7767_v60 = vld [vmem:[#allocation50_spill] sm:$0xff] }
 0x346   : > { %v2513_v39 = vmul.f32 0.7978846, %v2385_v34  ;;  %v2169_v53 = vmul.f32 %v2041_v46, %v5985_v12  ;;  %v2043_v4 = vmul.f32 0.044715, %v5992_v9  ;;  %v2517_v57 = vmul.f32 0.7978846, %v2389_v56 }
 0x347   : > { %v6012_v32 = vmul.f32 0.5, %v7765_v23  ;;  %v3013_v35 = vpack.c.bf16 %v2893_v33, %v2889_v8  ;;  %v2891_v5 = vmul.f32 %v2763_v51, %v5934_v41  ;;  %v2895_v29 = vmul.f32 %v2767_v3, %v5937_v30  ;;  %v7768_v34 = vld [vmem:[#allocation60_spill] sm:$0xff]  ;;  %v1774_v30 = vpop.f32.mrf.mxu0 }
 0x348   : > { %4424 = vtanh.f32 %v2513_v39  ;;  %v2387_v31 = vadd.f32 %v7766_v24, %v7765_v23  ;;  %v2391_v46 = vadd.f32 %v7768_v34, %v7767_v60  ;;  %v6021_v10 = vadd.f32 %v1577_v2, %v5439_v50 }
 0x349   : > { %4426 = vtanh.f32 %v2517_v57  ;;  %3377 = vmatmul.mubr.bf16.gmra.mxu1 %v3013_v35  ;;  %v3015_v56 = vpack.c.bf16 %v2895_v29, %v2891_v5  ;;  %v6024_v8 = vadd.f32 %v1770_v14, %v5441_v43  ;;  %v6027_v51 = vadd.f32 %v1579_v44, %v5435_v58 }
 0x34a   : > { %v6030_v41 = vadd.f32 %v1772_v16, %v5437_v52  ;;  %v2515_v57 = vmul.f32 0.7978846, %v2387_v31  ;;  %v2519_v33 = vmul.f32 0.7978846, %v2391_v46  ;;  %v2042_v3 = vmul.f32 0.044715, %v6021_v10 }
 0x34b   : > { %7769 = vst [vmem:[#allocation58_spill] sm:$0xff] %v6027_v51  ;;  %v6034_v39 = vadd.f32 %v1581_v28, %v5439_v50  ;;  %3538 = vmatmul.mubr.bf16.gmra.mxu0 %v3015_v56  ;;  %v2171_v5 = vmul.f32 %v2043_v4, %v5992_v9  ;;  %v2044_v2 = vmul.f32 0.044715, %v6024_v8  ;;  %v2045_v14 = vmul.f32 0.044715, %v6027_v51 }
 0x34c   : > { %7770 = vst [vmem:[#allocation52_spill] sm:$0xff] %v6030_v41  ;;  %v2047_v44 = vmul.f32 0.044715, %v6030_v41  ;;  %4428 = vtanh.f32 %v2515_v57  ;;  %v2170_v16 = vmul.f32 %v2042_v3, %v6021_v10  ;;  %v6043_v29 = vadd.f32 %v1774_v30, %v5441_v43 }
 0x34d   : > { %v4417_v23 = vpop.eup %4416  ;;  %v2046_v35 = vmul.f32 0.044715, %v6034_v39  ;;  %4430 = vtanh.f32 %v2519_v33  ;;  %v2172_v4 = vmul.f32 %v2044_v2, %v6024_v8  ;;  %v2173_v31 = vmul.f32 %v2045_v14, %v6027_v51 }
 0x34e   : > { %v4419_v28 = vpop.eup %4418  ;;  %v2770_v24 = vadd.f32 1.0, %v4417_v23  ;;  %v6048_v46 = vmul.f32 %v2169_v53, %v5985_v12  ;;  %v2175_v56 = vmul.f32 %v2047_v44, %v6030_v41  ;;  %v6053_v3 = vmul.f32 %v2171_v5, %v5992_v9  ;;  %v1585_v9 = vpop.f32.mrf.mxu1 }
 0x34f   : > { %v2774_v34 = vadd.f32 1.0, %v4419_v28  ;;  %v2174_v57 = vmul.f32 %v2046_v35, %v6034_v39  ;;  %v6056_v30 = vmul.f32 0.5, %v7767_v60  ;;  %v6059_v33 = vmul.f32 %v2170_v16, %v6021_v10 }
 0x350   : > { %7771 = vst [vmem:[#allocation65_spill] sm:$0xff] %v6048_v46  ;;  %7772 = vst [vmem:[#allocation41_spill] sm:$0xff] %v6053_v3  ;;  %v6062_v2 = vmul.f32 0.5, %v5601_v22  ;;  %v4421_v14 = vpop.eup %4420  ;;  %v2898_v53 = vmul.f32 %v2770_v24, %v5950_v61  ;;  %v6067_v44 = vmul.f32 %v2172_v4, %v6024_v8  ;;  %v6070_v5 = vmul.f32 %v2173_v31, %v6027_v51  ;;  %v1778_v31 = vpop.f32.mrf.mxu0 }
 0x351   : > { %v2902_v23 = vmul.f32 %v2774_v34, %v5971_v45  ;;  %v4423_v35 = vpop.eup %4422  ;;  %v2772_v60 = vadd.f32 1.0, %v4421_v14  ;;  %v2048_v28 = vmul.f32 0.044715, %v6043_v29  ;;  %v2394_v16 = vadd.f32 %v5687_v18, %v5601_v22 }
 0x352   : > { %7773 = vst [vmem:[#allocation55_spill] sm:$0xff] %v6070_v5  ;;  %v2398_v3 = vadd.f32 %v5713_v42, %v5653_v19  ;;  %v2776_v24 = vadd.f32 1.0, %v4423_v35  ;;  %v6078_v45 = vmul.f32 %v2175_v56, %v6030_v41  ;;  %v6081_v4 = vmul.f32 %v2174_v57, %v6034_v39 }
 0x353   : > { %v3018_v61 = vpack.c.bf16 %v2902_v23, %v2898_v53  ;;  %v2900_v34 = vmul.f32 %v2772_v60, %v5988_v37  ;;  %v6085_v14 = vmul.f32 0.5, %v5653_v19  ;;  %v2522_v5 = vmul.f32 0.7978846, %v2394_v16 }
 0x354   : > { %7774 = vst [vmem:[#allocation49_spill] sm:$0xff] %v6078_v45  ;;  %v2526_v22 = vmul.f32 0.7978846, %v2398_v3  ;;  %v2904_v42 = vmul.f32 %v2776_v24, %v5997_v47  ;;  %v2396_v53 = vadd.f32 %v5694_v1, %v5627_v6  ;;  %v2400_v56 = vadd.f32 %v5720_v20, %v5658_v48  ;;  %v1587_v1 = vpop.f32.mrf.mxu1  ;;  %v1780_v24 = vpop.f32.mrf.mxu0 }
 0x355   : > { %v4425_v18 = vpop.eup %4424  ;;  %3384 = vmatprep.mubr.bf16.mxu1 %v3018_v61  ;;  %v6093_v57 = vadd.f32 %v1585_v9, %v5435_v58  ;;  %4432 = vtanh.f32 %v2522_v5  ;;  %v6096_v19 = vmul.f32 0.5, %v5627_v6  ;;  %v6099_v3 = vadd.f32 %v1778_v31, %v5437_v52  ;;  %v7777_v31 = vld [vmem:[#allocation53_spill] sm:$0xff] }
 0x356   : > { %v4427_v23 = vpop.eup %4426  ;;  %v2769_v37 = vadd.f32 1.0, %v4425_v18  ;;  %v3020_v35 = vpack.c.bf16 %v2904_v42, %v2900_v34  ;;  %4434 = vtanh.f32 %v2526_v22  ;;  %v2524_v60 = vmul.f32 0.7978846, %v2396_v53  ;;  %v7778_v34 = vld [vmem:[#allocation66_spill] sm:$0xff]  ;;  %v7779_v53 = vld [vmem:[#allocation69_spill] sm:$0xff] }
 0x357   : > { %7775 = vst [vmem:[#allocation59_spill] sm:$0xff] %v6093_v57  ;;  %7776 = vst [vmem:[#allocation42_spill] sm:$0xff] %v6099_v3  ;;  %v2773_v47 = vadd.f32 1.0, %v4427_v23  ;;  %v2176_v16 = vmul.f32 %v2048_v28, %v6043_v29  ;;  %v2528_v20 = vmul.f32 0.7978846, %v2400_v56  ;;  %v2393_v18 = vadd.f32 %v7778_v34, %v7777_v31 }
 0x358   : > { %v2049_v9 = vmul.f32 0.044715, %v6093_v57  ;;  %v2051_v61 = vmul.f32 0.044715, %v6099_v3  ;;  %3545 = vmatprep.mubr.bf16.mxu0 %v3020_v35  ;;  %v2897_v6 = vmul.f32 %v2769_v37, %v6002_v55  ;;  %4436 = vtanh.f32 %v2524_v60  ;;  %v1589_v37 = vpop.f32.mrf.mxu1 }
 0x359   : > { %v2901_v5 = vmul.f32 %v2773_v47, %v6005_v21  ;;  %v4429_v22 = vpop.eup %4428  ;;  %4438 = vtanh.f32 %v2528_v20  ;;  %v2397_v56 = vadd.f32 %v7779_v53, %v5637_v17  ;;  %v6113_v55 = vmul.f32 0.5, %v5658_v48 }
 0x35a   : > { %v2177_v42 = vmul.f32 %v2049_v9, %v6093_v57  ;;  %v2179_v28 = vmul.f32 %v2051_v61, %v6099_v3  ;;  %v4431_v23 = vpop.eup %4430  ;;  %v2771_v35 = vadd.f32 1.0, %v4429_v22  ;;  %v2521_v21 = vmul.f32 0.7978846, %v2393_v18  ;;  %v1782_v9 = vpop.f32.mrf.mxu0 }
 0x35b   : > { %v3017_v45 = vpack.c.bf16 %v2901_v5, %v2897_v6  ;;  %v2775_v47 = vadd.f32 1.0, %v4431_v23  ;;  %v2525_v34 = vmul.f32 0.7978846, %v2397_v56  ;;  %v6119_v53 = vmul.f32 %v2176_v16, %v6043_v29  ;;  %v7780_v6 = vld [vmem:[#allocation54_spill] sm:$0xff]  ;;  %v7781_v5 = vld [vmem:[#allocation67_spill] sm:$0xff] }
 0x35c   : > { %v2305_v60 = vmul.f32 %v2177_v42, %v6093_v57  ;;  %v2307_v20 = vmul.f32 %v2179_v28, %v6099_v3  ;;  %v2899_v61 = vmul.f32 %v2771_v35, %v6012_v32  ;;  %4440 = vtanh.f32 %v2521_v21  ;;  %v7782_v28 = vld [vmem:[#allocation62_spill] sm:$0xff]  ;;  %v1591_v35 = vpop.f32.mrf.mxu1 }
 0x35d   : > { %3385 = vmatmul.mubr.bf16.gmra.mxu1 %v3017_v45  ;;  %v2395_v48 = vadd.f32 %v7781_v5, %v7780_v6  ;;  %v2903_v18 = vmul.f32 %v2775_v47, %v6056_v30  ;;  %4442 = vtanh.f32 %v2525_v34  ;;  %v7783_v56 = vld [vmem:[#allocation70_spill] sm:$0xff]  ;;  %v6129_v32 = vadd.f32 %v1587_v1, %v5439_v50 }
 0x35e   : > { %v2433_v22 = vadd.f32 %v2305_v60, %v6093_v57  ;;  %v2435_v42 = vadd.f32 %v2307_v20, %v6099_v3  ;;  %v2399_v23 = vadd.f32 %v7783_v56, %v7782_v28  ;;  %v6132_v16 = vadd.f32 %v1780_v24, %v5441_v43  ;;  %v1784_v60 = vpop.f32.mrf.mxu0 }
 0x35f   : > { %v2523_v45 = vmul.f32 0.7978846, %v2395_v48  ;;  %v3019_v21 = vpack.c.bf16 %v2903_v18, %v2899_v61  ;;  %v6135_v5 = vmul.f32 0.5, %v7777_v31  ;;  %v6138_v30 = vmul.f32 0.5, %v5637_v17 }
 0x360   : > { %v6141_v47 = vadd.f32 %v1589_v37, %v5435_v58  ;;  %v2527_v20 = vmul.f32 0.7978846, %v2399_v23  ;;  %v2050_v1 = vmul.f32 0.044715, %v6129_v32  ;;  %v2052_v34 = vmul.f32 0.044715, %v6132_v16 }
 0x361   : > { %4444 = vtanh.f32 %v2523_v45  ;;  %3546 = vmatmul.mubr.bf16.gmra.mxu0 %v3019_v21  ;;  %v2561_v24 = vmul.f32 0.7978846, %v2433_v22  ;;  %v6147_v31 = vadd.f32 %v1782_v9, %v5437_v52  ;;  %v6150_v17 = vadd.f32 %v1591_v35, %v5439_v50 }
 0x362   : > { %v2053_v61 = vmul.f32 0.044715, %v6141_v47  ;;  %v4433_v48 = vpop.eup %4432  ;;  %v2563_v37 = vmul.f32 0.7978846, %v2435_v42  ;;  %v6153_v18 = vmul.f32 0.5, %v7780_v6  ;;  %v6156_v56 = vmul.f32 0.5, %v7782_v28 }
 0x363   : > { %7784 = vst [vmem:[#allocation56_spill] sm:$0xff] %v6147_v31  ;;  %v6159_v23 = vadd.f32 %v1784_v60, %v5441_v43  ;;  %v4435_v22 = vpop.eup %4434  ;;  %v2778_v45 = vadd.f32 1.0, %v4433_v48  ;;  %4446 = vtanh.f32 %v2527_v20  ;;  %v2055_v21 = vmul.f32 0.044715, %v6147_v31 }
 0x364   : > { %v2181_v9 = vmul.f32 %v2053_v61, %v6141_v47  ;;  %v2782_v35 = vadd.f32 1.0, %v4435_v22  ;;  %v2178_v3 = vmul.f32 %v2050_v1, %v6129_v32  ;;  %v2180_v42 = vmul.f32 %v2052_v34, %v6132_v16 }
 0x365   : > { %v2054_v6 = vmul.f32 0.044715, %v6150_v17  ;;  %v4437_v57 = vpop.eup %4436  ;;  %4448 = vtanh.f32 %v2561_v24  ;;  %v2183_v60 = vmul.f32 %v2055_v21, %v6147_v31  ;;  %v2056_v48 = vmul.f32 0.044715, %v6159_v23 }
 0x366   : > { %v2309_v28 = vmul.f32 %v2181_v9, %v6141_v47  ;;  %v4439_v20 = vpop.eup %4438  ;;  %v2906_v61 = vmul.f32 %v2778_v45, %v6062_v2  ;;  %v2910_v41 = vmul.f32 %v2782_v35, %v6085_v14  ;;  %v2780_v22 = vadd.f32 1.0, %v4437_v57 }
 0x367   : > { %v2182_v1 = vmul.f32 %v2054_v6, %v6150_v17  ;;  %v2784_v51 = vadd.f32 1.0, %v4439_v20  ;;  %4450 = vtanh.f32 %v2563_v37  ;;  %v2311_v24 = vmul.f32 %v2183_v60, %v6147_v31  ;;  %v1788_v20 = vpop.f32.mrf.mxu0 }
 0x368   : > { %v2437_v34 = vadd.f32 %v2309_v28, %v6141_v47  ;;  %v3022_v46 = vpack.c.bf16 %v2910_v41, %v2906_v61  ;;  %v6175_v9 = vmul.f32 %v2178_v3, %v6129_v32  ;;  %v6178_v21 = vmul.f32 %v2180_v42, %v6132_v16 }
 0x369   : > { %v2184_v2 = vmul.f32 %v2056_v48, %v6159_v23  ;;  %v4441_v45 = vpop.eup %4440  ;;  %v2908_v14 = vmul.f32 %v2780_v22, %v6096_v19  ;;  %v2912_v57 = vmul.f32 %v2784_v51, %v6113_v55  ;;  %v2439_v37 = vadd.f32 %v2311_v24, %v6147_v31  ;;  %v1595_v48 = vpop.f32.mrf.mxu1 }
 0x36a   : > { %v6185_v35 = vmul.f32 0.5, %v5669_v13  ;;  %v4443_v6 = vpop.eup %4442  ;;  %3392 = vmatprep.mubr.bf16.mxu1 %v3022_v46  ;;  %v2777_v41 = vadd.f32 1.0, %v4441_v45  ;;  %v6188_v3 = vmul.f32 %v2182_v1, %v6150_v17  ;;  %v2402_v42 = vadd.f32 %v5739_v62, %v5669_v13  ;;  %v7786_v45 = vld [vmem:[#allocation73_spill] sm:$0xff] }
 0x36b   : > { %v2406_v28 = vadd.f32 %v5781_v40, %v5717_v7  ;;  %v3024_v19 = vpack.c.bf16 %v2912_v57, %v2908_v14  ;;  %v2781_v60 = vadd.f32 1.0, %v4443_v6  ;;  %v2565_v51 = vmul.f32 0.7978846, %v2437_v34  ;;  %v7785_v40 = vld [vmem:[#allocation68_spill] sm:$0xff] }
 0x36c   : > { %v6195_v55 = vmul.f32 0.5, %v5717_v7  ;;  %v2567_v61 = vmul.f32 0.7978846, %v2439_v37  ;;  %v6198_v46 = vmul.f32 %v2184_v2, %v6159_v23  ;;  %v2530_v22 = vmul.f32 0.7978846, %v2402_v42 }
 0x36d   : > { %v2534_v1 = vmul.f32 0.7978846, %v2406_v28  ;;  %3553 = vmatprep.mubr.bf16.mxu0 %v3024_v19  ;;  %v2905_v13 = vmul.f32 %v2777_v41, %v6135_v5  ;;  %v2909_v62 = vmul.f32 %v2781_v60, %v6138_v30  ;;  %v2404_v34 = vadd.f32 %v7786_v45, %v7785_v40  ;;  %v1597_v41 = vpop.f32.mrf.mxu1  ;;  %v1790_v30 = vpop.f32.mrf.mxu0 }
 0x36e   : > { %v4445_v24 = vpop.eup %4444  ;;  %v2408_v7 = vadd.f32 %v5790_v49, %v5725_v15  ;;  %4452 = vtanh.f32 %v2530_v22  ;;  %v6207_v57 = vadd.f32 %v1595_v48, %v5435_v58  ;;  %v6210_v2 = vadd.f32 %v1788_v20, %v5437_v52  ;;  %v7789_v20 = vld [vmem:[#allocation63_spill] sm:$0xff] }
 0x36f   : > { %v2779_v14 = vadd.f32 1.0, %v4445_v24  ;;  %v3021_v37 = vpack.c.bf16 %v2909_v62, %v2905_v13  ;;  %4454 = vtanh.f32 %v2534_v1  ;;  %v2532_v6 = vmul.f32 0.7978846, %v2404_v34  ;;  %v7790_v22 = vld [vmem:[#allocation71_spill] sm:$0xff]  ;;  %v1599_v34 = vpop.f32.mrf.mxu1 }
 0x370   : > { %7787 = vst [vmem:[#allocation50_spill] sm:$0xff] %v6207_v57  ;;  %7788 = vst [vmem:[#allocation60_spill] sm:$0xff] %v6210_v2  ;;  %v2536_v5 = vmul.f32 0.7978846, %v2408_v7  ;;  %v4447_v42 = vpop.eup %4446  ;;  %4456 = vtanh.f32 %v2565_v51  ;;  %v6213_v28 = vmul.f32 0.5, %v7785_v40  ;;  %v6218_v48 = vmul.f32 0.5, %v5725_v15  ;;  %v1792_v7 = vpop.f32.mrf.mxu0 }
 0x371   : > { %v2057_v49 = vmul.f32 0.044715, %v6207_v57  ;;  %v2059_v19 = vmul.f32 0.044715, %v6210_v2  ;;  %3393 = vmatmul.mubr.bf16.gmra.mxu1 %v3021_v37  ;;  %v2783_v60 = vadd.f32 1.0, %v4447_v42  ;;  %4458 = vtanh.f32 %v2532_v6 }
 0x372   : > { %v2401_v1 = vadd.f32 %v7790_v22, %v7789_v20  ;;  %v6222_v24 = vpop.eup %4448  ;;  %4460 = vtanh.f32 %v2536_v5  ;;  %v2405_v62 = vadd.f32 %v5775_v36, %v5701_v11  ;;  %v2907_v40 = vmul.f32 %v2779_v14, %v6153_v18 }
 0x373   : > { %v2185_v51 = vmul.f32 %v2057_v49, %v6207_v57  ;;  %v2187_v13 = vmul.f32 %v2059_v19, %v6210_v2  ;;  %v2911_v45 = vmul.f32 %v2783_v60, %v6156_v56  ;;  %4462 = vtanh.f32 %v2567_v61  ;;  %v7791_v49 = vld [vmem:[#allocation64_spill] sm:$0xff] }
 0x374   : > { %v2529_v15 = vmul.f32 0.7978846, %v2401_v1  ;;  %v6230_v37 = vpop.eup %4450  ;;  %v2533_v42 = vmul.f32 0.7978846, %v2405_v62  ;;  %v7792_v19 = vld [vmem:[#allocation72_spill] sm:$0xff]  ;;  %v2407_v36 = vadd.f32 %v5778_v26, %v5707_v27  ;;  %v6239_v18 = vadd.f32 %v1597_v41, %v5439_v50  ;;  %v1601_v26 = vpop.f32.mrf.mxu1 }
 0x375   : > { %v2313_v6 = vmul.f32 %v2185_v51, %v6207_v57  ;;  %v2315_v5 = vmul.f32 %v2187_v13, %v6210_v2  ;;  %v2403_v22 = vadd.f32 %v7792_v19, %v7791_v49  ;;  %v3023_v31 = vpack.c.bf16 %v2911_v45, %v2907_v40  ;;  %v1794_v62 = vpop.f32.mrf.mxu0 }
 0x376   : > { %4464 = vtanh.f32 %v2529_v15  ;;  %v2535_v60 = vmul.f32 0.7978846, %v2407_v36  ;;  %v2058_v1 = vmul.f32 0.044715, %v6239_v18  ;;  %v6245_v51 = vadd.f32 %v1790_v30, %v5441_v43 }
 0x377   : > { %v2441_v56 = vadd.f32 %v2313_v6, %v6207_v57  ;;  %v2443_v61 = vadd.f32 %v2315_v5, %v6210_v2  ;;  %4466 = vtanh.f32 %v2533_v42  ;;  %v2531_v14 = vmul.f32 0.7978846, %v2403_v22  ;;  %3554 = vmatmul.mubr.bf16.gmra.mxu0 %v3023_v31 }
 0x378   : > { %v6248_v13 = vadd.f32 %v1599_v34, %v5435_v58  ;;  %v6251_v41 = vmul.f32 0.5, %v7789_v20  ;;  %v6254_v40 = vmul.f32 0.5, %v5701_v11  ;;  %v6257_v31 = vadd.f32 %v1792_v7, %v5437_v52 }
 0x379   : > { %4468 = vtanh.f32 %v2531_v14  ;;  %v2569_v45 = vmul.f32 0.7978846, %v2441_v56  ;;  %v2060_v30 = vmul.f32 0.044715, %v6245_v51  ;;  %v2571_v34 = vmul.f32 0.7978846, %v2443_v61 }
 0x37a   : > { %7793 = vst [vmem:[#allocation53_spill] sm:$0xff] %v6248_v13  ;;  %7794 = vst [vmem:[#allocation66_spill] sm:$0xff] %v6257_v31  ;;  %4470 = vtanh.f32 %v2535_v60  ;;  %v2061_v15 = vmul.f32 0.044715, %v6248_v13  ;;  %v2063_v6 = vmul.f32 0.044715, %v6257_v31  ;;  %v6263_v5 = vadd.f32 %v1601_v26, %v5439_v50 }
 0x37b   : > { %v6266_v20 = vadd.f32 %v1794_v62, %v5441_v43  ;;  %v4453_v11 = vpop.eup %4452  ;;  %v6269_v42 = vmul.f32 0.5, %v7791_v49  ;;  %v2186_v7 = vmul.f32 %v2058_v1, %v6239_v18  ;;  %v2188_v19 = vmul.f32 %v2060_v30, %v6245_v51 }
 0x37c   : > { %v2189_v22 = vmul.f32 %v2061_v15, %v6248_v13  ;;  %v4455_v36 = vpop.eup %4454  ;;  %v2786_v56 = vadd.f32 1.0, %v4453_v11  ;;  %v2191_v61 = vmul.f32 %v2063_v6, %v6257_v31  ;;  %v2062_v14 = vmul.f32 0.044715, %v6263_v5 }
 0x37d   : > { %v2064_v60 = vmul.f32 0.044715, %v6266_v20  ;;  %v6277_v26 = vpop.eup %4456  ;;  %v2790_v62 = vadd.f32 1.0, %v4455_v36  ;;  %4472 = vtanh.f32 %v2569_v45  ;;  %v1895_v49 = vmul.f32 0.5, %v5707_v27 }
 0x37e   : > { %v2317_v1 = vmul.f32 %v2189_v22, %v6248_v13  ;;  %v4459_v43 = vpop.eup %4458  ;;  %v2914_v30 = vmul.f32 %v2786_v56, %v6185_v35  ;;  %4474 = vtanh.f32 %v2571_v34  ;;  %v2319_v15 = vmul.f32 %v2191_v61, %v6257_v31 }
 0x37f   : > { %v2190_v6 = vmul.f32 %v2062_v14, %v6263_v5  ;;  %v4461_v11 = vpop.eup %4460  ;;  %v2918_v50 = vmul.f32 %v2790_v62, %v6195_v55  ;;  %v2788_v52 = vadd.f32 1.0, %v4459_v43  ;;  %v2192_v45 = vmul.f32 %v2064_v60, %v6266_v20  ;;  %v7795_v55 = vld [vmem:[#allocation81_spill] sm:$0xff] }
 0x380   : > { %v2445_v58 = vadd.f32 %v2317_v1, %v6248_v13  ;;  %v6287_v36 = vpop.eup %4462  ;;  %v2792_v27 = vadd.f32 1.0, %v4461_v11  ;;  %v6290_v22 = vmul.f32 %v2186_v7, %v6239_v18  ;;  %v6293_v35 = vmul.f32 %v2188_v19, %v6245_v51  ;;  %v7802_v13 = vld [vmem:[#allocation83_spill] sm:$0xff] }
 0x381   : > { %v2447_v34 = vadd.f32 %v2319_v15, %v6257_v31  ;;  %v3026_v56 = vpack.c.bf16 %v2918_v50, %v2914_v30  ;;  %v6297_v61 = vmul.f32 0.5, %v5772_v59  ;;  %v6300_v43 = vmul.f32 0.5, %v5814_v54 }
 0x382   : > { %v2410_v14 = vadd.f32 %v7795_v55, %v5772_v59  ;;  %v2916_v62 = vmul.f32 %v2788_v52, %v6213_v28  ;;  %v2920_v7 = vmul.f32 %v2792_v27, %v6218_v48  ;;  %v6307_v19 = vmul.f32 %v2190_v6, %v6263_v5  ;;  %v7796_v6 = vld [vmem:[#allocation82_spill] sm:$0xff]  ;;  %v7798_v27 = vld [vmem:[#allocation87_spill] sm:$0xff] }
 0x383   : > { %v4465_v60 = vpop.eup %4464  ;;  %v2414_v50 = vadd.f32 %v5877_v38, %v5814_v54  ;;  %3400 = vmatprep.mubr.bf16.mxu1 %v3026_v56  ;;  %v2573_v15 = vmul.f32 0.7978846, %v2445_v58  ;;  %v6312_v11 = vmul.f32 %v2192_v45, %v6266_v20  ;;  %v2575_v2 = vmul.f32 0.7978846, %v2447_v34  ;;  %v7797_v38 = vld [vmem:[#allocation78_spill] sm:$0xff] }
 0x384   : > { %v4467_v1 = vpop.eup %4466  ;;  %v2785_v30 = vadd.f32 1.0, %v4465_v60  ;;  %v2538_v31 = vmul.f32 0.7978846, %v2410_v14  ;;  %v3028_v59 = vpack.c.bf16 %v2920_v7, %v2916_v62  ;;  %v6315_v48 = vmul.f32 0.5, %v5796_v0 }
 0x385   : > { %v2789_v55 = vadd.f32 1.0, %v4467_v1  ;;  %v2542_v52 = vmul.f32 0.7978846, %v2414_v50  ;;  %v2412_v54 = vadd.f32 %v7796_v6, %v5796_v0  ;;  %v2416_v56 = vadd.f32 %v7798_v27, %v7797_v38  ;;  %v7799_v50 = vld [vmem:[#allocation74_spill] sm:$0xff]  ;;  %v7800_v1 = vld [vmem:[#allocation79_spill] sm:$0xff]  ;;  %v7801_v6 = vld [vmem:[#allocation76_spill] sm:$0xff] }
 0x386   : > { %v4469_v28 = vpop.eup %4468  ;;  %4476 = vtanh.f32 %v2538_v31  ;;  %3561 = vmatprep.mubr.bf16.mxu0 %v3028_v59  ;;  %v2913_v45 = vmul.f32 %v2785_v30, %v6251_v41  ;;  %v2409_v0 = vadd.f32 %v7800_v1, %v7799_v50  ;;  %v2413_v27 = vadd.f32 %v7802_v13, %v7801_v6  ;;  %v7810_v1 = vld [vmem:[#allocation39_spill] sm:$0xff] }
 0x387   : > { %v4471_v58 = vpop.eup %4470  ;;  %v2917_v14 = vmul.f32 %v2789_v55, %v6254_v40  ;;  %v2787_v60 = vadd.f32 1.0, %v4469_v28  ;;  %4478 = vtanh.f32 %v2542_v52  ;;  %v2540_v31 = vmul.f32 0.7978846, %v2412_v54  ;;  %v7804_v55 = vld [vmem:[#allocation80_spill] sm:$0xff] }
 0x388   : > { %v2791_v34 = vadd.f32 1.0, %v4471_v58  ;;  %4480 = vtanh.f32 %v2573_v15  ;;  %v2544_v62 = vmul.f32 0.7978846, %v2416_v56  ;;  %v6329_v41 = vmul.f32 0.5, %v7797_v38  ;;  %v7807_v38 = vld [vmem:[#allocation86_spill] sm:$0xff] }
 0x389   : > { %v3025_v7 = vpack.c.bf16 %v2917_v14, %v2913_v45  ;;  %4482 = vtanh.f32 %v2575_v2  ;;  %v2915_v59 = vmul.f32 %v2787_v60, %v6269_v42  ;;  %v2537_v30 = vmul.f32 0.7978846, %v2409_v0  ;;  %v7803_v2 = vld [vmem:[#allocation75_spill] sm:$0xff]  ;;  %v7808_v45 = vld [vmem:[#allocation44_spill] sm:$0xff] }
 0x38a   : > { %v2919_v57 = vmul.f32 %v2791_v34, %v1895_v49  ;;  %4484 = vtanh.f32 %v2540_v31  ;;  %v6331_v40 = vpop.eup %4472  ;;  %v2541_v15 = vmul.f32 0.7978846, %v2413_v27  ;;  %v2411_v52 = vadd.f32 %v7804_v55, %v7803_v2  ;;  %v7806_v49 = vld [vmem:[#allocation77_spill] sm:$0xff]  ;;  %v7809_v14 = vld [vmem:[#allocation88_spill] sm:$0xff]  ;;  %v7811_v0 = vld [vmem:[#allocation43_spill] sm:$0xff] }
 0x38b   : > { %3401 = vmatmul.mubr.bf16.gmra.mxu1 %v3025_v7  ;;  %4486 = vtanh.f32 %v2544_v62  ;;  %v6335_v28 = vpop.eup %4474  ;;  %v6338_v13 = vmul.f32 0.5, %v7799_v50  ;;  %v6341_v42 = vmul.f32 0.5, %v7801_v6  ;;  %v2415_v56 = vadd.f32 %v7807_v38, %v7806_v49  ;;  %v7814_v55 = vld [vmem:[#allocation84_spill] sm:$0xff]  ;;  %v7817_v38 = vld [vmem:[#allocation57_spill] sm:$0xff] }
 0x38c   : > { %7805 = vst [vmem:[#allocation69_spill] sm:$0xff] %v6335_v28  ;;  %v3027_v54 = vpack.c.bf16 %v2919_v57, %v2915_v59  ;;  %4488 = vtanh.f32 %v2537_v30  ;;  %v2539_v58 = vmul.f32 0.7978846, %v2411_v52  ;;  %v2418_v60 = vadd.f32 %v7809_v14, %v7808_v45  ;;  %v7812_v59 = vld [vmem:[#allocation45_spill] sm:$0xff]  ;;  %v7815_v52 = vld [vmem:[#allocation40_spill] sm:$0xff] }
 0x38d   : > { %v2422_v34 = vadd.f32 %v5979_v63, %v5923_v25  ;;  %4490 = vtanh.f32 %v2541_v15  ;;  %v6350_v57 = vmul.f32 0.5, %v7803_v2  ;;  %v6353_v31 = vmul.f32 0.5, %v7806_v49  ;;  %v7813_v30 = vld [vmem:[#allocation61_spill] sm:$0xff]  ;;  %v7816_v49 = vld [vmem:[#allocation47_spill] sm:$0xff] }
 0x38e   : > { %3562 = vmatmul.mubr.bf16.gmra.mxu0 %v3027_v54  ;;  %v2543_v62 = vmul.f32 0.7978846, %v2415_v56  ;;  %4492 = vtanh.f32 %v2539_v58  ;;  %v2546_v7 = vmul.f32 0.7978846, %v2418_v60  ;;  %v2420_v6 = vadd.f32 %v7811_v0, %v7810_v1 }
 0x38f   : > { %v2550_v50 = vmul.f32 0.7978846, %v2422_v34  ;;  %v6358_v27 = vmul.f32 0.5, %v7808_v45  ;;  %v6361_v63 = vmul.f32 0.5, %v5923_v25  ;;  %v2424_v15 = vadd.f32 %v7813_v30, %v7812_v59 }
 0x390   : > { %4494 = vtanh.f32 %v2543_v62  ;;  %v2548_v2 = vmul.f32 0.7978846, %v2420_v6  ;;  %v2417_v54 = vadd.f32 %v7815_v52, %v7814_v55  ;;  %v2421_v56 = vadd.f32 %v7817_v38, %v7816_v49  ;;  %v7818_v62 = vld [vmem:[#allocation85_spill] sm:$0xff] }
 0x391   : > { %4496 = vtanh.f32 %v2546_v7  ;;  %v6370_v58 = vmul.f32 0.5, %v7810_v1  ;;  %v6373_v45 = vmul.f32 0.5, %v7812_v59  ;;  %v2552_v25 = vmul.f32 0.7978846, %v2424_v15  ;;  %v7819_v7 = vld [vmem:[#allocation48_spill] sm:$0xff]  ;;  %v7821_v1 = vld [vmem:[#allocation51_spill] sm:$0xff] }
 0x392   : > { %4498 = vtanh.f32 %v2550_v50  ;;  %v2545_v60 = vmul.f32 0.7978846, %v2417_v54  ;;  %v2549_v34 = vmul.f32 0.7978846, %v2421_v56  ;;  %v2419_v0 = vadd.f32 %v7819_v7, %v7818_v62  ;;  %v7820_v50 = vld [vmem:[#allocation38_spill] sm:$0xff] }
 0x393   : > { %v4477_v14 = vpop.eup %4476  ;;  %4500 = vtanh.f32 %v2548_v2  ;;  %v6378_v52 = vmul.f32 0.5, %v7814_v55  ;;  %v2423_v38 = vadd.f32 %v7821_v1, %v7820_v50  ;;  %v6385_v15 = vmul.f32 0.5, %v7816_v49 }
 0x394   : > { %v4479_v6 = vpop.eup %4478  ;;  %v2794_v30 = vadd.f32 1.0, %v4477_v14  ;;  %4502 = vtanh.f32 %v2552_v25  ;;  %v2547_v2 = vmul.f32 0.7978846, %v2419_v0  ;;  %v6390_v56 = vmul.f32 0.5, %v7818_v62 }
 0x395   : > { %v6382_v28 = vpop.eup %4480  ;;  %v2798_v59 = vadd.f32 1.0, %v4479_v6  ;;  %4504 = vtanh.f32 %v2545_v60  ;;  %v2551_v25 = vmul.f32 0.7978846, %v2423_v38  ;;  %v2426_v55 = vadd.f32 %v6059_v33, %v6021_v10 }
 0x396   : > { %v6387_v54 = vpop.eup %4482  ;;  %4506 = vtanh.f32 %v2549_v34  ;;  %v2922_v7 = vmul.f32 %v2794_v30, %v6297_v61  ;;  %v2430_v49 = vadd.f32 %v6081_v4, %v6034_v39  ;;  %v6399_v34 = vmul.f32 0.5, %v7820_v50 }
 0x397   : > { %7822 = vst [vmem:[#allocation54_spill] sm:$0xff] %v6387_v54  ;;  %v4485_v14 = vpop.eup %4484  ;;  %v2926_v6 = vmul.f32 %v2798_v59, %v6300_v43  ;;  %4508 = vtanh.f32 %v2547_v2  ;;  %v2554_v62 = vmul.f32 0.7978846, %v2426_v55  ;;  %v2428_v33 = vadd.f32 %v6067_v44, %v6024_v8 }
 0x398   : > { %v4487_v60 = vpop.eup %4486  ;;  %v2796_v0 = vadd.f32 1.0, %v4485_v14  ;;  %4510 = vtanh.f32 %v2551_v25  ;;  %v2558_v54 = vmul.f32 0.7978846, %v2430_v49  ;;  %v6405_v30 = vmul.f32 0.5, %v6021_v10  ;;  %v7823_v10 = vld [vmem:[#allocation65_spill] sm:$0xff] }
 0x399   : > { %v3030_v1 = vpack.c.bf16 %v2926_v6, %v2922_v7  ;;  %v2800_v38 = vadd.f32 1.0, %v4487_v60  ;;  %v4489_v61 = vpop.eup %4488  ;;  %4512 = vtanh.f32 %v2554_v62  ;;  %v2432_v4 = vadd.f32 %v6119_v53, %v6043_v29  ;;  %v7824_v62 = vld [vmem:[#allocation58_spill] sm:$0xff] }
 0x39a   : > { %v2924_v43 = vmul.f32 %v2796_v0, %v6315_v48  ;;  %v4491_v50 = vpop.eup %4490  ;;  %v2793_v2 = vadd.f32 1.0, %v4489_v61  ;;  %4514 = vtanh.f32 %v2558_v54  ;;  %v2556_v25 = vmul.f32 0.7978846, %v2428_v33 }
 0x39b   : > { %3408 = vmatprep.mubr.bf16.mxu1 %v3030_v1  ;;  %v2928_v59 = vmul.f32 %v2800_v38, %v6329_v41  ;;  %v4493_v55 = vpop.eup %4492  ;;  %v2797_v14 = vadd.f32 1.0, %v4491_v50  ;;  %v6411_v44 = vmul.f32 0.5, %v6034_v39  ;;  %v2560_v48 = vmul.f32 0.7978846, %v2432_v4  ;;  %v7825_v1 = vld [vmem:[#allocation55_spill] sm:$0xff] }
 0x39c   : > { %v2425_v7 = vadd.f32 %v7823_v10, %v5985_v12  ;;  %v2921_v53 = vmul.f32 %v2793_v2, %v6338_v13  ;;  %v2795_v60 = vadd.f32 1.0, %v4493_v55  ;;  %4516 = vtanh.f32 %v2556_v25 }
 0x39d   : > { %v4495_v6 = vpop.eup %4494  ;;  %v3032_v49 = vpack.c.bf16 %v2928_v59, %v2924_v43  ;;  %v2925_v41 = vmul.f32 %v2797_v14, %v6341_v42  ;;  %4518 = vtanh.f32 %v2560_v48  ;;  %v2429_v38 = vadd.f32 %v7825_v1, %v7824_v62  ;;  %v6438_v1 = vpop.f32.mrf.mxu0 }
 0x39e   : > { %v4497_v0 = vpop.eup %4496  ;;  %v2799_v54 = vadd.f32 1.0, %v4495_v6  ;;  %v2923_v33 = vmul.f32 %v2795_v60, %v6350_v57  ;;  %v6421_v4 = vmul.f32 0.5, %v6024_v8  ;;  %v2553_v43 = vmul.f32 0.7978846, %v2425_v7  ;;  %v6429_v6 = vpop.f32.mrf.mxu1  ;;  %v7827_v60 = vld [vmem:[#allocation41_spill] sm:$0xff] }
 0x39f   : > { %v4499_v39 = vpop.eup %4498  ;;  %3569 = vmatprep.mubr.bf16.mxu0 %v3032_v49  ;;  %v2802_v61 = vadd.f32 1.0, %v4497_v0  ;;  %v3029_v50 = vpack.c.bf16 %v2925_v41, %v2921_v53  ;;  %v2557_v42 = vmul.f32 0.7978846, %v2429_v38  ;;  %v6426_v48 = vmul.f32 0.5, %v6043_v29  ;;  %v7828_v29 = vld [vmem:[#allocation52_spill] sm:$0xff]  ;;  %v7829_v41 = vld [vmem:[#allocation49_spill] sm:$0xff] }
 0x3a0   : > { %v4501_v13 = vpop.eup %4500  ;;  %v2927_v59 = vmul.f32 %v2799_v54, %v6353_v31  ;;  %v2806_v2 = vadd.f32 1.0, %v4499_v39  ;;  %4520 = vtanh.f32 %v2553_v43  ;;  %v6432_v53 = vmul.f32 0.5, %v5985_v12 }
 0x3a1   : > { %v4503_v25 = vpop.eup %4502  ;;  %v2930_v55 = vmul.f32 %v2802_v61, %v6358_v27  ;;  %v2804_v14 = vadd.f32 1.0, %v4501_v13  ;;  %3409 = vmatmul.mubr.bf16.gmra.mxu1 %v3029_v50  ;;  %4522 = vtanh.f32 %v2557_v42  ;;  %v7826_v27 = vld [vmem:[#allocation46_spill] sm:$0xff]  ;;  %v2431_v54 = vadd.f32 %v7829_v41, %v7828_v29 }
 0x3a2   : > { %v4505_v57 = vpop.eup %4504  ;;  %v3031_v10 = vpack.c.bf16 %v2927_v59, %v2923_v33  ;;  %v2934_v8 = vmul.f32 %v2806_v2, %v6361_v63  ;;  %v2808_v7 = vadd.f32 1.0, %v4503_v25  ;;  %v2427_v0 = vadd.f32 %v7827_v60, %v7826_v27 }
 0x3a3   : > { %v4507_v31 = vpop.eup %4506  ;;  %v2801_v49 = vadd.f32 1.0, %v4505_v57  ;;  %v2932_v39 = vmul.f32 %v2804_v14, %v6370_v58  ;;  %v6443_v12 = vmul.f32 0.5, %v7824_v62  ;;  %v2559_v59 = vmul.f32 0.7978846, %v2431_v54 }
 0x3a4   : > { %v4509_v38 = vpop.eup %4508  ;;  %3570 = vmatmul.mubr.bf16.gmra.mxu0 %v3031_v10  ;;  %v3034_v63 = vpack.c.bf16 %v2934_v8, %v2930_v55  ;;  %v2936_v33 = vmul.f32 %v2808_v7, %v6373_v45  ;;  %v2805_v61 = vadd.f32 1.0, %v4507_v31  ;;  %v2555_v50 = vmul.f32 0.7978846, %v2427_v0  ;;  %v6447_v55 = vpop.f32.mrf.mxu1 }
 0x3a5   : > { %v4511_v43 = vpop.eup %4510  ;;  %v2803_v13 = vadd.f32 1.0, %v4509_v38  ;;  %v2929_v42 = vmul.f32 %v2801_v49, %v6378_v52  ;;  %v2434_v14 = vadd.f32 %v6175_v9, %v6129_v32  ;;  %v2438_v62 = vadd.f32 %v6188_v3, %v6150_v17  ;;  %v6454_v10 = vpop.f32.mrf.mxu0 }
 0x3a6   : > { %3416 = vmatprep.mubr.bf16.mxu1 %v3034_v63  ;;  %v3036_v2 = vpack.c.bf16 %v2936_v33, %v2932_v39  ;;  %v2933_v25 = vmul.f32 %v2805_v61, %v6385_v15  ;;  %v2807_v57 = vadd.f32 1.0, %v4511_v43  ;;  %v4513_v58 = vpop.eup %4512  ;;  %4524 = vtanh.f32 %v2555_v50 }
 0x3a7   : > { %v2931_v45 = vmul.f32 %v2803_v13, %v6390_v56  ;;  %v4515_v8 = vpop.eup %4514  ;;  %v2810_v7 = vadd.f32 1.0, %v4513_v58  ;;  %4526 = vtanh.f32 %v2559_v59  ;;  %v6458_v49 = vmul.f32 0.5, %v7826_v27  ;;  %v6471_v33 = vpop.f32.mrf.mxu0 }
 0x3a8   : > { %3577 = vmatprep.mubr.bf16.mxu0 %v3036_v2  ;;  %v3033_v52 = vpack.c.bf16 %v2933_v25, %v2929_v42  ;;  %v2935_v15 = vmul.f32 %v2807_v57, %v6399_v34  ;;  %v2814_v31 = vadd.f32 1.0, %v4515_v8  ;;  %v2562_v56 = vmul.f32 0.7978846, %v2434_v14  ;;  %v6466_v34 = vpop.f32.mrf.mxu1  ;;  %v7831_v8 = vld [vmem:[#allocation42_spill] sm:$0xff] }
 0x3a9   : > { %v2566_v60 = vmul.f32 0.7978846, %v2438_v62  ;;  %v4517_v0 = vpop.eup %4516  ;;  %v2938_v3 = vmul.f32 %v2810_v7, %v6405_v30  ;;  %v6462_v41 = vmul.f32 0.5, %v7828_v29  ;;  %v2436_v54 = vadd.f32 %v6178_v21, %v6132_v16 }
 0x3aa   : > { %3417 = vmatmul.mubr.bf16.gmra.mxu1 %v3033_v52  ;;  %v3035_v9 = vpack.c.bf16 %v2935_v15, %v2931_v45  ;;  %v4519_v38 = vpop.eup %4518  ;;  %v2942_v63 = vmul.f32 %v2814_v31, %v6411_v44  ;;  %v2812_v27 = vadd.f32 1.0, %v4517_v0  ;;  %4528 = vtanh.f32 %v2562_v56  ;;  %v6481_v42 = vpop.f32.mrf.mxu1 }
 0x3ab   : > { %v2440_v39 = vadd.f32 %v6198_v46, %v6159_v23  ;;  %v2816_v30 = vadd.f32 1.0, %v4519_v38  ;;  %v6474_v29 = vmul.f32 0.5, %v6129_v32  ;;  %4530 = vtanh.f32 %v2566_v60  ;;  %v7832_v60 = vld [vmem:[#allocation56_spill] sm:$0xff] }
 0x3ac   : > { %3578 = vmatmul.mubr.bf16.gmra.mxu0 %v3035_v9  ;;  %v2564_v61 = vmul.f32 0.7978846, %v2436_v54  ;;  %v3038_v21 = vpack.c.bf16 %v2942_v63, %v2938_v3  ;;  %v2940_v43 = vmul.f32 %v2812_v27, %v6421_v4  ;;  %v1925_v44 = vmul.f32 0.5, %v6141_v47  ;;  %v7830_v4 = vld [vmem:[#allocation59_spill] sm:$0xff]  ;;  %v6487_v47 = vpop.f32.mrf.mxu0  ;;  %v6506_v56 = vpop.f32.mrf.mxu1 }
 0x3ad   : > { %v2568_v13 = vmul.f32 0.7978846, %v2440_v39  ;;  %v4521_v50 = vpop.eup %4520  ;;  %v2944_v59 = vmul.f32 %v2816_v30, %v6426_v48  ;;  %v2817_v46 = vadd.f32 1.0, %v6222_v24  ;;  %v2821_v2 = vadd.f32 1.0, %v6277_v26 }
 0x3ae   : > { %4532 = vtanh.f32 %v2564_v61  ;;  %v4523_v32 = vpop.eup %4522  ;;  %3424 = vmatprep.mubr.bf16.mxu1 %v3038_v21  ;;  %v2809_v25 = vadd.f32 1.0, %v4521_v50  ;;  %v6484_v57 = vmul.f32 0.5, %v6150_v17  ;;  %v1921_v58 = vmul.f32 0.5, %v7830_v4 }
 0x3af   : > { %4534 = vtanh.f32 %v2568_v13  ;;  %v3040_v45 = vpack.c.bf16 %v2944_v59, %v2940_v43  ;;  %v2813_v48 = vadd.f32 1.0, %v4523_v32  ;;  %v6490_v14 = vmul.f32 0.5, %v6132_v16  ;;  %v7833_v32 = vld [vmem:[#allocation50_spill] sm:$0xff] }
 0x3b0   : > { %v6492_v24 = vmul.f32 %v2821_v2, %v1925_v44  ;;  %v6495_v26 = vmul.f32 0.5, %v6159_v23  ;;  %v6497_v62 = vmul.f32 %v2817_v46, %v1921_v58  ;;  %v1923_v17 = vmul.f32 0.5, %v7831_v8 }
 0x3b1   : > { %v2819_v52 = vadd.f32 1.0, %v6230_v37  ;;  %3585 = vmatprep.mubr.bf16.mxu0 %v3040_v45  ;;  %v2937_v15 = vmul.f32 %v2809_v25, %v6432_v53  ;;  %v2941_v7 = vmul.f32 %v2813_v48, %v6443_v12  ;;  %v2823_v31 = vadd.f32 1.0, %v6287_v36  ;;  %v6516_v53 = vpop.f32.mrf.mxu0  ;;  %v7834_v45 = vld [vmem:[#allocation53_spill] sm:$0xff] }
 0x3b2   : > { %v2442_v16 = vadd.f32 %v6290_v22, %v6239_v18  ;;  %v3041_v23 = vpack.c.bf16 %v6492_v24, %v6497_v62  ;;  %v1927_v0 = vmul.f32 0.5, %v7832_v60  ;;  %v6512_v9 = vmul.f32 0.5, %v6239_v18 }
 0x3b3   : > { %v2446_v37 = vadd.f32 %v6307_v19, %v6263_v5  ;;  %v4525_v12 = vpop.eup %4524  ;;  %v3037_v36 = vpack.c.bf16 %v2941_v7, %v2937_v15  ;;  %v6519_v3 = vmul.f32 0.5, %v6263_v5  ;;  %v2444_v54 = vadd.f32 %v6293_v35, %v6245_v51  ;;  %v6529_v5 = vpop.f32.mrf.mxu1  ;;  %v7837_v7 = vld [vmem:[#allocation34_spill] sm:$0xff] }
 0x3b4   : > { %v2570_v22 = vmul.f32 0.7978846, %v2442_v16  ;;  %v4527_v38 = vpop.eup %4526  ;;  %v2811_v63 = vadd.f32 1.0, %v4525_v12  ;;  %v6523_v27 = vmul.f32 %v2819_v52, %v1923_v17  ;;  %v2448_v39 = vadd.f32 %v6312_v11, %v6266_v20  ;;  %v6537_v13 = vpop.f32.mrf.mxu0  ;;  %v7836_v52 = vld [vmem:[#allocation66_spill] sm:$0xff]  ;;  %v7838_v12 = vld [vmem:[#allocation35_spill] sm:$0xff] }
 0x3b5   : > { %v2574_v18 = vmul.f32 0.7978846, %v2446_v37  ;;  %3425 = vmatmul.mubr.bf16.gmra.mxu1 %v3037_v36  ;;  %v2815_v19 = vadd.f32 1.0, %v4527_v38  ;;  %v6527_v30 = vmul.f32 %v2823_v31, %v1927_v0  ;;  %v2572_v61 = vmul.f32 0.7978846, %v2444_v54  ;;  %v7839_v38 = vld [vmem:[#allocation69_spill] sm:$0xff] }
 0x3b6   : > { %4536 = vtanh.f32 %v2570_v22  ;;  %v6532_v21 = vmul.f32 0.5, %v6245_v51  ;;  %v6535_v35 = vmul.f32 0.5, %v6266_v20  ;;  %v2576_v43 = vmul.f32 0.7978846, %v2448_v39 }
 0x3b7   : > { %4538 = vtanh.f32 %v2574_v18  ;;  %v4529_v44 = vpop.eup %4528  ;;  %v2939_v11 = vmul.f32 %v2811_v63, %v6458_v49  ;;  %v2943_v50 = vmul.f32 %v2815_v19, %v6462_v41  ;;  %v2825_v59 = vadd.f32 1.0, %v6331_v40  ;;  %v6547_v49 = vpop.f32.mrf.mxu1  ;;  %v7835_v40 = vld [vmem:[#allocation60_spill] sm:$0xff]  ;;  %v7840_v18 = vld [vmem:[#allocation54_spill] sm:$0xff] }
 0x3b8   : > { %4540 = vtanh.f32 %v2572_v61  ;;  %v4531_v46 = vpop.eup %4530  ;;  %v2818_v2 = vadd.f32 1.0, %v4529_v44  ;;  %v1929_v51 = vmul.f32 0.5, %v7833_v32  ;;  %v2829_v25 = vadd.f32 1.0, %v6382_v28  ;;  %v6557_v28 = vpop.f32.mrf.mxu0  ;;  %v7842_v44 = vld [vmem:[#allocation37_spill] sm:$0xff] }
 0x3b9   : > { %4542 = vtanh.f32 %v2576_v43  ;;  %v3039_v20 = vpack.c.bf16 %v2943_v50, %v2939_v11  ;;  %v2822_v4 = vadd.f32 1.0, %v4531_v46  ;;  %v3043_v58 = vpack.c.bf16 %v6527_v30, %v6523_v27  ;;  %v6575_v30 = vpop.f32.mrf.mxu1 }
 0x3ba   : > { %v1933_v48 = vmul.f32 0.5, %v7834_v45  ;;  %v6549_v8 = vmul.f32 %v2825_v59, %v1929_v51  ;;  %v1931_v17 = vmul.f32 0.5, %v7835_v40  ;;  %v1935_v15 = vmul.f32 0.5, %v7836_v52  ;;  %v6584_v50 = vpop.f32.mrf.mxu0 }
 0x3bb   : > { %v4533_v41 = vpop.eup %4532  ;;  %v6555_v31 = vadd.f32 %v6429_v6, %v7837_v7  ;;  %3586 = vmatmul.mubr.bf16.gmra.mxu0 %v3039_v20  ;;  %v2946_v60 = vmul.f32 %v2818_v2, %v6474_v29  ;;  %v2950_v0 = vmul.f32 %v2822_v4, %v6484_v57  ;;  %v6563_v36 = vadd.f32 %v6438_v1, %v7838_v12  ;;  %v7841_v29 = vld [vmem:[#allocation36_spill] sm:$0xff]  ;;  %v6610_v20 = vpop.f32.mrf.mxu1 }
 0x3bc   : > { %v4535_v16 = vpop.eup %4534  ;;  %v2820_v37 = vadd.f32 1.0, %v4533_v41  ;;  %v6565_v54 = vmul.f32 %v2829_v25, %v1933_v48  ;;  %v2827_v63 = vadd.f32 1.0, %v7839_v38  ;;  %v2831_v39 = vadd.f32 1.0, %v7840_v18  ;;  %v6614_v45 = vpop.f32.mrf.mxu0 }
 0x3bd   : > { %v2824_v22 = vadd.f32 1.0, %v4535_v16  ;;  %v2065_v6 = vmul.f32 0.044715, %v6555_v31  ;;  %v3042_v27 = vpack.c.bf16 %v2950_v0, %v2946_v60  ;;  %v2067_v19 = vmul.f32 0.044715, %v6563_v36 }
 0x3be   : > { %v6573_v57 = vadd.f32 %v6447_v55, %v7841_v29  ;;  %v2948_v1 = vmul.f32 %v2820_v37, %v6490_v14  ;;  %v6582_v11 = vadd.f32 %v6454_v10, %v7842_v44  ;;  %v6590_v46 = vadd.f32 %v6466_v34, %v7837_v7 }
 0x3bf   : > { %v2952_v61 = vmul.f32 %v2824_v22, %v6495_v26  ;;  %v2193_v43 = vmul.f32 %v2065_v6, %v6555_v31  ;;  %3432 = vmatprep.mubr.bf16.mxu1 %v3042_v27  ;;  %v2195_v59 = vmul.f32 %v2067_v19, %v6563_v36  ;;  %v6594_v14 = vadd.f32 %v6471_v33, %v7838_v12  ;;  %v6631_v19 = vpop.f32.mrf.mxu0 }
 0x3c0   : > { %v2066_v55 = vmul.f32 0.044715, %v6573_v57  ;;  %3433 = vmatmul.mubr.bf16.gmra.mxu1 %v3041_v23  ;;  %v2068_v2 = vmul.f32 0.044715, %v6582_v11  ;;  %v6603_v32 = vadd.f32 %v6481_v42, %v7841_v29  ;;  %v3045_v34 = vpack.c.bf16 %v6565_v54, %v6549_v8 }
 0x3c1   : > { %v3044_v26 = vpack.c.bf16 %v2952_v61, %v2948_v1  ;;  %v2321_v10 = vmul.f32 %v2193_v43, %v6555_v31  ;;  %v2323_v51 = vmul.f32 %v2195_v59, %v6563_v36  ;;  %v2069_v33 = vmul.f32 0.044715, %v6590_v46 }
 0x3c2   : > { %v2071_v25 = vmul.f32 0.044715, %v6594_v14  ;;  %v2955_v62 = vmul.f32 %v2827_v63, %v1931_v17  ;;  %v2959_v23 = vmul.f32 %v2831_v39, %v1935_v15  ;;  %v2194_v42 = vmul.f32 %v2066_v55, %v6573_v57  ;;  %v6627_v63 = vpop.f32.mrf.mxu1 }
 0x3c3   : > { %v4537_v24 = vpop.eup %4536  ;;  %3593 = vmatprep.mubr.bf16.mxu0 %v3044_v26  ;;  %v2449_v4 = vadd.f32 %v2321_v10, %v6555_v31  ;;  %v2451_v8 = vadd.f32 %v2323_v51, %v6563_v36  ;;  %v2196_v40 = vmul.f32 %v2068_v2, %v6582_v11  ;;  %v2197_v52 = vmul.f32 %v2069_v33, %v6590_v46 }
 0x3c4   : > { %v4539_v48 = vpop.eup %4538  ;;  %3594 = vmatmul.mubr.bf16.gmra.mxu0 %v3043_v58  ;;  %v2826_v41 = vadd.f32 1.0, %v4537_v24  ;;  %v2199_v17 = vmul.f32 %v2071_v25, %v6594_v14  ;;  %v2070_v15 = vmul.f32 0.044715, %v6603_v32  ;;  %v6623_v0 = vadd.f32 %v6487_v47, %v7842_v44  ;;  %v6652_v2 = vpop.f32.mrf.mxu1 }
 0x3c5   : > { %v4541_v16 = vpop.eup %4540  ;;  %v2830_v60 = vadd.f32 1.0, %v4539_v48  ;;  %v2577_v54 = vmul.f32 0.7978846, %v2449_v4  ;;  %v2325_v38 = vmul.f32 %v2197_v52, %v6590_v46  ;;  %v2579_v18 = vmul.f32 0.7978846, %v2451_v8  ;;  %v6659_v25 = vpop.f32.mrf.mxu0 }
 0x3c6   : > { %v4543_v37 = vpop.eup %4542  ;;  %v2954_v58 = vmul.f32 %v2826_v41, %v6512_v9  ;;  %v2828_v22 = vadd.f32 1.0, %v4541_v16  ;;  %v2327_v39 = vmul.f32 %v2199_v17, %v6594_v14  ;;  %v3047_v1 = vpack.c.bf16 %v2959_v23, %v2955_v62  ;;  %v1631_v8 = vpop.f32.mrf.mxu1 }
 0x3c7   : > { %v2958_v6 = vmul.f32 %v2830_v60, %v6519_v3  ;;  %v2832_v27 = vadd.f32 1.0, %v4543_v37  ;;  %v6635_v61 = vmul.f32 %v2194_v42, %v6573_v57  ;;  %v2453_v9 = vadd.f32 %v2325_v38, %v6590_v46  ;;  %v1824_v60 = vpop.f32.mrf.mxu0 }
 0x3c8   : > { %v2956_v47 = vmul.f32 %v2828_v22, %v6532_v21  ;;  %v2455_v55 = vadd.f32 %v2327_v39, %v6594_v14  ;;  %v2198_v3 = vmul.f32 %v2070_v15, %v6603_v32  ;;  %4544 = vtanh.f32 %v2577_v54 }
 0x3c9   : > { %v3046_v43 = vpack.c.bf16 %v2958_v6, %v2954_v58  ;;  %v2960_v59 = vmul.f32 %v2832_v27, %v6535_v35  ;;  %v6642_v26 = vmul.f32 %v2196_v40, %v6582_v11  ;;  %v6646_v21 = vadd.f32 %v6506_v56, %v7837_v7  ;;  %v1635_v27 = vpop.f32.mrf.mxu1 }
 0x3ca   : > { %v6650_v10 = vadd.f32 %v6516_v53, %v7838_v12  ;;  %4546 = vtanh.f32 %v2579_v18  ;;  %v2072_v51 = vmul.f32 0.044715, %v6623_v0  ;;  %v6657_v33 = vadd.f32 %v6529_v5, %v7841_v29 }
 0x3cb   : > { %3440 = vmatprep.mubr.bf16.mxu1 %v3046_v43  ;;  %v3048_v35 = vpack.c.bf16 %v2960_v59, %v2956_v47  ;;  %v2581_v56 = vmul.f32 0.7978846, %v2453_v9  ;;  %v2073_v24 = vmul.f32 0.044715, %v6646_v21  ;;  %v6665_v62 = vadd.f32 %v6537_v13, %v7842_v44 }
 0x3cc   : > { %3441 = vmatmul.mubr.bf16.gmra.mxu1 %v3045_v34  ;;  %v2075_v53 = vmul.f32 0.044715, %v6650_v10  ;;  %v2583_v23 = vmul.f32 0.7978846, %v2455_v55  ;;  %v6668_v4 = vmul.f32 %v2198_v3, %v6603_v32  ;;  %v2074_v5 = vmul.f32 0.044715, %v6657_v33 }
 0x3cd   : > { %3601 = vmatprep.mubr.bf16.mxu0 %v3048_v35  ;;  %v6673_v42 = vadd.f32 %v6547_v49, %v7837_v7  ;;  %v2201_v34 = vmul.f32 %v2073_v24, %v6646_v21  ;;  %v2076_v41 = vmul.f32 0.044715, %v6665_v62  ;;  %v6680_v13 = vadd.f32 %v6557_v28, %v7838_v12 }
 0x3ce   : > { %3602 = vmatmul.mubr.bf16.gmra.mxu0 %v3047_v1  ;;  %v2203_v48 = vmul.f32 %v2075_v53, %v6650_v10  ;;  %v2200_v40 = vmul.f32 %v2072_v51, %v6623_v0  ;;  %v6686_v49 = vadd.f32 %v6575_v30, %v7841_v29  ;;  %v6690_v16 = vadd.f32 %v6584_v50, %v7842_v44  ;;  %v1828_v1 = vpop.f32.mrf.mxu0 }
 0x3cf   : > { %v2077_v52 = vmul.f32 0.044715, %v6673_v42  ;;  %4548 = vtanh.f32 %v2581_v56  ;;  %v2329_v17 = vmul.f32 %v2201_v34, %v6646_v21  ;;  %v2079_v15 = vmul.f32 0.044715, %v6680_v13 }
 0x3d0   : > { %v2331_v28 = vmul.f32 %v2203_v48, %v6650_v10  ;;  %v2202_v37 = vmul.f32 %v2074_v5, %v6657_v33  ;;  %v2204_v58 = vmul.f32 %v2076_v41, %v6665_v62  ;;  %v2078_v30 = vmul.f32 0.044715, %v6686_v49 }
 0x3d1   : > { %v2205_v22 = vmul.f32 %v2077_v52, %v6673_v42  ;;  %v2457_v54 = vadd.f32 %v2329_v17, %v6646_v21  ;;  %v2207_v38 = vmul.f32 %v2079_v15, %v6680_v13  ;;  %v2080_v6 = vmul.f32 0.044715, %v6690_v16  ;;  %v1830_v52 = vpop.f32.mrf.mxu0 }
 0x3d2   : > { %v2459_v50 = vadd.f32 %v2331_v28, %v6650_v10  ;;  %4550 = vtanh.f32 %v2583_v23  ;;  %v2206_v39 = vmul.f32 %v2078_v30, %v6686_v49  ;;  %v6707_v47 = vadd.f32 %v6610_v20, %v7837_v7 }
 0x3d3   : > { %v2333_v18 = vmul.f32 %v2205_v22, %v6673_v42  ;;  %v6710_v9 = vmul.f32 %v2200_v40, %v6623_v0  ;;  %v2585_v43 = vmul.f32 0.7978846, %v2457_v54  ;;  %v2335_v59 = vmul.f32 %v2207_v38, %v6680_v13 }
 0x3d4   : > { %7843 = vst [vmem:[#allocation67_spill] sm:$0xff] %v6707_v47  ;;  %v6715_v55 = vadd.f32 %v6614_v45, %v7838_v12  ;;  %v6718_v3 = vmul.f32 %v2202_v37, %v6657_v33  ;;  %v6721_v35 = vmul.f32 %v2204_v58, %v6665_v62  ;;  %v2081_v51 = vmul.f32 0.044715, %v6707_v47  ;;  %v1637_v45 = vpop.f32.mrf.mxu1 }
 0x3d5   : > { %v2461_v20 = vadd.f32 %v2333_v18, %v6673_v42  ;;  %v2587_v56 = vmul.f32 0.7978846, %v2459_v50  ;;  %v2208_v24 = vmul.f32 %v2080_v6, %v6690_v16  ;;  %v6729_v23 = vadd.f32 %v6627_v63, %v7841_v29  ;;  %v6731_v5 = vpop.eup %4544 }
 0x3d6   : > { %7844 = vst [vmem:[#allocation62_spill] sm:$0xff] %v6715_v55  ;;  %v2083_v53 = vmul.f32 0.044715, %v6715_v55  ;;  %v2463_v34 = vadd.f32 %v2335_v59, %v6680_v13  ;;  %v6735_v48 = vmul.f32 %v2206_v39, %v6686_v49  ;;  %v2209_v41 = vmul.f32 %v2081_v51, %v6707_v47  ;;  %v1639_v38 = vpop.f32.mrf.mxu1 }
 0x3d7   : > { %v6740_v40 = vadd.f32 %v6631_v19, %v7842_v44  ;;  %v6742_v17 = vpop.eup %4546  ;;  %4552 = vtanh.f32 %v2585_v43  ;;  %v2082_v28 = vmul.f32 0.044715, %v6729_v23  ;;  %v6748_v15 = vadd.f32 %v6652_v2, %v7837_v7  ;;  %v1832_v43 = vpop.f32.mrf.mxu0 }
 0x3d8   : > { %v2211_v63 = vmul.f32 %v2083_v53, %v6715_v55  ;;  %v2589_v37 = vmul.f32 0.7978846, %v2461_v20  ;;  %v2337_v58 = vmul.f32 %v2209_v41, %v6707_v47  ;;  %v6754_v19 = vadd.f32 %v6659_v25, %v7838_v12 }
 0x3d9   : > { %7845 = vst [vmem:[#allocation70_spill] sm:$0xff] %v6740_v40  ;;  %7846 = vst [vmem:[#allocation68_spill] sm:$0xff] %v6748_v15  ;;  %v2084_v22 = vmul.f32 0.044715, %v6740_v40  ;;  %4554 = vtanh.f32 %v2587_v56  ;;  %v6757_v30 = vmul.f32 %v2208_v24, %v6690_v16  ;;  %v2085_v50 = vmul.f32 0.044715, %v6748_v15 }
 0x3da   : > { %7847 = vst [vmem:[#allocation73_spill] sm:$0xff] %v6754_v19  ;;  %v2339_v54 = vmul.f32 %v2211_v63, %v6715_v55  ;;  %v2591_v2 = vmul.f32 0.7978846, %v2463_v34  ;;  %v2465_v6 = vadd.f32 %v2337_v58, %v6707_v47  ;;  %v2087_v18 = vmul.f32 0.044715, %v6754_v19  ;;  %v1641_v58 = vpop.f32.mrf.mxu1 }
 0x3db   : > { %v6764_v39 = vadd.f32 %v1631_v8, %v7841_v29  ;;  %v2210_v59 = vmul.f32 %v2082_v28, %v6729_v23  ;;  %v2213_v20 = vmul.f32 %v2085_v50, %v6748_v15  ;;  %v6770_v51 = vadd.f32 %v1824_v60, %v7842_v44 }
 0x3dc   : > { %v2467_v25 = vadd.f32 %v2339_v54, %v6715_v55  ;;  %v6772_v56 = vpop.eup %4548  ;;  %4556 = vtanh.f32 %v2589_v37  ;;  %v2212_v24 = vmul.f32 %v2084_v22, %v6740_v40  ;;  %v2215_v53 = vmul.f32 %v2087_v18, %v6754_v19  ;;  %v1834_v22 = vpop.f32.mrf.mxu0 }
 0x3dd   : > { %7848 = vst [vmem:[#allocation63_spill] sm:$0xff] %v6764_v39  ;;  %7849 = vst [vmem:[#allocation71_spill] sm:$0xff] %v6770_v51  ;;  %v2086_v8 = vmul.f32 0.044715, %v6764_v39  ;;  %v2593_v34 = vmul.f32 0.7978846, %v2465_v6  ;;  %v2341_v41 = vmul.f32 %v2213_v20, %v6748_v15  ;;  %v6780_v28 = vadd.f32 %v1635_v27, %v7837_v7 }
 0x3de   : > { %v2088_v63 = vmul.f32 0.044715, %v6770_v51  ;;  %4558 = vtanh.f32 %v2591_v2  ;;  %v2595_v60 = vmul.f32 0.7978846, %v2467_v25  ;;  %v2343_v54 = vmul.f32 %v2215_v53, %v6754_v19 }
 0x3df   : > { %7850 = vst [vmem:[#allocation64_spill] sm:$0xff] %v6780_v28  ;;  %v6784_v37 = vadd.f32 %v1828_v1, %v7838_v12  ;;  %v6786_v50 = vpop.eup %4550  ;;  %v6789_v6 = vmul.f32 %v2210_v59, %v6729_v23  ;;  %v2469_v18 = vadd.f32 %v2341_v41, %v6748_v15  ;;  %v2214_v20 = vmul.f32 %v2086_v8, %v6764_v39  ;;  %v1645_v8 = vpop.f32.mrf.mxu1 }
 0x3e0   : > { %v2089_v27 = vmul.f32 0.044715, %v6780_v28  ;;  %v6795_v2 = vmul.f32 %v2212_v24, %v6740_v40  ;;  %v2216_v25 = vmul.f32 %v2088_v63, %v6770_v51  ;;  %v6800_v53 = vadd.f32 %v1637_v45, %v7841_v29  ;;  %v1838_v15 = vpop.f32.mrf.mxu0 }
 0x3e1   : > { %7851 = vst [vmem:[#allocation72_spill] sm:$0xff] %v6784_v37  ;;  %7852 = vst [vmem:[#allocation81_spill] sm:$0xff] %v6789_v6  ;;  %v2091_v1 = vmul.f32 0.044715, %v6784_v37  ;;  %4560 = vtanh.f32 %v2593_v34  ;;  %v2471_v59 = vadd.f32 %v2343_v54, %v6754_v19  ;;  %v6805_v41 = vadd.f32 %v1830_v52, %v7842_v44 }
 0x3e2   : > { %7853 = vst [vmem:[#allocation82_spill] sm:$0xff] %v6795_v2  ;;  %7854 = vst [vmem:[#allocation78_spill] sm:$0xff] %v6800_v53  ;;  %v2217_v55 = vmul.f32 %v2089_v27, %v6780_v28  ;;  %4562 = vtanh.f32 %v2595_v60  ;;  %v2090_v47 = vmul.f32 0.044715, %v6800_v53  ;;  %v6810_v63 = vadd.f32 %v1639_v38, %v7837_v7 }
 0x3e3   : > { %7855 = vst [vmem:[#allocation87_spill] sm:$0xff] %v6805_v41  ;;  %v2219_v24 = vmul.f32 %v2091_v1, %v6784_v37  ;;  %v2597_v45 = vmul.f32 0.7978846, %v2469_v18  ;;  %v6813_v34 = vmul.f32 %v2214_v20, %v6764_v39  ;;  %v6817_v27 = vadd.f32 %v1832_v43, %v7838_v12  ;;  %v1647_v43 = vpop.f32.mrf.mxu1 }
 0x3e4   : > { %7856 = vst [vmem:[#allocation74_spill] sm:$0xff] %v6810_v63  ;;  %v2345_v54 = vmul.f32 %v2217_v55, %v6780_v28  ;;  %v6819_v52 = vpop.eup %4552  ;;  %v6822_v60 = vmul.f32 %v2216_v25, %v6770_v51  ;;  %v2092_v38 = vmul.f32 0.044715, %v6805_v41  ;;  %v2093_v19 = vmul.f32 0.044715, %v6810_v63 }
 0x3e5   : > { %7857 = vst [vmem:[#allocation79_spill] sm:$0xff] %v6813_v34  ;;  %7858 = vst [vmem:[#allocation76_spill] sm:$0xff] %v6817_v27  ;;  %v2347_v1 = vmul.f32 %v2219_v24, %v6784_v37  ;;  %v2599_v18 = vmul.f32 0.7978846, %v2471_v59  ;;  %v2095_v2 = vmul.f32 0.044715, %v6817_v27  ;;  %v6830_v55 = vadd.f32 %v1641_v58, %v7841_v29  ;;  %v1840_v59 = vpop.f32.mrf.mxu0 }
 0x3e6   : > { %7859 = vst [vmem:[#allocation83_spill] sm:$0xff] %v6822_v60  ;;  %v2473_v20 = vadd.f32 %v2345_v54, %v6780_v28  ;;  %v6832_v40 = vpop.eup %4554  ;;  %v2218_v60 = vmul.f32 %v2090_v47, %v6800_v53  ;;  %v2221_v24 = vmul.f32 %v2093_v19, %v6810_v63  ;;  %v6838_v51 = vadd.f32 %v1834_v22, %v7842_v44 }
 0x3e7   : > { %7860 = vst [vmem:[#allocation75_spill] sm:$0xff] %v6830_v55  ;;  %v2475_v25 = vadd.f32 %v2347_v1, %v6784_v37  ;;  %4564 = vtanh.f32 %v2597_v45  ;;  %v2223_v28 = vmul.f32 %v2095_v2, %v6817_v27  ;;  %v2094_v58 = vmul.f32 0.044715, %v6830_v55  ;;  %v1649_v2 = vpop.f32.mrf.mxu1 }
 0x3e8   : > { %v2601_v54 = vmul.f32 0.7978846, %v2473_v20  ;;  %v2220_v39 = vmul.f32 %v2092_v38, %v6805_v41  ;;  %v2349_v6 = vmul.f32 %v2221_v24, %v6810_v63  ;;  %v6845_v1 = vadd.f32 %v1645_v8, %v7837_v7 }
 0x3e9   : > { %v2603_v34 = vmul.f32 0.7978846, %v2475_v25  ;;  %v6847_v47 = vpop.eup %4556  ;;  %4566 = vtanh.f32 %v2599_v18  ;;  %v2351_v19 = vmul.f32 %v2223_v28, %v6817_v27  ;;  %v2096_v22 = vmul.f32 0.044715, %v6838_v51  ;;  %v1842_v25 = vpop.f32.mrf.mxu0 }
 0x3ea   : > { %7861 = vst [vmem:[#allocation80_spill] sm:$0xff] %v6845_v1  ;;  %v6852_v45 = vadd.f32 %v1838_v15, %v7838_v12  ;;  %4568 = vtanh.f32 %v2601_v54  ;;  %v6855_v20 = vmul.f32 %v2218_v60, %v6800_v53  ;;  %v2222_v38 = vmul.f32 %v2094_v58, %v6830_v55 }
 0x3eb   : > { %v2097_v8 = vmul.f32 0.044715, %v6845_v1  ;;  %v6859_v24 = vpop.eup %4558  ;;  %v2477_v18 = vadd.f32 %v2349_v6, %v6810_v63  ;;  %v2479_v28 = vadd.f32 %v2351_v19, %v6817_v27  ;;  %v6865_v15 = vadd.f32 %v1647_v43, %v7841_v29  ;;  %v1651_v43 = vpop.f32.mrf.mxu1 }
 0x3ec   : > { %7862 = vst [vmem:[#allocation77_spill] sm:$0xff] %v6852_v45  ;;  %7863 = vst [vmem:[#allocation86_spill] sm:$0xff] %v6855_v20  ;;  %v2099_v37 = vmul.f32 0.044715, %v6852_v45  ;;  %4570 = vtanh.f32 %v2603_v34  ;;  %v6868_v60 = vmul.f32 %v2220_v39, %v6805_v41  ;;  %v6872_v58 = vadd.f32 %v1840_v59, %v7842_v44 }
 0x3ed   : > { %v2225_v54 = vmul.f32 %v2097_v8, %v6845_v1  ;;  %v2224_v20 = vmul.f32 %v2096_v22, %v6838_v51  ;;  %v2098_v19 = vmul.f32 0.044715, %v6865_v15  ;;  %v6878_v27 = vadd.f32 %v1649_v2, %v7837_v7  ;;  %v1844_v22 = vpop.f32.mrf.mxu0 }
 0x3ee   : > { %7864 = vst [vmem:[#allocation44_spill] sm:$0xff] %v6868_v60  ;;  %7865 = vst [vmem:[#allocation88_spill] sm:$0xff] %v6872_v58  ;;  %v2227_v6 = vmul.f32 %v2099_v37, %v6852_v45  ;;  %v6880_v63 = vpop.eup %4560  ;;  %v6883_v39 = vmul.f32 %v2222_v38, %v6830_v55  ;;  %v2100_v59 = vmul.f32 0.044715, %v6872_v58  ;;  %v6888_v8 = vadd.f32 %v1842_v25, %v7838_v12 }
 0x3ef   : > { %7866 = vst [vmem:[#allocation39_spill] sm:$0xff] %v6878_v27  ;;  %7867 = vst [vmem:[#allocation43_spill] sm:$0xff] %v6880_v63  ;;  %v2353_v34 = vmul.f32 %v2225_v54, %v6845_v1  ;;  %v6890_v37 = vpop.eup %4562  ;;  %v2605_v60 = vmul.f32 0.7978846, %v2477_v18  ;;  %v2607_v41 = vmul.f32 0.7978846, %v2479_v28  ;;  %v2226_v38 = vmul.f32 %v2098_v19, %v6865_v15 }
 0x3f0   : > { %7868 = vst [vmem:[#allocation45_spill] sm:$0xff] %v6883_v39  ;;  %7869 = vst [vmem:[#allocation61_spill] sm:$0xff] %v6888_v8  ;;  %v2355_v2 = vmul.f32 %v2227_v6, %v6852_v45  ;;  %v2101_v53 = vmul.f32 0.044715, %v6878_v27  ;;  %v2103_v54 = vmul.f32 0.044715, %v6888_v8  ;;  %v6898_v39 = vadd.f32 %v1651_v43, %v7841_v29 }
 0x3f1   : > { %7870 = vst [vmem:[#allocation84_spill] sm:$0xff] %v6890_v37  ;;  %v2481_v63 = vadd.f32 %v2353_v34, %v6845_v1  ;;  %v2228_v55 = vmul.f32 %v2100_v59, %v6872_v58  ;;  %v6904_v28 = vadd.f32 %v1844_v22, %v7842_v44  ;;  %v6907_v6 = vmul.f32 %v2224_v20, %v6838_v51  ;;  %v1655_v59 = vpop.f32.mrf.mxu1 }
 0x3f2   : > { %v2483_v25 = vadd.f32 %v2355_v2, %v6852_v45  ;;  %v2229_v18 = vmul.f32 %v2101_v53, %v6878_v27  ;;  %v2231_v19 = vmul.f32 %v2103_v54, %v6888_v8  ;;  %v2102_v1 = vmul.f32 0.044715, %v6898_v39 }
 0x3f3   : > { %7871 = vst [vmem:[#allocation40_spill] sm:$0xff] %v6907_v6  ;;  %v2609_v34 = vmul.f32 0.7978846, %v2481_v63  ;;  %4572 = vtanh.f32 %v2605_v60  ;;  %v2104_v2 = vmul.f32 0.044715, %v6904_v28  ;;  %v6916_v53 = vmul.f32 %v2226_v38, %v6865_v15 }
 0x3f4   : > { %v2611_v43 = vmul.f32 0.7978846, %v2483_v25  ;;  %v2357_v37 = vmul.f32 %v2229_v18, %v6878_v27  ;;  %v6913_v45 = vpop.eup %4564  ;;  %4574 = vtanh.f32 %v2607_v41  ;;  %v2359_v20 = vmul.f32 %v2231_v19, %v6888_v8  ;;  %v1848_v18 = vpop.f32.mrf.mxu0 }
 0x3f5   : > { %v2230_v63 = vmul.f32 %v2102_v1, %v6898_v39  ;;  %v6921_v22 = vmul.f32 %v2228_v55, %v6872_v58  ;;  %v2232_v54 = vmul.f32 %v2104_v2, %v6904_v28  ;;  %v2450_v25 = vadd.f32 %v6635_v61, %v6573_v57  ;;  %v1657_v2 = vpop.f32.mrf.mxu1 }
 0x3f6   : > { %v2485_v60 = vadd.f32 %v2357_v37, %v6878_v27  ;;  %v6927_v6 = vpop.eup %4566  ;;  %4576 = vtanh.f32 %v2609_v34  ;;  %v6930_v41 = vmul.f32 0.5, %v6573_v57  ;;  %v6933_v38 = vmul.f32 0.5, %v6603_v32 }
 0x3f7   : > { %7872 = vst [vmem:[#allocation47_spill] sm:$0xff] %v6921_v22  ;;  %v2454_v55 = vadd.f32 %v6668_v4, %v6603_v32  ;;  %v6937_v1 = vpop.eup %4568  ;;  %4578 = vtanh.f32 %v2611_v43  ;;  %v2487_v19 = vadd.f32 %v2359_v20, %v6888_v8  ;;  %v2578_v61 = vmul.f32 0.7978846, %v2450_v25 }
 0x3f8   : > { %v2613_v37 = vmul.f32 0.7978846, %v2485_v60  ;;  %v6941_v27 = vmul.f32 %v2230_v63, %v6898_v39  ;;  %v2452_v57 = vadd.f32 %v6642_v26, %v6582_v11  ;;  %v2456_v22 = vadd.f32 %v6710_v9, %v6623_v0  ;;  %v1850_v63 = vpop.f32.mrf.mxu0 }
 0x3f9   : > { %v2582_v34 = vmul.f32 0.7978846, %v2454_v55  ;;  %v6947_v58 = vpop.eup %4570  ;;  %v6950_v32 = vmul.f32 %v2232_v54, %v6904_v28  ;;  %v6953_v4 = vmul.f32 0.5, %v6582_v11  ;;  %v6956_v43 = vadd.f32 %v1655_v59, %v7837_v7  ;;  %v1659_v55 = vpop.f32.mrf.mxu1 }
 0x3fa   : > { %v6959_v20 = vadd.f32 %v1848_v18, %v7838_v12  ;;  %4580 = vtanh.f32 %v2613_v37  ;;  %v6962_v26 = vmul.f32 0.5, %v6623_v0  ;;  %v2580_v9 = vmul.f32 0.7978846, %v2452_v57 }
 0x3fb   : > { %7873 = vst [vmem:[#allocation57_spill] sm:$0xff] %v6950_v32  ;;  %7874 = vst [vmem:[#allocation85_spill] sm:$0xff] %v6956_v43  ;;  %v2584_v60 = vmul.f32 0.7978846, %v2456_v22  ;;  %v2615_v25 = vmul.f32 0.7978846, %v2487_v19  ;;  %4582 = vtanh.f32 %v2578_v61  ;;  %v1852_v19 = vpop.f32.mrf.mxu0 }
 0x3fc   : > { %7875 = vst [vmem:[#allocation48_spill] sm:$0xff] %v6959_v20  ;;  %v2105_v54 = vmul.f32 0.044715, %v6956_v43  ;;  %v2107_v11 = vmul.f32 0.044715, %v6959_v20  ;;  %4584 = vtanh.f32 %v2582_v34  ;;  %v1937_v59 = vmul.f32 0.5, %v6555_v31 }
 0x3fd   : > { %v1941_v18 = vmul.f32 0.5, %v6590_v46  ;;  %v2837_v8 = vadd.f32 1.0, %v6772_v56  ;;  %4586 = vtanh.f32 %v2580_v9  ;;  %v2833_v22 = vadd.f32 1.0, %v6731_v5  ;;  %v1854_v32 = vpop.f32.mrf.mxu0 }
 0x3fe   : > { %v2233_v0 = vmul.f32 %v2105_v54, %v6956_v43  ;;  %v2235_v37 = vmul.f32 %v2107_v11, %v6959_v20  ;;  %4588 = vtanh.f32 %v2584_v60  ;;  %v1943_v61 = vmul.f32 0.5, %v6594_v14  ;;  %v1661_v54 = vpop.f32.mrf.mxu1 }
 0x3ff   : > { %v2835_v57 = vadd.f32 1.0, %v6742_v17  ;;  %v2839_v34 = vadd.f32 1.0, %v6786_v50  ;;  %v6978_v56 = vadd.f32 %v1657_v2, %v7841_v29  ;;  %v6981_v9 = vadd.f32 %v1850_v63, %v7842_v44 }
 0x400   : > { %v2361_v31 = vmul.f32 %v2233_v0, %v6956_v43  ;;  %v2363_v46 = vmul.f32 %v2235_v37, %v6959_v20  ;;  %v6983_v5 = vpop.eup %4572  ;;  %v6985_v60 = vmul.f32 %v2837_v8, %v1941_v18  ;;  %v1939_v14 = vmul.f32 0.5, %v6563_v36 }
 0x401   : > { %v6988_v17 = vmul.f32 %v2839_v34, %v1943_v61  ;;  %v6991_v50 = vadd.f32 %v1659_v55, %v7837_v7  ;;  %v6993_v11 = vpop.eup %4574  ;;  %v2106_v63 = vmul.f32 0.044715, %v6978_v56  ;;  %v2108_v37 = vmul.f32 0.044715, %v6981_v9 }
 0x402   : > { %v2489_v2 = vadd.f32 %v2361_v31, %v6956_v43  ;;  %v2491_v0 = vadd.f32 %v2363_v46, %v6959_v20  ;;  %v6999_v8 = vmul.f32 %v2833_v22, %v1937_v59  ;;  %v7003_v18 = vadd.f32 %v1852_v19, %v7838_v12  ;;  %v7022_v19 = vpop.f32.mrf.mxu1 }
 0x403   : > { %7876 = vst [vmem:[#allocation38_spill] sm:$0xff] %v6991_v50  ;;  %v2109_v36 = vmul.f32 0.044715, %v6991_v50  ;;  %v7006_v7 = vadd.f32 %v1661_v54, %v7841_v29  ;;  %v7008_v55 = vpop.eup %4576  ;;  %v7010_v34 = vmul.f32 %v2835_v57, %v1939_v14  ;;  %v2234_v31 = vmul.f32 %v2106_v63, %v6978_v56  ;;  %7877 = vst [vmem:[#allocation51_spill] sm:$0xff] %v7022_v19 }
 0x404   : > { %v2617_v61 = vmul.f32 0.7978846, %v2489_v2  ;;  %v2236_v46 = vmul.f32 %v2108_v37, %v6981_v9  ;;  %v7014_v20 = vpop.eup %4578  ;;  %v2111_v22 = vmul.f32 0.044715, %v7003_v18  ;;  %v7020_v29 = vadd.f32 %v1854_v32, %v7842_v44 }
 0x405   : > { %v2237_v59 = vmul.f32 %v2109_v36, %v6991_v50  ;;  %v2110_v12 = vmul.f32 0.044715, %v7006_v7  ;;  %4590 = vtanh.f32 %v2615_v25  ;;  %v2619_v57 = vmul.f32 0.7978846, %v2491_v0  ;;  %v7043_v0 = vpop.f32.mrf.mxu0 }
 0x406   : > { %v3049_v54 = vpack.c.bf16 %v6985_v60, %v6999_v8  ;;  %4592 = vtanh.f32 %v2617_v61  ;;  %v2239_v63 = vmul.f32 %v2111_v22, %v7003_v18  ;;  %v7034_v44 = vmul.f32 %v2234_v31, %v6978_v56  ;;  %7879 = vst [vmem:[#allocation58_spill] sm:$0xff] %v7043_v0 }
 0x407   : > { %v2365_v2 = vmul.f32 %v2237_v59, %v6991_v50  ;;  %v2238_v37 = vmul.f32 %v2110_v12, %v7006_v7  ;;  %v7031_v36 = vpop.eup %4580  ;;  %v7037_v32 = vmul.f32 %v2236_v46, %v6981_v9  ;;  %v2458_v25 = vadd.f32 %v6718_v3, %v6657_v33  ;;  %v7051_v46 = vpop.f32.mrf.mxu1 }
 0x408   : > { %v2462_v60 = vadd.f32 %v6735_v48, %v6686_v49  ;;  %v4583_v8 = vpop.eup %4582  ;;  %v2367_v59 = vmul.f32 %v2239_v63, %v7003_v18  ;;  %v2112_v22 = vmul.f32 0.044715, %v7020_v29  ;;  %v7049_v31 = vmul.f32 0.5, %v6657_v33  ;;  %7880 = vst [vmem:[#allocation55_spill] sm:$0xff] %v7051_v46 }
 0x409   : > { %7878 = vst [vmem:[#allocation65_spill] sm:$0xff] %v7037_v32  ;;  %v2493_v61 = vadd.f32 %v2365_v2, %v6991_v50  ;;  %v4585_v12 = vpop.eup %4584  ;;  %v2834_v14 = vadd.f32 1.0, %v4583_v8  ;;  %4594 = vtanh.f32 %v2619_v57  ;;  %v2586_v3 = vmul.f32 0.7978846, %v2458_v25  ;;  %v7063_v57 = vpop.f32.mrf.mxu0 }
 0x40a   : > { %v2590_v19 = vmul.f32 0.7978846, %v2462_v60  ;;  %v4587_v48 = vpop.eup %4586  ;;  %v2838_v43 = vadd.f32 1.0, %v4585_v12  ;;  %v2495_v0 = vadd.f32 %v2367_v59, %v7003_v18  ;;  %v7055_v2 = vmul.f32 %v2238_v37, %v7006_v7  ;;  %7881 = vst [vmem:[#allocation46_spill] sm:$0xff] %v7063_v57  ;;  %v7067_v37 = vpop.f32.mrf.mxu1 }
 0x40b   : > { %v7058_v63 = vmul.f32 0.5, %v6686_v49  ;;  %v4589_v50 = vpop.eup %4588  ;;  %v2836_v33 = vadd.f32 1.0, %v4587_v48  ;;  %v2621_v32 = vmul.f32 0.7978846, %v2493_v61  ;;  %4596 = vtanh.f32 %v2586_v3  ;;  %7882 = vst [vmem:[#allocation41_spill] sm:$0xff] %v7067_v37 }
 0x40c   : > { %v7061_v46 = vmul.f32 0.5, %v6665_v62  ;;  %v2962_v25 = vmul.f32 %v2834_v14, %v6930_v41  ;;  %v2966_v60 = vmul.f32 %v2838_v43, %v6933_v38  ;;  %v2840_v8 = vadd.f32 1.0, %v4589_v50 }
 0x40d   : > { %v2623_v59 = vmul.f32 0.7978846, %v2495_v0  ;;  %v2240_v49 = vmul.f32 %v2112_v22, %v7020_v29  ;;  %4598 = vtanh.f32 %v2590_v19  ;;  %v2460_v61 = vadd.f32 %v6721_v35, %v6665_v62  ;;  %v7080_v19 = vpop.f32.mrf.mxu0 }
 0x40e   : > { %v2464_v12 = vadd.f32 %v6757_v30, %v6690_v16  ;;  %v3050_v3 = vpack.c.bf16 %v2966_v60, %v2962_v25  ;;  %v2964_v48 = vmul.f32 %v2836_v33, %v6953_v4  ;;  %v2968_v41 = vmul.f32 %v2840_v8, %v6962_v26  ;;  %7883 = vst [vmem:[#allocation52_spill] sm:$0xff] %v7080_v19  ;;  %v7084_v4 = vpop.f32.mrf.mxu1  ;;  %v7887_v25 = vld [vmem:[#allocation63_spill] sm:$0xff] }
 0x40f   : > { %v7077_v38 = vmul.f32 0.5, %v6690_v16  ;;  %4600 = vtanh.f32 %v2621_v32  ;;  %v2588_v43 = vmul.f32 0.7978846, %v2460_v61  ;;  %v2841_v14 = vadd.f32 1.0, %v6819_v52  ;;  %7884 = vst [vmem:[#allocation49_spill] sm:$0xff] %v7084_v4  ;;  %v7888_v60 = vld [vmem:[#allocation79_spill] sm:$0xff] }
 0x410   : > { %v2592_v50 = vmul.f32 0.7978846, %v2464_v12  ;;  %3448 = vmatprep.mubr.bf16.mxu1 %v3050_v3  ;;  %v3052_v62 = vpack.c.bf16 %v2968_v41, %v2964_v48  ;;  %4602 = vtanh.f32 %v2623_v59  ;;  %v1949_v35 = vmul.f32 0.5, %v6673_v42  ;;  %v7109_v59 = vpop.f32.mrf.mxu0  ;;  %v7891_v61 = vld [vmem:[#allocation82_spill] sm:$0xff] }
 0x411   : > { %v2845_v30 = vadd.f32 1.0, %v6847_v47  ;;  %3449 = vmatmul.mubr.bf16.gmra.mxu1 %v3049_v54  ;;  %4604 = vtanh.f32 %v2588_v43  ;;  %v1945_v16 = vmul.f32 0.5, %v6646_v21  ;;  %v2843_v26 = vadd.f32 1.0, %v6832_v40  ;;  %v7886_v54 = vld [vmem:[#allocation81_spill] sm:$0xff]  ;;  %7889 = vst [vmem:[#allocation59_spill] sm:$0xff] %v7109_v59  ;;  %v7893_v43 = vld [vmem:[#allocation71_spill] sm:$0xff] }
 0x412   : > { %v2847_v32 = vadd.f32 1.0, %v6859_v24  ;;  %v7089_v52 = vpop.eup %4590  ;;  %3609 = vmatprep.mubr.bf16.mxu0 %v3052_v62  ;;  %v7092_v0 = vmul.f32 %v2240_v49, %v7020_v29  ;;  %4606 = vtanh.f32 %v2592_v50  ;;  %v1947_v47 = vmul.f32 0.5, %v6650_v10  ;;  %v7894_v50 = vld [vmem:[#allocation83_spill] sm:$0xff] }
 0x413   : > { %v7094_v42 = vmul.f32 %v2845_v30, %v1949_v35  ;;  %v7097_v22 = vpop.eup %4592  ;;  %v7885_v21 = vpack.c.bf16 %v6988_v17, %v7010_v34  ;;  %v7102_v40 = vmul.f32 %v2841_v14, %v1945_v16  ;;  %v1951_v24 = vmul.f32 0.5, %v6680_v13  ;;  %v7890_v34 = vld [vmem:[#allocation70_spill] sm:$0xff]  ;;  %v7121_v13 = vpop.f32.mrf.mxu1  ;;  %v7896_v16 = vld [vmem:[#allocation43_spill] sm:$0xff] }
 0x414   : > { %v2466_v33 = vadd.f32 %v7886_v54, %v6729_v23  ;;  %v2470_v8 = vadd.f32 %v7888_v60, %v7887_v25  ;;  %v7111_v49 = vmul.f32 %v2843_v26, %v1947_v47  ;;  %v7114_v10 = vmul.f32 0.5, %v6729_v23  ;;  %7892 = vst [vmem:[#allocation42_spill] sm:$0xff] %v7121_v13  ;;  %v7137_v54 = vpop.f32.mrf.mxu0  ;;  %v7899_v60 = vld [vmem:[#allocation67_spill] sm:$0xff]  ;;  %v7903_v23 = vld [vmem:[#allocation73_spill] sm:$0xff]  ;;  %v7913_v13 = vld [vmem:[#allocation40_spill] sm:$0xff] }
 0x415   : > { %3610 = vmatmul.mubr.bf16.gmra.mxu0 %v7885_v21  ;;  %v7117_v17 = vmul.f32 0.5, %v7887_v25  ;;  %v2468_v12 = vadd.f32 %v7891_v61, %v7890_v34  ;;  %v7123_v3 = vmul.f32 %v2847_v32, %v1951_v24  ;;  %v2472_v14 = vadd.f32 %v7894_v50, %v7893_v43  ;;  %v7897_v32 = vld [vmem:[#allocation68_spill] sm:$0xff]  ;;  %7898 = vst [vmem:[#allocation50_spill] sm:$0xff] %v7137_v54 }
 0x416   : > { %v2594_v48 = vmul.f32 0.7978846, %v2466_v33  ;;  %v2598_v41 = vmul.f32 0.7978846, %v2470_v8  ;;  %v7127_v62 = vpop.eup %4594  ;;  %v7132_v35 = vmul.f32 0.5, %v7890_v34  ;;  %v2849_v26 = vadd.f32 1.0, %v7896_v16 }
 0x417   : > { %7895 = vst [vmem:[#allocation56_spill] sm:$0xff] %v7127_v62  ;;  %v2596_v30 = vmul.f32 0.7978846, %v2468_v12  ;;  %v2600_v47 = vmul.f32 0.7978846, %v2472_v14  ;;  %v1957_v21 = vmul.f32 0.5, %v7897_v32  ;;  %v7144_v12 = vpop.f32.mrf.mxu1  ;;  %v2480_v59 = vadd.f32 %v7913_v13, %v6838_v51 }
 0x418   : > { %4608 = vtanh.f32 %v2594_v48  ;;  %v2853_v24 = vadd.f32 1.0, %v6913_v45  ;;  %v4597_v33 = vpop.eup %4596  ;;  %v7140_v25 = vmul.f32 0.5, %v7893_v43  ;;  %v1953_v8 = vmul.f32 0.5, %v7899_v60  ;;  %v7900_v34 = vld [vmem:[#allocation84_spill] sm:$0xff]  ;;  %7901 = vst [vmem:[#allocation53_spill] sm:$0xff] %v7144_v12  ;;  %v7902_v14 = vld [vmem:[#allocation62_spill] sm:$0xff] }
 0x419   : > { %4610 = vtanh.f32 %v2598_v41  ;;  %v2851_v61 = vadd.f32 1.0, %v7900_v34  ;;  %v2842_v50 = vadd.f32 1.0, %v4597_v33  ;;  %v1955_v16 = vmul.f32 0.5, %v7902_v14  ;;  %v7904_v33 = vld [vmem:[#allocation78_spill] sm:$0xff]  ;;  %v7906_v32 = vld [vmem:[#allocation75_spill] sm:$0xff] }
 0x41a   : > { %4612 = vtanh.f32 %v2596_v30  ;;  %v7146_v48 = vmul.f32 %v2853_v24, %v1957_v21  ;;  %v4599_v45 = vpop.eup %4598  ;;  %v7151_v41 = vmul.f32 %v2849_v26, %v1953_v8  ;;  %v2855_v43 = vadd.f32 1.0, %v6927_v6  ;;  %v7160_v21 = vpop.f32.mrf.mxu0  ;;  %v7907_v26 = vld [vmem:[#allocation86_spill] sm:$0xff]  ;;  %v7908_v8 = vld [vmem:[#allocation45_spill] sm:$0xff]  ;;  %v7911_v12 = vld [vmem:[#allocation87_spill] sm:$0xff] }
 0x41b   : > { %4614 = vtanh.f32 %v2600_v47  ;;  %v2846_v60 = vadd.f32 1.0, %v4599_v45  ;;  %v1959_v34 = vmul.f32 0.5, %v7903_v23  ;;  %v7155_v54 = vmul.f32 %v2851_v61, %v1955_v16  ;;  %7905 = vst [vmem:[#allocation60_spill] sm:$0xff] %v7160_v21  ;;  %v7172_v61 = vpop.f32.mrf.mxu1 }
 0x41c   : > { %v7158_v30 = vmul.f32 0.5, %v7904_v33  ;;  %v7162_v24 = vpop.eup %4600  ;;  %v2970_v14 = vmul.f32 %v2842_v50, %v7049_v31  ;;  %v7166_v47 = vmul.f32 0.5, %v7906_v32  ;;  %v2474_v6 = vadd.f32 %v7907_v26, %v7904_v33  ;;  %7909 = vst [vmem:[#allocation66_spill] sm:$0xff] %v7172_v61  ;;  %v7912_v31 = vld [vmem:[#allocation44_spill] sm:$0xff]  ;;  %v7186_v4 = vpop.f32.mrf.mxu0 }
 0x41d   : > { %v2478_v23 = vadd.f32 %v7908_v8, %v7906_v32  ;;  %v7174_v16 = vpop.eup %4602  ;;  %v2974_v45 = vmul.f32 %v2846_v60, %v7058_v63  ;;  %v2476_v50 = vadd.f32 %v7912_v31, %v7911_v12  ;;  %v7183_v33 = vmul.f32 %v2855_v43, %v1959_v34  ;;  %v7914_v8 = vld [vmem:[#allocation74_spill] sm:$0xff]  ;;  %v7190_v37 = vpop.f32.mrf.mxu1 }
 0x41e   : > { %7910 = vst [vmem:[#allocation34_spill] sm:$0xff] %v7174_v16  ;;  %v4605_v19 = vpop.eup %4604  ;;  %v2602_v26 = vmul.f32 0.7978846, %v2474_v6  ;;  %v1965_v61 = vmul.f32 0.5, %v7914_v8  ;;  %v2608_v60 = vmul.f32 0.7978846, %v2480_v59 }
 0x41f   : > { %v2606_v32 = vmul.f32 0.7978846, %v2478_v23  ;;  %v4607_v57 = vpop.eup %4606  ;;  %v3054_v16 = vpack.c.bf16 %v2974_v45, %v2970_v14  ;;  %v2844_v62 = vadd.f32 1.0, %v4605_v19  ;;  %v2604_v63 = vmul.f32 0.7978846, %v2476_v50  ;;  %v7915_v19 = vld [vmem:[#allocation64_spill] sm:$0xff] }
 0x420   : > { %v2848_v21 = vadd.f32 1.0, %v4607_v57  ;;  %4616 = vtanh.f32 %v2602_v26  ;;  %v2857_v31 = vadd.f32 1.0, %v6937_v1  ;;  %v2861_v13 = vadd.f32 1.0, %v6983_v5  ;;  %v7917_v6 = vld [vmem:[#allocation72_spill] sm:$0xff] }
 0x421   : > { %3456 = vmatprep.mubr.bf16.mxu1 %v3054_v16  ;;  %4618 = vtanh.f32 %v2606_v32  ;;  %v7193_v43 = vmul.f32 0.5, %v7911_v12  ;;  %v7196_v34 = vmul.f32 0.5, %v6838_v51  ;;  %v1961_v59 = vmul.f32 0.5, %v7915_v19  ;;  %v7210_v16 = vpop.f32.mrf.mxu0 }
 0x422   : > { %v2972_v14 = vmul.f32 %v2844_v62, %v7061_v46  ;;  %v2976_v57 = vmul.f32 %v2848_v21, %v7077_v38  ;;  %v7916_v1 = vpack.c.bf16 %v7094_v42, %v7102_v40  ;;  %4620 = vtanh.f32 %v2604_v63  ;;  %v7918_v21 = vld [vmem:[#allocation76_spill] sm:$0xff] }
 0x423   : > { %v7204_v5 = vmul.f32 %v2861_v13, %v1965_v61  ;;  %v3059_v12 = vpack.c.bf16 %v7183_v33, %v7155_v54  ;;  %4622 = vtanh.f32 %v2608_v60  ;;  %v1963_v51 = vmul.f32 0.5, %v7917_v6  ;;  %v7217_v61 = vpop.f32.mrf.mxu1  ;;  %v7921_v6 = vld [vmem:[#allocation47_spill] sm:$0xff] }
 0x424   : > { %3457 = vmatmul.mubr.bf16.gmra.mxu1 %v7916_v1  ;;  %v2859_v23 = vadd.f32 1.0, %v6947_v58  ;;  %v3056_v62 = vpack.c.bf16 %v2976_v57, %v2972_v14  ;;  %v7212_v38 = vmul.f32 %v2857_v31, %v1961_v59  ;;  %v1967_v42 = vmul.f32 0.5, %v7918_v21  ;;  %v7236_v14 = vpop.f32.mrf.mxu0 }
 0x425   : > { %v4609_v46 = vpop.eup %4608  ;;  %v2482_v40 = vadd.f32 %v6916_v53, %v6865_v15  ;;  %v2863_v26 = vadd.f32 1.0, %v6993_v11  ;;  %v7221_v32 = vmul.f32 0.5, %v6865_v15  ;;  %v2486_v58 = vadd.f32 %v6941_v27, %v6898_v39 }
 0x426   : > { %v4611_v45 = vpop.eup %4610  ;;  %v2850_v50 = vadd.f32 1.0, %v4609_v46  ;;  %3617 = vmatprep.mubr.bf16.mxu0 %v3056_v62  ;;  %v3061_v60 = vpack.c.bf16 %v7204_v5, %v7212_v38  ;;  %v7228_v53 = vmul.f32 0.5, %v6898_v39  ;;  %v7919_v11 = vpack.c.bf16 %v7123_v3, %v7111_v49  ;;  %v7920_v39 = vld [vmem:[#allocation88_spill] sm:$0xff]  ;;  %v7241_v62 = vpop.f32.mrf.mxu1  ;;  %v7329_v5 = vld [vmem:[%s7501_s9] ss:$0 sm:$0xff] }
 0x427   : > { %v4613_v8 = vpop.eup %4612  ;;  %v2854_v63 = vadd.f32 1.0, %v4611_v45  ;;  %v2610_v31 = vmul.f32 0.7978846, %v2482_v40  ;;  %v7234_v59 = vmul.f32 %v2859_v23, %v1963_v51  ;;  %v2614_v27 = vmul.f32 0.7978846, %v2486_v58  ;;  %v7257_v58 = vpop.f32.mrf.mxu0 }
 0x428   : > { %v4615_v13 = vpop.eup %4614  ;;  %3618 = vmatmul.mubr.bf16.gmra.mxu0 %v7919_v11  ;;  %v2978_v15 = vmul.f32 %v2850_v50, %v7114_v10  ;;  %v2852_v19 = vadd.f32 1.0, %v4613_v8  ;;  %v2484_v46 = vadd.f32 %v7921_v6, %v7920_v39  ;;  %v7243_v21 = vmul.f32 %v2863_v26, %v1967_v42  ;;  %v7922_v10 = vld [vmem:[#allocation57_spill] sm:$0xff] }
 0x429   : > { %v2982_v57 = vmul.f32 %v2854_v63, %v7117_v17  ;;  %v2856_v1 = vadd.f32 1.0, %v4615_v13  ;;  %4624 = vtanh.f32 %v2610_v31  ;;  %v7246_v49 = vmul.f32 0.5, %v7920_v39  ;;  %v7923_v63 = vld [vmem:[#allocation80_spill] sm:$0xff]  ;;  %v7261_v13 = vpop.f32.mrf.mxu1 }
 0x42a   : > { %4626 = vtanh.f32 %v2614_v27  ;;  %v2488_v3 = vadd.f32 %v7922_v10, %v6904_v28  ;;  %v2980_v23 = vmul.f32 %v2852_v19, %v7132_v35  ;;  %v2612_v40 = vmul.f32 0.7978846, %v2484_v46  ;;  %v7283_v10 = vpop.f32.mrf.mxu0 }
 0x42b   : > { %v3058_v51 = vpack.c.bf16 %v2982_v57, %v2978_v15  ;;  %v2984_v17 = vmul.f32 %v2856_v1, %v7140_v25  ;;  %v7253_v45 = vmul.f32 0.5, %v6904_v28  ;;  %v2865_v42 = vadd.f32 1.0, %v7008_v55  ;;  %v7926_v15 = vld [vmem:[#allocation77_spill] sm:$0xff]  ;;  %v7293_v33 = vpop.f32.mrf.mxu1 }
 0x42c   : > { %v2616_v50 = vmul.f32 0.7978846, %v2488_v3  ;;  %v2869_v26 = vadd.f32 1.0, %v7031_v36  ;;  %4628 = vtanh.f32 %v2612_v40  ;;  %v1969_v31 = vmul.f32 0.5, %v7923_v63  ;;  %v7925_v36 = vld [vmem:[#allocation39_spill] sm:$0xff] }
 0x42d   : > { %3464 = vmatprep.mubr.bf16.mxu1 %v3058_v51  ;;  %v3060_v8 = vpack.c.bf16 %v2984_v17, %v2980_v23  ;;  %v2867_v35 = vadd.f32 1.0, %v7014_v20  ;;  %v4617_v25 = vpop.eup %4616  ;;  %v7924_v28 = vpack.c.bf16 %v7146_v48, %v7151_v41  ;;  %v3063_v55 = vpack.c.bf16 %v7243_v21, %v7234_v59  ;;  %v7927_v20 = vld [vmem:[#allocation61_spill] sm:$0xff] }
 0x42e   : > { %4630 = vtanh.f32 %v2616_v50  ;;  %v1973_v11 = vmul.f32 0.5, %v7925_v36  ;;  %v1971_v19 = vmul.f32 0.5, %v7926_v15  ;;  %v4619_v27 = vpop.eup %4618  ;;  %v2858_v57 = vadd.f32 1.0, %v4617_v25 }
 0x42f   : > { %3465 = vmatmul.mubr.bf16.gmra.mxu1 %v7924_v28  ;;  %3625 = vmatprep.mubr.bf16.mxu0 %v3060_v8  ;;  %v7270_v1 = vmul.f32 %v2865_v42, %v1969_v31  ;;  %v1975_v39 = vmul.f32 0.5, %v7927_v20  ;;  %v2871_v6 = vadd.f32 1.0, %v7089_v52  ;;  %v4621_v46 = vpop.eup %4620  ;;  %v2862_v48 = vadd.f32 1.0, %v4619_v27  ;;  %v7931_v20 = vld [vmem:[#allocation48_spill] sm:$0xff] }
 0x430   : > { %3626 = vmatmul.mubr.bf16.gmra.mxu0 %v3059_v12  ;;  %v7277_v41 = vmul.f32 %v2869_v26, %v1973_v11  ;;  %v7279_v59 = vmul.f32 %v2867_v35, %v1971_v19  ;;  %v2490_v21 = vadd.f32 %v7034_v44, %v6978_v56  ;;  %v4623_v3 = vpop.eup %4622  ;;  %v2860_v51 = vadd.f32 1.0, %v4621_v46  ;;  %v7928_v26 = vld [vmem:[#allocation65_spill] sm:$0xff]  ;;  %v7933_v46 = vld [vmem:[#allocation55_spill] sm:$0xff] }
 0x431   : > { %v7286_v23 = vmul.f32 0.5, %v6978_v56  ;;  %v7289_v52 = vmul.f32 0.5, %v7006_v7  ;;  %v2494_v54 = vadd.f32 %v7055_v2, %v7006_v7  ;;  %v2986_v12 = vmul.f32 %v2858_v57, %v7158_v30  ;;  %v7305_v2 = vpop.f32.mrf.mxu0  ;;  %v7312_v35 = vpop.f32.mrf.mxu1  ;;  %v7929_v19 = vld [vmem:[#allocation85_spill] sm:$0xff] }
 0x432   : > { %v2990_v17 = vmul.f32 %v2862_v48, %v7166_v47  ;;  %v2864_v44 = vadd.f32 1.0, %v4623_v3  ;;  %v2618_v40 = vmul.f32 0.7978846, %v2490_v21  ;;  %v2988_v50 = vmul.f32 %v2860_v51, %v7193_v43 }
 0x433   : > { %v7298_v42 = vmul.f32 %v2871_v6, %v1975_v39  ;;  %v2622_v56 = vmul.f32 0.7978846, %v2494_v54  ;;  %v2492_v8 = vadd.f32 %v7928_v26, %v6981_v9  ;;  %v2496_v7 = vadd.f32 %v7092_v0, %v7020_v29  ;;  %v7937_v26 = vld [vmem:[#allocation58_spill] sm:$0xff] }
 0x434   : > { %v3062_v63 = vpack.c.bf16 %v2990_v17, %v2986_v12  ;;  %v2992_v31 = vmul.f32 %v2864_v44, %v7196_v34  ;;  %4632 = vtanh.f32 %v2618_v40  ;;  %v3065_v30 = vpack.c.bf16 %v7277_v41, %v7270_v1  ;;  %v3954_v41 = vpop.f32.mrf.mxu1  ;;  %v7935_v12 = vld [vmem:[#allocation49_spill] sm:$0xff] }
 0x435   : > { %4634 = vtanh.f32 %v2622_v56  ;;  %v7310_v47 = vmul.f32 0.5, %v6981_v9  ;;  %v2620_v43 = vmul.f32 0.7978846, %v2492_v8  ;;  %v2624_v34 = vmul.f32 0.7978846, %v2496_v7  ;;  %v7938_v8 = vld [vmem:[#allocation46_spill] sm:$0xff] }
 0x436   : > { %v4625_v25 = vpop.eup %4624  ;;  %3472 = vmatprep.mubr.bf16.mxu1 %v3062_v63  ;;  %v3064_v28 = vpack.c.bf16 %v2992_v31, %v2988_v50  ;;  %v2873_v36 = vadd.f32 1.0, %v7097_v22  ;;  %v2877_v0 = vadd.f32 1.0, %v7162_v24  ;;  %v3067_v9 = vpack.c.bf16 %v7298_v42, %v7279_v59  ;;  %v7930_v22 = vld [vmem:[#allocation38_spill] sm:$0xff]  ;;  %v7936_v50 = vld [vmem:[#allocation56_spill] sm:$0xff] }
 0x437   : > { %v4627_v11 = vpop.eup %4626  ;;  %3473 = vmatmul.mubr.bf16.gmra.mxu1 %v3061_v60  ;;  %v2866_v15 = vadd.f32 1.0, %v4625_v25  ;;  %4636 = vtanh.f32 %v2620_v43  ;;  %v1977_v27 = vmul.f32 0.5, %v7929_v19  ;;  %v7323_v1 = vmul.f32 0.5, %v7020_v29  ;;  %v4065_v38 = vpop.f32.mrf.mxu0  ;;  %v7932_v29 = vld [vmem:[#allocation51_spill] sm:$0xff]  ;;  %v7939_v43 = vld [vmem:[#allocation52_spill] sm:$0xff]  ;;  %v7943_v19 = vld [vmem:[#allocation53_spill] sm:$0xff] }
 0x438   : > { %3633 = vmatprep.mubr.bf16.mxu0 %v3064_v28  ;;  %v2870_v57 = vadd.f32 1.0, %v4627_v11  ;;  %4638 = vtanh.f32 %v2624_v34  ;;  %v1981_v24 = vmul.f32 0.5, %v7930_v22  ;;  %v7334_v39 = vmul.f32 0.5, %v7931_v20  ;;  %v7940_v25 = vld [vmem:[#allocation59_spill] sm:$0xff]  ;;  %v7944_v20 = vld [vmem:[#allocation50_spill] sm:$0xff] }
 0x439   : > { %3634 = vmatmul.mubr.bf16.gmra.mxu0 %v3063_v55  ;;  %v7331_v60 = vmul.f32 %v2873_v36, %v1977_v27  ;;  %v7337_v6 = vmul.f32 0.5, %v7003_v18  ;;  %v3937_v48 = vadd.f32 %v7933_v46, %v7932_v29  ;;  %v4629_v21 = vpop.eup %4628  ;;  %v2994_v3 = vmul.f32 %v2866_v15, %v7221_v32  ;;  %v7934_v55 = vld [vmem:[#allocation41_spill] sm:$0xff]  ;;  %v4066_v31 = vpop.f32.mrf.mxu0  ;;  %v7941_v36 = vld [vmem:[#allocation34_spill] sm:$0xff] }
 0x43a   : > { %v2998_v51 = vmul.f32 %v2870_v57, %v7228_v53  ;;  %v7343_v54 = vmul.f32 %v2877_v0, %v1981_v24  ;;  %v3940_v17 = vadd.f32 %v7935_v12, %v7934_v55  ;;  %v2868_v40 = vadd.f32 1.0, %v4629_v21  ;;  %v7942_v15 = vld [vmem:[#allocation42_spill] sm:$0xff]  ;;  %v3956_v57 = vpop.f32.mrf.mxu1  ;;  %v7947_v21 = vld [vmem:[#allocation3_spill] sm:$0xff] }
 0x43b   : > { %v4631_v44 = vpop.eup %4630  ;;  %v7348_v18 = vadd.f32 1.0, %v7936_v50  ;;  %v3371_v56 = vadd.f32 %v3937_v48, %v7329_v5  ;;  %v4049_v63 = vadd.f32 %v7938_v8, %v7937_v26  ;;  %v4052_v28 = vadd.f32 %v7940_v25, %v7939_v43  ;;  %v7946_v46 = vld [vmem:[#allocation66_spill] sm:$0xff]  ;;  %v7950_v25 = vld [vmem:[#allocation4_spill] sm:$0xff] }
 0x43c   : > { %v3066_v32 = vpack.c.bf16 %v2998_v51, %v2994_v3  ;;  %v2872_v7 = vadd.f32 1.0, %v4631_v44  ;;  %v3374_v53 = vadd.f32 %v3940_v17, %v7329_v5  ;;  %v2996_v34 = vmul.f32 %v2868_v40, %v7246_v49  ;;  %v7945_v49 = vld [vmem:[#allocation60_spill] sm:$0xff]  ;;  %v7948_v44 = vld [vmem:[#allocation5_spill] sm:$0xff] }
 0x43d   : > { %v2879_v0 = vadd.f32 1.0, %v7941_v36  ;;  %v3532_v11 = vadd.f32 %v4049_v63, %v3371_v56  ;;  %v3943_v27 = vadd.f32 %v7943_v19, %v7942_v15  ;;  %v4055_v29 = vadd.f32 %v7945_v49, %v7944_v20  ;;  %v7953_v49 = vld [vmem:[#allocation7_spill] sm:$0xff] }
 0x43e   : > { %3480 = vmatprep.mubr.bf16.mxu1 %v3066_v32  ;;  %v3000_v22 = vmul.f32 %v2872_v7, %v7253_v45  ;;  %v3535_v24 = vadd.f32 %v4052_v28, %v3374_v53  ;;  %v3946_v48 = vadd.f32 %v7190_v37, %v7946_v46  ;;  %v4058_v55 = vadd.f32 %v7210_v16, %v7186_v4  ;;  %v4068_v45 = vpop.f32.mrf.mxu0  ;;  %v7949_v7 = vld [vmem:[#allocation2_spill] sm:$0xff] }
 0x43f   : > { %3481 = vmatmul.mubr.bf16.gmra.mxu1 %v3065_v30  ;;  %v3658_v3 = vadd.f32 %v3532_v11, %v7947_v21  ;;  %v3379_v51 = vadd.f32 %v3943_v27, %v7329_v5  ;;  %v3949_v12 = vadd.f32 %v7241_v62, %v7217_v61  ;;  %v4061_v37 = vadd.f32 %v7257_v58, %v7236_v14  ;;  %v3957_v61 = vpop.f32.mrf.mxu1 }
 0x440   : > { %v3068_v17 = vpack.c.bf16 %v3000_v22, %v2996_v34  ;;  %v3659_v40 = vadd.f32 %v3535_v24, %v7948_v44  ;;  %v3382_v50 = vadd.f32 %v3946_v48, %v7329_v5  ;;  %v3952_v4 = vadd.f32 %v7293_v33, %v7261_v13 }
 0x441   : > { %v4633_v30 = vpop.eup %4632  ;;  %3690 = vst [vmem:[%s7365_s29] sm:$0xff] %v3658_v3  ;;  %v3540_v56 = vadd.f32 %v4055_v29, %v3379_v51  ;;  %v3387_v26 = vadd.f32 %v3949_v12, %v7329_v5  ;;  %v4064_v16 = vadd.f32 %v7305_v2, %v7283_v10  ;;  %v3955_v32 = vadd.f32 %v3954_v41, %v7312_v35  ;;  %v4069_v2 = vpop.f32.mrf.mxu0 }
 0x442   : > { %v4635_v62 = vpop.eup %4634  ;;  %3641 = vmatprep.mubr.bf16.mxu0 %v3068_v17  ;;  %v2874_v8 = vadd.f32 1.0, %v4633_v30  ;;  %3691 = vst [vmem:[%s7365_s29 + $0x8] sm:$0xff] %v3659_v40  ;;  %v3543_v63 = vadd.f32 %v4058_v55, %v3382_v50  ;;  %v4067_v14 = vadd.f32 %v4066_v31, %v4065_v38  ;;  %v3390_v10 = vadd.f32 %v3952_v4, %v7329_v5  ;;  %v7956_v4 = vld [vmem:[#allocation12_spill] sm:$0xff] }
 0x443   : > { %3642 = vmatmul.mubr.bf16.gmra.mxu0 %v3067_v9  ;;  %v2878_v58 = vadd.f32 1.0, %v4635_v62  ;;  %v3660_v13 = vadd.f32 %v3540_v56, %v7949_v7  ;;  %v3548_v33 = vadd.f32 %v4061_v37, %v3387_v26  ;;  %v3395_v35 = vadd.f32 %v3955_v32, %v7329_v5  ;;  %v7951_v9 = vld [vmem:[#allocation6_spill] sm:$0xff] }
 0x444   : > { %v4637_v53 = vpop.eup %4636  ;;  %v3002_v43 = vmul.f32 %v2874_v8, %v7286_v23  ;;  %v3661_v28 = vadd.f32 %v3543_v63, %v7950_v25  ;;  %v3958_v38 = vadd.f32 %v3957_v61, %v3956_v57  ;;  %v3551_v34 = vadd.f32 %v4064_v16, %v3390_v10  ;;  %v7955_v37 = vld [vmem:[#allocation10_spill] sm:$0xff]  ;;  %v7957_v25 = vld [vmem:[#allocation11_spill] sm:$0xff] }
 0x445   : > { %v4639_v41 = vpop.eup %4638  ;;  %v3006_v59 = vmul.f32 %v2878_v58, %v7289_v52  ;;  %v2876_v42 = vadd.f32 1.0, %v4637_v53  ;;  %3692 = vst [vmem:[%s7365_s29 + $0x10] sm:$0xff] %v3660_v13  ;;  %v3662_v31 = vadd.f32 %v3548_v33, %v7951_v9  ;;  %v3556_v11 = vadd.f32 %v4067_v14, %v3395_v35  ;;  %v7952_v52 = vld [vmem:[#allocation8_spill] sm:$0xff] }
 0x446   : > { %v2880_v36 = vadd.f32 1.0, %v4639_v41  ;;  %3693 = vst [vmem:[%s7365_s29 + $0x18] sm:$0xff] %v3661_v28  ;;  %v3398_v23 = vadd.f32 %v3958_v38, %v7329_v5  ;;  %v4070_v15 = vadd.f32 %v4069_v2, %v4068_v45  ;;  %v3069_v27 = vpack.c.bf16 %v7343_v54, %v7331_v60  ;;  %v7954_v60 = vld [vmem:[#allocation9_spill] sm:$0xff] }
 0x447   : > { %v3070_v19 = vpack.c.bf16 %v3006_v59, %v3002_v43  ;;  %v3007_v57 = vmul.f32 %v2879_v0, %v7337_v6  ;;  %3694 = vst [vmem:[%s7365_s29 + $0x20] sm:$0xff] %v3662_v31  ;;  %v3663_v22 = vadd.f32 %v3551_v34, %v7952_v52  ;;  %v3004_v24 = vmul.f32 %v2876_v42, %v7310_v47 }
 0x448   : > { %v3008_v20 = vmul.f32 %v2880_v36, %v7323_v1  ;;  %v3664_v29 = vadd.f32 %v3556_v11, %v7953_v49  ;;  %v3559_v46 = vadd.f32 %v4070_v15, %v3398_v23  ;;  %v3003_v48 = vmul.f32 %v7348_v18, %v7334_v39  ;;  %v7958_v36 = vld [vmem:[#allocation13_spill] sm:$0xff] }
 0x449   : > { %3488 = vmatprep.mubr.bf16.mxu1 %v3070_v19  ;;  %3695 = vst [vmem:[%s7365_s29 + $0x28] sm:$0xff] %v3663_v22 }
 0x44a   : > { %v3072_v21 = vpack.c.bf16 %v3008_v20, %v3004_v24  ;;  %3489 = vmatmul.mubr.bf16.gmra.mxu1 %v3069_v27  ;;  %3696 = vst [vmem:[%s7365_s29 + $0x30] sm:$0xff] %v3664_v29  ;;  %v3665_v6 = vadd.f32 %v3559_v46, %v7954_v60  ;;  %v3071_v54 = vpack.c.bf16 %v3007_v57, %v3003_v48  ;;  %v7959_v24 = vld [vmem:[#allocation14_spill] sm:$0xff] }
 0x44b   : > { %v3959_v0 = vpop.f32.mrf.mxu1 }
 0x44c   : > { %3649 = vmatprep.mubr.bf16.mxu0 %v3072_v21  ;;  %3697 = vst [vmem:[%s7365_s29 + $0x38] sm:$0xff] %v3665_v6  ;;  %v7960_v21 = vld [vmem:[#allocation16_spill] sm:$0xff] }
 0x44d   : > { %3650 = vmatmul.mubr.bf16.gmra.mxu0 %v3071_v54  ;;  %v3960_v47 = vpop.f32.mrf.mxu1 }
 0x44e   : > { %v4071_v1 = vpop.f32.mrf.mxu0  ;;  %v3961_v3 = vadd.f32 %v3960_v47, %v3959_v0 }
 0x44f   : > { %v3962_v51 = vpop.f32.mrf.mxu1 }
 0x450   : > { %v3403_v55 = vadd.f32 %v3961_v3, %v7329_v5  ;;  %v4072_v39 = vpop.f32.mrf.mxu0 }
 0x451   : > { %v4073_v18 = vadd.f32 %v4072_v39, %v4071_v1  ;;  %v3963_v12 = vpop.f32.mrf.mxu1 }
 0x452   : > { %v4074_v45 = vpop.f32.mrf.mxu0  ;;  %v3964_v17 = vadd.f32 %v3963_v12, %v3962_v51 }
 0x453   : > { %v3564_v44 = vadd.f32 %v4073_v18, %v3403_v55 }
 0x454   : > { %v3406_v40 = vadd.f32 %v3964_v17, %v7329_v5  ;;  %v4075_v50 = vpop.f32.mrf.mxu0 }
 0x455   : > { %v3666_v30 = vadd.f32 %v3564_v44, %v7955_v37  ;;  %v4076_v56 = vadd.f32 %v4075_v50, %v4074_v45 }
 0x457   : > { %3698 = vst [vmem:[%s7365_s29 + $0x40] sm:$0xff] %v3666_v30  ;;  %v3567_v26 = vadd.f32 %v4076_v56, %v3406_v40  ;;  %v7961_v40 = vld [vmem:[#allocation15_spill] sm:$0xff] }
 0x459   : > { %v3667_v16 = vadd.f32 %v3567_v26, %v7956_v4 }
 0x45b   : > { %3699 = vst [vmem:[%s7365_s29 + $0x48] sm:$0xff] %v3667_v16 }
 0x461   : > { %v3965_v61 = vpop.f32.mrf.mxu1 }
 0x463   : > { %v3966_v8 = vpop.f32.mrf.mxu1 }
 0x464   : > { %v4077_v62 = vpop.f32.mrf.mxu0  ;;  %v3967_v63 = vadd.f32 %v3966_v8, %v3965_v61  ;;  %v7962_v8 = vld [vmem:[#allocation17_spill] sm:$0xff] }
 0x465   : > { %v3968_v14 = vpop.f32.mrf.mxu1 }
 0x466   : > { %v4078_v32 = vpop.f32.mrf.mxu0  ;;  %v3411_v58 = vadd.f32 %v3967_v63, %v7329_v5 }
 0x467   : > { %v4079_v7 = vadd.f32 %v4078_v32, %v4077_v62  ;;  %v3969_v33 = vpop.f32.mrf.mxu1 }
 0x468   : > { %v4080_v13 = vpop.f32.mrf.mxu0  ;;  %v3970_v2 = vadd.f32 %v3969_v33, %v3968_v14 }
 0x469   : > { %v3572_v10 = vadd.f32 %v4079_v7, %v3411_v58 }
 0x46a   : > { %v4081_v53 = vpop.f32.mrf.mxu0  ;;  %v3971_v43 = vpop.f32.mrf.mxu1  ;;  %v3414_v35 = vadd.f32 %v3970_v2, %v7329_v5  ;;  %v7963_v2 = vld [vmem:[#allocation18_spill] sm:$0xff] }
 0x46b   : > { %v3668_v28 = vadd.f32 %v3572_v10, %v7957_v25  ;;  %v4082_v38 = vadd.f32 %v4081_v53, %v4080_v13 }
 0x46c   : > { %v4083_v41 = vpop.f32.mrf.mxu0  ;;  %v3972_v59 = vpop.f32.mrf.mxu1 }
 0x46d   : > { %3700 = vst [vmem:[%s7365_s29 + $0x50] sm:$0xff] %v3668_v28  ;;  %v3575_v42 = vadd.f32 %v4082_v38, %v3414_v35  ;;  %v3973_v9 = vadd.f32 %v3972_v59, %v3971_v43 }
 0x46e   : > { %v4084_v31 = vpop.f32.mrf.mxu0  ;;  %v3974_v34 = vpop.f32.mrf.mxu1 }
 0x46f   : > { %v3669_v11 = vadd.f32 %v3575_v42, %v7958_v36  ;;  %v3419_v23 = vadd.f32 %v3973_v9, %v7329_v5  ;;  %v4085_v15 = vadd.f32 %v4084_v31, %v4083_v41  ;;  %v7964_v41 = vld [vmem:[#allocation20_spill] sm:$0xff] }
 0x470   : > { %v4086_v19 = vpop.f32.mrf.mxu0  ;;  %v3975_v27 = vpop.f32.mrf.mxu1 }
 0x471   : > { %3701 = vst [vmem:[%s7365_s29 + $0x58] sm:$0xff] %v3669_v11  ;;  %v3580_v57 = vadd.f32 %v4085_v15, %v3419_v23  ;;  %v3976_v52 = vadd.f32 %v3975_v27, %v3974_v34 }
 0x472   : > { %v4087_v22 = vpop.f32.mrf.mxu0 }
 0x473   : > { %v3670_v20 = vadd.f32 %v3580_v57, %v7959_v24  ;;  %v3422_v49 = vadd.f32 %v3976_v52, %v7329_v5  ;;  %v4088_v29 = vadd.f32 %v4087_v22, %v4086_v19  ;;  %v7965_v57 = vld [vmem:[#allocation19_spill] sm:$0xff] }
 0x475   : > { %3702 = vst [vmem:[%s7365_s29 + $0x60] sm:$0xff] %v3670_v20  ;;  %v3583_v46 = vadd.f32 %v4088_v29, %v3422_v49  ;;  %v3977_v48 = vpop.f32.mrf.mxu1  ;;  %v7966_v49 = vld [vmem:[#allocation21_spill] sm:$0xff] }
 0x477   : > { %v3671_v60 = vadd.f32 %v3583_v46, %v7960_v21  ;;  %v3978_v6 = vpop.f32.mrf.mxu1 }
 0x478   : > { %v3979_v54 = vadd.f32 %v3978_v6, %v3977_v48 }
 0x479   : > { %3703 = vst [vmem:[%s7365_s29 + $0x68] sm:$0xff] %v3671_v60  ;;  %v3980_v0 = vpop.f32.mrf.mxu1 }
 0x47a   : > { %v3427_v3 = vadd.f32 %v3979_v54, %v7329_v5 }
 0x47b   : > { %v4089_v47 = vpop.f32.mrf.mxu0  ;;  %v3981_v1 = vpop.f32.mrf.mxu1 }
 0x47c   : > { %v3982_v51 = vadd.f32 %v3981_v1, %v3980_v0 }
 0x47d   : > { %v4090_v55 = vpop.f32.mrf.mxu0 }
 0x47e   : > { %v4091_v39 = vadd.f32 %v4090_v55, %v4089_v47  ;;  %v3430_v45 = vadd.f32 %v3982_v51, %v7329_v5 }
 0x47f   : > { %v4092_v18 = vpop.f32.mrf.mxu0 }
 0x480   : > { %v3588_v12 = vadd.f32 %v4091_v39, %v3427_v3  ;;  %v3983_v17 = vpop.f32.mrf.mxu1 }
 0x481   : > { %v4093_v44 = vpop.f32.mrf.mxu0 }
 0x482   : > { %v3672_v50 = vadd.f32 %v3588_v12, %v7961_v40  ;;  %v4094_v37 = vadd.f32 %v4093_v44, %v4092_v18  ;;  %v3984_v30 = vpop.f32.mrf.mxu1  ;;  %v7967_v18 = vld [vmem:[#allocation22_spill] sm:$0xff]  ;;  %v7968_v40 = vld [vmem:[#allocation23_spill] sm:$0xff] }
 0x483   : > { %v3985_v26 = vadd.f32 %v3984_v30, %v3983_v17 }
 0x484   : > { %v4095_v56 = vpop.f32.mrf.mxu0  ;;  %3704 = vst [vmem:[%s7365_s29 + $0x70] sm:$0xff] %v3672_v50  ;;  %v3591_v4 = vadd.f32 %v4094_v37, %v3430_v45  ;;  %v3986_v16 = vpop.f32.mrf.mxu1 }
 0x485   : > { %v3435_v61 = vadd.f32 %v3985_v26, %v7329_v5 }
 0x486   : > { %v4096_v62 = vpop.f32.mrf.mxu0  ;;  %v3673_v63 = vadd.f32 %v3591_v4, %v7962_v8  ;;  %v3987_v14 = vpop.f32.mrf.mxu1 }
 0x487   : > { %v4097_v32 = vadd.f32 %v4096_v62, %v4095_v56  ;;  %v3988_v7 = vadd.f32 %v3987_v14, %v3986_v16 }
 0x488   : > { %v4098_v58 = vpop.f32.mrf.mxu0  ;;  %3705 = vst [vmem:[%s7365_s29 + $0x78] sm:$0xff] %v3673_v63 }
 0x489   : > { %v3596_v13 = vadd.f32 %v4097_v32, %v3435_v61  ;;  %v3438_v33 = vadd.f32 %v3988_v7, %v7329_v5 }
 0x48a   : > { %v4099_v10 = vpop.f32.mrf.mxu0 }
 0x48b   : > { %v3674_v53 = vadd.f32 %v3596_v13, %v7963_v2  ;;  %v4100_v43 = vadd.f32 %v4099_v10, %v4098_v58 }
 0x48c   : > { %v3989_v25 = vpop.f32.mrf.mxu1 }
 0x48d   : > { %3706 = vst [vmem:[%s7365_s29 + $0x80] sm:$0xff] %v3674_v53  ;;  %v3599_v28 = vadd.f32 %v4100_v43, %v3438_v33  ;;  %v7969_v33 = vld [vmem:[#allocation24_spill] sm:$0xff] }
 0x48e   : > { %v4101_v35 = vpop.f32.mrf.mxu0  ;;  %v3990_v38 = vpop.f32.mrf.mxu1 }
 0x48f   : > { %v3675_v59 = vadd.f32 %v3599_v28, %v7964_v41  ;;  %v3991_v42 = vadd.f32 %v3990_v38, %v3989_v25  ;;  %v7970_v41 = vld [vmem:[#allocation25_spill] sm:$0xff] }
 0x490   : > { %v4102_v9 = vpop.f32.mrf.mxu0  ;;  %v3992_v31 = vpop.f32.mrf.mxu1 }
 0x491   : > { %3707 = vst [vmem:[%s7365_s29 + $0x88] sm:$0xff] %v3675_v59  ;;  %v3443_v34 = vadd.f32 %v3991_v42, %v7329_v5  ;;  %v4103_v36 = vadd.f32 %v4102_v9, %v4101_v35 }
 0x492   : > { %v4104_v11 = vpop.f32.mrf.mxu0  ;;  %v3993_v23 = vpop.f32.mrf.mxu1 }
 0x493   : > { %v3604_v15 = vadd.f32 %v4103_v36, %v3443_v34  ;;  %v3994_v19 = vadd.f32 %v3993_v23, %v3992_v31 }
 0x494   : > { %v4105_v27 = vpop.f32.mrf.mxu0 }
 0x495   : > { %v3676_v52 = vadd.f32 %v3604_v15, %v7965_v57  ;;  %v3446_v22 = vadd.f32 %v3994_v19, %v7329_v5  ;;  %v4106_v24 = vadd.f32 %v4105_v27, %v4104_v11  ;;  %v7971_v15 = vld [vmem:[#allocation26_spill] sm:$0xff] }
 0x497   : > { %3708 = vst [vmem:[%s7365_s29 + $0x90] sm:$0xff] %v3676_v52  ;;  %v3607_v20 = vadd.f32 %v4106_v24, %v3446_v22 }
 0x499   : > { %v3677_v29 = vadd.f32 %v3607_v20, %v7966_v49 }
 0x49b   : > { %3709 = vst [vmem:[%s7365_s29 + $0x98] sm:$0xff] %v3677_v29  ;;  %v7972_v29 = vld [vmem:[#allocation27_spill] sm:$0xff] }
 0x4d1   : > { %v3995_v46 = vpop.f32.mrf.mxu1 }
 0x4d3   : > { %v3996_v21 = vpop.f32.mrf.mxu1 }
 0x4d4   : > { %v3997_v60 = vadd.f32 %v3996_v21, %v3995_v46 }
 0x4d5   : > { %v4107_v48 = vpop.f32.mrf.mxu0  ;;  %v3998_v54 = vpop.f32.mrf.mxu1 }
 0x4d6   : > { %v3451_v0 = vadd.f32 %v3997_v60, %v7329_v5 }
 0x4d7   : > { %v4108_v6 = vpop.f32.mrf.mxu0  ;;  %v3999_v3 = vpop.f32.mrf.mxu1 }
 0x4d8   : > { %v4109_v47 = vadd.f32 %v4108_v6, %v4107_v48  ;;  %v4000_v55 = vadd.f32 %v3999_v3, %v3998_v54 }
 0x4d9   : > { %v4110_v1 = vpop.f32.mrf.mxu0 }
 0x4da   : > { %v3612_v51 = vadd.f32 %v4109_v47, %v3451_v0  ;;  %v3454_v45 = vadd.f32 %v4000_v55, %v7329_v5  ;;  %v7973_v55 = vld [vmem:[#allocation28_spill] sm:$0xff] }
 0x4db   : > { %v4111_v39 = vpop.f32.mrf.mxu0 }
 0x4dc   : > { %v3678_v12 = vadd.f32 %v3612_v51, %v7967_v18  ;;  %v4112_v17 = vadd.f32 %v4111_v39, %v4110_v1 }
 0x4de   : > { %3710 = vst [vmem:[%s7365_s29 + $0xa0] sm:$0xff] %v3678_v12  ;;  %v3615_v44 = vadd.f32 %v4112_v17, %v3454_v45 }
 0x4e0   : > { %v3679_v50 = vadd.f32 %v3615_v44, %v7968_v40 }
 0x4e2   : > { %3711 = vst [vmem:[%s7365_s29 + $0xa8] sm:$0xff] %v3679_v50 }
 0x4e4   : > { %v4001_v37 = vpop.f32.mrf.mxu1 }
 0x4e6   : > { %v4002_v30 = vpop.f32.mrf.mxu1 }
 0x4e7   : > { %v4003_v56 = vadd.f32 %v4002_v30, %v4001_v37  ;;  %v7974_v37 = vld [vmem:[#allocation29_spill] sm:$0xff] }
 0x4e8   : > { %v4004_v26 = vpop.f32.mrf.mxu1  ;;  %v4113_v4 = vpop.f32.mrf.mxu0 }
 0x4e9   : > { %v3459_v16 = vadd.f32 %v4003_v56, %v7329_v5 }
 0x4ea   : > { %v4005_v61 = vpop.f32.mrf.mxu1  ;;  %v4114_v62 = vpop.f32.mrf.mxu0 }
 0x4eb   : > { %v4006_v8 = vadd.f32 %v4005_v61, %v4004_v26  ;;  %v4115_v63 = vadd.f32 %v4114_v62, %v4113_v4 }
 0x4ec   : > { %v4116_v32 = vpop.f32.mrf.mxu0 }
 0x4ed   : > { %v3620_v14 = vadd.f32 %v4115_v63, %v3459_v16  ;;  %v3462_v58 = vadd.f32 %v4006_v8, %v7329_v5 }
 0x4ee   : > { %v4117_v7 = vpop.f32.mrf.mxu0 }
 0x4ef   : > { %v4007_v13 = vpop.f32.mrf.mxu1  ;;  %v3680_v10 = vadd.f32 %v3620_v14, %v7969_v33  ;;  %v4118_v2 = vadd.f32 %v4117_v7, %v4116_v32  ;;  %v7975_v14 = vld [vmem:[#allocation30_spill] sm:$0xff] }
 0x4f0   : > { %v4119_v53 = vpop.f32.mrf.mxu0 }
 0x4f1   : > { %v4008_v43 = vpop.f32.mrf.mxu1  ;;  %3712 = vst [vmem:[%s7365_s29 + $0xb0] sm:$0xff] %v3680_v10  ;;  %v3623_v25 = vadd.f32 %v4118_v2, %v3462_v58 }
 0x4f2   : > { %v4009_v28 = vadd.f32 %v4008_v43, %v4007_v13  ;;  %v4120_v35 = vpop.f32.mrf.mxu0  ;;  %v7976_v43 = vld [vmem:[#allocation31_spill] sm:$0xff] }
 0x4f3   : > { %v4010_v38 = vpop.f32.mrf.mxu1  ;;  %v3681_v59 = vadd.f32 %v3623_v25, %v7970_v41  ;;  %v4121_v9 = vadd.f32 %v4120_v35, %v4119_v53 }
 0x4f4   : > { %v3467_v42 = vadd.f32 %v4009_v28, %v7329_v5  ;;  %v4122_v31 = vpop.f32.mrf.mxu0 }
 0x4f5   : > { %v4011_v34 = vpop.f32.mrf.mxu1  ;;  %3713 = vst [vmem:[%s7365_s29 + $0xb8] sm:$0xff] %v3681_v59 }
 0x4f6   : > { %v3628_v36 = vadd.f32 %v4121_v9, %v3467_v42  ;;  %v4012_v11 = vadd.f32 %v4011_v34, %v4010_v38  ;;  %v4123_v23 = vpop.f32.mrf.mxu0 }
 0x4f7   : > { %v4124_v57 = vadd.f32 %v4123_v23, %v4122_v31  ;;  %v4013_v52 = vpop.f32.mrf.mxu1 }
 0x4f8   : > { %v3682_v19 = vadd.f32 %v3628_v36, %v7971_v15  ;;  %v3470_v27 = vadd.f32 %v4012_v11, %v7329_v5  ;;  %v7977_v11 = vld [vmem:[#allocation32_spill] sm:$0xff] }
 0x4f9   : > { %v4125_v24 = vpop.f32.mrf.mxu0  ;;  %v4014_v20 = vpop.f32.mrf.mxu1 }
 0x4fa   : > { %3714 = vst [vmem:[%s7365_s29 + $0xc0] sm:$0xff] %v3682_v19  ;;  %v3631_v22 = vadd.f32 %v4124_v57, %v3470_v27  ;;  %v4015_v49 = vadd.f32 %v4014_v20, %v4013_v52  ;;  %v7978_v27 = vld [vmem:[#allocation33_spill] sm:$0xff] }
 0x4fb   : > { %v4126_v48 = vpop.f32.mrf.mxu0  ;;  %v4016_v21 = vpop.f32.mrf.mxu1 }
 0x4fc   : > { %v3683_v46 = vadd.f32 %v3631_v22, %v7972_v29  ;;  %v3475_v60 = vadd.f32 %v4015_v49, %v7329_v5  ;;  %v4127_v6 = vadd.f32 %v4126_v48, %v4125_v24 }
 0x4fd   : > { %v4128_v54 = vpop.f32.mrf.mxu0  ;;  %v4017_v0 = vpop.f32.mrf.mxu1 }
 0x4fe   : > { %3715 = vst [vmem:[%s7365_s29 + $0xc8] sm:$0xff] %v3683_v46  ;;  %v3636_v47 = vadd.f32 %v4127_v6, %v3475_v60  ;;  %v4018_v1 = vadd.f32 %v4017_v0, %v4016_v21 }
 0x4ff   : > { %v4129_v3 = vpop.f32.mrf.mxu0  ;;  %v4019_v51 = vpop.f32.mrf.mxu1 }
 0x500   : > { %v3684_v39 = vadd.f32 %v3636_v47, %v7973_v55  ;;  %v3478_v18 = vadd.f32 %v4018_v1, %v7329_v5  ;;  %v4130_v12 = vadd.f32 %v4129_v3, %v4128_v54 }
 0x501   : > { %v4020_v45 = vpop.f32.mrf.mxu1 }
 0x502   : > { %3716 = vst [vmem:[%s7365_s29 + $0xd0] sm:$0xff] %v3684_v39  ;;  %v3639_v17 = vadd.f32 %v4130_v12, %v3478_v18  ;;  %v4021_v44 = vadd.f32 %v4020_v45, %v4019_v51 }
 0x503   : > { %v4131_v40 = vpop.f32.mrf.mxu0  ;;  %v4022_v50 = vpop.f32.mrf.mxu1 }
 0x504   : > { %v3685_v30 = vadd.f32 %v3639_v17, %v7974_v37  ;;  %v3483_v56 = vadd.f32 %v4021_v44, %v7329_v5 }
 0x505   : > { %v4132_v26 = vpop.f32.mrf.mxu0  ;;  %v4023_v4 = vpop.f32.mrf.mxu1 }
 0x506   : > { %3717 = vst [vmem:[%s7365_s29 + $0xd8] sm:$0xff] %v3685_v30  ;;  %v4133_v16 = vadd.f32 %v4132_v26, %v4131_v40  ;;  %v4024_v61 = vadd.f32 %v4023_v4, %v4022_v50 }
 0x507   : > { %v4134_v62 = vpop.f32.mrf.mxu0 }
 0x508   : > { %v3644_v8 = vadd.f32 %v4133_v16, %v3483_v56  ;;  %v3486_v63 = vadd.f32 %v4024_v61, %v7329_v5 }
 0x509   : > { %v4135_v32 = vpop.f32.mrf.mxu0 }
 0x50a   : > { %v3686_v58 = vadd.f32 %v3644_v8, %v7975_v14  ;;  %v4136_v7 = vadd.f32 %v4135_v32, %v4134_v62  ;;  %v4025_v13 = vpop.f32.mrf.mxu1 }
 0x50c   : > { %3718 = vst [vmem:[%s7365_s29 + $0xe0] sm:$0xff] %v3686_v58  ;;  %v3647_v33 = vadd.f32 %v4136_v7, %v3486_v63  ;;  %v4026_v10 = vpop.f32.mrf.mxu1 }
 0x50d   : > { %v4137_v2 = vpop.f32.mrf.mxu0  ;;  %v4027_v53 = vadd.f32 %v4026_v10, %v4025_v13 }
 0x50e   : > { %v3687_v25 = vadd.f32 %v3647_v33, %v7976_v43  ;;  %v4028_v28 = vpop.f32.mrf.mxu1 }
 0x50f   : > { %v3491_v35 = vadd.f32 %v4027_v53, %v7329_v5  ;;  %v4138_v38 = vpop.f32.mrf.mxu0 }
 0x510   : > { %3719 = vst [vmem:[%s7365_s29 + $0xe8] sm:$0xff] %v3687_v25  ;;  %v4139_v41 = vadd.f32 %v4138_v38, %v4137_v2  ;;  %v4029_v59 = vpop.f32.mrf.mxu1 }
 0x511   : > { %v4140_v42 = vpop.f32.mrf.mxu0  ;;  %v4030_v9 = vadd.f32 %v4029_v59, %v4028_v28 }
 0x512   : > { %v3652_v31 = vadd.f32 %v4139_v41, %v3491_v35 }
 0x513   : > { %v3494_v34 = vadd.f32 %v4030_v9, %v7329_v5  ;;  %v4141_v36 = vpop.f32.mrf.mxu0 }
 0x514   : > { %v3688_v23 = vadd.f32 %v3652_v31, %v7977_v11  ;;  %v4142_v15 = vadd.f32 %v4141_v36, %v4140_v42 }
 0x516   : > { %3720 = vst [vmem:[%s7365_s29 + $0xf0] sm:$0xff] %v3688_v23  ;;  %v3655_v19 = vadd.f32 %v4142_v15, %v3494_v34 }
 0x518   : > { %v3689_v57 = vadd.f32 %v3655_v19, %v7978_v27 }
 0x51a   : > { %3721 = vst [vmem:[%s7365_s29 + $0xf8] sm:$0xff] %v3689_v57 }
 0x51b PF: > { %s20_s13 = sadd.s32 1, %s4646_s13  }
 0x51c   : > { %p17_p4 = scmp.ge.s32.totalorder %s20_s13, 4  }
 0x51e   :  { %19 = sbr.rel (!%p17_p4) target bundleno = 1 (0x1), region = 93 }

</bundles_post_ra>
